<compile_context>
chip_gen: v5e
topology: v5e:2x2
jax: 0.10.0
libtpu: 0.0.40
codegen_flags: <defaults>
</compile_context>

<pallas_src>
import numpy as np
import jax
import jax.numpy as jnp
from jax.experimental import pallas as pl
from jax.experimental.pallas import tpu as pltpu


def _round_up(x: int, m: int) -> int:
    return ((x + m - 1) // m) * m


def _nudft_fwd_kernel(imgc_ref, imgs_ref, trj_ref, rgrid_ref, out_ref):
    """One (n, t-tile, p-tile) grid step of the type-2 NUDFT.

    imgc_ref : (2*IB, tP) f32   stacked [Re(img); Im(img)]   (LHS of the cos product)
    imgs_ref : (2*IB, tP) f32   stacked [Im(img); -Re(img)]  (LHS of the sin product)
    trj_ref  : (d, tT)    f32   trajectory coords, T lane-dense
    rgrid_ref: (tP, d)    f32   2*pi * normalized pixel coords, column layout
    out_ref  : (2*IB, tT) f32   stacked [Re(ksp); Im(ksp)], resident across the P axis
    """
    d = trj_ref.shape[0]

    # Phase on the VPU (not the MXU): theta[p, t] = sum_i (2*pi*r_i[p]) * k_i[t]
    theta = rgrid_ref[:, 0:1] * trj_ref[0:1, :]
    for i in range(1, d):
        theta = theta + rgrid_ref[:, i:i + 1] * trj_ref[i:i + 1, :]

    # Transcendentals in f32 (theta reaches hundreds of radians at real MRI sizes);
    # matmul operands in bf16 (native MXU rate), accumulation in f32.
    c = jnp.cos(theta).astype(jnp.bfloat16)          # (tP, tT)
    s = jnp.sin(theta).astype(jnp.bfloat16)          # (tP, tT)

    @pl.when(pl.program_id(2) == 0)
    def _():
        out_ref[...] = jnp.zeros_like(out_ref)

    # (a + i b) * (cos - i sin) = (a c + b s) + i (b c - a s)
    #   [a; b] @ c + [b; -a] @ s = [a c + b s ; b c - a s]
    out_ref[...] += (
        jnp.dot(imgc_ref[...].astype(jnp.bfloat16), c,
                preferred_element_type=jnp.float32)
        + jnp.dot(imgs_ref[...].astype(jnp.bfloat16), s,
                  preferred_element_type=jnp.float32))


class ChebyshevNUFFT:
    """JAX/Pallas port of the forward pass of mr_recon.fourier.chebyshev_nufft.

    The Pallas path evaluates exactly the type-2 NUDFT that the torch module's
    rescale_trajectory + forward pipeline approximates, so rescale_trajectory is the
    identity here and forward consumes the physical trajectory directly.
    """

    # Pixel (reduction) / trajectory (output-lane) tiles: per-tile temporaries
    # (theta f32 + cos/sin bf16 ~= 6 MiB) + double-buffered inputs stay well inside
    # v7x's 64 MiB VMEM, and far under v5e/v6e's 128 MiB.
    _TP_MAX = 1024
    _TT_MAX = 512

    def __init__(self, im_size: tuple, n_cheby_per_dim: int = 5,
                 grid_oversamp: float = 1.0, n_batch_size=None):
        self.im_size = tuple(int(s) for s in im_size)
        self.n_cheby_per_dim = n_cheby_per_dim      # unused by the direct-NUDFT path
        self.grid_oversamp = grid_oversamp
        self.n_batch_size = n_batch_size

    def rescale_trajectory(self, trj):
        return trj

    def forward(self, img, trj):
        """
        img : complex, shape (N, *img_batch, *im_size)
        trj : float,   shape (N, *trj_batch, len(im_size)), values in [-N_i/2, N_i/2]
        returns complex k-space with shape (N, *img_batch, *trj_batch)
        """
        im_size = self.im_size
        d = len(im_size)
        N = img.shape[0]
        img_batch = img.shape[1:-d]
        trj_batch = trj.shape[1:-1]
        P = int(np.prod(im_size))
        IB = int(np.prod(img_batch)) if img_batch else 1
        T = int(np.prod(trj_batch)) if trj_batch else 1

        tP = min(self._TP_MAX, _round_up(P, 128))
        tT = min(self._TT_MAX, _round_up(T, 128))
        P_pad = _round_up(P, tP)
        T_pad = _round_up(T, tT)

        # ---- glue (plain JAX): split complex, stack planes, pad, transpose ----
        img_flt = img.reshape(N, IB, P)
        a = jnp.real(img_flt).astype(jnp.float32)
        b = jnp.imag(img_flt).astype(jnp.float32)
        img_c = jnp.concatenate([a, b], axis=1)         # [a;  b]  -> multiplies cos
        img_s = jnp.concatenate([b, -a], axis=1)        # [b; -a]  -> multiplies sin
        if P_pad != P:
            pad_p = ((0, 0), (0, 0), (0, P_pad - P))
            img_c = jnp.pad(img_c, pad_p)
            img_s = jnp.pad(img_s, pad_p)

        # trajectory transposed so T is lane-dense: (N, d, T_pad)
        trj_t = jnp.transpose(trj.reshape(N, T, d).astype(jnp.float32), (0, 2, 1))
        if T_pad != T:
            trj_t = jnp.pad(trj_t, ((0, 0), (0, 0), (0, T_pad - T)))

        # 2*pi * normalized pixel coordinates, r_i in [-1/2, 1/2); column layout (P_pad, d)
        axes = [(jnp.arange(n, dtype=jnp.float32) - (n // 2)) / n for n in im_size]
        grids = jnp.meshgrid(*axes, indexing="ij")
        rgrid = (2.0 * np.pi) * jnp.stack([g.reshape(-1) for g in grids], axis=-1)
        if P_pad != P:
            rgrid = jnp.pad(rgrid, ((0, P_pad - P), (0, 0)))

        grid = (N, T_pad // tT, P_pad // tP)
        grid_spec = pltpu.PrefetchScalarGridSpec(
            num_scalar_prefetch=0,
            grid=grid,
            in_specs=[
                pl.BlockSpec((None, 2 * IB, tP), lambda n, t, p: (n, 0, p)),  # [a; b]
                pl.BlockSpec((None, 2 * IB, tP), lambda n, t, p: (n, 0, p)),  # [b; -a]
                pl.BlockSpec((None, d, tT), lambda n, t, p: (n, 0, t)),       # trajectory
                pl.BlockSpec((tP, d), lambda n, t, p: (p, 0)),                # pixel coords
            ],
            out_specs=pl.BlockSpec((None, 2 * IB, tT), lambda n, t, p: (n, 0, t)),
        )

        out_ri = pl.pallas_call(
            _nudft_fwd_kernel,
            out_shape=jax.ShapeDtypeStruct((N, 2 * IB, T_pad), jnp.float32),
            grid_spec=grid_spec,
            compiler_params=pltpu.CompilerParams(
                dimension_semantics=("parallel", "parallel", "arbitrary"),
                vmem_limit_bytes=32 * 1024 * 1024,
            ),
        )(img_c, img_s, trj_t, rgrid)

        # assemble complex output, drop padding, ortho normalization (norm='ortho' FFT path)
        ksp = (out_ri[:, :IB, :T] + 1j * out_ri[:, IB:, :T]).astype(jnp.complex64)
        ksp = ksp / np.sqrt(P)
        return ksp.reshape((N,) + tuple(img_batch) + tuple(trj_batch))


def _reference_nufft(img, trj, im_size):
    """Pure-JAX reference of the same type-2 NUDFT definition."""
    d = len(im_size)
    axes = [(jnp.arange(n, dtype=jnp.float32) - (n // 2)) / n for n in im_size]
    grids = jnp.meshgrid(*axes, indexing="ij")
    r = jnp.stack([g.reshape(-1) for g in grids], axis=-1)            # (P, d)
    N = img.shape[0]
    P = r.shape[0]
    img_flt = img.reshape(N, -1, P)
    trj_flt = trj.reshape(N, -1, d)
    phase = jnp.exp(-2j * jnp.pi * jnp.einsum("ntd,pd->ntp", trj_flt, r))
    ksp = jnp.einsum("nip,ntp->nit",
                     img_flt.astype(jnp.complex64),
                     phase.astype(jnp.complex64)) / np.sqrt(P)
    img_batch = img.shape[1:-d]
    trj_batch = trj.shape[1:-1]
    return ksp.reshape((N,) + tuple(img_batch) + tuple(trj_batch))


if __name__ == "__main__":
    key = jax.random.PRNGKey(0)
    k1, k2, k3, k4, k5, k6 = jax.random.split(key, 6)

    # ---- test 1: 16x16 image, 4-way image batch, 128 trajectory points ----
    im_size = (16, 16)
    N, img_batch, T = 2, (4,), 128
    img = (jax.random.normal(k1, (N,) + img_batch + im_size, dtype=jnp.float32)
           + 1j * jax.random.normal(k2, (N,) + img_batch + im_size, dtype=jnp.float32)
           ).astype(jnp.complex64)
    trj = (jax.random.uniform(k3, (N, T, len(im_size)), dtype=jnp.float32) - 0.5) * 16.0

    nufft = ChebyshevNUFFT(im_size)
    ksp = nufft.forward(img, nufft.rescale_trajectory(trj))
    ksp = jax.block_until_ready(ksp)
    ref = _reference_nufft(img, trj, im_size)
    # tolerance accounts for bf16 cos/sin + image matmul operands (f32 accumulation)
    np.testing.assert_allclose(np.asarray(ksp), np.asarray(ref), atol=2e-2, rtol=2e-2)

    # ---- test 2: exercises P/T padding (P=96 -> 128, T=50 -> 128) ----
    im_size2 = (8, 12)
    N2, img_batch2, T2 = 1, (2,), 50
    img2 = (jax.random.normal(k4, (N2,) + img_batch2 + im_size2, dtype=jnp.float32)
            + 1j * jax.random.normal(k5, (N2,) + img_batch2 + im_size2, dtype=jnp.float32)
            ).astype(jnp.complex64)
    scale2 = jnp.asarray(im_size2, dtype=jnp.float32)
    trj2 = (jax.random.uniform(k6, (N2, T2, len(im_size2)), dtype=jnp.float32) - 0.5) * scale2

    nufft2 = ChebyshevNUFFT(im_size2)
    ksp2 = jax.block_until_ready(nufft2.forward(img2, nufft2.rescale_trajectory(trj2)))
    ref2 = _reference_nufft(img2, trj2, im_size2)
    np.testing.assert_allclose(np.asarray(ksp2), np.asarray(ref2), atol=2e-2, rtol=2e-2)

    print("KERNEL_OK")
</pallas_src>

<mosaic_0001>
module attributes {stable_mosaic.version = 11 : i64} {
  func.func @_nudft_fwd_kernel(%arg0: i32, %arg1: i32, %arg2: i32, %arg3: memref<1x8x256xf32, #tpu.memory_space<vmem>>, %arg4: memref<1x8x256xf32, #tpu.memory_space<vmem>>, %arg5: memref<1x2x128xf32, #tpu.memory_space<vmem>>, %arg6: memref<256x2xf32, #tpu.memory_space<vmem>>, %arg7: memref<1x8x128xf32, #tpu.memory_space<vmem>>) attributes {dimension_semantics = [#tpu.dimension_semantics<parallel>, #tpu.dimension_semantics<parallel>, #tpu.dimension_semantics<arbitrary>], iteration_bounds = array<i64: 2, 1, 1>, scalar_prefetch = 0 : i64, scratch_operands = 0 : i64, tpu.core_type = #tpu.core_type<tc>, window_params = [{transform_indices = @transform_0, window_bounds = array<i64: 1, 8, 256>}, {transform_indices = @transform_1, window_bounds = array<i64: 1, 8, 256>}, {transform_indices = @transform_2, window_bounds = array<i64: 1, 2, 128>}, {transform_indices = @transform_3, window_bounds = array<i64: 256, 2>}, {transform_indices = @transform_4, window_bounds = array<i64: 1, 8, 128>}]} {
    %c0 = arith.constant 0 : index
    %c0_0 = arith.constant 0 : index
    %0 = vector.load %arg6[%c0, %c0_0] : memref<256x2xf32, #tpu.memory_space<vmem>>, vector<256x1xf32>
    %c0_1 = arith.constant 0 : index
    %c0_2 = arith.constant 0 : index
    %c0_3 = arith.constant 0 : index
    %1 = vector.load %arg5[%c0_1, %c0_2, %c0_3] : memref<1x2x128xf32, #tpu.memory_space<vmem>>, vector<1x1x128xf32>
    %2 = vector.shape_cast %1 : vector<1x1x128xf32> to vector<1x128xf32>
    %3 = vector.broadcast %0 : vector<256x1xf32> to vector<256x128xf32>
    %4 = vector.broadcast %2 : vector<1x128xf32> to vector<256x128xf32>
    %5 = arith.mulf %3, %4 : vector<256x128xf32>
    %c0_4 = arith.constant 0 : index
    %c1 = arith.constant 1 : index
    %6 = vector.load %arg6[%c0_4, %c1] : memref<256x2xf32, #tpu.memory_space<vmem>>, vector<256x1xf32>
    %c0_5 = arith.constant 0 : index
    %c1_6 = arith.constant 1 : index
    %c0_7 = arith.constant 0 : index
    %7 = vector.load %arg5[%c0_5, %c1_6, %c0_7] : memref<1x2x128xf32, #tpu.memory_space<vmem>>, vector<1x1x128xf32>
    %8 = vector.shape_cast %7 : vector<1x1x128xf32> to vector<1x128xf32>
    %9 = vector.broadcast %6 : vector<256x1xf32> to vector<256x128xf32>
    %10 = vector.broadcast %8 : vector<1x128xf32> to vector<256x128xf32>
    %11 = arith.mulf %9, %10 : vector<256x128xf32>
    %12 = arith.addf %5, %11 : vector<256x128xf32>
    %13 = math.cos %12 : vector<256x128xf32>
    %14 = arith.truncf %13 : vector<256x128xf32> to vector<256x128xbf16>
    %15 = math.sin %12 : vector<256x128xf32>
    %16 = arith.truncf %15 : vector<256x128xf32> to vector<256x128xbf16>
    %c0_i32 = arith.constant 0 : i32
    %17 = arith.cmpi eq, %arg2, %c0_i32 : i32
    %18 = arith.extui %17 : i1 to i32
    %c0_i32_8 = arith.constant 0 : i32
    %19 = arith.cmpi ne, %18, %c0_i32_8 : i32
    scf.if %19 {
      %cst_22 = arith.constant 0.000000e+00 : f32
      %35 = vector.broadcast %cst_22 : f32 to vector<8x128xf32>
      %c0_23 = arith.constant 0 : index
      %c0_24 = arith.constant 0 : index
      %c0_25 = arith.constant 0 : index
      %36 = vector.load %arg7[%c0_23, %c0_24, %c0_25] : memref<1x8x128xf32, #tpu.memory_space<vmem>>, vector<1x8x128xf32>
      %37 = vector.shape_cast %36 : vector<1x8x128xf32> to vector<8x128xf32>
      %38 = vector.shape_cast %35 : vector<8x128xf32> to vector<1x8x128xf32>
      tpu.vector_store %arg7[%c0_23, %c0_24, %c0_25], %38 {strides = array<i32>} : memref<1x8x128xf32, #tpu.memory_space<vmem>>, vector<1x8x128xf32>,
    } else {
    }
    %c0_9 = arith.constant 0 : index
    %c0_10 = arith.constant 0 : index
    %c0_11 = arith.constant 0 : index
    %20 = vector.load %arg7[%c0_9, %c0_10, %c0_11] : memref<1x8x128xf32, #tpu.memory_space<vmem>>, vector<1x8x128xf32>
    %21 = vector.shape_cast %20 : vector<1x8x128xf32> to vector<8x128xf32>
    %c0_12 = arith.constant 0 : index
    %c0_13 = arith.constant 0 : index
    %c0_14 = arith.constant 0 : index
    %22 = vector.load %arg3[%c0_12, %c0_13, %c0_14] : memref<1x8x256xf32, #tpu.memory_space<vmem>>, vector<1x8x256xf32>
    %23 = vector.shape_cast %22 : vector<1x8x256xf32> to vector<8x256xf32>
    %24 = arith.truncf %23 : vector<8x256xf32> to vector<8x256xbf16>
    %cst = arith.constant dense<0.000000e+00> : vector<8x128xf32>
    %25 = tpu.matmul %24, %14, %cst {dimension_numbers = #tpu.dot_dimension_numbers<[1], [0], [0], [1], [0, 0, 1, 1], [], []>} : vector<8x256xbf16>, vector<256x128xbf16>, vector<8x128xf32> -> vector<8x128xf32>
    %c0_15 = arith.constant 0 : index
    %c0_16 = arith.constant 0 : index
    %c0_17 = arith.constant 0 : index
    %26 = vector.load %arg4[%c0_15, %c0_16, %c0_17] : memref<1x8x256xf32, #tpu.memory_space<vmem>>, vector<1x8x256xf32>
    %27 = vector.shape_cast %26 : vector<1x8x256xf32> to vector<8x256xf32>
    %28 = arith.truncf %27 : vector<8x256xf32> to vector<8x256xbf16>
    %cst_18 = arith.constant dense<0.000000e+00> : vector<8x128xf32>
    %29 = tpu.matmul %28, %16, %cst_18 {dimension_numbers = #tpu.dot_dimension_numbers<[1], [0], [0], [1], [0, 0, 1, 1], [], []>} : vector<8x256xbf16>, vector<256x128xbf16>, vector<8x128xf32> -> vector<8x128xf32>
    %30 = arith.addf %25, %29 : vector<8x128xf32>
    %31 = arith.addf %21, %30 : vector<8x128xf32>
    %c0_19 = arith.constant 0 : index
    %c0_20 = arith.constant 0 : index
    %c0_21 = arith.constant 0 : index
    %32 = vector.load %arg7[%c0_19, %c0_20, %c0_21] : memref<1x8x128xf32, #tpu.memory_space<vmem>>, vector<1x8x128xf32>
    %33 = vector.shape_cast %32 : vector<1x8x128xf32> to vector<8x128xf32>
    %34 = vector.shape_cast %31 : vector<8x128xf32> to vector<1x8x128xf32>
    tpu.vector_store %arg7[%c0_19, %c0_20, %c0_21], %34 {strides = array<i32>} : memref<1x8x128xf32, #tpu.memory_space<vmem>>, vector<1x8x128xf32>,
    return
  }
  func.func @transform_0(%arg0: i32, %arg1: i32, %arg2: i32) -> (i32, i32, i32) {
    %c0_i32 = arith.constant 0 : i32
    %c0_i32_0 = arith.constant 0 : i32
    return %arg0, %c0_i32, %arg2 : i32, i32, i32
  }
  func.func @transform_1(%arg0: i32, %arg1: i32, %arg2: i32) -> (i32, i32, i32) {
    %c0_i32 = arith.constant 0 : i32
    %c0_i32_0 = arith.constant 0 : i32
    return %arg0, %c0_i32, %arg2 : i32, i32, i32
  }
  func.func @transform_2(%arg0: i32, %arg1: i32, %arg2: i32) -> (i32, i32, i32) {
    %c0_i32 = arith.constant 0 : i32
    %c0_i32_0 = arith.constant 0 : i32
    return %arg0, %c0_i32, %arg1 : i32, i32, i32
  }
  func.func @transform_3(%arg0: i32, %arg1: i32, %arg2: i32) -> (i32, i32) {
    %c0_i32 = arith.constant 0 : i32
    %c0_i32_0 = arith.constant 0 : i32
    return %arg2, %c0_i32 : i32, i32
  }
  func.func @transform_4(%arg0: i32, %arg1: i32, %arg2: i32) -> (i32, i32, i32) {
    %c0_i32 = arith.constant 0 : i32
    %c0_i32_0 = arith.constant 0 : i32
    return %arg0, %c0_i32, %arg1 : i32, i32, i32
  }
}

</mosaic_0001>

<bundles_post_ra>
// kernel: tpu_custom_call.1
= control target key start
LH: loop header
LB: loop body
LE: loop exit
PB: predicated region body
PF: predicated region fallthrough
CT: control target
= control target key end

     0   :  { %9 = vsyncpa [#allocation3], 0  ;;  %s17390_s0 = inlined_call_operand.vmem [shape: f32[2,8,256], index: 0, kind: input, shape index: {}]   ;;  %s17391_s1 = inlined_call_operand.vmem [shape: f32[2,8,256], index: 1, kind: input, shape index: {}]   ;;  %s17392_s2 = inlined_call_operand.vmem [shape: f32[2,2,128], index: 2, kind: input, shape index: {}]   ;;  %s17393_s3 = inlined_call_operand.vmem [shape: f32[256,2], index: 3, kind: input, shape index: {}]   ;;  %s17394_s4 = inlined_call_operand.hbm [shape: f32[2,8,128], index: 4, kind: output, shape index: {}]  }
   0x1   :  { %11 = vsyncpa [#allocation3 + $0x1], 0  ;;  %s11297_s15 = smov 0   ;;  %s11299_s16 = smov 0  }
   0x2   :  { %s11301_s17 = smov 0   ;;  %s11303_s18 = smov 0  }
   0x3   :  { %s11305_s19 = smov 0   ;;  %s11307_s20 = smov 0  }
   0x4 LB: > { %s10869_s21 = sadd.s32 4294967295, %s11262_s20   ;;  %s10870_s22 = sadd.s32 4294967294, %s11262_s20   ;;  %s11262_s20 = sphi %s11307_s20, %s17_s20   ;;  %s11258_s19 = sphi %s11305_s19, %s18159_s19   ;;  %s11254_s18 = sphi %s11303_s18, %s18158_s18   ;;  %s11250_s17 = sphi %s11301_s17, %s18157_s17   ;;  %s11246_s16 = sphi %s11299_s16, %s18156_s16   ;;  %s11242_s15 = sphi %s11297_s15, %s18155_s15  }
   0x5   : > { %s36_s23 = sadd.s32 1, %s11258_s19  ;;  %s155_s24 = sadd.s32 1, %s11250_s17 }
   0x6   : > { %p38_p0 = scmp.ge.s32.totalorder %s36_s23, 2  ;;  %p165_p1 = scmp.ne.s32.totalorder %s11250_s17, %s11246_s16 }
   0x7   : > { %p166_p2 = scmp.eq.s32.totalorder %s10869_s21, 1  ;;  %p171_p3 = scmp.ne.s32.totalorder %s11246_s16, %s11242_s15 }
   0x8   : > { %s18161_s23 = smov (%p38_p0, %s36_s23), 0  ;;  %p172_p5 = scmp.eq.s32.totalorder %s10870_s22, 1 }
   0x9   : > { %p11337_p4 = por %p166_p2, %p165_p1  ;;  %s150_s26 = ssub.s32 %s11258_s19, %s18161_s23 }
   0xa   : > { %p10874_p6 = scmp.ge.s32.totalorder %s11262_s20, 1  ;;  %p153_p7 = scmp.eq.s32.totalorder %s150_s26, 0 }
   0xb   : > { %p11344_p8 = por %p172_p5, %p171_p3  ;;  %p235_p9 = scmp.lt.s32.totalorder %s11262_s20, 3 }
   0xc   : > { %s11350_s28 = scalar_select %p153_p7, %s11250_s17, %s155_s24  }
   0xd   : > { %p236_p10 = pnand %p10874_p6, %p235_p9 }
   0xf   : > { %239 = sbr.rel (%p236_p10) target bundleno = 1706 (0x6aa), region = 36 }
  0x14   : > { %v11355_v0 = vld [vmem:[%s17393_s3 + $0x20] sm:$0xff]  ;;  %v11360_v1 = vld [vmem:[%s17393_s3 + $0x10] sm:$0xff]  ;;  %p287_p11 = scmp.lt.s32.totalorder %s11254_s18, 1  ;;  %v17396_v3 = vmov 0   ;;  %v11386_v4 = vld [vmem:[%s17393_s3 + $0x28] sm:$0xff]  ;;  %v11265_v18 = vmov 1  }
  0x15   : > { %v11365_v2 = vld [vmem:[%s17393_s3] sm:$0xff]  ;;  %11145 = vset.pattern.permute.xlu2 %v17396_v3  ;;  %11144 = vset.pattern.permute.xlu1 %v17396_v3  ;;  %v11391_v5 = vld [vmem:[%s17393_s3 + $0x18] sm:$0xff]  ;;  %v11396_v6 = vld [vmem:[%s17393_s3 + $0x8] sm:$0xff]  ;;  %s283_s5 = sand.u32 1, %s11246_s16   ;;  %s11074_s7 = sshll.u32 %s11254_s18, 3 }
  0x16   : > { %11143 = vset.pattern.permute.xlu0 %v17396_v3  ;;  %374 = vperm.xlu2 %11145, %v11355_v0   ;;  %s11373_s9 = scalar_select %p287_p11, %s11254_s18, 1  ;;  %v327_v7 = vld [vmem:[%s17393_s3 + $0x40] sm:$0xff]  ;;  %v11407_v8 = vld [vmem:[%s17393_s3 + $0x38] sm:$0xff]  ;;  %v325_v9 = vld [vmem:[%s17393_s3 + $0x30] sm:$0xff] }
  0x17   : > { %364 = vperm.xlu1 %11144, %v11360_v1   ;;  %354 = vperm.xlu0 %11143, %v11365_v2   ;;  %v330_v10 = vld [vmem:[%s17393_s3 + $0x58] sm:$0xff]  ;;  %v329_v11 = vld [vmem:[%s17393_s3 + $0x50] sm:$0xff]  ;;  %v328_v12 = vld [vmem:[%s17393_s3 + $0x48] sm:$0xff]  ;;  %s10875_s6 = sshll.u32 %s283_s5, 3  ;;  %s10739_s11 = scalar_lea.hbm %s17394_s4, %s11074_s7 }
  0x18   : > { %s10880_s10 = sshll.u32 %s11373_s9, 1  ;;  %v334_v13 = vld [vmem:[%s17393_s3 + $0x78] sm:$0xff]  ;;  %v333_v14 = vld [vmem:[%s17393_s3 + $0x70] sm:$0xff]  ;;  %v331_v15 = vld [vmem:[%s17393_s3 + $0x60] sm:$0xff]  ;;  %s285_s12 = scalar_lea.vmem [#allocation2], %s10875_s6 }
  0x19   : > { %s11381_s13 = scalar_lea.vmem %s17392_s2, %s10880_s10  ;;  %v350_v16 = vld [vmem:[%s17393_s3 + $0xf8] sm:$0xff]  ;;  %v349_v17 = vld [vmem:[%s17393_s3 + $0xf0] sm:$0xff]  ;;  %v348_v19 = vld [vmem:[%s17393_s3 + $0xe8] sm:$0xff]  ;;  %s10741_s14 = sshll.u32 %s285_s12, 4  ;;  %s10742_s14 = int_to_ptr.vmem [resolvable:$true] %s10741_s14 }
  0x1a   : > { %v345_v20 = vld [vmem:[%s17393_s3 + $0xd0] sm:$0xff]  ;;  %v347_v21 = vld [vmem:[%s17393_s3 + $0xe0] sm:$0xff]  ;;  %v332_v22 = vld [vmem:[%s17393_s3 + $0x68] sm:$0xff]  ;;  %s10743_s21 = sshll.u32 %s10739_s11, 4  ;;  %s11204_s26 = scalar_lea.hbm %s17394_s4, 16  ;;  %s10744_s21 = int_to_ptr.hbm [resolvable:$true] %s10743_s21 }
  0x1b   : > { %v346_v23 = vld [vmem:[%s17393_s3 + $0xd8] sm:$0xff]  ;;  %v344_v24 = vld [vmem:[%s17393_s3 + $0xc8] sm:$0xff]  ;;  %v343_v27 = vld [vmem:[%s17393_s3 + $0xc0] sm:$0xff] }
  0x1c   : > { %v342_v28 = vld [vmem:[%s17393_s3 + $0xb8] sm:$0xff]  ;;  %v341_v33 = vld [vmem:[%s17393_s3 + $0xb0] sm:$0xff]  ;;  %v340_v34 = vld [vmem:[%s17393_s3 + $0xa8] sm:$0xff] }
  0x1d   : > { %v338_v41 = vld [vmem:[%s17393_s3 + $0x98] sm:$0xff]  ;;  %v339_v42 = vld [vmem:[%s17393_s3 + $0xa0] sm:$0xff]  ;;  %v336_v54 = vld [vmem:[%s17393_s3 + $0x88] sm:$0xff] }
  0x1e   : > { %379 = vperm.xlu2 %11145, %v11386_v4   ;;  %v11522_v46 = vld [vmem:[%s11381_s13 + $0x1] ss:$0 sm:$0xff]  ;;  %v11526_v47 = vld [vmem:[%s11381_s13] ss:$0 sm:$0xff]  ;;  %v337_v55 = vld [vmem:[%s17393_s3 + $0x90] sm:$0xff] }
  0x1f   : > { %369 = vperm.xlu1 %11144, %v11391_v5   ;;  %359 = vperm.xlu0 %11143, %v11396_v6  }
  0x26   : > { %394 = vperm.xlu2 %11145, %v327_v7  }
  0x27   : > { %389 = vperm.xlu1 %11144, %v11407_v8   ;;  %384 = vperm.xlu0 %11143, %v325_v9  }
  0x2e   : > { %409 = vperm.xlu2 %11145, %v330_v10  }
  0x2f   : > { %404 = vperm.xlu1 %11144, %v329_v11   ;;  %399 = vperm.xlu0 %11143, %v328_v12  }
  0x36   : > { %429 = vperm.xlu2 %11145, %v334_v13  }
  0x37   : > { %424 = vperm.xlu1 %11144, %v333_v14   ;;  %414 = vperm.xlu0 %11143, %v331_v15  }
  0x3e   : > { %11146 = vset.pattern.permute.xlu2 %v11265_v18 }
  0x3f   : > { %509 = vperm.xlu1 %11144, %v350_v16   ;;  %504 = vperm.xlu0 %11143, %v349_v17  }
  0x40   : > { %603 = vperm.xlu2 %11146, %v333_v14  }
  0x47   : > { %11147 = vset.pattern.permute.xlu1 %v11265_v18  ;;  %499 = vperm.xlu0 %11143, %v348_v19  }
  0x48   : > { %671 = vperm.xlu2 %11146, %v350_v16   ;;  %667 = vperm.xlu1 %11147, %v349_v17  }
  0x4f   : > { %484 = vperm.xlu0 %11143, %v345_v20  }
  0x50   : > { %11149 = vset.pattern.permute.xlu2 %v17396_v3  ;;  %11148 = vset.pattern.permute.xlu1 %v17396_v3 }
  0x51   : > { %494 = vperm.xlu2 %11149, %v347_v21   ;;  %419 = vperm.xlu1 %11148, %v332_v22  }
  0x57   : > { %11152 = vset.pattern.permute.xlu0 %v11265_v18 }
  0x58   : > { %607 = vperm.xlu0 %11152, %v334_v13  }
  0x59   : > { %11151 = vset.pattern.permute.xlu2 %v11265_v18  ;;  %11150 = vset.pattern.permute.xlu1 %v11265_v18 }
  0x5a   : > { %599 = vperm.xlu2 %11151, %v332_v22   ;;  %595 = vperm.xlu1 %11150, %v331_v15  }
  0x60   : > { %591 = vperm.xlu0 %11152, %v330_v10  }
  0x62   : > { %663 = vperm.xlu2 %11151, %v348_v19   ;;  %659 = vperm.xlu1 %11150, %v347_v21  }
  0x68   : > { %579 = vperm.xlu0 %11152, %v327_v7  }
  0x6a   : > { %587 = vperm.xlu2 %11151, %v329_v11   ;;  %11153 = vset.pattern.permute.xlu1 %v17396_v3 }
  0x6b   : > { %489 = vperm.xlu1 %11153, %v346_v23  }
  0x70   : > { %647 = vperm.xlu0 %11152, %v344_v24   ;;  %v11463_v25 = vpop.permute.xlu2 %374 }
  0x72   : > { %655 = vperm.xlu2 %11151, %v346_v23  }
  0x73   : > { %11154 = vset.pattern.permute.xlu1 %v11265_v18 }
  0x74   : > { %651 = vperm.xlu1 %11154, %v345_v20  }
  0x78   : > { %571 = vperm.xlu0 %11152, %v325_v9   ;;  %v11466_v26 = vpop.permute.xlu2 %379 }
  0x7a   : > { %11156 = vset.pattern.permute.xlu2 %v17396_v3 }
  0x7b   : > { %479 = vperm.xlu2 %11156, %v344_v24  }
  0x7c   : > { %11155 = vset.pattern.permute.xlu1 %v17396_v3 }
  0x7d   : > { %474 = vperm.xlu1 %11155, %v343_v27  }
  0x80   : > { %639 = vperm.xlu0 %11152, %v342_v28   ;;  %v11476_v29 = vpop.permute.xlu2 %394 }
  0x83   : > { %11158 = vset.pattern.permute.xlu2 %v11265_v18 }
  0x84   : > { %643 = vperm.xlu2 %11158, %v343_v27  }
  0x85   : > { %11157 = vset.pattern.permute.xlu1 %v11265_v18 }
  0x86   : > { %583 = vperm.xlu1 %11157, %v328_v12  }
  0x88   : > { %563 = vperm.xlu0 %11152, %v11355_v0   ;;  %v11481_v30 = vpop.permute.xlu2 %409  ;;  %v335_v0 = vld [vmem:[%s17393_s3 + $0x80] sm:$0xff] }
  0x89   : > { %v11483_v31 = vpop.permute.xlu1 %364  ;;  %v11485_v32 = vpop.permute.xlu0 %354 }
  0x8c   : > { %11160 = vset.pattern.permute.xlu2 %v17396_v3 }
  0x8d   : > { %469 = vperm.xlu2 %11160, %v342_v28  }
  0x8e   : > { %11159 = vset.pattern.permute.xlu1 %v17396_v3 }
  0x8f   : > { %464 = vperm.xlu1 %11159, %v341_v33  }
  0x90   : > { %631 = vperm.xlu0 %11152, %v340_v34   ;;  %v11499_v37 = vpop.permute.xlu2 %429 }
  0x91   : > { %v11495_v35 = vpop.permute.xlu1 %369  ;;  %v11497_v36 = vpop.permute.xlu0 %359 }
  0x95   : > { %11162 = vset.pattern.permute.xlu2 %v11265_v18 }
  0x96   : > { %635 = vperm.xlu2 %11162, %v341_v33  }
  0x97   : > { %11161 = vset.pattern.permute.xlu1 %v11265_v18 }
  0x98   : > { %575 = vperm.xlu1 %11161, %v11407_v8   ;;  %555 = vperm.xlu0 %11152, %v11360_v1   ;;  %v521_v8 = vmul.f32 %v11526_v47, %v11476_v29 }
  0x99   : > { %v11505_v38 = vpop.permute.xlu1 %389  ;;  %v11507_v39 = vpop.permute.xlu0 %384 }
  0x9a   : > { %v604_v40 = vpop.permute.xlu2 %603 }
  0x9b   : > { %v689_v48 = vmul.f32 %v11522_v46, %v604_v40 }
  0x9e   : > { %11164 = vset.pattern.permute.xlu2 %v17396_v3 }
  0x9f   : > { %459 = vperm.xlu2 %11164, %v340_v34   ;;  %v519_v34 = vmul.f32 %v11526_v47, %v11507_v39 }
  0xa0   : > { %11163 = vset.pattern.permute.xlu1 %v17396_v3  ;;  %623 = vperm.xlu0 %11152, %v338_v41  }
  0xa1   : > { %454 = vperm.xlu1 %11163, %v339_v42   ;;  %v11517_v43 = vpop.permute.xlu1 %404  ;;  %v11519_v44 = vpop.permute.xlu0 %399 }
  0xa2   : > { %v672_v45 = vpop.permute.xlu2 %671 }
  0xa3   : > { %v706_v10 = vmul.f32 %v11522_v46, %v672_v45 }
  0xa7   : > { %11166 = vset.pattern.permute.xlu2 %v11265_v18 }
  0xa8   : > { %547 = vperm.xlu0 %11152, %v11365_v2   ;;  %627 = vperm.xlu2 %11166, %v339_v42  }
  0xa9   : > { %11165 = vset.pattern.permute.xlu1 %v11265_v18  ;;  %v425_v49 = vpop.permute.xlu1 %424  ;;  %v11531_v50 = vpop.permute.xlu0 %414 }
  0xaa   : > { %v527_v51 = vmul.f32 %v11526_v47, %v425_v49  ;;  %567 = vperm.xlu1 %11165, %v11386_v4  }
  0xab   : > { %v11535_v52 = vpop.permute.xlu2 %494 }
  0xac   : > { %v11537_v53 = vadd.f32 %v689_v48, %v527_v51 }
  0xae   : > { %17668 = vst [vmem:[#allocation5_spill] sm:$0xff] %v11537_v53  ;;  %v2898_v13 = vand.u32 2139095040, %v11537_v53 }
  0xb0   : > { %615 = vperm.xlu0 %11152, %v336_v54   ;;  %11168 = vset.pattern.permute.xlu2 %v17396_v3  ;;  %v2899_v15 = vshrl.u32 %v2898_v13, 23 }
  0xb1   : > { %v505_v56 = vpop.permute.xlu0 %504  ;;  %449 = vperm.xlu2 %11168, %v338_v41  }
  0xb2   : > { %11167 = vset.pattern.permute.xlu1 %v17396_v3  ;;  %v10923_v19 = vadd.s32 4294967169, %v2899_v15  ;;  %v543_v21 = vmul.f32 %v11526_v47, %v505_v56  ;;  %v11635_v15 = vmul.f32 %v11526_v47, %v11497_v36 }
  0xb3   : > { %444 = vperm.xlu1 %11167, %v337_v55  }
  0xb4   : > { %v600_v57 = vpop.permute.xlu2 %599  ;;  %v2905_v23 = vadd.s32 1, %v10923_v19  ;;  %17677 = vst [vmem:[#allocation14_spill] sm:$0xff] %v11635_v15 }
  0xb5   : > { %v688_v49 = vmul.f32 %v11522_v46, %v600_v57  ;;  %v11605_v57 = vmul.f32 %v11526_v47, %v11466_v26  ;;  %v11624_v26 = vmul.f32 %v11526_v47, %v11485_v32  ;;  %v11643_v32 = vmul.f32 %v11526_v47, %v11519_v44 }
  0xb6   : > { %vm2906_vm0 = vcmp.gt.s32.totalorder %v2905_v23, 0 }
  0xb7   : > { %v2907_v48 = vsel %vm2906_vm0, %v2905_v23, 0  ;;  %17672 = vst [vmem:[#allocation9_spill] sm:$0xff] %v11605_v57  ;;  %v17398_v23 = vmov 2102212464  }
  0xb8   : > { %v11595_v56 = vand.u32 31, %v2907_v48  ;;  %17675 = vst [vmem:[#allocation12_spill] sm:$0xff] %v11624_v26 }
  0xb9   : > { %v500_v58 = vpop.permute.xlu0 %499  ;;  %11170 = vset.pattern.permute.xlu2 %v11265_v18 }
  0xba   : > { %619 = vperm.xlu2 %11170, %v337_v55   ;;  %v542_v60 = vmul.f32 %v11526_v47, %v500_v58 }
  0xbb   : > { %11169 = vset.pattern.permute.xlu1 %v11265_v18 }
  0xbc   : > { %v664_v59 = vpop.permute.xlu2 %663  ;;  %559 = vperm.xlu1 %11169, %v11391_v5   ;;  %v510_v5 = vpop.permute.xlu1 %509 }
  0xbd   : > { %v704_v61 = vmul.f32 %v11522_v46, %v664_v59  ;;  %v544_v11 = vmul.f32 %v11526_v47, %v510_v5 }
  0xbf   : > { %v11552_v62 = vadd.f32 %v704_v61, %v542_v60  ;;  %v11599_v60 = vmul.f32 %v11526_v47, %v11463_v25  ;;  %v523_v61 = vmul.f32 %v11526_v47, %v11517_v43  ;;  %v11618_v25 = vsub.s32 32, %v11595_v56 }
  0xc1   : > { %17669 = vst [vmem:[#allocation6_spill] sm:$0xff] %v11552_v62  ;;  %v11554_v63 = vpop.permute.xlu0 %484  ;;  %v5208_v41 = vand.u32 2139095040, %v11552_v62 }
  0xc2   : > { %11172 = vset.pattern.permute.xlu2 %v17396_v3 }
  0xc3   : > { %439 = vperm.xlu2 %11172, %v336_v54   ;;  %v5209_v39 = vshrl.u32 %v5208_v41, 23 }
  0xc4   : > { %11171 = vset.pattern.permute.xlu1 %v17396_v3  ;;  %v668_v14 = vpop.permute.xlu1 %667  ;;  %v588_v42 = vpop.permute.xlu2 %587 }
  0xc5   : > { %434 = vperm.xlu1 %11171, %v335_v0   ;;  %v705_v17 = vmul.f32 %v11522_v46, %v668_v14  ;;  %v685_v55 = vmul.f32 %v11522_v46, %v588_v42 }
  0xc7   : > { %v11581_v22 = vadd.f32 %v705_v17, %v543_v21 }
  0xc9   : > { %v5362_v28 = vand.u32 2139095040, %v11581_v22 }
  0xca   : > { %v608_v1 = vpop.permute.xlu0 %607 }
  0xcb   : > { %11174 = vset.pattern.permute.xlu2 %v11265_v18  ;;  %v5363_v40 = vshrl.u32 %v5362_v28, 23  ;;  %v690_v13 = vmul.f32 %v11522_v46, %v608_v1  ;;  %v541_v1 = vmul.f32 %v11526_v47, %v11535_v52  ;;  %v11661_v52 = vshrl.u32 %v2907_v48, 5 }
  0xcc   : > { %611 = vperm.xlu2 %11174, %v335_v0   ;;  %v420_v27 = vpop.permute.xlu1 %419  ;;  %v17395_v48 = vand.u32 2147483647, %v11581_v22 }
  0xcd   : > { %11173 = vset.pattern.permute.xlu1 %v11265_v18  ;;  %v526_v51 = vmul.f32 %v11526_v47, %v420_v27  ;;  %v10971_v58 = vadd.s32 4294967169, %v5363_v40  ;;  %vm2930_vm4 = vcmp.lt.s32.totalorder %v11661_v52, 4 }
  0xce   : > { %551 = vperm.xlu1 %11173, %v11396_v6   ;;  %v11576_v6 = vadd.f32 %v706_v10, %v544_v11  ;;  %v10968_v11 = vadd.s32 4294967169, %v5209_v39 }
  0xcf   : > { %v11609_v5 = vadd.f32 %v688_v49, %v526_v51  ;;  %v5369_v10 = vadd.s32 1, %v10971_v58 }
  0xd0   : > { %v5516_v16 = vand.u32 2139095040, %v11576_v6  ;;  %v5215_v44 = vadd.s32 1, %v10968_v11 }
  0xd1   : > { %17673 = vst [vmem:[#allocation10_spill] sm:$0xff] %v11609_v5  ;;  %vm5370_vm2 = vcmp.gt.s32.totalorder %v5369_v10, 0 }
  0xd2   : > { %v11564_v2 = vpop.permute.xlu0 %591  ;;  %v5517_v20 = vshrl.u32 %v5516_v16, 23  ;;  %v11639_v16 = vmul.f32 %v11526_v47, %v11505_v38  ;;  %vm5216_vm3 = vcmp.gt.s32.totalorder %v5215_v44, 0 }
  0xd3   : > { %v686_v58 = vmul.f32 %v11522_v46, %v11564_v2 }
  0xd4   : > { %v10974_v24 = vadd.s32 4294967169, %v5517_v20  ;;  %v596_v59 = vpop.permute.xlu1 %595  ;;  %17678 = vst [vmem:[#allocation15_spill] sm:$0xff] %v11639_v16  ;;  %v17404_v20 = vmov 1326507024  }
  0xd5   : > { %v687_v36 = vmul.f32 %v11522_v46, %v596_v59 }
  0xd6   : > { %v5523_v29 = vadd.s32 1, %v10974_v24  ;;  %v2921_v24 = vshll.u32 %v17398_v23, %v11595_v56 }
  0xd8   : > { %vm5524_vm1 = vcmp.gt.s32.totalorder %v5523_v29, 0 }
  0xd9   : > { %v5525_v0 = vsel %vm5524_vm1, %v5523_v29, 0 }
  0xda   : > { %v580_v4 = vpop.permute.xlu0 %579  ;;  %v11620_v43 = vand.u32 31, %v5525_v0  ;;  %v11679_v39 = vshrl.u32 %v5525_v0, 5 }
  0xdb   : > { %v683_v7 = vmul.f32 %v11522_v46, %v580_v4  ;;  %v524_v4 = vmul.f32 %v11526_v47, %v11481_v30  ;;  %v528_v30 = vmul.f32 %v11526_v47, %v11499_v37  ;;  %v2744_v37 = vand.u32 2139095040, %v11609_v5 }
  0xdc   : > { %v11655_v19 = vsub.s32 32, %v11620_v43  ;;  %v660_v28 = vpop.permute.xlu1 %659  ;;  %v5539_v59 = vshll.u32 %v17398_v23, %v11620_v43  ;;  %vm5548_vm5 = vcmp.lt.s32.totalorder %v11679_v39, 4 }
  0xdd   : > { %v11569_v9 = vadd.f32 %v683_v7, %v521_v8  ;;  %v11613_v7 = vmul.f32 %v11526_v47, %v11483_v31  ;;  %v11615_v8 = vadd.f32 %v685_v55, %v523_v61  ;;  %v11630_v31 = vmul.f32 %v11526_v47, %v11495_v35 }
  0xde   : > { %v525_v35 = vmul.f32 %v11526_v47, %v11531_v50  ;;  %v2925_v50 = vshrl.u32 %v17404_v20, %v11618_v25  ;;  %v11659_v21 = vadd.f32 %v690_v13, %v528_v30  ;;  %v2745_v27 = vshrl.u32 %v2744_v37, 23 }
  0xdf   : > { %17670 = vst [vmem:[#allocation7_spill] sm:$0xff] %v11569_v9  ;;  %v2282_v17 = vand.u32 2139095040, %v11615_v8  ;;  %v5543_v51 = vshrl.u32 %v17404_v20, %v11655_v19  ;;  %v5217_v30 = vsel %vm5216_vm3, %v5215_v44, 0  ;;  %v703_v0 = vmul.f32 %v11522_v46, %v660_v28 }
  0xe0   : > { %17674 = vst [vmem:[#allocation11_spill] sm:$0xff] %v11615_v8  ;;  %v11667_v41 = vadd.f32 %v687_v36, %v525_v35  ;;  %v3052_v55 = vand.u32 2139095040, %v11659_v21  ;;  %v11712_v28 = vand.u32 31, %v5217_v30 }
  0xe1   : > { %17676 = vst [vmem:[#allocation13_spill] sm:$0xff] %v11630_v31  ;;  %v2283_v40 = vshrl.u32 %v2282_v17, 23  ;;  %v11696_v17 = vand.u32 8388607, %v17395_v48 }
  0xe2   : > { %v11573_v12 = vpop.permute.xlu0 %647  ;;  %17679 = vst [vmem:[#allocation16_spill] sm:$0xff] %v11667_v41  ;;  %v2590_v37 = vand.u32 2139095040, %v11667_v41  ;;  %v3053_v44 = vshrl.u32 %v3052_v55, 23  ;;  %v11725_v55 = vadd.f32 %v703_v0, %v541_v1  ;;  %v11740_v1 = vsub.s32 32, %v11712_v28 }
  0xe3   : > { %v10911_v13 = vadd.s32 4294967169, %v2283_v40  ;;  %17682 = vst [vmem:[#allocation19_spill] sm:$0xff] %v11712_v28 }
  0xe4   : > { %17683 = vst [vmem:[#allocation20_spill] sm:$0xff] %v11725_v55 }
  0xe5   : > { %v2289_v40 = vadd.s32 1, %v10911_v13  ;;  %17684 = vst [vmem:[#allocation21_spill] sm:$0xff] %v11740_v1 }
  0xe7   : > { %vm2290_vm7 = vcmp.gt.s32.totalorder %v2289_v40, 0 }
  0xe8   : > { %v2291_v62 = vsel %vm2290_vm7, %v2289_v40, 0 }
  0xe9   : > { %v11770_v16 = vand.u32 31, %v2291_v62 }
  0xea   : > { %v572_v18 = vpop.permute.xlu0 %571 }
  0xeb   : > { %v681_v45 = vmul.f32 %v11522_v46, %v572_v18  ;;  %v17414_v18 = vmov 920167782   ;;  %17691 = vst [vmem:[#allocation26_spill] sm:$0xff] %v11770_v16 }
  0xec   : > { %v2922_v38 = vshrl.u32 %v17414_v18, %v11618_v25  ;;  %v2924_v29 = vshll.u32 %v17414_v18, %v11595_v56  ;;  %v5542_v11 = vshll.u32 %v17414_v18, %v11620_v43 }
  0xed   : > { %v11592_v54 = vadd.f32 %v681_v45, %v519_v34  ;;  %v5371_v34 = vsel %vm5370_vm2, %v5369_v10, 0  ;;  %v5540_v45 = vshrl.u32 %v17414_v18, %v11655_v19  ;;  %v10920_v10 = vadd.s32 4294967169, %v2745_v27 }
  0xee   : > { %v11669_v42 = vor.u32 %v2922_v38, %v2921_v24  ;;  %v2926_v49 = vor.u32 %v2925_v50, %v2924_v29  ;;  %v11683_v61 = vand.u32 31, %v5371_v34  ;;  %v5544_v38 = vor.u32 %v5543_v51, %v5542_v11 }
  0xef   : > { %17671 = vst [vmem:[#allocation8_spill] sm:$0xff] %v11592_v54  ;;  %v11691_v2 = vor.u32 %v5540_v45, %v5539_v59  ;;  %v11703_v50 = vadd.f32 %v686_v58, %v524_v4  ;;  %v2751_v29 = vadd.s32 1, %v10920_v10  ;;  %v2591_v45 = vshrl.u32 %v2590_v37, 23  ;;  %v656_v59 = vpop.permute.xlu2 %655  ;;  %v490_v58 = vpop.permute.xlu1 %489 }
  0xf0   : > { %v11701_v36 = vsel %vm2930_vm4, %v11669_v42, 920167782  ;;  %v11707_v24 = vsel %vm2930_vm4, %v2926_v49, 1326507024  ;;  %v11710_v27 = vsub.s32 32, %v11683_v61  ;;  %v11723_v49 = vmul.f32 %v11526_v47, %v11554_v63 }
  0xf1   : > { %17681 = vst [vmem:[#allocation18_spill] sm:$0xff] %v11703_v50  ;;  %v11719_v4 = vsel %vm5548_vm5, %v11691_v2, 920167782  ;;  %v11730_v11 = vsel %vm5548_vm5, %v5544_v38, 1326507024  ;;  %v11732_v13 = vshrl.u32 %v5371_v34, 5  ;;  %v5385_v48 = vshll.u32 %v17398_v23, %v11683_v61 }
  0xf2   : > { %v11584_v33 = vpop.permute.xlu0 %639  ;;  %v2436_v37 = vand.u32 2139095040, %v11703_v50  ;;  %v5386_v63 = vshrl.u32 %v17414_v18, %v11710_v27  ;;  %vm2752_vm6 = vcmp.gt.s32.totalorder %v2751_v29, 0  ;;  %v10917_v0 = vadd.s32 4294967169, %v2591_v45 }
  0xf3   : > { %v540_v38 = vmul.f32 %v11526_v47, %v490_v58  ;;  %v5389_v3 = vshrl.u32 %v17404_v20, %v11710_v27  ;;  %v11750_v10 = vshrl.u32 %v5217_v30, 5  ;;  %v5054_v23 = vand.u32 2139095040, %v11725_v55 }
  0xf4   : > { %v2753_v15 = vsel %vm2752_vm6, %v2751_v29, 0  ;;  %v702_v57 = vmul.f32 %v11522_v46, %v656_v59  ;;  %v2437_v45 = vshrl.u32 %v2436_v37, 23  ;;  %v17687_v58 = vmov 2102212464  }
  0xf5   : > { %17686 = vst [vmem:[#allocation23_spill] sm:$0xff] %v11750_v10  ;;  %v1974_v50 = vand.u32 2139095040, %v11569_v9  ;;  %v11759_v20 = vor.u32 %v5386_v63, %v5385_v48  ;;  %v5232_v30 = vshrl.u32 %v17414_v18, %v11740_v1  ;;  %v2597_v29 = vadd.s32 1, %v10917_v0 }
  0xf6   : > { %v17689_v37 = vmov 1326507024   ;;  %v11767_v8 = vand.u32 31, %v2753_v15  ;;  %v5055_v5 = vshrl.u32 %v5054_v23, 23  ;;  %v10914_v48 = vadd.s32 4294967169, %v2437_v45 }
  0xf7   : > { %v480_v59 = vpop.permute.xlu2 %479  ;;  %v5235_v55 = vshrl.u32 %v17689_v37, %v11740_v1  ;;  %v1975_v63 = vshrl.u32 %v1974_v50, 23  ;;  %vm5394_vm9 = vcmp.lt.s32.totalorder %v11732_v13, 4  ;;  %vm2598_vm10 = vcmp.gt.s32.totalorder %v2597_v29, 0 }
  0xf8   : > { %17690 = vst [vmem:[#allocation25_spill] sm:$0xff] %v11767_v8  ;;  %vm17510_vm11 = vcmp.lt.s32.totalorder %v11750_v10, 4  ;;  %v11784_v23 = vsub.s32 32, %v11767_v8  ;;  %v10965_v50 = vadd.s32 4294967169, %v5055_v5  ;;  %v2599_v45 = vsel %vm2598_vm10, %v2597_v29, 0 }
  0xf9   : > { %v11822_v9 = vand.u32 31, %v2599_v45 }
  0xfa   : > { %v564_v14 = vpop.permute.xlu0 %563  ;;  %17694 = vst [vmem:[#allocation29_spill] sm:$0xff] %v11784_v23 }
  0xfb   : > { %v679_v51 = vmul.f32 %v11522_v46, %v564_v14  ;;  %v10926_v14 = vadd.s32 4294967169, %v3053_v44  ;;  %v5388_v44 = vshll.u32 %v17414_v18, %v11683_v61  ;;  %17702 = vst [vmem:[#allocation36_spill] sm:$0xff] %v11822_v9 }
  0xfd   : > { %v11744_v34 = vadd.f32 %v679_v51, %v11599_v60  ;;  %v3059_v31 = vadd.s32 1, %v10926_v14  ;;  %v5231_v60 = vshll.u32 %v17687_v58, %v11712_v28  ;;  %v5234_v51 = vshll.u32 %v17414_v18, %v11712_v28 }
  0xfe   : > { %v11763_v14 = vadd.f32 %v702_v57, %v540_v38  ;;  %v5390_v40 = vor.u32 %v5389_v3, %v5388_v44  ;;  %v538_v18 = vmul.f32 %v11526_v47, %v480_v59  ;;  %v700_v57 = vmul.f32 %v11522_v46, %v11573_v12 }
  0xff   : > { %17685 = vst [vmem:[#allocation22_spill] sm:$0xff] %v11744_v34  ;;  %vm3060_vm8 = vcmp.gt.s32.totalorder %v3059_v31, 0  ;;  %v11779_v38 = vor.u32 %v5232_v30, %v5231_v60  ;;  %v11789_v12 = vsel %vm5394_vm9, %v11759_v20, 920167782  ;;  %v2443_v44 = vadd.s32 1, %v10914_v48 }
 0x100   : > { %17688 = vst [vmem:[#allocation24_spill] sm:$0xff] %v11763_v14  ;;  %v4900_v3 = vand.u32 2139095040, %v11763_v14  ;;  %v10905_v60 = vadd.s32 4294967169, %v1975_v63  ;;  %v11806_v30 = vshrl.u32 %v2753_v15, 5  ;;  %v11808_v59 = vshrl.u32 %v2291_v62, 5 }
 0x101   : > { %17693 = vst [vmem:[#allocation28_spill] sm:$0xff] %v11779_v38  ;;  %v11804_v5 = vsel %vm17510_vm11, %v11779_v38, 920167782  ;;  %v17701_v48 = vmov 920167782   ;;  %v2771_v15 = vshrl.u32 %v17689_v37, %v11784_v23  ;;  %vm2444_vm12 = vcmp.gt.s32.totalorder %v2443_v44, 0 }
 0x102   : > { %v11688_v35 = vpop.permute.xlu0 %631  ;;  %17697 = vst [vmem:[#allocation32_spill] sm:$0xff] %v11804_v5  ;;  %v2768_v29 = vshrl.u32 %v17701_v48, %v11784_v23  ;;  %v2770_v62 = vshll.u32 %v17701_v48, %v11767_v8  ;;  %vm2776_vm13 = vcmp.lt.s32.totalorder %v11806_v30, 4  ;;  %vm2314_vm15 = vcmp.lt.s32.totalorder %v11808_v59, 4 }
 0x103   : > { %17680 = vst [vmem:[#allocation17_spill] sm:$0xff] %v11688_v35  ;;  %v11843_v23 = vsub.s32 32, %v11822_v9 }
 0x104   : > { %17698 = vst [vmem:[#allocation33_spill] sm:$0xff] %v11806_v30 }
 0x105   : > { %17699 = vst [vmem:[#allocation34_spill] sm:$0xff] %v11808_v59 }
 0x106   : > { %17705 = vst [vmem:[#allocation39_spill] sm:$0xff] %v11843_v23 }
 0x10a   : > { %v556_v26 = vpop.permute.xlu0 %555 }
 0x10b   : > { %v677_v28 = vmul.f32 %v11522_v46, %v556_v26  ;;  %v5236_v26 = vor.u32 %v5235_v55, %v5234_v51  ;;  %v11797_v55 = vsub.s32 32, %v11770_v16  ;;  %v11799_v51 = vadd.f32 %v700_v57, %v538_v18 }
 0x10c   : > { %v5061_v18 = vadd.s32 1, %v10965_v50  ;;  %v2767_v57 = vshll.u32 %v17687_v58, %v11767_v8  ;;  %v2305_v50 = vshll.u32 %v17687_v58, %v11770_v16 }
 0x10d   : > { %v11776_v0 = vadd.f32 %v677_v28, %v11613_v7  ;;  %v11793_v7 = vsel %vm5394_vm9, %v5390_v40, 1326507024  ;;  %v3061_v28 = vsel %vm3060_vm8, %v3059_v31, 0  ;;  %17695 = vst [vmem:[#allocation30_spill] sm:$0xff] %v11797_v55  ;;  %v4901_v40 = vshrl.u32 %v4900_v3, 23 }
 0x10e   : > { %17696 = vst [vmem:[#allocation31_spill] sm:$0xff] %v11799_v51  ;;  %v11812_v31 = vsel %vm17510_vm11, %v5236_v26, 1326507024  ;;  %v11816_v63 = vand.u32 31, %v3061_v28  ;;  %v2306_v3 = vshrl.u32 %v17701_v48, %v11797_v55  ;;  %v1981_v26 = vadd.s32 1, %v10905_v60 }
 0x10f   : > { %17692 = vst [vmem:[#allocation27_spill] sm:$0xff] %v11776_v0  ;;  %v4592_v14 = vand.u32 2139095040, %v11799_v51  ;;  %v2309_v5 = vshrl.u32 %v17689_v37, %v11797_v55  ;;  %v10962_v38 = vadd.s32 4294967169, %v4901_v40  ;;  %v11834_v10 = vor.u32 %v2768_v29, %v2767_v57 }
 0x110   : > { %17700 = vst [vmem:[#allocation35_spill] sm:$0xff] %v11812_v31  ;;  %v652_v31 = vpop.permute.xlu1 %651  ;;  %v11837_v1 = vsub.s32 32, %v11816_v63  ;;  %v2445_v0 = vsel %vm2444_vm12, %v2443_v44, 0  ;;  %vm5062_vm14 = vcmp.gt.s32.totalorder %v5061_v18, 0  ;;  %v2772_v60 = vor.u32 %v2771_v15, %v2770_v62 }
 0x111   : > { %17703 = vst [vmem:[#allocation37_spill] sm:$0xff] %v11834_v10  ;;  %v2308_v51 = vshll.u32 %v17701_v48, %v11770_v16  ;;  %v11845_v8 = vor.u32 %v2306_v3, %v2305_v50  ;;  %vm1982_vm0 = vcmp.gt.s32.totalorder %v1981_v26, 0  ;;  %v4593_v40 = vshrl.u32 %v4592_v14, 23 }
 0x112   : > { %17704 = vst [vmem:[#allocation38_spill] sm:$0xff] %v11837_v1  ;;  %v701_v29 = vmul.f32 %v11522_v46, %v652_v31  ;;  %v11848_v55 = vand.u32 31, %v2445_v0  ;;  %v5063_v44 = vsel %vm5062_vm14, %v5061_v18, 0  ;;  %v4907_v41 = vadd.s32 1, %v10962_v38 }
 0x113   : > { %17706 = vst [vmem:[#allocation40_spill] sm:$0xff] %v11845_v8  ;;  %v2310_v57 = vor.u32 %v2309_v5, %v2308_v51  ;;  %v11853_v15 = vsel %vm2776_vm13, %v11834_v10, 920167782  ;;  %v11855_v62 = vshrl.u32 %v3061_v28, 5  ;;  %v3076_v3 = vshrl.u32 %v17701_v48, %v11837_v1 }
 0x114   : > { %17707 = vst [vmem:[#allocation41_spill] sm:$0xff] %v11848_v55  ;;  %v3079_v14 = vshrl.u32 %v17689_v37, %v11837_v1  ;;  %v3075_v51 = vshll.u32 %v17687_v58, %v11816_v63  ;;  %v3078_v5 = vshll.u32 %v17701_v48, %v11816_v63  ;;  %v2614_v38 = vshrl.u32 %v17701_v48, %v11843_v23 }
 0x115   : > { %17708 = vst [vmem:[#allocation42_spill] sm:$0xff] %v11853_v15  ;;  %v1983_v31 = vsel %vm1982_vm0, %v1981_v26, 0  ;;  %v11867_v18 = vshrl.u32 %v2599_v45, 5  ;;  %v11869_v28 = vand.u32 31, %v5063_v44  ;;  %v10956_v50 = vadd.s32 4294967169, %v4593_v40 }
 0x116   : > { %17709 = vst [vmem:[#allocation43_spill] sm:$0xff] %v11855_v62  ;;  %v11872_v16 = vadd.f32 %v701_v29, %v11723_v49  ;;  %v2613_v10 = vshll.u32 %v17687_v58, %v11822_v9  ;;  %v2617_v15 = vshrl.u32 %v17689_v37, %v11843_v23  ;;  %v11879_v35 = vsub.s32 32, %v11848_v55 }
 0x117   : > { %17710 = vst [vmem:[#allocation44_spill] sm:$0xff] %v11867_v18  ;;  %vm4908_vm1 = vcmp.gt.s32.totalorder %v4907_v41, 0  ;;  %v11883_v45 = vsel %vm2776_vm13, %v2772_v60, 1326507024  ;;  %v11885_v26 = vor.u32 %v3076_v3, %v3075_v51  ;;  %v3080_v40 = vor.u32 %v3079_v14, %v3078_v5 }
 0x118   : > { %17711 = vst [vmem:[#allocation45_spill] sm:$0xff] %v11869_v28  ;;  %v11887_v34 = vand.u32 31, %v1983_v31  ;;  %v11892_v49 = vsel %vm2314_vm15, %v11845_v8, 920167782  ;;  %v11896_v29 = vsel %vm2314_vm15, %v2310_v57, 1326507024  ;;  %v11898_v23 = vor.u32 %v2614_v38, %v2613_v10 }
 0x119   : > { %17712 = vst [vmem:[#allocation46_spill] sm:$0xff] %v11872_v16  ;;  %v2616_v60 = vshll.u32 %v17701_v48, %v11822_v9  ;;  %v11903_v3 = vsub.s32 32, %v11869_v28  ;;  %v4909_v14 = vsel %vm4908_vm1, %v4907_v41, 0  ;;  %v4599_v51 = vadd.s32 1, %v10956_v50 }
 0x11a   : > { %17713 = vst [vmem:[#allocation47_spill] sm:$0xff] %v11879_v35  ;;  %v4746_v5 = vand.u32 2139095040, %v11872_v16  ;;  %vm3084_vm2 = vcmp.lt.s32.totalorder %v11855_v62, 4  ;;  %vm2622_vm3 = vcmp.lt.s32.totalorder %v11867_v18, 4  ;;  %v2460_v10 = vshrl.u32 %v17701_v48, %v11879_v35  ;;  %v475_v18 = vpop.permute.xlu1 %474 }
 0x11b   : > { %17714 = vst [vmem:[#allocation48_spill] sm:$0xff] %v11883_v45  ;;  %v644_v45 = vpop.permute.xlu2 %643  ;;  %v11913_v57 = vsel %vm3084_vm2, %v11885_v26, 920167782  ;;  %v11917_v41 = vsel %vm3084_vm2, %v3080_v40, 1326507024  ;;  %v2463_v38 = vshrl.u32 %v17689_v37, %v11879_v35  ;;  %v11922_v50 = vsub.s32 32, %v11887_v34 }
 0x11c   : > { %17715 = vst [vmem:[#allocation49_spill] sm:$0xff] %v11885_v26  ;;  %v2459_v16 = vshll.u32 %v17687_v58, %v11848_v55  ;;  %v11933_v8 = vand.u32 31, %v4909_v14  ;;  %v2462_v40 = vshll.u32 %v17701_v48, %v11848_v55  ;;  %v5078_v35 = vshrl.u32 %v17701_v48, %v11903_v3 }
 0x11d   : > { %17716 = vst [vmem:[#allocation50_spill] sm:$0xff] %v11887_v34  ;;  %vm4600_vm6 = vcmp.gt.s32.totalorder %v4599_v51, 0  ;;  %v5077_v55 = vshll.u32 %v17687_v58, %v11869_v28  ;;  %v1998_v9 = vshrl.u32 %v17701_v48, %v11922_v50  ;;  %vm5391_vm1 = vcmp.lt.s32.totalorder %v11732_v13, 1 }
 0x11e   : > { %17717 = vst [vmem:[#allocation51_spill] sm:$0xff] %v11892_v49  ;;  %v2618_v49 = vor.u32 %v2617_v15, %v2616_v60  ;;  %v11927_v15 = vsel %vm2622_vm3, %v11898_v23, 920167782  ;;  %v11929_v60 = vshrl.u32 %v2445_v0, 5  ;;  %v11943_v30 = vor.u32 %v2460_v10, %v2459_v16 }
 0x11f   : > { %17718 = vst [vmem:[#allocation52_spill] sm:$0xff] %v11896_v29  ;;  %v4747_v29 = vshrl.u32 %v4746_v5, 23  ;;  %v11945_v0 = vshrl.u32 %v5063_v44, 5  ;;  %v2001_v5 = vshrl.u32 %v17689_v37, %v11922_v50  ;;  %v5080_v16 = vshll.u32 %v17701_v48, %v11869_v28 }
 0x120   : > { %17719 = vst [vmem:[#allocation53_spill] sm:$0xff] %v11898_v23  ;;  %v11941_v59 = vsel %vm2622_vm3, %v2618_v49, 1326507024  ;;  %v2464_v23 = vor.u32 %v2463_v38, %v2462_v40  ;;  %v11957_v49 = vshrl.u32 %v1983_v31, 5  ;;  %v11960_v44 = vsub.s32 32, %v11933_v8 }
 0x121   : > { %17720 = vst [vmem:[#allocation54_spill] sm:$0xff] %v11903_v3  ;;  %v4601_v10 = vsel %vm4600_vm6, %v4599_v51, 0  ;;  %v11962_v38 = vor.u32 %v5078_v35, %v5077_v55  ;;  %v1997_v40 = vshll.u32 %v17687_v58, %v11887_v34  ;;  %vm2468_vm7 = vcmp.lt.s32.totalorder %v11929_v60, 4 }
 0x122   : > { %17721 = vst [vmem:[#allocation55_spill] sm:$0xff] %v11913_v57  ;;  %v699_v28 = vmul.f32 %v11522_v46, %v644_v45  ;;  %v537_v31 = vmul.f32 %v11526_v47, %v475_v18  ;;  %v11973_v51 = vshrl.u32 %v4909_v14, 5  ;;  %v11975_v35 = vand.u32 31, %v4601_v10 }
 0x123   : > { %17722 = vst [vmem:[#allocation56_spill] sm:$0xff] %v11917_v41  ;;  %v11971_v26 = vor.u32 %v1998_v9, %v1997_v40  ;;  %v470_v55 = vpop.permute.xlu2 %469  ;;  %vm17513_vm8 = vcmp.lt.s32.totalorder %v11945_v0, 4  ;;  %v4924_v45 = vshrl.u32 %v17701_v48, %v11960_v44  ;;  %v4927_v9 = vshrl.u32 %v17689_v37, %v11960_v44 }
 0x124   : > { %17723 = vst [vmem:[#allocation57_spill] sm:$0xff] %v11922_v50  ;;  %v11989_v18 = vsel %vm2468_vm7, %v2464_v23, 1326507024  ;;  %vm17507_vm10 = vcmp.lt.s32.totalorder %v11957_v49, 4  ;;  %v12005_v23 = vadd.f32 %v699_v28, %v537_v31  ;;  %vm17509_vm12 = vcmp.lt.s32.totalorder %v11973_v51, 4 }
 0x125   : > { %17724 = vst [vmem:[#allocation58_spill] sm:$0xff] %v11927_v15  ;;  %v5081_v15 = vshrl.u32 %v17689_v37, %v11903_v3  ;;  %v2000_v3 = vshll.u32 %v17701_v48, %v11887_v34  ;;  %v11980_v34 = vsel %vm2468_vm7, %v11943_v30, 920167782  ;;  %v536_v28 = vmul.f32 %v11526_v47, %v470_v55 }
 0x126   : > { %17725 = vst [vmem:[#allocation59_spill] sm:$0xff] %v11929_v60  ;;  %v4615_v31 = vshll.u32 %v17687_v58, %v11975_v35  ;;  %v4438_v55 = vand.u32 2139095040, %v12005_v23  ;;  %vm5393_vm6 = vcmp.lt.s32.totalorder %v11732_v13, 3 }
 0x127   : > { %17726 = vst [vmem:[#allocation60_spill] sm:$0xff] %v11933_v8  ;;  %v5082_v50 = vor.u32 %v5081_v15, %v5080_v16  ;;  %v2002_v41 = vor.u32 %v2001_v5, %v2000_v3  ;;  %v4923_v15 = vshll.u32 %v17687_v58, %v11933_v8  ;;  %v4926_v5 = vshll.u32 %v17701_v48, %v11933_v8 }
 0x128   : > { %17727 = vst [vmem:[#allocation61_spill] sm:$0xff] %v11941_v59  ;;  %v10959_v59 = vadd.s32 4294967169, %v4747_v29  ;;  %v11994_v29 = vsel %vm17513_vm8, %v11962_v38, 920167782  ;;  %v12010_v16 = vsel %vm17507_vm10, %v11971_v26, 920167782 }
 0x129   : > { %17728 = vst [vmem:[#allocation62_spill] sm:$0xff] %v11943_v30  ;;  %v11999_v14 = vsel %vm17513_vm8, %v5082_v50, 1326507024  ;;  %v12018_v50 = vsub.s32 32, %v11975_v35  ;;  %v12020_v40 = vor.u32 %v4924_v45, %v4923_v15  ;;  %v12022_v8 = vshrl.u32 %v4601_v10, 5 }
 0x12a   : > { %17729 = vst [vmem:[#allocation63_spill] sm:$0xff] %v11945_v0  ;;  %v4753_v3 = vadd.s32 1, %v10959_v59  ;;  %v12014_v59 = vsel %vm17507_vm10, %v2002_v41, 1326507024  ;;  %v4618_v45 = vshll.u32 %v17701_v48, %v11975_v35  ;;  %v1666_v10 = vand.u32 2139095040, %v11592_v54 }
 0x12b   : > { %17730 = vst [vmem:[#allocation64_spill] sm:$0xff] %v11957_v49  ;;  %v4616_v15 = vshrl.u32 %v17701_v48, %v12018_v50  ;;  %v12048_v54 = vsel %vm17509_vm12, %v12020_v40, 920167782  ;;  %v5383_v30 = vshrl.u32 %v17687_v58, %v11710_v27  ;;  %vm17508_vm0 = vcmp.lt.s32.totalorder %v12022_v8, 4 }
 0x12c   : > { %17731 = vst [vmem:[#allocation65_spill] sm:$0xff] %v11960_v44  ;;  %v4928_v44 = vor.u32 %v4927_v9, %v4926_v5  ;;  %vm4754_vm14 = vcmp.gt.s32.totalorder %v4753_v3, 0  ;;  %v698_v9 = vmul.f32 %v11522_v46, %v11584_v33  ;;  %v4619_v5 = vshrl.u32 %v17689_v37, %v12018_v50 }
 0x12d   : > { %17732 = vst [vmem:[#allocation66_spill] sm:$0xff] %v11962_v38  ;;  %v636_v38 = vpop.permute.xlu2 %635 }
 0x12e   : > { %17733 = vst [vmem:[#allocation67_spill] sm:$0xff] %v11971_v26  ;;  %v17474_v26 = vmov 2475754826   ;;  %v12052_v33 = vsel %vm17509_vm12, %v4928_v44, 1326507024  ;;  %v12062_v44 = vmul.f32 %v11522_v46, %v636_v38 }
 0x12f   : > { %17734 = vst [vmem:[#allocation68_spill] sm:$0xff] %v11973_v51  ;;  %v5377_v41 = vshrl.u32 %v17474_v26, %v11710_v27  ;;  %v17489_v26 = vmov 683565275  }
 0x130   : > { %17735 = vst [vmem:[#allocation69_spill] sm:$0xff] %v11975_v35 }
 0x131   : > { %17736 = vst [vmem:[#allocation70_spill] sm:$0xff] %v11980_v34 }
 0x132   : > { %17737 = vst [vmem:[#allocation71_spill] sm:$0xff] %v11989_v18  ;;  %v17760_v18 = vmov 0  }
 0x133   : > { %17738 = vst [vmem:[#allocation72_spill] sm:$0xff] %v11994_v29  ;;  %v17746_v29 = vmov 2475754826  }
 0x134   : > { %17739 = vst [vmem:[#allocation73_spill] sm:$0xff] %v11999_v14  ;;  %v5379_v35 = vshll.u32 %v17746_v29, %v11683_v61 }
 0x135   : > { %17740 = vst [vmem:[#allocation74_spill] sm:$0xff] %v12005_v23  ;;  %v4755_v23 = vsel %vm4754_vm14, %v4753_v3, 0  ;;  %v4620_v3 = vor.u32 %v4619_v5, %v4618_v45  ;;  %vm5392_vm14 = vcmp.lt.s32.totalorder %v11732_v13, 2 }
 0x136   : > { %17741 = vst [vmem:[#allocation75_spill] sm:$0xff] %v12010_v16  ;;  %v584_v16 = vpop.permute.xlu1 %583 }
 0x137   : > { %17742 = vst [vmem:[#allocation76_spill] sm:$0xff] %v12014_v59  ;;  %v17476_v59 = vmov 2131351028  }
 0x138   : > { %17743 = vst [vmem:[#allocation77_spill] sm:$0xff] %v12018_v50  ;;  %v5380_v49 = vshrl.u32 %v17476_v59, %v11710_v27  ;;  %v5376_v59 = vshll.u32 %v17489_v26, %v11683_v61  ;;  %v684_v50 = vmul.f32 %v11522_v46, %v584_v16  ;;  %v17749_v26 = vmov 2131351028  }
 0x139   : > { %17744 = vst [vmem:[#allocation78_spill] sm:$0xff] %v12020_v40  ;;  %v5382_v34 = vshll.u32 %v17749_v26, %v11683_v61  ;;  %v1667_v40 = vshrl.u32 %v1666_v10, 23  ;;  %v12066_v16 = vadd.f32 %v698_v9, %v536_v28 }
 0x13a   : > { %17745 = vst [vmem:[#allocation79_spill] sm:$0xff] %v12022_v8  ;;  %v5378_v14 = vor.u32 %v5377_v41, %v5376_v59  ;;  %v5381_v0 = vor.u32 %v5380_v49, %v5379_v35  ;;  %v12068_v49 = vshrl.u32 %v4755_v23, 5  ;;  %v12071_v61 = vadd.f32 %v684_v50, %v11643_v32 }
 0x13b   : > { %17747 = vst [vmem:[#allocation80_spill] sm:$0xff] %v12048_v54  ;;  %v4439_v54 = vshrl.u32 %v4438_v55, 23  ;;  %v5384_v59 = vor.u32 %v5383_v30, %v5382_v34  ;;  %v12083_v30 = vand.u32 31, %v4755_v23  ;;  %v12085_v32 = vadd.s32 4294967169, %v1667_v40 }
 0x13c   : > { %17748 = vst [vmem:[#allocation81_spill] sm:$0xff] %v12052_v33  ;;  %v12064_v33 = vor.u32 %v4616_v15, %v4615_v31  ;;  %v5399_v46 = vsel %vm5391_vm1, %v5378_v14, %v5381_v0  ;;  %v5405_v23 = vsel %vm5393_vm6, %v11759_v20, %v11793_v7  ;;  %v17756_v40 = vor.u32 8388608, %v11696_v17 }
 0x13d   : > { %17751 = vst [vmem:[#allocation83_spill] sm:$0xff] %v12066_v16  ;;  %v5401_v38 = vsel %vm5393_vm6, %v5384_v59, %v11789_v12  ;;  %v5403_v34 = vsel %vm5391_vm1, %v5381_v0, %v5384_v59  ;;  %v12087_v35 = vadd.s32 4294967169, %v4439_v54  ;;  %v5396_v12 = vsel %vm5394_vm9, %v5384_v59, 2102212464 }
 0x13e   : > { %17750 = vst [vmem:[#allocation82_spill] sm:$0xff] %v12064_v33  ;;  %v5402_v50 = vsel %vm5392_vm14, %v5399_v46, %v5401_v38  ;;  %v12094_v28 = vsel %vm17508_vm0, %v12064_v33, 920167782  ;;  %v12104_v54 = vshll.u32 %v17756_v40, 8  ;;  %v17757_v31 = vmov 683565275  }
 0x13f   : > { %17752 = vst [vmem:[#allocation84_spill] sm:$0xff] %v12068_v49  ;;  %v5375_v41 = vshrl.u32 %v17757_v31, %v11710_v27  ;;  %v5406_v45 = vsel %vm5392_vm14, %v5403_v34, %v5405_v23  ;;  %v5432_v10 = vand.u32 65535, %v5402_v50  ;;  %v5433_v55 = vshrl.u32 %v5402_v50, 16 }
 0x140   : > { %17753 = vst [vmem:[#allocation85_spill] sm:$0xff] %v12071_v61  ;;  %v5408_v9 = vand.u32 65535, %v12104_v54  ;;  %v5409_v15 = vshrl.u32 %v12104_v54, 16  ;;  %v5410_v5 = vand.u32 65535, %v5406_v45  ;;  %v5411_v59 = vshrl.u32 %v5406_v45, 16 }
 0x141   : > { %17754 = vst [vmem:[#allocation86_spill] sm:$0xff] %v12083_v30  ;;  %v12114_v20 = vsel %vm17508_vm0, %v4620_v3, 1326507024  ;;  %v5395_v27 = vsel %vm5391_vm1, %v5375_v41, %v5378_v14  ;;  %v5397_v7 = vsel %vm5393_vm6, %v5381_v0, %v5396_v12  ;;  %v12122_v46 = vsub.s32 32, %v12083_v30 }
 0x142   : > { %17755 = vst [vmem:[#allocation87_spill] sm:$0xff] %v12094_v28  ;;  %v5413_v34 = vmul.u32 %v5411_v59, %v5408_v9  ;;  %v5414_v50 = vmul.u32 %v5410_v5, %v5409_v15  ;;  %v12127_v23 = vshll.u32 %v17687_v58, %v12083_v30  ;;  %v5435_v3 = vmul.u32 %v5433_v55, %v5408_v9 }
 0x143   : > { %17758 = vst [vmem:[#allocation88_spill] sm:$0xff] %v12114_v20  ;;  %v5436_v40 = vmul.u32 %v5432_v10, %v5409_v15  ;;  %v17500_v45 = vand.u32 2147483647, %v11576_v6  ;;  %v12132_v14 = vsel %vm5392_vm14, %v5395_v27, %v5397_v7  ;;  %v5412_v0 = vmul.u32 %v5410_v5, %v5408_v9 }
 0x144   : > { %17759 = vst [vmem:[#allocation89_spill] sm:$0xff] %v12122_v46  ;;  %v5415_v12 = vmul.u32 %v5411_v59, %v5409_v15  ;;  %v5416_v41 = vshll.u32 %v5413_v34, 16  ;;  %v5417_v17 = vshrl.u32 %v5413_v34, 16  ;;  %v5434_v33 = vmul.u32 %v5432_v10, %v5408_v9 }
 0x145   : > { %v5437_v38 = vmul.u32 %v5433_v55, %v5409_v15  ;;  %v5438_v20 = vshll.u32 %v5435_v3, 16  ;;  %v5418_v28 = vshll.u32 %v5414_v50, 16  ;;  %v5440_v51 = vshll.u32 %v5436_v40, 16 }
 0x146   : > { %vm5420_vm9 = vc.u32 %v5412_v0, %v5416_v41  ;;  %v5422_v8 = vadd.s32 %v5416_v41, %v5412_v0  ;;  %v5520_v13 = vand.u32 8388607, %v17500_v45  ;;  %v5419_v27 = vshrl.u32 %v5414_v50, 16 }
 0x147   : > { %v5421_v60 = vsel %vm5420_vm9, 1, %v17760_v18  ;;  %vm5442_vm1 = vc.u32 %v5434_v33, %v5438_v20  ;;  %v5444_v57 = vadd.s32 %v5438_v20, %v5434_v33  ;;  %v5439_v55 = vshrl.u32 %v5435_v3, 16 }
 0x148   : > { %v5423_v7 = vadd.s32 %v5421_v60, %v5415_v12  ;;  %vm5424_vm6 = vc.u32 %v5422_v8, %v5418_v28  ;;  %v5443_v5 = vsel %vm5442_vm1, 1, %v17760_v18  ;;  %v5530_v34 = vshll.u32 %v17757_v31, %v11620_v43 }
 0x149   : > { %v5425_v10 = vsel %vm5424_vm6, 1, %v17760_v18  ;;  %v5445_v9 = vadd.s32 %v5443_v5, %v5437_v38  ;;  %vm5446_vm14 = vc.u32 %v5444_v57, %v5440_v51  ;;  %v5531_v33 = vshrl.u32 %v17746_v29, %v11655_v19 }
 0x14a   : > { %v5427_v15 = vadd.s32 %v5425_v10, %v5423_v7  ;;  %v5447_v59 = vsel %vm5446_vm14, 1, %v17760_v18  ;;  %v5521_v50 = vor.u32 8388608, %v5520_v13  ;;  %v5533_v8 = vshll.u32 %v17746_v29, %v11620_v43 }
 0x14b   : > { %v5449_v20 = vadd.s32 %v5447_v59, %v5445_v9  ;;  %v5534_v60 = vshrl.u32 %v17749_v26, %v11655_v19  ;;  %v12148_v38 = vor.u32 %v5531_v33, %v5530_v34  ;;  %v5536_v3 = vshll.u32 %v17749_v26, %v11620_v43 }
 0x14c   : > { %v5428_v28 = vadd.s32 %v5427_v15, %v5417_v17  ;;  %v5537_v0 = vshrl.u32 %v17687_v58, %v11655_v19  ;;  %v5441_v12 = vshrl.u32 %v5436_v40, 16  ;;  %v12154_v41 = vadd.s32 %v5444_v57, %v5440_v51 }
 0x14d   : > { %v5450_v7 = vadd.s32 %v5449_v20, %v5439_v55  ;;  %v12156_v13 = vor.u32 %v5534_v60, %v5533_v8  ;;  %vm5545_vm9 = vcmp.lt.s32.totalorder %v11679_v39, 1  ;;  %vm5547_vm1 = vcmp.lt.s32.totalorder %v11679_v39, 3 }
 0x14e   : > { %v12158_v5 = vadd.s32 %v5428_v28, %v5419_v27  ;;  %v5538_v10 = vor.u32 %v5537_v0, %v5536_v3  ;;  %v5559_v57 = vsel %vm5547_vm1, %v11691_v2, %v11730_v11  ;;  %v12170_v51 = vshll.u32 %v5521_v50, 8  ;;  %v465_v0 = vpop.permute.xlu1 %464 }
 0x14f   : > { %v5451_v17 = vadd.s32 %v5450_v7, %v5441_v12  ;;  %v5553_v43 = vsel %vm5545_vm9, %v12148_v38, %v12156_v13  ;;  %v12174_v40 = vshll.u32 %v17701_v48, %v12083_v30  ;;  %vm5546_vm14 = vcmp.lt.s32.totalorder %v11679_v39, 2 }
 0x150   : > { %vm5454_vm6 = vc.u32 %v12158_v5, %v12154_v41  ;;  %v5555_v27 = vsel %vm5547_vm1, %v5538_v10, %v11719_v4  ;;  %v17761_v55 = vand.u32 2139095040, %v12066_v16  ;;  %v5557_v11 = vsel %vm5545_vm9, %v12156_v13, %v5538_v10 }
 0x151   : > { %v5455_v15 = vadd.s32 1, %v5451_v17  ;;  %v5556_v2 = vsel %vm5546_vm14, %v5553_v43, %v5555_v27  ;;  %v5452_v59 = vmul.u32 %v12104_v54, %v12132_v14  ;;  %v5560_v34 = vsel %vm5546_vm14, %v5557_v11, %v5559_v57 }
 0x152   : > { %v4285_v9 = vshrl.u32 %v17761_v55, 23  ;;  %v5562_v33 = vand.u32 65535, %v12170_v51  ;;  %v5563_v4 = vshrl.u32 %v12170_v51, 16  ;;  %v5564_v50 = vand.u32 65535, %v5560_v34 }
 0x153   : > { %v5456_v20 = vsel %vm5454_vm6, %v5455_v15, %v5451_v17  ;;  %v5565_v8 = vshrl.u32 %v5560_v34, 16  ;;  %v5586_v60 = vand.u32 65535, %v5556_v2  ;;  %v12196_v28 = vadd.s32 1, %v12085_v32 }
 0x154   : > { %v12199_v3 = vadd.s32 1, %v12087_v35  ;;  %v5457_v12 = vadd.s32 %v5456_v20, %v5452_v59  ;;  %v5587_v54 = vshrl.u32 %v5556_v2, 16  ;;  %v4770_v14 = vshrl.u32 %v17701_v48, %v12122_v46 }
 0x155   : > { %v17762_v7 = vand.u32 2139095040, %v12071_v61  ;;  %v5567_v57 = vmul.u32 %v5565_v8, %v5562_v33  ;;  %v5568_v17 = vmul.u32 %v5564_v50, %v5563_v4  ;;  %v12207_v27 = vshrl.u32 %v17689_v37, %v12122_v46 }
 0x156   : > { %v5458_v32 = vadd.s32 536870912, %v5457_v12  ;;  %v5589_v55 = vmul.u32 %v5587_v54, %v5562_v33  ;;  %v5590_v15 = vmul.u32 %v5586_v60, %v5563_v4  ;;  %v12209_v35 = vadd.s32 4294967169, %v4285_v9 }
 0x157   : > { %v2129_v43 = vshrl.u32 %v17762_v7, 23  ;;  %v12212_v11 = vmul.f32 %v11526_v47, %v465_v0  ;;  %v5566_v2 = vmul.u32 %v5564_v50, %v5562_v33  ;;  %v5570_v59 = vshll.u32 %v5567_v57, 16 }
 0x158   : > { %v12214_v34 = vshrl.u32 %v5458_v32, 30  ;;  %v5569_v20 = vmul.u32 %v5565_v8, %v5563_v4  ;;  %v5588_v7 = vmul.u32 %v5586_v60, %v5562_v33  ;;  %v5592_v45 = vshll.u32 %v5589_v55, 16 }
 0x159   : > { %v5572_v16 = vshll.u32 %v5568_v17, 16  ;;  %vm5574_vm6 = vc.u32 %v5566_v2, %v5570_v59  ;;  %v5576_v61 = vadd.s32 %v5570_v59, %v5566_v2  ;;  %v5591_v30 = vmul.u32 %v5587_v54, %v5563_v4 }
 0x15a   : > { %vm1674_vm10 = vcmp.gt.s32.totalorder %v12196_v28, 0  ;;  %vm4446_vm0 = vcmp.gt.s32.totalorder %v12199_v3, 0  ;;  %v5460_v9 = vshll.u32 %v12214_v34, 30  ;;  %v5575_v47 = vsel %vm5574_vm6, 1, %v17760_v18 }
 0x15b   : > { %v5594_v0 = vshll.u32 %v5590_v15, 16  ;;  %vm5596_vm12 = vc.u32 %v5588_v7, %v5592_v45  ;;  %v5577_v50 = vadd.s32 %v5575_v47, %v5569_v20  ;;  %vm5578_vm11 = vc.u32 %v5576_v61, %v5572_v16 }
 0x15c   : > { %v5597_v8 = vsel %vm5596_vm12, 1, %v17760_v18  ;;  %v5598_v33 = vadd.s32 %v5592_v45, %v5588_v7  ;;  %v12221_v60 = vsub.s32 %v5457_v12, %v5460_v9  ;;  %v5529_v4 = vshrl.u32 %v17757_v31, %v11655_v19 }
 0x15d   : > { %v5579_v54 = vsel %vm5578_vm11, 1, %v17760_v18  ;;  %v5599_v32 = vadd.s32 %v5597_v8, %v5591_v30  ;;  %v5550_v2 = vsel %vm5548_vm5, %v5538_v10, 2102212464  ;;  %v5571_v59 = vshrl.u32 %v5567_v57, 16 }
 0x15e   : > { %v5581_v46 = vadd.s32 %v5579_v54, %v5577_v50  ;;  %vm5600_vm6 = vc.u32 %v5598_v33, %v5594_v0  ;;  %vm5462_vm8 = vcmp.lt.s32.totalorder %v12221_v60, 0  ;;  %v5463_v16 = vsub.s32 0, %v12221_v60 }
 0x15f   : > { %v5601_v61 = vsel %vm5600_vm6, 1, %v17760_v18  ;;  %v17514_v45 = vand.u32 2147483647, %v11537_v53  ;;  %v5573_v12 = vshrl.u32 %v5568_v17, 16  ;;  %v5593_v19 = vshrl.u32 %v5589_v55, 16 }
 0x160   : > { %v5582_v20 = vadd.s32 %v5581_v46, %v5571_v59  ;;  %v5603_v7 = vadd.s32 %v5601_v61, %v5599_v32  ;;  %v12232_v9 = vadd.s32 4294967169, %v2129_v43  ;;  %v5464_v30 = vsel %vm5462_vm8, %v5463_v16, %v12221_v60 }
 0x161   : > { %v5549_v10 = vsel %vm5545_vm9, %v5529_v4, %v12148_v38  ;;  %v5551_v57 = vsel %vm5547_vm1, %v12156_v13, %v5550_v2  ;;  %v5465_v47 = vclz %v5464_v30  ;;  %v5595_v8 = vshrl.u32 %v5590_v15, 16 }
 0x162   : > { %v12241_v50 = vadd.s32 %v5582_v20, %v5573_v12  ;;  %v5604_v17 = vadd.s32 %v5603_v7, %v5593_v19  ;;  %v12244_v46 = vor.u32 %v4770_v14, %v12127_v23  ;;  %v4774_v43 = vor.u32 %v12207_v27, %v12174_v40 }
 0x163   : > { %v12248_v55 = vadd.s32 %v5598_v33, %v5594_v0  ;;  %v2916_v38 = vshrl.u32 %v17749_v26, %v11618_v25  ;;  %v10972_v4 = vadd.s32 4294967294, %v5465_v47  ;;  %v5552_v13 = vsel %vm5546_vm14, %v5549_v10, %v5551_v57 }
 0x164   : > { %17763 = vst [vmem:[#allocation90_spill] sm:$0xff] %v12244_v46  ;;  %v5605_v54 = vadd.s32 %v5604_v17, %v5595_v8  ;;  %v2902_v15 = vand.u32 8388607, %v17514_v45  ;;  %v2915_v23 = vshll.u32 %v17746_v29, %v11595_v56  ;;  %v2918_v40 = vshll.u32 %v17749_v26, %v11595_v56 }
 0x165   : > { %vm5608_vm5 = vc.u32 %v12241_v50, %v12248_v55  ;;  %v2919_v14 = vshrl.u32 %v17687_v58, %v11618_v25  ;;  %vm17522_vm11 = vcmp.lt.s32.totalorder %v12068_v49, 4  ;;  %v1675_v39 = vsel %vm1674_vm10, %v12196_v28, 0 }
 0x166   : > { %v4447_v27 = vsel %vm4446_vm0, %v12199_v3, 0  ;;  %vm10973_vm8 = vcmp.lt.s32.totalorder %v10972_v4, 0  ;;  %v5609_v0 = vadd.s32 1, %v5605_v54  ;;  %v5606_v32 = vmul.u32 %v12170_v51, %v5552_v13 }
 0x167   : > { %v5468_v33 = vsel %vm10973_vm8, 0, %v10972_v4  ;;  %v12272_v2 = vor.u32 %v2916_v38, %v2915_v23  ;;  %v12274_v59 = vor.u32 %v2919_v14, %v2918_v40  ;;  %v5453_v16 = vadd.s32 %v12154_v41, %v12158_v5 }
 0x168   : > { %v5469_v61 = vsub.s32 32, %v5468_v33  ;;  %v5473_v12 = vsub.s32 4294967266, %v5468_v33  ;;  %v5610_v28 = vsel %vm5608_vm5, %v5609_v0, %v5605_v54  ;;  %v2903_v3 = vor.u32 8388608, %v2902_v15 }
 0x169   : > { %v5611_v20 = vadd.s32 %v5610_v28, %v5606_v32  ;;  %v2913_v19 = vshrl.u32 %v17746_v29, %v11618_v25  ;;  %vm2927_vm10 = vcmp.lt.s32.totalorder %v11661_v52, 1  ;;  %v5470_v51 = vshll.u32 %v12221_v60, %v5468_v33 }
 0x16a   : > { %v5471_v7 = vshrl.u32 %v5453_v16, %v5469_v61  ;;  %v5474_v30 = vadd.s32 127, %v5473_v12  ;;  %vm2929_vm12 = vcmp.lt.s32.totalorder %v11661_v52, 3  ;;  %v2912_v5 = vshll.u32 %v17757_v31, %v11595_v56 }
 0x16b   : > { %v5612_v41 = vadd.s32 536870912, %v5611_v20  ;;  %v2939_v10 = vsel %vm2927_vm10, %v12272_v2, %v12274_v59  ;;  %v2941_v57 = vsel %vm2929_vm12, %v11669_v42, %v11707_v24  ;;  %v12296_v47 = vshrl.u32 %v1675_v39, 5 }
 0x16c   : > { %v12298_v60 = vand.u32 31, %v1675_v39  ;;  %v5472_v8 = vor.u32 %v5471_v7, %v5470_v51  ;;  %v5475_v17 = vshll.u32 %v5474_v30, 23  ;;  %v12300_v38 = vshrl.u32 %v4447_v27, 5 }
 0x16d   : > { %17764 = vst [vmem:[#allocation91_spill] sm:$0xff] %v12296_v47  ;;  %vm5361_vm0 = vcmp.lt.s32.totalorder %v11581_v22, 0  ;;  %v12303_v56 = vshrl.u32 %v5612_v41, 30  ;;  %v12305_v4 = vor.u32 %v2913_v19, %v2912_v5  ;;  %vm2928_vm9 = vcmp.lt.s32.totalorder %v11661_v52, 2 }
 0x16e   : > { %17765 = vst [vmem:[#allocation92_spill] sm:$0xff] %v12298_v60  ;;  %v12308_v13 = vand.u32 31, %v4447_v27  ;;  %v17768_v42 = vand.u32 2147483647, %v11581_v22  ;;  %v5476_v54 = vor.u32 4788187, %v5475_v17  ;;  %v2942_v15 = vsel %vm2928_vm9, %v2939_v10, %v2941_v57 }
 0x16f   : > { %17766 = vst [vmem:[#allocation93_spill] sm:$0xff] %v12300_v38  ;;  %v12318_v23 = vshll.u32 %v2903_v3, 8  ;;  %v12323_v40 = vsel %vm17522_vm11, %v12244_v46, 920167782  ;;  %v12327_v14 = vsel %vm17522_vm11, %v4774_v43, 1326507024  ;;  %v5479_v16 = vcvt.s32.f32 %v5472_v8 }
 0x170   : > { %17767 = vst [vmem:[#allocation94_spill] sm:$0xff] %v12308_v13  ;;  %vm12312_vm1 = vcmp.le.f32.partialorder %v17768_v42, 0.7853982  ;;  %v4291_v39 = vadd.s32 1, %v12209_v35  ;;  %v5614_v27 = vshll.u32 %v12303_v56, 30  ;;  %v12332_v0 = vsub.s32 32, %v12298_v60 }
 0x171   : > { %17771 = vst [vmem:[#allocation95_spill] sm:$0xff] %v12323_v40  ;;  %v2135_v33 = vadd.s32 1, %v12232_v9  ;;  %v5477_v32 = vand.u32 2147483647, %v5476_v54  ;;  %v1689_v61 = vshll.u32 %v17687_v58, %v12298_v60  ;;  %v2935_v43 = vsel %vm2927_vm10, %v12305_v4, %v12272_v2 }
 0x172   : > { %17772 = vst [vmem:[#allocation96_spill] sm:$0xff] %v12327_v14  ;;  %v12337_v12 = vsub.s32 %v5611_v20, %v5614_v27  ;;  %v2947_v35 = vshrl.u32 %v2942_v15, 16  ;;  %v2937_v3 = vsel %vm2929_vm12, %v12274_v59, %v11701_v36  ;;  %v2944_v9 = vand.u32 65535, %v12318_v23 }
 0x173   : > { %17773 = vst [vmem:[#allocation97_spill] sm:$0xff] %v12332_v0  ;;  %v5480_v28 = vmul.f32 %v5479_v16, %v5477_v32  ;;  %v2946_v19 = vand.u32 65535, %v2942_v15  ;;  %v12350_v51 = vshll.u32 %v17701_v48, %v12298_v60  ;;  %v12353_v20 = vsub.s32 32, %v12308_v13 }
 0x174   : > { %vm5616_vm14 = vcmp.lt.s32.totalorder %v12337_v12, 0  ;;  %v5617_v7 = vsub.s32 0, %v12337_v12  ;;  %v12359_v30 = vshll.u32 %v17687_v58, %v12308_v13  ;;  %v2945_v36 = vshrl.u32 %v12318_v23, 16 }
 0x175   : > { %17774 = vst [vmem:[#allocation98_spill] sm:$0xff] %v12353_v20  ;;  %v5481_v41 = vxor.u32 2147483648, %v5480_v28  ;;  %v12362_v5 = vmul.u32 %v2947_v35, %v2944_v9  ;;  %v1690_v10 = vshrl.u32 %v17701_v48, %v12332_v0  ;;  %v12368_v57 = vshll.u32 %v17701_v48, %v12308_v13 }
 0x176   : > { %v5618_v8 = vsel %vm5616_vm14, %v5617_v7, %v12337_v12  ;;  %v2938_v17 = vsel %vm2928_vm9, %v2935_v43, %v2937_v3  ;;  %v12375_v15 = vmul.u32 %v2946_v19, %v2945_v36  ;;  %v12380_v32 = vshrl.u32 %v17689_v37, %v12332_v0 }
 0x177   : > { %v5482_v42 = vsel %vm5361_vm0, %v5481_v41, %v5480_v28  ;;  %v5619_v54 = vclz %v5618_v8  ;;  %v2952_v27 = vshll.u32 %v12362_v5, 16  ;;  %vm4292_vm6 = vcmp.gt.s32.totalorder %v4291_v39, 0 }
 0x178   : > { %v12385_v16 = vsel %vm12312_vm1, %v11581_v22, %v5482_v42  ;;  %v2948_v7 = vmul.u32 %v2946_v19, %v2944_v9  ;;  %v4462_v43 = vshrl.u32 %v17701_v48, %v12353_v20  ;;  %vm2136_vm5 = vcmp.gt.s32.totalorder %v2135_v33, 0 }
 0x179   : > { %v12391_v28 = vmul.f32 %v12385_v16, %v12385_v16  ;;  %v10975_v3 = vadd.s32 4294967294, %v5619_v54  ;;  %v2968_v8 = vand.u32 65535, %v2938_v17  ;;  %v2969_v45 = vshrl.u32 %v2938_v17, 16 }
 0x17a   : > { %vm2956_vm8 = vc.u32 %v2948_v7, %v2952_v27  ;;  %v2958_v41 = vadd.s32 %v2952_v27, %v2948_v7  ;;  %v12395_v60 = vshrl.u32 %v17689_v37, %v12353_v20  ;;  %v2954_v19 = vshll.u32 %v12375_v15, 16 }
 0x17b   : > { %v5495_v42 = vmul.f32 -0.00019511016, %v12391_v28  ;;  %vm10976_vm14 = vcmp.lt.s32.totalorder %v10975_v3, 0  ;;  %v5607_v0 = vadd.s32 %v12248_v55, %v12241_v50  ;;  %v2957_v46 = vsel %vm2956_vm8, 1, %v17760_v18 }
 0x17c   : > { %v5622_v13 = vsel %vm10976_vm14, 0, %v10975_v3  ;;  %v2971_v54 = vmul.u32 %v2969_v45, %v2944_v9  ;;  %v2951_v7 = vmul.u32 %v2947_v35, %v2945_v36  ;;  %vm2960_vm11 = vc.u32 %v2958_v41, %v2954_v19 }
 0x17d   : > { %v5496_v14 = vadd.f32 0.008332121, %v5495_v42  ;;  %v5623_v27 = vsub.s32 32, %v5622_v13  ;;  %v4293_v17 = vsel %vm4292_vm6, %v4291_v39, 0  ;;  %v2137_v20 = vsel %vm2136_vm5, %v2135_v33, 0 }
 0x17e   : > { %v5627_v40 = vsub.s32 4294967266, %v5622_v13  ;;  %v12404_v49 = vmul.u32 %v2968_v8, %v2945_v36  ;;  %v5488_v53 = vmul.f32 -0.001358992, %v12391_v28  ;;  %v2959_v26 = vadd.s32 %v2957_v46, %v2951_v7 }
 0x17f   : > { %v5625_v62 = vshrl.u32 %v5607_v0, %v5623_v27  ;;  %v2970_v50 = vmul.u32 %v2968_v8, %v2944_v9  ;;  %v5624_v55 = vshll.u32 %v12337_v12, %v5622_v13  ;;  %v2961_v42 = vsel %vm2960_vm11, 1, %v17760_v18 }
 0x180   : > { %v5628_v3 = vadd.s32 127, %v5627_v40  ;;  %v2974_v29 = vshll.u32 %v2971_v54, 16  ;;  %v12409_v35 = vor.u32 %v1690_v10, %v1689_v61  ;;  %v1694_v39 = vor.u32 %v12380_v32, %v12350_v51 }
 0x181   : > { %v5497_v33 = vmul.f32 %v5496_v14, %v12391_v28  ;;  %v2976_v41 = vshll.u32 %v12404_v49, 16  ;;  %v5626_v19 = vor.u32 %v5625_v62, %v5624_v55  ;;  %v12415_v0 = vshrl.u32 %v4293_v17, 5 }
 0x182   : > { %17775 = vst [vmem:[#allocation99_spill] sm:$0xff] %v12409_v35  ;;  %v5629_v1 = vshll.u32 %v5628_v3, 23  ;;  %vm2978_vm6 = vc.u32 %v2970_v50, %v2974_v29  ;;  %v2980_v46 = vadd.s32 %v2974_v29, %v2970_v50  ;;  %v5489_v13 = vadd.f32 0.041655596, %v5488_v53 }
 0x183   : > { %17776 = vst [vmem:[#allocation100_spill] sm:$0xff] %v12415_v0  ;;  %v2963_v40 = vadd.s32 %v2961_v42, %v2959_v26  ;;  %v2973_v12 = vmul.u32 %v2969_v45, %v2945_v36  ;;  %v5483_v9 = vsub.s32 4, %v12214_v34  ;;  %v2979_v10 = vsel %vm2978_vm6, 1, %v17760_v18 }
 0x184   : > { %v5630_v61 = vor.u32 4788187, %v5629_v1  ;;  %vm2982_vm11 = vc.u32 %v2980_v46, %v2976_v41  ;;  %vm17535_vm5 = vcmp.lt.s32.totalorder %v12296_v47, 4  ;;  %v5498_v14 = vadd.f32 -0.16666654, %v5497_v33 }
 0x185   : > { %v2953_v51 = vshrl.u32 %v12362_v5, 16  ;;  %v2981_v62 = vadd.s32 %v2979_v10, %v2973_v12  ;;  %v2983_v32 = vsel %vm2982_vm11, 1, %v17760_v18  ;;  %v12423_v29 = vor.u32 %v4462_v43, %v12359_v30 }
 0x186   : > { %v12425_v53 = vand.u32 31, %v4293_v17  ;;  %v5631_v26 = vand.u32 2147483647, %v5630_v61  ;;  %v5633_v45 = vcvt.s32.f32 %v5626_v19  ;;  %v4466_v1 = vor.u32 %v12395_v60, %v12368_v57 }
 0x187   : > { %17777 = vst [vmem:[#allocation101_spill] sm:$0xff] %v12423_v29  ;;  %v5490_v36 = vmul.f32 %v5489_v13, %v12391_v28  ;;  %v2964_v8 = vadd.s32 %v2963_v40, %v2953_v51  ;;  %v2985_v27 = vadd.s32 %v2983_v32, %v2981_v62  ;;  %v12430_v7 = vshrl.u32 %v2137_v20, 5 }
 0x188   : > { %17778 = vst [vmem:[#allocation102_spill] sm:$0xff] %v12425_v53  ;;  %v5634_v5 = vmul.f32 %v5633_v45, %v5631_v26  ;;  %v2932_v50 = vsel %vm2930_vm4, %v12274_v59, 2102212464  ;;  %v2975_v30 = vshrl.u32 %v2971_v54, 16  ;;  %vm17555_vm8 = vcmp.lt.s32.totalorder %v12300_v38, 4 }
 0x189   : > { %17779 = vst [vmem:[#allocation103_spill] sm:$0xff] %v12430_v7  ;;  %v5484_v43 = vsel %vm5361_vm0, %v5483_v9, %v12214_v34  ;;  %v5499_v60 = vmul.f32 %v5498_v14, %v12391_v28  ;;  %v2911_v57 = vshrl.u32 %v17757_v31, %v11618_v25  ;;  %v2955_v17 = vshrl.u32 %v12375_v15, 16 }
 0x18a   : > { %v17780_v55 = vand.u32 2147483647, %v11576_v6  ;;  %vm5515_vm4 = vcmp.lt.s32.totalorder %v11576_v6, 0  ;;  %v5635_v59 = vxor.u32 2147483648, %v5634_v5  ;;  %v2986_v54 = vadd.s32 %v2985_v27, %v2975_v30 }
 0x18b   : > { %v5491_v42 = vadd.f32 -0.4999988, %v5490_v36  ;;  %v2931_v34 = vsel %vm2927_vm10, %v2911_v57, %v12305_v4  ;;  %v2933_v25 = vsel %vm2929_vm12, %v12272_v2, %v2932_v50  ;;  %v12456_v15 = vadd.s32 %v2964_v8, %v2955_v17 }
 0x18c   : > { %vm12445_vm14 = vcmp.le.f32.partialorder %v17780_v55, 0.7853982  ;;  %v5486_v33 = vsel %vm12312_vm1, 0, %v5484_v43  ;;  %v5636_v19 = vsel %vm5515_vm4, %v5635_v59, %v5634_v5  ;;  %v5637_v13 = vsub.s32 4, %v12303_v56 }
 0x18d   : > { %v2977_v40 = vshrl.u32 %v12404_v49, 16  ;;  %v12464_v12 = vand.u32 31, %v2137_v20  ;;  %v5500_v9 = vadd.f32 1.0, %v5499_v60  ;;  %v5639_v4 = vsel %vm12445_vm14, %v11576_v6, %v5636_v19 }
 0x18e   : > { %v12469_v2 = vadd.s32 %v2980_v46, %v2976_v41  ;;  %v12474_v24 = vsel %vm17535_vm5, %v12409_v35, 920167782  ;;  %v5641_v61 = vmul.f32 %v5639_v4, %v5639_v4  ;;  %v2934_v10 = vsel %vm2928_vm9, %v2931_v34, %v2933_v25 }
 0x18f   : > { %17783 = vst [vmem:[#allocation104_spill] sm:$0xff] %v12464_v12  ;;  %v2987_v14 = vadd.s32 %v2986_v54, %v2977_v40  ;;  %v12480_v49 = vsel %vm17535_vm5, %v1694_v39, 1326507024  ;;  %v5492_v20 = vmul.f32 %v5491_v42, %v12391_v28  ;;  %v10477_v51 = vadd.s32 3, %v5486_v33 }
 0x190   : > { %17784 = vst [vmem:[#allocation105_spill] sm:$0xff] %v12474_v24  ;;  %vm2990_vm10 = vc.u32 %v12456_v15, %v12469_v2  ;;  %v5638_v41 = vsel %vm5515_vm4, %v5637_v13, %v12303_v56  ;;  %v5642_v46 = vmul.f32 -0.001358992, %v5641_v61  ;;  %v5649_v62 = vmul.f32 -0.00019511016, %v5641_v61 }
 0x191   : > { %17785 = vst [vmem:[#allocation106_spill] sm:$0xff] %v12480_v49  ;;  %v2991_v32 = vadd.s32 1, %v2987_v14  ;;  %v12489_v52 = vsub.s32 32, %v12425_v53  ;;  %v12493_v39 = vshll.u32 %v17687_v58, %v12425_v53  ;;  %v5501_v28 = vmul.f32 %v5500_v9, %v12385_v16 }
 0x192   : > { %v2988_v26 = vmul.u32 %v12318_v23, %v2934_v10  ;;  %v12500_v45 = vsel %vm17555_vm8, %v12423_v29, 920167782  ;;  %v5643_v56 = vadd.f32 0.041655596, %v5642_v46  ;;  %v5650_v36 = vadd.f32 0.008332121, %v5649_v62 }
 0x193   : > { %17786 = vst [vmem:[#allocation107_spill] sm:$0xff] %v12489_v52  ;;  %v2992_v8 = vsel %vm2990_vm10, %v2991_v32, %v2987_v14  ;;  %v5493_v27 = vadd.f32 1.0, %v5492_v20  ;;  %v5640_v5 = vsel %vm12445_vm14, 0, %v5638_v41  ;;  %v5503_v50 = vand.u32 3, %v5486_v33 }
 0x194   : > { %17787 = vst [vmem:[#allocation108_spill] sm:$0xff] %v12500_v45  ;;  %v2993_v30 = vadd.s32 %v2992_v8, %v2988_v26  ;;  %v12506_v43 = vsel %vm17555_vm8, %v4466_v1, 1326507024  ;;  %v5644_v16 = vmul.f32 %v5643_v56, %v5641_v61  ;;  %v5651_v23 = vmul.f32 %v5650_v36, %v5641_v61 }
 0x195   : > { %17788 = vst [vmem:[#allocation109_spill] sm:$0xff] %v12506_v43  ;;  %v10478_v60 = vand.u32 3, %v10477_v51  ;;  %v4308_v57 = vshrl.u32 %v17701_v48, %v12489_v52  ;;  %v12512_v17 = vshll.u32 %v17701_v48, %v12425_v53  ;;  %v12516_v55 = vshrl.u32 %v17689_v37, %v12489_v52 }
 0x196   : > { %v5506_v3 = vxor.u32 2147483648, %v5501_v28  ;;  %v12519_v59 = vsub.s32 32, %v12464_v12  ;;  %v5645_v1 = vadd.f32 -0.4999988, %v5644_v16  ;;  %v5652_v54 = vadd.f32 -0.16666654, %v5651_v23 }
 0x197   : > { %v10632_v42 = vadd.s32 3, %v5640_v5  ;;  %vm5502_vm12 = vweird.f32 %v11581_v22  ;;  %v5509_v34 = vxor.u32 2147483648, %v5493_v27  ;;  %vm5504_vm0 = vcmp.lt.s32.totalorder %v5503_v50, 2 }
 0x198   : > { %17789 = vst [vmem:[#allocation110_spill] sm:$0xff] %v12519_v59  ;;  %v2994_v25 = vadd.s32 536870912, %v2993_v30  ;;  %v5646_v33 = vmul.f32 %v5645_v1, %v5641_v61  ;;  %v5653_v19 = vmul.f32 %v5652_v54, %v5641_v61  ;;  %vm10480_vm9 = vcmp.eq.s32.totalorder %v10478_v60, 0 }
 0x199   : > { %vm5505_vm1 = vcmp.eq.s32.totalorder %v5503_v50, 0  ;;  %v10482_v13 = vsel %vm10480_vm9, %v5493_v27, %v5506_v3  ;;  %vm5508_vm6 = vcmp.eq.s32.totalorder %v5503_v50, 2  ;;  %v5657_v9 = vand.u32 3, %v5640_v5 }
 0x19a   : > { %v5507_v40 = vsel %vm5505_vm1, %v5493_v27, %v5506_v3  ;;  %v5647_v10 = vadd.f32 1.0, %v5646_v33  ;;  %v5654_v14 = vadd.f32 1.0, %v5653_v19  ;;  %vm10483_vm11 = vcmp.eq.s32.totalorder %v10478_v60, 2 }
 0x19b   : > { %v10633_v20 = vand.u32 3, %v10632_v42  ;;  %vm10479_vm14 = vcmp.lt.s32.totalorder %v10478_v60, 2  ;;  %v10485_v51 = vsel %vm10483_vm11, %v5509_v34, %v5501_v28  ;;  %v5510_v41 = vsel %vm5508_vm6, %v5509_v34, %v5501_v28 }
 0x19c   : > { %v12522_v46 = vshrl.u32 %v2994_v25, 30  ;;  %v5655_v62 = vmul.f32 %v5654_v14, %v5639_v4  ;;  %v5663_v32 = vxor.u32 2147483648, %v5647_v10  ;;  %v10486_v26 = vsel %vm10479_vm14, %v10482_v13, %v10485_v51 }
 0x19d   : > { %v5511_v61 = vsel %vm5504_vm0, %v5507_v40, %v5510_v41  ;;  %vm5658_vm4 = vcmp.lt.s32.totalorder %v5657_v9, 2  ;;  %vm5659_vm10 = vcmp.eq.s32.totalorder %v5657_v9, 0  ;;  %v17536_v36 = vand.u32 2147483647, %v11659_v21  ;;  %v460_v40 = vpop.permute.xlu2 %459 }
 0x19e   : > { %v2996_v56 = vshll.u32 %v12522_v46, 30  ;;  %v5660_v8 = vxor.u32 2147483648, %v5655_v62  ;;  %vm10634_vm9 = vcmp.lt.s32.totalorder %v10633_v20, 2  ;;  %vm10635_vm1 = vcmp.eq.s32.totalorder %v10633_v20, 0 }
 0x19f   : > { %vm5662_vm5 = vcmp.eq.s32.totalorder %v5657_v9, 2  ;;  %v10487_v28 = vsel %vm5502_vm12, nan, %v10486_v26  ;;  %vm10638_vm6 = vcmp.eq.s32.totalorder %v10633_v20, 2  ;;  %v5512_v4 = vsel %vm5502_vm12, nan, %v5511_v61  ;;  %v12573_v61 = vld [vmem:[%s11381_s13] ss:$0 sm:$0xff] }
 0x1a0   : > { %v12531_v27 = vsub.s32 %v2993_v30, %v2996_v56  ;;  %vm17553_vm0 = vcmp.lt.s32.totalorder %v12415_v0, 4  ;;  %v10637_v5 = vsel %vm10635_vm1, %v5647_v10, %v5660_v8  ;;  %v10640_v50 = vsel %vm10638_vm6, %v5663_v32, %v5655_v62 }
 0x1a1   : > { %v5661_v16 = vsel %vm5659_vm10, %v5647_v10, %v5660_v8  ;;  %v5664_v23 = vsel %vm5662_vm5, %v5663_v32, %v5655_v62  ;;  %vm5656_vm11 = vweird.f32 %v11576_v6  ;;  %v10641_v60 = vsel %vm10634_vm9, %v10637_v5, %v10640_v50  ;;  %v17795_v62 = vld [vmem:[#allocation22_spill] sm:$0xff] }
 0x1a2   : > { %v5665_v3 = vsel %vm5658_vm4, %v5661_v16, %v5664_v23  ;;  %v3056_v1 = vand.u32 8388607, %v17536_v36  ;;  %v10642_v54 = vsel %vm5656_vm11, nan, %v10641_v60  ;;  %vm2998_vm12 = vcmp.lt.s32.totalorder %v12531_v27, 0  ;;  %v12590_v23 = vld [vmem:[%s11381_s13 + $0x1] ss:$0 sm:$0xff] }
 0x1a3   : > { %v5666_v42 = vsel %vm5656_vm11, nan, %v5665_v3  ;;  %v2999_v22 = vsub.s32 0, %v12531_v27  ;;  %v2151_v30 = vshll.u32 %v17687_v58, %v12464_v12  ;;  %v12544_v34 = vadd.f32 %v12062_v44, %v12212_v11  ;;  %v17797_v60 = vld [vmem:[#allocation17_spill] sm:$0xff] }
 0x1a4   : > { %v10658_v6 = vpack.c.bf16 %v10642_v54, %v10487_v28  ;;  %v5682_v25 = vpack.c.bf16 %v5666_v42, %v5512_v4  ;;  %v12547_v33 = vor.u32 %v4308_v57, %v12493_v39  ;;  %v4312_v19 = vor.u32 %v12516_v55, %v12512_v17  ;;  %v17792_v55 = vld [vmem:[#allocation38_spill] sm:$0xff] }
 0x1a5   : > { %17790 = vst [vmem:[#allocation111_spill] sm:$0xff] %v12544_v34  ;;  %v12553_v13 = vshll.u32 %v17701_v48, %v12464_v12  ;;  %v3000_v9 = vsel %vm2998_vm12, %v2999_v22, %v12531_v27  ;;  %v2152_v44 = vshrl.u32 %v17701_v48, %v12519_v59  ;;  %v12560_v11 = vshrl.u32 %v17689_v37, %v12519_v59 }
 0x1a6   : > { %17791 = vst [vmem:[#allocation112_spill] sm:$0xff] %v12547_v33  ;;  %10686 = vmatpush.bf16.msra.mxu1 %v10658_v6  ;;  %10712 = vmatpush.bf16.msra.mxu3 %v5682_v25  ;;  %v3001_v39 = vclz %v3000_v9  ;;  %v3057_v57 = vor.u32 8388608, %v3056_v1  ;;  %v3066_v17 = vshll.u32 %v17757_v31, %v11816_v63  ;;  %v17793_v10 = vmov 2475754826  }
 0x1a7   : > { %v3067_v14 = vshrl.u32 %v17793_v10, %v17792_v55  ;;  %v3069_v20 = vshll.u32 %v17793_v10, %v11816_v63  ;;  %v17794_v51 = vmov 2131351028   ;;  %v1358_v32 = vand.u32 2139095040, %v17795_v62 }
 0x1a8   : > { %v3070_v41 = vshrl.u32 %v17794_v51, %v17792_v55  ;;  %v4130_v26 = vand.u32 2139095040, %v12544_v34  ;;  %v534_v56 = vmul.f32 %v12573_v61, %v460_v40  ;;  %v10924_v8 = vadd.s32 4294967294, %v3001_v39  ;;  %v17800_v39 = vld [vmem:[#allocation56_spill] sm:$0xff] }
 0x1a9   : > { %v12576_v28 = vor.u32 %v3067_v14, %v3066_v17  ;;  %v3072_v5 = vshll.u32 %v17794_v51, %v11816_v63  ;;  %v3073_v50 = vshrl.u32 %v17687_v58, %v17792_v55  ;;  %v12587_v16 = vsel %vm17553_vm0, %v12547_v33, 920167782  ;;  %v17798_v63 = vld [vmem:[#allocation43_spill] sm:$0xff] }
 0x1aa   : > { %v12578_v4 = vor.u32 %v3070_v41, %v3069_v20  ;;  %17796 = vst [vmem:[#allocation38_spill] sm:$0xff] %v12587_v16  ;;  %v696_v3 = vmul.f32 %v12590_v23, %v17797_v60  ;;  %v2989_v1 = vadd.s32 %v12469_v2, %v12456_v15  ;;  %vm10925_vm5 = vcmp.lt.s32.totalorder %v10924_v8, 0  ;;  %v17799_v15 = vld [vmem:[#allocation55_spill] sm:$0xff] }
 0x1ab   : > { %v3004_v54 = vsel %vm10925_vm5, 0, %v10924_v8  ;;  %v12596_v42 = vor.u32 %v3073_v50, %v3072_v5  ;;  %vm3081_vm14 = vcmp.lt.s32.totalorder %v17798_v63, 1  ;;  %v12599_v22 = vshll.u32 %v3057_v57, 8  ;;  %v17801_v57 = vld [vmem:[#allocation49_spill] sm:$0xff] }
 0x1ac   : > { %v3005_v6 = vsub.s32 32, %v3004_v54  ;;  %v3009_v25 = vsub.s32 4294967266, %v3004_v54  ;;  %vm3083_vm4 = vcmp.lt.s32.totalorder %v17798_v63, 3  ;;  %v3089_v40 = vsel %vm3081_vm14, %v12576_v28, %v12578_v4 }
 0x1ad   : > { %vm3082_vm10 = vcmp.lt.s32.totalorder %v17798_v63, 2  ;;  %v3091_v2 = vsel %vm3083_vm4, %v12596_v42, %v17799_v15  ;;  %v3093_v9 = vsel %vm3081_vm14, %v12578_v4, %v12596_v42  ;;  %v3095_v17 = vsel %vm3083_vm4, %v17801_v57, %v17800_v39 }
 0x1ae   : > { %v3006_v14 = vshll.u32 %v12531_v27, %v3004_v54  ;;  %v3007_v20 = vshrl.u32 %v2989_v1, %v3005_v6  ;;  %v3010_v41 = vadd.s32 127, %v3009_v25  ;;  %v3092_v8 = vsel %vm3082_vm10, %v3089_v40, %v3091_v2 }
 0x1af   : > { %v12624_v5 = vsel %vm17553_vm0, %v4312_v19, 1326507024  ;;  %v12626_v50 = vor.u32 %v2152_v44, %v2151_v30  ;;  %v3096_v60 = vsel %vm3082_vm10, %v3093_v9, %v3095_v17  ;;  %v3098_v15 = vand.u32 65535, %v12599_v22  ;;  %v17805_v9 = vld [vmem:[#allocation5_spill] sm:$0xff] }
 0x1b0   : > { %17802 = vst [vmem:[#allocation17_spill] sm:$0xff] %v12624_v5  ;;  %v3008_v36 = vor.u32 %v3007_v20, %v3006_v14  ;;  %v3011_v39 = vshll.u32 %v3010_v41, 23  ;;  %v3100_v57 = vand.u32 65535, %v3096_v60  ;;  %v3101_v27 = vshrl.u32 %v3096_v60, 16  ;;  %v17816_v14 = vld [vmem:[#allocation61_spill] sm:$0xff] }
 0x1b1   : > { %17803 = vst [vmem:[#allocation43_spill] sm:$0xff] %v12626_v50  ;;  %v3099_v54 = vshrl.u32 %v12599_v22, 16  ;;  %v3122_v6 = vand.u32 65535, %v3092_v8  ;;  %v3123_v25 = vshrl.u32 %v3092_v8, 16  ;;  %v12634_v19 = vshrl.u32 %v1358_v32, 23 }
 0x1b2   : > { %v12636_v30 = vshrl.u32 %v4130_v26, 23  ;;  %v3012_v44 = vor.u32 4788187, %v3011_v39  ;;  %v3103_v40 = vmul.u32 %v3101_v27, %v3098_v15  ;;  %v12638_v2 = vadd.f32 %v696_v3, %v534_v56 }
 0x1b3   : > { %v17806_v17 = vand.u32 2147483647, %v17805_v9  ;;  %v3104_v20 = vmul.u32 %v3100_v57, %v3099_v54  ;;  %v3125_v41 = vmul.u32 %v3123_v25, %v3098_v15  ;;  %v3015_v1 = vcvt.s32.f32 %v3008_v36 }
 0x1b4   : > { %17804 = vst [vmem:[#allocation55_spill] sm:$0xff] %v12638_v2  ;;  %v3013_v60 = vand.u32 2147483647, %v3012_v44  ;;  %v3102_v62 = vmul.u32 %v3100_v57, %v3098_v15  ;;  %v3106_v8 = vshll.u32 %v3103_v40, 16  ;;  %v3105_v32 = vmul.u32 %v3101_v27, %v3099_v54 }
 0x1b5   : > { %vm12642_vm9 = vcmp.le.f32.partialorder %v17806_v17, 0.7853982  ;;  %v3124_v24 = vmul.u32 %v3122_v6, %v3098_v15  ;;  %v3126_v26 = vmul.u32 %v3122_v6, %v3099_v54  ;;  %v3128_v35 = vshll.u32 %v3125_v41, 16 }
 0x1b6   : > { %v3016_v39 = vmul.f32 %v3015_v1, %v3013_v60  ;;  %v3108_v49 = vshll.u32 %v3104_v20, 16  ;;  %vm3110_vm1 = vc.u32 %v3102_v62, %v3106_v8  ;;  %v3112_v56 = vadd.s32 %v3106_v8, %v3102_v62 }
 0x1b7   : > { %vm17554_vm6 = vcmp.lt.s32.totalorder %v12430_v7, 4  ;;  %vm2897_vm11 = vcmp.lt.s32.totalorder %v17805_v9, 0  ;;  %v3111_v3 = vsel %vm3110_vm1, 1, %v17760_v18  ;;  %v3127_v17 = vmul.u32 %v3123_v25, %v3099_v54 }
 0x1b8   : > { %vm3132_vm12 = vc.u32 %v3124_v24, %v3128_v35  ;;  %v3017_v44 = vxor.u32 2147483648, %v3016_v39  ;;  %v3113_v36 = vadd.s32 %v3111_v3, %v3105_v32  ;;  %vm3114_vm5 = vc.u32 %v3112_v56, %v3108_v49 }
 0x1b9   : > { %v3133_v57 = vsel %vm3132_vm12, 1, %v17760_v18  ;;  %v3115_v15 = vsel %vm3114_vm5, 1, %v17760_v18  ;;  %v3130_v27 = vshll.u32 %v3126_v26, 16  ;;  %v3134_v1 = vadd.s32 %v3128_v35, %v3124_v24 }
 0x1ba   : > { %v3135_v6 = vadd.s32 %v3133_v57, %v3127_v17  ;;  %v3018_v62 = vsel %vm2897_vm11, %v3017_v44, %v3016_v39  ;;  %v3019_v60 = vsub.s32 4, %v12522_v46  ;;  %v3107_v8 = vshrl.u32 %v3103_v40, 16  ;;  %v628_v39 = vpop.permute.xlu2 %627  ;;  %v17809_v17 = vld [vmem:[#allocation16_spill] sm:$0xff] }
 0x1bb   : > { %v3117_v47 = vadd.s32 %v3115_v15, %v3113_v36  ;;  %v12657_v54 = vsel %vm12642_vm9, %v17805_v9, %v3018_v62  ;;  %v3065_v49 = vshrl.u32 %v17757_v31, %v17792_v55  ;;  %v3086_v35 = vsel %vm3084_vm2, %v12596_v42, 2102212464  ;;  %v576_v36 = vpop.permute.xlu1 %575 }
 0x1bc   : > { %vm3136_vm1 = vc.u32 %v3134_v1, %v3130_v27  ;;  %v12666_v24 = vmul.f32 %v12657_v54, %v12657_v54  ;;  %v3109_v25 = vshrl.u32 %v3104_v20, 16  ;;  %v3129_v3 = vshrl.u32 %v3125_v41, 16 }
 0x1bd   : > { %v3118_v40 = vadd.s32 %v3117_v47, %v3107_v8  ;;  %v3137_v32 = vsel %vm3136_vm1, 1, %v17760_v18  ;;  %v3085_v56 = vsel %vm3081_vm14, %v3065_v49, %v12576_v28  ;;  %v17540_v44 = vand.u32 2147483647, %v17809_v17 }
 0x1be   : > { %v3139_v55 = vadd.s32 %v3137_v32, %v3135_v6  ;;  %v3024_v42 = vmul.f32 -0.001358992, %v12666_v24  ;;  %v3031_v57 = vmul.f32 -0.00019511016, %v12666_v24  ;;  %v3087_v47 = vsel %vm3083_vm4, %v12578_v4, %v3086_v35 }
 0x1bf   : > { %v12678_v20 = vadd.s32 %v3118_v40, %v3109_v25  ;;  %v12681_v15 = vmul.f32 %v12590_v23, %v628_v39  ;;  %v3131_v62 = vshrl.u32 %v3126_v26, 16  ;;  %v12683_v28 = vadd.s32 %v3134_v1, %v3130_v27  ;;  %v17811_v40 = vld [vmem:[#allocation39_spill] sm:$0xff] }
 0x1c0   : > { %v3140_v41 = vadd.s32 %v3139_v55, %v3129_v3  ;;  %v12688_v6 = vsel %vm17554_vm6, %v12626_v50, 920167782  ;;  %v3020_v8 = vsel %vm2897_vm11, %v3019_v60, %v12522_v46  ;;  %v3025_v49 = vadd.f32 0.041655596, %v3024_v42  ;;  %v17812_v46 = vld [vmem:[#allocation36_spill] sm:$0xff] }
 0x1c1   : > { %17810 = vst [vmem:[#allocation56_spill] sm:$0xff] %v12688_v6  ;;  %v3032_v4 = vadd.f32 0.008332121, %v3031_v57  ;;  %v3088_v35 = vsel %vm3082_vm10, %v3085_v56, %v3087_v47  ;;  %vm3144_vm2 = vc.u32 %v12678_v20, %v12683_v28  ;;  %v2594_v26 = vand.u32 8388607, %v17540_v44 }
 0x1c2   : > { %v3141_v25 = vadd.s32 %v3140_v41, %v3131_v62  ;;  %v3026_v27 = vmul.f32 %v3025_v49, %v12666_v24  ;;  %v2605_v32 = vshrl.u32 %v17793_v10, %v17811_v40  ;;  %v2607_v60 = vshll.u32 %v17793_v10, %v17812_v46 }
 0x1c3   : > { %v3033_v1 = vmul.f32 %v3032_v4, %v12666_v24  ;;  %v2608_v63 = vshrl.u32 %v17794_v51, %v17811_v40  ;;  %v2610_v56 = vshll.u32 %v17794_v51, %v17812_v46  ;;  %v2611_v3 = vshrl.u32 %v17687_v58, %v17811_v40 }
 0x1c4   : > { %v3145_v39 = vadd.s32 1, %v3141_v25  ;;  %v17813_v55 = vor.u32 %v12560_v11, %v12553_v13  ;;  %v682_v57 = vmul.f32 %v12590_v23, %v576_v36  ;;  %v3142_v62 = vmul.u32 %v12599_v22, %v3088_v35  ;;  %v450_v36 = vpop.permute.xlu2 %449  ;;  %v624_v35 = vpop.permute.xlu0 %623 }
 0x1c5   : > { %v3034_v47 = vadd.f32 -0.16666654, %v3033_v1  ;;  %v2604_v49 = vshll.u32 %v17757_v31, %v17812_v46  ;;  %v2609_v4 = vor.u32 %v2608_v63, %v2607_v60  ;;  %v2612_v44 = vor.u32 %v2611_v3, %v2610_v56 }
 0x1c6   : > { %v12716_v42 = vsel %vm17554_vm6, %v17813_v55, 1326507024  ;;  %v3146_v41 = vsel %vm3144_vm2, %v3145_v39, %v3141_v25  ;;  %v10893_v16 = vadd.s32 4294967169, %v12634_v19  ;;  %v10947_v33 = vadd.s32 4294967169, %v12636_v30  ;;  %v455_v25 = vpop.permute.xlu1 %454  ;;  %v17815_v39 = vld [vmem:[#allocation44_spill] sm:$0xff] }
 0x1c7   : > { %17814 = vst [vmem:[#allocation49_spill] sm:$0xff] %v12716_v42  ;;  %v3022_v13 = vsel %vm12642_vm9, 0, %v3020_v8  ;;  %v3147_v11 = vadd.s32 %v3146_v41, %v3142_v62  ;;  %v3027_v1 = vadd.f32 -0.4999988, %v3026_v27  ;;  %v2595_v5 = vor.u32 8388608, %v2594_v26  ;;  %v17817_v8 = vld [vmem:[#allocation53_spill] sm:$0xff] }
 0x1c8   : > { %v2606_v22 = vor.u32 %v2605_v32, %v2604_v49  ;;  %v3035_v46 = vmul.f32 %v3034_v47, %v12666_v24  ;;  %vm2619_vm14 = vcmp.lt.s32.totalorder %v17815_v39, 1  ;;  %vm2621_vm4 = vcmp.lt.s32.totalorder %v17815_v39, 3  ;;  %v17818_v27 = vld [vmem:[#allocation15_spill] sm:$0xff] }
 0x1c9   : > { %v3148_v60 = vadd.s32 536870912, %v3147_v11  ;;  %v7997_v19 = vadd.s32 3, %v3022_v13  ;;  %vm2620_vm10 = vcmp.lt.s32.totalorder %v17815_v39, 2  ;;  %v2631_v30 = vsel %vm2619_vm14, %v2609_v4, %v2612_v44 }
 0x1ca   : > { %v2633_v26 = vsel %vm2621_vm4, %v17817_v8, %v17816_v14  ;;  %v12738_v32 = vadd.f32 %v682_v57, %v17818_v27  ;;  %v12741_v63 = vmul.f32 %v12573_v61, %v450_v36  ;;  %v12748_v47 = vmul.f32 %v12590_v23, %v624_v35 }
 0x1cb   : > { %v12743_v56 = vshrl.u32 %v3148_v60, 30  ;;  %v2634_v3 = vsel %vm2620_vm10, %v2631_v30, %v2633_v26  ;;  %v12751_v62 = vmul.f32 %v12573_v61, %v455_v25  ;;  %v3028_v41 = vmul.f32 %v3027_v1, %v12666_v24  ;;  %v17820_v60 = vld [vmem:[#allocation58_spill] sm:$0xff] }
 0x1cc   : > { %17819 = vst [vmem:[#allocation5_spill] sm:$0xff] %v12738_v32  ;;  %v12754_v49 = vshll.u32 %v2595_v5, 8  ;;  %v3036_v57 = vadd.f32 1.0, %v3035_v46  ;;  %v2627_v36 = vsel %vm2619_vm14, %v2606_v22, %v2609_v4  ;;  %v2629_v30 = vsel %vm2621_vm4, %v2612_v44, %v17820_v60 }
 0x1cd   : > { %v3150_v14 = vshll.u32 %v12743_v56, 30  ;;  %v12762_v8 = vadd.s32 1, %v10893_v16  ;;  %v12764_v35 = vand.u32 3, %v7997_v19  ;;  %v2638_v61 = vand.u32 65535, %v2634_v3 }
 0x1ce   : > { %v2639_v25 = vshrl.u32 %v2634_v3, 16  ;;  %v12768_v5 = vand.u32 3, %v3022_v13  ;;  %v2603_v24 = vshrl.u32 %v17757_v31, %v17811_v40  ;;  %v2624_v1 = vsel %vm2622_vm3, %v2612_v44, 2102212464 }
 0x1cf   : > { %v12766_v26 = vsub.s32 %v3147_v11, %v3150_v14  ;;  %v12774_v46 = vadd.f32 1.0, %v3028_v41  ;;  %v2630_v16 = vsel %vm2620_vm10, %v2627_v36, %v2629_v30  ;;  %v2636_v19 = vand.u32 65535, %v12754_v49 }
 0x1d0   : > { %v2637_v27 = vshrl.u32 %v12754_v49, 16  ;;  %v12780_v3 = vadd.s32 1, %v10947_v33  ;;  %v12783_v13 = vmul.f32 %v3036_v57, %v12657_v54  ;;  %v2623_v44 = vsel %vm2619_vm14, %v2603_v24, %v2606_v22 }
 0x1d1   : > { %vm3152_vm9 = vcmp.lt.s32.totalorder %v12766_v26, 0  ;;  %v3153_v40 = vsub.s32 0, %v12766_v26  ;;  %v2625_v11 = vsel %vm2621_vm4, %v2609_v4, %v2624_v1  ;;  %v2641_v41 = vmul.u32 %v2639_v25, %v2636_v19 }
 0x1d2   : > { %v12791_v14 = vmul.u32 %v2638_v61, %v2637_v27  ;;  %vm8003_vm3 = vcmp.eq.s32.totalorder %v12764_v35, 2  ;;  %v2660_v33 = vand.u32 65535, %v2630_v16  ;;  %v2661_v54 = vshrl.u32 %v2630_v16, 16 }
 0x1d3   : > { %v3154_v36 = vsel %vm3152_vm9, %v3153_v40, %v12766_v26  ;;  %v3045_v57 = vxor.u32 2147483648, %v12774_v46  ;;  %v3143_v60 = vadd.s32 %v12683_v28, %v12678_v20  ;;  %vm3044_vm11 = vcmp.eq.s32.totalorder %v12768_v5, 2 }
 0x1d4   : > { %v3155_v30 = vclz %v3154_v36  ;;  %v12802_v4 = vsel %vm2620_vm10, %v2623_v44, %v2625_v11  ;;  %v2640_v24 = vmul.u32 %v2638_v61, %v2636_v19  ;;  %v2644_v1 = vshll.u32 %v2641_v41, 16 }
 0x1d5   : > { %vm3051_vm12 = vcmp.lt.s32.totalorder %v11659_v21, 0  ;;  %v3173_v16 = vsub.s32 4, %v12743_v56  ;;  %vm8000_vm5 = vcmp.eq.s32.totalorder %v12764_v35, 0  ;;  %v2643_v55 = vmul.u32 %v2639_v25, %v2637_v27 }
 0x1d6   : > { %v10927_v40 = vadd.s32 4294967294, %v3155_v30  ;;  %v2646_v20 = vshll.u32 %v12791_v14, 16  ;;  %vm2648_vm1 = vc.u32 %v2640_v24, %v2644_v1  ;;  %v2650_v28 = vadd.s32 %v2644_v1, %v2640_v24 }
 0x1d7   : > { %v2663_v36 = vmul.u32 %v2661_v54, %v2636_v19  ;;  %v2664_v22 = vmul.u32 %v2660_v33, %v2637_v27  ;;  %v12811_v39 = vsel %vm8003_vm3, %v3045_v57, %v12783_v13  ;;  %v2649_v61 = vsel %vm2648_vm1, 1, %v17760_v18 }
 0x1d8   : > { %vm10928_vm2 = vcmp.lt.s32.totalorder %v10927_v40, 0  ;;  %v2662_v44 = vmul.u32 %v2660_v33, %v2636_v19  ;;  %v2651_v30 = vadd.s32 %v2649_v61, %v2643_v55  ;;  %vm2652_vm14 = vc.u32 %v2650_v28, %v2646_v20 }
 0x1d9   : > { %v3158_v11 = vsel %vm10928_vm2, 0, %v10927_v40  ;;  %v2666_v0 = vshll.u32 %v2663_v36, 16  ;;  %v2645_v52 = vshrl.u32 %v2641_v41, 16  ;;  %v2653_v24 = vsel %vm2652_vm14, 1, %v17760_v18 }
 0x1da   : > { %v3159_v25 = vsub.s32 32, %v3158_v11  ;;  %v3163_v53 = vsub.s32 4294967266, %v3158_v11  ;;  %v3160_v1 = vshll.u32 %v12766_v26, %v3158_v11  ;;  %v2655_v34 = vadd.s32 %v2653_v24, %v2651_v30  ;;  %v17826_v24 = vld [vmem:[#allocation25_spill] sm:$0xff] }
 0x1db   : > { %v2665_v50 = vmul.u32 %v2661_v54, %v2637_v27  ;;  %v2668_v42 = vshll.u32 %v2664_v22, 16  ;;  %v17821_v6 = vand.u32 2147483647, %v11659_v21  ;;  %vm3041_vm10 = vcmp.eq.s32.totalorder %v12768_v5, 0  ;;  %v17824_v54 = vld [vmem:[#allocation10_spill] sm:$0xff] }
 0x1dc   : > { %v3161_v19 = vshrl.u32 %v3143_v60, %v3159_v25  ;;  %v3164_v55 = vadd.s32 127, %v3163_v53  ;;  %vm2670_vm9 = vc.u32 %v2662_v44, %v2666_v0  ;;  %v2672_v33 = vadd.s32 %v2666_v0, %v2662_v44 }
 0x1dd   : > { %vm12818_vm4 = vcmp.le.f32.partialorder %v17821_v6, 0.7853982  ;;  %v3046_v41 = vsel %vm3044_vm11, %v3045_v57, %v12783_v13  ;;  %v2656_v26 = vadd.s32 %v2655_v34, %v2645_v52  ;;  %v2671_v27 = vsel %vm2670_vm9, 1, %v17760_v18 }
 0x1de   : > { %v17556_v40 = vand.u32 2147483647, %v17824_v54  ;;  %v3162_v20 = vor.u32 %v3161_v19, %v3160_v1  ;;  %v3165_v6 = vshll.u32 %v3164_v55, 23  ;;  %v2673_v28 = vadd.s32 %v2671_v27, %v2665_v50  ;;  %v17827_v19 = vld [vmem:[#allocation29_spill] sm:$0xff] }
 0x1df   : > { %vm2674_vm3 = vc.u32 %v2672_v33, %v2668_v42  ;;  %v3174_v53 = vsel %vm3051_vm12, %v3173_v16, %v12743_v56  ;;  %v17825_v60 = vxor.u32 2147483648, %v12783_v13  ;;  %v2647_v52 = vshrl.u32 %v12791_v14, 16 }
 0x1e0   : > { %v2675_v34 = vsel %vm2674_vm3, 1, %v17760_v18  ;;  %v3166_v57 = vor.u32 4788187, %v3165_v6  ;;  %vm7999_vm11 = vcmp.lt.s32.totalorder %v12764_v35, 2  ;;  %vm3040_vm1 = vcmp.lt.s32.totalorder %v12768_v5, 2 }
 0x1e1   : > { %v8002_v0 = vsel %vm8000_vm5, %v12774_v46, %v17825_v60  ;;  %v2667_v50 = vshrl.u32 %v2663_v36, 16  ;;  %v2669_v61 = vshrl.u32 %v2664_v22, 16  ;;  %v2677_v44 = vadd.s32 %v2675_v34, %v2673_v28 }
 0x1e2   : > { %v3169_v11 = vcvt.s32.f32 %v3162_v20  ;;  %v12840_v56 = vadd.s32 %v2656_v26, %v2647_v52  ;;  %v12842_v16 = vadd.s32 %v2672_v33, %v2668_v42  ;;  %v2748_v30 = vand.u32 8388607, %v17556_v40 }
 0x1e3   : > { %v3167_v25 = vand.u32 2147483647, %v3166_v57  ;;  %v2678_v14 = vadd.s32 %v2677_v44, %v2667_v50  ;;  %v2758_v1 = vshll.u32 %v17757_v31, %v17826_v24  ;;  %v2759_v55 = vshrl.u32 %v17793_v10, %v17827_v19  ;;  %v17828_v44 = vld [vmem:[#allocation33_spill] sm:$0xff] }
 0x1e4   : > { %v2749_v27 = vor.u32 8388608, %v2748_v30  ;;  %v2761_v22 = vshll.u32 %v17793_v10, %v17826_v24  ;;  %v2762_v36 = vshrl.u32 %v17794_v51, %v17827_v19  ;;  %v2764_v42 = vshll.u32 %v17794_v51, %v17826_v24  ;;  %v17830_v24 = vld [vmem:[#allocation48_spill] sm:$0xff] }
 0x1e5   : > { %vm3038_vm5 = vweird.f32 %v17805_v9  ;;  %v3170_v33 = vmul.f32 %v3169_v11, %v3167_v25  ;;  %v2679_v26 = vadd.s32 %v2678_v14, %v2669_v61  ;;  %v12857_v20 = vor.u32 %v2759_v55, %v2758_v1  ;;  %v17829_v25 = vld [vmem:[#allocation42_spill] sm:$0xff] }
 0x1e6   : > { %v2765_v6 = vshrl.u32 %v17687_v58, %v17827_v19  ;;  %v3176_v28 = vsel %vm12818_vm4, 0, %v3174_v53  ;;  %v3043_v52 = vsel %vm3041_vm10, %v12774_v46, %v17825_v60  ;;  %vm2682_vm2 = vc.u32 %v12840_v56, %v12842_v16 }
 0x1e7   : > { %v12870_v34 = vor.u32 %v2762_v36, %v2761_v22  ;;  %v3171_v57 = vxor.u32 2147483648, %v3170_v33  ;;  %v2683_v50 = vadd.s32 1, %v2679_v26  ;;  %vm2773_vm14 = vcmp.lt.s32.totalorder %v17828_v44, 1 }
 0x1e8   : > { %v12872_v61 = vor.u32 %v2765_v6, %v2764_v42  ;;  %v2680_v53 = vmul.u32 %v12754_v49, %v12802_v4  ;;  %vm2775_vm9 = vcmp.lt.s32.totalorder %v17828_v44, 3  ;;  %v12882_v13 = vshll.u32 %v2749_v27, 8  ;;  %v17831_v49 = vld [vmem:[#allocation37_spill] sm:$0xff] }
 0x1e9   : > { %v2781_v46 = vsel %vm2773_vm14, %v12857_v20, %v12870_v34  ;;  %v3172_v11 = vsel %vm3051_vm12, %v3171_v57, %v3170_v33  ;;  %v2684_v30 = vsel %vm2682_vm2, %v2683_v50, %v2679_v26  ;;  %v2787_v4 = vsel %vm2775_vm9, %v17831_v49, %v17830_v24 }
 0x1ea   : > { %v2783_v14 = vsel %vm2775_vm9, %v12872_v61, %v17829_v25  ;;  %v12897_v1 = vsel %vm12818_vm4, %v11659_v21, %v3172_v11  ;;  %v8006_v55 = vsel %vm7999_vm11, %v8002_v0, %v12811_v39  ;;  %v3047_v27 = vsel %vm3040_vm1, %v3043_v52, %v3046_v41 }
 0x1eb   : > { %v2685_v22 = vadd.s32 %v2684_v30, %v2680_v53  ;;  %v3177_v36 = vmul.f32 %v12897_v1, %v12897_v1  ;;  %v8152_v42 = vadd.s32 3, %v3176_v28  ;;  %vm2774_vm12 = vcmp.lt.s32.totalorder %v17828_v44, 2 }
 0x1ec   : > { %v2785_v7 = vsel %vm2773_vm14, %v12870_v34, %v12872_v61  ;;  %v12913_v35 = vsel %vm2774_vm12, %v2781_v46, %v2783_v14  ;;  %v2790_v39 = vand.u32 65535, %v12882_v13  ;;  %v12920_v60 = vsel %vm3038_vm5, nan, %v8006_v55 }
 0x1ed   : > { %v2686_v33 = vadd.s32 536870912, %v2685_v22  ;;  %v2788_v5 = vsel %vm2774_vm12, %v2785_v7, %v2787_v4  ;;  %v3178_v41 = vmul.f32 -0.001358992, %v3177_v36  ;;  %v3185_v0 = vmul.f32 -0.00019511016, %v3177_v36 }
 0x1ee   : > { %v2792_v26 = vand.u32 65535, %v2788_v5  ;;  %v2793_v6 = vshrl.u32 %v2788_v5, 16  ;;  %v12924_v52 = vsel %vm3038_vm5, nan, %v3047_v27  ;;  %v2791_v50 = vshrl.u32 %v12882_v13, 16 }
 0x1ef   : > { %v12926_v57 = vshrl.u32 %v2686_v33, 30  ;;  %v3179_v53 = vadd.f32 0.041655596, %v3178_v41  ;;  %v3186_v46 = vadd.f32 0.008332121, %v3185_v0  ;;  %v12929_v11 = vand.u32 3, %v8152_v42 }
 0x1f0   : > { %v2795_v30 = vmul.u32 %v2793_v6, %v2790_v39  ;;  %v12931_v25 = vand.u32 3, %v3176_v28  ;;  %v12934_v24 = vmul.u32 %v2792_v26, %v2791_v50  ;;  %v2815_v49 = vshrl.u32 %v12913_v35, 16 }
 0x1f1   : > { %v2688_v14 = vshll.u32 %v12926_v57, 30  ;;  %v3180_v9 = vmul.f32 %v3179_v53, %v3177_v36  ;;  %v3187_v4 = vmul.f32 %v3186_v46, %v3177_v36  ;;  %v2794_v55 = vmul.u32 %v2792_v26, %v2790_v39 }
 0x1f2   : > { %v2798_v27 = vshll.u32 %v2795_v30, 16  ;;  %v2681_v7 = vadd.s32 %v12842_v16, %v12840_v56  ;;  %v2797_v42 = vmul.u32 %v2793_v6, %v2791_v50  ;;  %v2814_v5 = vand.u32 65535, %v12913_v35 }
 0x1f3   : > { %v12939_v33 = vsub.s32 %v2685_v22, %v2688_v14  ;;  %v3181_v28 = vadd.f32 -0.4999988, %v3180_v9  ;;  %v3188_v41 = vadd.f32 -0.16666654, %v3187_v4  ;;  %vm8158_vm4 = vcmp.eq.s32.totalorder %v12929_v11, 2 }
 0x1f4   : > { %v2800_v0 = vshll.u32 %v12934_v24, 16  ;;  %vm2802_vm10 = vc.u32 %v2794_v55, %v2798_v27  ;;  %vm8155_vm3 = vcmp.eq.s32.totalorder %v12929_v11, 0  ;;  %vm3195_vm11 = vcmp.eq.s32.totalorder %v12931_v25, 0 }
 0x1f5   : > { %vm3198_vm1 = vcmp.eq.s32.totalorder %v12931_v25, 2  ;;  %vm2690_vm5 = vcmp.lt.s32.totalorder %v12939_v33, 0  ;;  %v2691_v56 = vsub.s32 0, %v12939_v33  ;;  %v2803_v16 = vsel %vm2802_vm10, 1, %v17760_v18 }
 0x1f6   : > { %v2804_v22 = vadd.s32 %v2798_v27, %v2794_v55  ;;  %v3182_v35 = vmul.f32 %v3181_v28, %v3177_v36  ;;  %v3189_v26 = vmul.f32 %v3188_v41, %v3177_v36  ;;  %vm8154_vm2 = vcmp.lt.s32.totalorder %v12929_v11, 2 }
 0x1f7   : > { %vm3194_vm0 = vcmp.lt.s32.totalorder %v12931_v25, 2  ;;  %v2805_v6 = vadd.s32 %v2803_v16, %v2797_v42  ;;  %v2817_v53 = vmul.u32 %v2815_v49, %v2790_v39  ;;  %vm3192_vm6 = vweird.f32 %v11659_v21 }
 0x1f8   : > { %v2692_v46 = vsel %vm2690_vm5, %v2691_v56, %v12939_v33  ;;  %v2757_v14 = vshrl.u32 %v17757_v31, %v17827_v19  ;;  %vm2806_vm8 = vc.u32 %v2804_v22, %v2800_v0  ;;  %v12956_v9 = vmul.u32 %v2814_v5, %v2791_v50 }
 0x1f9   : > { %v3183_v4 = vadd.f32 1.0, %v3182_v35  ;;  %v3190_v55 = vadd.f32 1.0, %v3189_v26  ;;  %v2693_v27 = vclz %v2692_v46  ;;  %v2807_v36 = vsel %vm2806_vm8, 1, %v17760_v18 }
 0x1fa   : > { %v2778_v42 = vsel %vm2776_vm13, %v12872_v61, 2102212464  ;;  %v2809_v28 = vadd.s32 %v2807_v36, %v2805_v6  ;;  %v2816_v41 = vmul.u32 %v2814_v5, %v2790_v39  ;;  %v2820_v16 = vshll.u32 %v2817_v53, 16 }
 0x1fb   : > { %v3191_v56 = vmul.f32 %v3190_v55, %v12897_v1  ;;  %v3199_v40 = vxor.u32 2147483648, %v3183_v4  ;;  %v10918_v59 = vadd.s32 4294967294, %v2693_v27  ;;  %v2799_v19 = vshrl.u32 %v2795_v30, 16 }
 0x1fc   : > { %v2801_v0 = vshrl.u32 %v12934_v24, 16  ;;  %v2822_v22 = vshll.u32 %v12956_v9, 16  ;;  %vm2824_vm10 = vc.u32 %v2816_v41, %v2820_v16  ;;  %v2826_v35 = vadd.s32 %v2820_v16, %v2816_v41  ;;  %v548_v41 = vpop.permute.xlu0 %547 }
 0x1fd   : > { %v3196_v26 = vxor.u32 2147483648, %v3191_v56  ;;  %vm10919_vm8 = vcmp.lt.s32.totalorder %v10918_v59, 0  ;;  %v2810_v46 = vadd.s32 %v2809_v28, %v2799_v19  ;;  %v2819_v12 = vmul.u32 %v2815_v49, %v2791_v50 }
 0x1fe   : > { %v8160_v61 = vsel %vm8158_vm4, %v3199_v40, %v3191_v56  ;;  %v2696_v39 = vsel %vm10919_vm8, 0, %v10918_v59  ;;  %v2825_v5 = vsel %vm2824_vm10, 1, %v17760_v18  ;;  %vm2828_vm13 = vc.u32 %v2826_v35, %v2822_v22 }
 0x1ff   : > { %v8157_v1 = vsel %vm8155_vm3, %v3183_v4, %v3196_v26  ;;  %v3197_v30 = vsel %vm3195_vm11, %v3183_v4, %v3196_v26  ;;  %v3200_v24 = vsel %vm3198_vm1, %v3199_v40, %v3191_v56  ;;  %v2697_v6 = vsub.s32 32, %v2696_v39  ;;  %v17832_v26 = vld [vmem:[#allocation11_spill] sm:$0xff] }
 0x200   : > { %v8161_v50 = vsel %vm8154_vm2, %v8157_v1, %v8160_v61  ;;  %v3201_v49 = vsel %vm3194_vm0, %v3197_v30, %v3200_v24  ;;  %v2701_v59 = vsub.s32 4294967266, %v2696_v39  ;;  %v2827_v55 = vadd.s32 %v2825_v5, %v2819_v12  ;;  %v17835_v24 = vld [vmem:[#allocation27_spill] sm:$0xff] }
 0x201   : > { %v8162_v27 = vsel %vm3192_vm6, nan, %v8161_v50  ;;  %v3202_v36 = vsel %vm3192_vm6, nan, %v3201_v49  ;;  %v2699_v28 = vshrl.u32 %v2681_v7, %v2697_v6  ;;  %v2829_v4 = vsel %vm2828_vm13, 1, %v17760_v18 }
 0x202   : > { %v10650_v40 = vpack.c.bf16 %v8162_v27, %v12920_v60  ;;  %v5674_v11 = vpack.c.bf16 %v3202_v36, %v12924_v52  ;;  %v2698_v16 = vshll.u32 %v12939_v33, %v2696_v39  ;;  %v2702_v25 = vadd.s32 127, %v2701_v59  ;;  %v17838_v36 = vld [vmem:[#allocation30_spill] sm:$0xff] }
 0x203   : > { %v2777_v12 = vsel %vm2773_vm14, %v2757_v14, %v12857_v20  ;;  %v2821_v56 = vshrl.u32 %v2817_v53, 16  ;;  %v2831_v19 = vadd.s32 %v2829_v4, %v2827_v55  ;;  %v17561_v21 = vand.u32 2147483647, %v17832_v26  ;;  %v17837_v55 = vld [vmem:[#allocation26_spill] sm:$0xff] }
 0x204   : > { %10673 = vmatpush.bf16.msra.mxu0 %v10650_v40  ;;  %10699 = vmatpush.bf16.msra.mxu2 %v5674_v11  ;;  %v2700_v7 = vor.u32 %v2699_v28, %v2698_v16  ;;  %v2703_v61 = vshll.u32 %v2702_v25, 23  ;;  %v2779_v60 = vsel %vm2775_vm9, %v12870_v34, %v2778_v42  ;;  %v12993_v52 = vadd.s32 %v2810_v46, %v2801_v0 }
 0x205   : > { %v17833_v33 = vand.u32 2139095040, %v12638_v2  ;;  %v12998_v5 = vmul.f32 %v12590_v23, %v548_v41  ;;  %v2823_v20 = vshrl.u32 %v12956_v9, 16  ;;  %v2832_v53 = vadd.s32 %v2831_v19, %v2821_v56  ;;  %v17842_v56 = vld [vmem:[#allocation34_spill] sm:$0xff] }
 0x206   : > { %vm1366_vm0 = vcmp.gt.s32.totalorder %v12762_v8, 0  ;;  %v1820_v14 = vand.u32 2139095040, %v12738_v32  ;;  %v2704_v1 = vor.u32 4788187, %v2703_v61  ;;  %v13003_v30 = vadd.s32 %v2826_v35, %v2822_v22  ;;  %v17843_v61 = vld [vmem:[#allocation52_spill] sm:$0xff] }
 0x207   : > { %v3977_v39 = vshrl.u32 %v17833_v33, 23  ;;  %17834 = vst [vmem:[#allocation16_spill] sm:$0xff] %v12998_v5  ;;  %v1050_v34 = vand.u32 2139095040, %v17835_v24  ;;  %v2780_v42 = vsel %vm2774_vm12, %v2777_v12, %v2779_v60  ;;  %v2833_v0 = vadd.s32 %v2832_v53, %v2823_v20  ;;  %v17844_v60 = vld [vmem:[#allocation40_spill] sm:$0xff] }
 0x208   : > { %v2286_v46 = vand.u32 8388607, %v17561_v21  ;;  %v13012_v9 = vadd.f32 %v12748_v47, %v12741_v63  ;;  %v2705_v6 = vand.u32 2147483647, %v2704_v1  ;;  %v2707_v50 = vcvt.s32.f32 %v2700_v7 }
 0x209   : > { %vm2836_vm6 = vc.u32 %v12993_v52, %v13003_v30  ;;  %v1367_v22 = vsel %vm1366_vm0, %v12762_v8, 0  ;;  %vm4138_vm14 = vcmp.gt.s32.totalorder %v12780_v3, 0  ;;  %v10944_v35 = vadd.s32 4294967169, %v3977_v39 }
 0x20a   : > { %17836 = vst [vmem:[#allocation39_spill] sm:$0xff] %v13012_v9  ;;  %v2837_v44 = vadd.s32 1, %v2833_v0  ;;  %v2708_v49 = vmul.f32 %v2707_v50, %v2705_v6  ;;  %v2834_v59 = vmul.u32 %v12882_v13, %v2780_v42  ;;  %v2299_v27 = vshll.u32 %v17793_v10, %v17837_v55 }
 0x20b   : > { %v2300_v63 = vshrl.u32 %v17794_v51, %v17838_v36  ;;  %v2287_v28 = vor.u32 8388608, %v2286_v46  ;;  %v2302_v4 = vshll.u32 %v17794_v51, %v17837_v55  ;;  %v2303_v8 = vshrl.u32 %v17687_v58, %v17838_v36 }
 0x20c   : > { %v2838_v47 = vsel %vm2836_vm6, %v2837_v44, %v2833_v0  ;;  %v17839_v41 = vand.u32 2147483647, %v17809_v17  ;;  %v2709_v13 = vxor.u32 2147483648, %v2708_v49  ;;  %vm2589_vm12 = vcmp.lt.s32.totalorder %v17809_v17, 0  ;;  %v620_v44 = vpop.permute.xlu2 %619 }
 0x20d   : > { %v2839_v11 = vadd.s32 %v2838_v47, %v2834_v59  ;;  %v13033_v16 = vor.u32 %v2300_v63, %v2299_v27  ;;  %v2297_v25 = vshrl.u32 %v17793_v10, %v17838_v36  ;;  %v13038_v12 = vor.u32 %v2303_v8, %v2302_v4 }
 0x20e   : > { %vm13029_vm9 = vcmp.le.f32.partialorder %v17839_v41, 0.7853982  ;;  %vm2313_vm4 = vcmp.lt.s32.totalorder %v17842_v56, 3  ;;  %v2710_v19 = vsel %vm2589_vm12, %v2709_v13, %v2708_v49  ;;  %vm2311_vm3 = vcmp.lt.s32.totalorder %v17842_v56, 1 }
 0x20f   : > { %v2840_v7 = vadd.s32 536870912, %v2839_v11  ;;  %v2325_v33 = vsel %vm2313_vm4, %v17844_v60, %v17843_v61  ;;  %v4139_v39 = vsel %vm4138_vm14, %v12780_v3, 0  ;;  %v13054_v20 = vsel %vm13029_vm9, %v17809_v17, %v2710_v19 }
 0x210   : > { %v2323_v53 = vsel %vm2311_vm3, %v13033_v16, %v13038_v12  ;;  %v13060_v1 = vshll.u32 %v2287_v28, 8  ;;  %v13064_v42 = vmul.f32 %v13054_v20, %v13054_v20  ;;  %v2296_v3 = vshll.u32 %v17757_v31, %v17837_v55 }
 0x211   : > { %v13066_v0 = vshrl.u32 %v2840_v7, 30  ;;  %vm2312_vm11 = vcmp.lt.s32.totalorder %v17842_v56, 2  ;;  %v1821_v46 = vshrl.u32 %v1820_v14, 23  ;;  %v1051_v6 = vshrl.u32 %v1050_v34, 23  ;;  %v17851_v7 = vld [vmem:[#allocation51_spill] sm:$0xff] }
 0x212   : > { %v13073_v50 = vadd.f32 %v12681_v15, %v12751_v62  ;;  %v2326_v49 = vsel %vm2312_vm11, %v2323_v53, %v2325_v33  ;;  %v13077_v59 = vshrl.u32 %v1367_v22, 5  ;;  %v13080_v27 = vmul.f32 %v12590_v23, %v620_v44  ;;  %v17858_v56 = vld [vmem:[#allocation47_spill] sm:$0xff] }
 0x213   : > { %v2842_v63 = vshll.u32 %v13066_v0, 30  ;;  %v13083_v55 = vor.u32 %v2297_v25, %v2296_v3  ;;  %v13085_v47 = vand.u32 31, %v1367_v22  ;;  %v13087_v14 = vshrl.u32 %v4139_v39, 5 }
 0x214   : > { %17845 = vst [vmem:[#allocation36_spill] sm:$0xff] %v13073_v50  ;;  %v2328_v15 = vand.u32 65535, %v13060_v1  ;;  %v2331_v62 = vshrl.u32 %v2326_v49, 16  ;;  %v13090_v34 = vand.u32 31, %v4139_v39  ;;  %v13092_v28 = vadd.s32 1, %v10944_v35 }
 0x215   : > { %17846 = vst [vmem:[#allocation44_spill] sm:$0xff] %v13077_v59  ;;  %v2723_v4 = vmul.f32 -0.00019511016, %v13064_v42  ;;  %v2843_v8 = vsub.s32 %v2839_v11, %v2842_v63  ;;  %v13095_v23 = vadd.s32 4294967169, %v1821_v46  ;;  %v13097_v41 = vadd.s32 4294967169, %v1051_v6 }
 0x216   : > { %17847 = vst [vmem:[#allocation61_spill] sm:$0xff] %v13080_v27  ;;  %v2330_v13 = vand.u32 65535, %v2326_v49  ;;  %v13099_v25 = vmul.u32 %v2331_v62, %v2328_v15  ;;  %v2319_v19 = vsel %vm2311_vm3, %v13083_v55, %v13033_v16  ;;  %v2321_v35 = vsel %vm2313_vm4, %v13038_v12, %v17851_v7 }
 0x217   : > { %17848 = vst [vmem:[#allocation53_spill] sm:$0xff] %v13085_v47  ;;  %vm2844_vm1 = vcmp.lt.s32.totalorder %v2843_v8, 0  ;;  %v2845_v22 = vsub.s32 0, %v2843_v8  ;;  %v13110_v11 = vsub.s32 32, %v13085_v47  ;;  %v2711_v60 = vsub.s32 4, %v12926_v57 }
 0x218   : > { %17849 = vst [vmem:[#allocation15_spill] sm:$0xff] %v13087_v14  ;;  %v2329_v33 = vshrl.u32 %v13060_v1, 16  ;;  %v13117_v39 = vshll.u32 %v17687_v58, %v13085_v47  ;;  %v2724_v53 = vadd.f32 0.008332121, %v2723_v4  ;;  %v2336_v46 = vshll.u32 %v13099_v25, 16 }
 0x219   : > { %17850 = vst [vmem:[#allocation58_spill] sm:$0xff] %v13090_v34  ;;  %v2846_v3 = vsel %vm2844_vm1, %v2845_v22, %v2843_v8  ;;  %v13122_v6 = vshll.u32 %v17701_v48, %v13085_v47  ;;  %v2322_v49 = vsel %vm2312_vm11, %v2319_v19, %v2321_v35  ;;  %v13129_v7 = vsub.s32 32, %v13090_v34 }
 0x21a   : > { %17852 = vst [vmem:[#allocation10_spill] sm:$0xff] %v13110_v11  ;;  %v2847_v44 = vclz %v2846_v3  ;;  %v13126_v63 = vmul.u32 %v2330_v13, %v2329_v33  ;;  %v13133_v61 = vshll.u32 %v17687_v58, %v13090_v34  ;;  %v13137_v4 = vshll.u32 %v17701_v48, %v13090_v34 }
 0x21b   : > { %17853 = vst [vmem:[#allocation25_spill] sm:$0xff] %v13129_v7  ;;  %v2332_v22 = vmul.u32 %v2330_v13, %v2328_v15  ;;  %v13141_v3 = vshrl.u32 %v17701_v48, %v13110_v11  ;;  %v2712_v19 = vsel %vm2589_vm12, %v2711_v60, %v12926_v57  ;;  %v2716_v35 = vmul.f32 -0.001358992, %v13064_v42 }
 0x21c   : > { %v10921_v21 = vadd.s32 4294967294, %v2847_v44  ;;  %v2725_v24 = vmul.f32 %v2724_v53, %v13064_v42  ;;  %v2335_v47 = vmul.u32 %v2331_v62, %v2329_v33  ;;  %v2353_v2 = vshrl.u32 %v2322_v49, 16 }
 0x21d   : > { %vm2340_vm5 = vc.u32 %v2332_v22, %v2336_v46  ;;  %v2338_v32 = vshll.u32 %v13126_v63, 16  ;;  %v2342_v27 = vadd.s32 %v2336_v46, %v2332_v22  ;;  %v13152_v34 = vshrl.u32 %v17689_v37, %v13110_v11 }
 0x21e   : > { %vm10922_vm2 = vcmp.lt.s32.totalorder %v10921_v21, 0  ;;  %v2341_v13 = vsel %vm2340_vm5, 1, %v17760_v18  ;;  %v2835_v57 = vadd.s32 %v13003_v30, %v12993_v52  ;;  %v2352_v44 = vand.u32 65535, %v2322_v49 }
 0x21f   : > { %v2850_v60 = vsel %vm10922_vm2, 0, %v10921_v21  ;;  %v2343_v62 = vadd.s32 %v2341_v13, %v2335_v47  ;;  %vm2344_vm10 = vc.u32 %v2342_v27, %v2338_v32  ;;  %v2714_v29 = vsel %vm13029_vm9, 0, %v2712_v19 }
 0x220   : > { %v2851_v45 = vsub.s32 32, %v2850_v60  ;;  %v2855_v53 = vsub.s32 4294967266, %v2850_v60  ;;  %v2717_v43 = vadd.f32 0.041655596, %v2716_v35  ;;  %v2345_v38 = vsel %vm2344_vm10, 1, %v17760_v18 }
 0x221   : > { %v2355_v46 = vmul.u32 %v2353_v2, %v2328_v15  ;;  %v2726_v22 = vadd.f32 -0.16666654, %v2725_v24  ;;  %v2852_v5 = vshll.u32 %v2843_v8, %v2850_v60  ;;  %vm2743_vm8 = vcmp.lt.s32.totalorder %v17824_v54, 0 }
 0x222   : > { %v2853_v11 = vshrl.u32 %v2835_v57, %v2851_v45  ;;  %v2856_v50 = vadd.s32 127, %v2855_v53  ;;  %v2354_v52 = vmul.u32 %v2352_v44, %v2328_v15  ;;  %v2356_v21 = vmul.u32 %v2352_v44, %v2329_v33 }
 0x223   : > { %v2358_v30 = vshll.u32 %v2355_v46, 16  ;;  %v7687_v47 = vadd.s32 3, %v2714_v29  ;;  %v2347_v32 = vadd.s32 %v2345_v38, %v2343_v62  ;;  %v2718_v40 = vmul.f32 %v2717_v43, %v13064_v42 }
 0x224   : > { %v2854_v49 = vor.u32 %v2853_v11, %v2852_v5  ;;  %v2857_v9 = vshll.u32 %v2856_v50, 23  ;;  %v2865_v27 = vsub.s32 4, %v13066_v0  ;;  %v2357_v19 = vmul.u32 %v2353_v2, %v2329_v33 }
 0x225   : > { %vm2362_vm13 = vc.u32 %v2354_v52, %v2358_v30  ;;  %v2727_v24 = vmul.f32 %v2726_v22, %v13064_v42  ;;  %v2337_v45 = vshrl.u32 %v13099_v25, 16  ;;  %v13165_v15 = vand.u32 3, %v2714_v29 }
 0x226   : > { %v2858_v8 = vor.u32 4788187, %v2857_v9  ;;  %v2363_v35 = vsel %vm2362_vm13, 1, %v17760_v18  ;;  %v2360_v13 = vshll.u32 %v2356_v21, 16  ;;  %v2364_v5 = vadd.s32 %v2358_v30, %v2354_v52 }
 0x227   : > { %v2365_v50 = vadd.s32 %v2363_v35, %v2357_v19  ;;  %v2861_v38 = vcvt.s32.f32 %v2854_v49  ;;  %v2295_v43 = vshrl.u32 %v17757_v31, %v17838_v36  ;;  %v2348_v57 = vadd.s32 %v2347_v32, %v2337_v45 }
 0x228   : > { %v2859_v11 = vand.u32 2147483647, %v2858_v8  ;;  %v2719_v2 = vadd.f32 -0.4999988, %v2718_v40  ;;  %v2866_v9 = vsel %vm2743_vm8, %v2865_v27, %v13066_v0  ;;  %v2316_v25 = vsel %vm2314_vm15, %v13038_v12, 2102212464 }
 0x229   : > { %vm2366_vm0 = vc.u32 %v2364_v5, %v2360_v13  ;;  %v2728_v29 = vadd.f32 1.0, %v2727_v24  ;;  %v2339_v60 = vshrl.u32 %v13126_v63, 16  ;;  %v17854_v53 = vand.u32 2147483647, %v17824_v54 }
 0x22a   : > { %v2862_v33 = vmul.f32 %v2861_v38, %v2859_v11  ;;  %v2367_v44 = vsel %vm2366_vm0, 1, %v17760_v18  ;;  %v13183_v62 = vand.u32 3, %v7687_v47  ;;  %v2359_v0 = vshrl.u32 %v2355_v46, 16 }
 0x22b   : > { %vm13179_vm6 = vcmp.le.f32.partialorder %v17854_v53, 0.7853982  ;;  %v2369_v22 = vadd.s32 %v2367_v44, %v2365_v50  ;;  %v2315_v12 = vsel %vm2311_vm3, %v2295_v43, %v13083_v55  ;;  %v2317_v63 = vsel %vm2313_vm4, %v13033_v16, %v2316_v25 }
 0x22c   : > { %v2863_v52 = vxor.u32 2147483648, %v2862_v33  ;;  %v13191_v30 = vadd.s32 %v2348_v57, %v2339_v60  ;;  %v2720_v49 = vmul.f32 %v2719_v2, %v13064_v42  ;;  %v2868_v32 = vsel %vm13179_vm6, 0, %v2866_v9  ;;  %v17859_v9 = vld [vmem:[#allocation41_spill] sm:$0xff] }
 0x22d   : > { %v2361_v47 = vshrl.u32 %v2356_v21, 16  ;;  %v2370_v40 = vadd.s32 %v2369_v22, %v2359_v0  ;;  %v2729_v46 = vmul.f32 %v2728_v29, %v13054_v20  ;;  %vm2733_vm15 = vcmp.eq.s32.totalorder %v13165_v15, 0  ;;  %v17857_v21 = vld [vmem:[#allocation18_spill] sm:$0xff] }
 0x22e   : > { %v2864_v27 = vsel %vm2743_vm8, %v2863_v52, %v2862_v33  ;;  %v13200_v55 = vadd.s32 %v2364_v5, %v2360_v13  ;;  %v2318_v42 = vsel %vm2312_vm11, %v2315_v12, %v2317_v63  ;;  %v2433_v24 = vand.u32 2147483647, %v17857_v21 }
 0x22f   : > { %v13205_v16 = vsel %vm13179_vm6, %v17824_v54, %v2864_v27  ;;  %v2371_v19 = vadd.s32 %v2370_v40, %v2361_v47  ;;  %vm7690_vm14 = vcmp.eq.s32.totalorder %v13183_v62, 0  ;;  %v7842_v8 = vadd.s32 3, %v2868_v32 }
 0x230   : > { %v2869_v20 = vmul.f32 %v13205_v16, %v13205_v16  ;;  %vm2374_vm9 = vc.u32 %v13191_v30, %v13200_v55  ;;  %v2721_v45 = vadd.f32 1.0, %v2720_v49  ;;  %vm7693_vm12 = vcmp.eq.s32.totalorder %v13183_v62, 2 }
 0x231   : > { %vm2736_vm4 = vcmp.eq.s32.totalorder %v13165_v15, 2  ;;  %v2375_v35 = vadd.s32 1, %v2371_v19  ;;  %v2454_v13 = vshrl.u32 %v17794_v51, %v17858_v56  ;;  %v2457_v5 = vshrl.u32 %v17687_v58, %v17858_v56 }
 0x232   : > { %v2734_v50 = vxor.u32 2147483648, %v2729_v46  ;;  %v2870_v11 = vmul.f32 -0.001358992, %v2869_v20  ;;  %v2877_v38 = vmul.f32 -0.00019511016, %v2869_v20  ;;  %vm7689_vm3 = vcmp.lt.s32.totalorder %v13183_v62, 2 }
 0x233   : > { %vm2732_vm11 = vcmp.lt.s32.totalorder %v13165_v15, 2  ;;  %v2372_v43 = vmul.u32 %v13060_v1, %v2318_v42  ;;  %v2376_v57 = vsel %vm2374_vm9, %v2375_v35, %v2371_v19  ;;  %v2440_v2 = vand.u32 8388607, %v2433_v24  ;;  %v17863_v62 = vld [vmem:[#allocation70_spill] sm:$0xff] }
 0x234   : > { %v2453_v25 = vshll.u32 %v17793_v10, %v17859_v9  ;;  %v2456_v29 = vshll.u32 %v17794_v51, %v17859_v9  ;;  %v2871_v33 = vadd.f32 0.041655596, %v2870_v11  ;;  %v2878_v60 = vadd.f32 0.008332121, %v2877_v38 }
 0x235   : > { %v13230_v44 = vand.u32 3, %v2868_v32  ;;  %v2377_v53 = vadd.s32 %v2376_v57, %v2372_v43  ;;  %vm2730_vm1 = vweird.f32 %v17809_v17  ;;  %v13233_v36 = vand.u32 3, %v7842_v8  ;;  %v17860_v8 = vld [vmem:[#allocation59_spill] sm:$0xff] }
 0x236   : > { %v2451_v1 = vshrl.u32 %v17793_v10, %v17858_v56  ;;  %v13237_v0 = vor.u32 %v2454_v13, %v2453_v25  ;;  %v13239_v22 = vor.u32 %v2457_v5, %v2456_v29  ;;  %v2737_v52 = vxor.u32 2147483648, %v2721_v45  ;;  %v17861_v5 = vld [vmem:[#allocation71_spill] sm:$0xff] }
 0x237   : > { %v2872_v12 = vmul.f32 %v2871_v33, %v2869_v20  ;;  %v2879_v63 = vmul.f32 %v2878_v60, %v2869_v20  ;;  %v7692_v49 = vsel %vm7690_vm14, %v2721_v45, %v2734_v50  ;;  %v2735_v32 = vsel %vm2733_vm15, %v2721_v45, %v2734_v50  ;;  %v17862_v50 = vld [vmem:[#allocation62_spill] sm:$0xff] }
 0x238   : > { %v2378_v47 = vadd.s32 536870912, %v2377_v53  ;;  %v2441_v40 = vor.u32 8388608, %v2440_v2  ;;  %v2450_v27 = vshll.u32 %v17757_v31, %v17859_v9  ;;  %vm2890_vm5 = vcmp.eq.s32.totalorder %v13230_v44, 2 }
 0x239   : > { %v2873_v42 = vadd.f32 -0.4999988, %v2872_v12  ;;  %v2880_v19 = vadd.f32 -0.16666654, %v2879_v63  ;;  %vm2465_vm2 = vcmp.lt.s32.totalorder %v17860_v8, 1  ;;  %vm2467_vm10 = vcmp.lt.s32.totalorder %v17860_v8, 3 }
 0x23a   : > { %vm2887_vm8 = vcmp.eq.s32.totalorder %v13230_v44, 0  ;;  %v13251_v35 = vshrl.u32 %v2378_v47, 30  ;;  %v13253_v13 = vor.u32 %v2451_v1, %v2450_v27  ;;  %v2477_v45 = vsel %vm2465_vm2, %v13237_v0, %v13239_v22 }
 0x23b   : > { %v2479_v11 = vsel %vm2467_vm10, %v17862_v50, %v17861_v5  ;;  %v2874_v38 = vmul.f32 %v2873_v42, %v2869_v20  ;;  %v2881_v43 = vmul.f32 %v2880_v19, %v2869_v20  ;;  %v7695_v57 = vsel %vm7693_vm12, %v2737_v52, %v2729_v46 }
 0x23c   : > { %vm7844_vm13 = vcmp.lt.s32.totalorder %v13233_v36, 2  ;;  %v2738_v2 = vsel %vm2736_vm4, %v2737_v52, %v2729_v46  ;;  %vm2886_vm0 = vcmp.lt.s32.totalorder %v13230_v44, 2  ;;  %vm2884_vm6 = vweird.f32 %v17824_v54 }
 0x23d   : > { %v7696_v9 = vsel %vm7689_vm3, %v7692_v49, %v7695_v57  ;;  %v2739_v25 = vsel %vm2732_vm11, %v2735_v32, %v2738_v2  ;;  %v2380_v20 = vshll.u32 %v13251_v35, 30  ;;  %vm2466_vm15 = vcmp.lt.s32.totalorder %v17860_v8, 2 }
 0x23e   : > { %v2875_v29 = vadd.f32 1.0, %v2874_v38  ;;  %v2882_v33 = vadd.f32 1.0, %v2881_v43  ;;  %v2480_v60 = vsel %vm2466_vm15, %v2477_v45, %v2479_v11  ;;  %v13278_v46 = vshll.u32 %v2441_v40, 8 }
 0x23f   : > { %vm7845_vm14 = vcmp.eq.s32.totalorder %v13233_v36, 0  ;;  %v13281_v1 = vsub.s32 %v2377_v53, %v2380_v20  ;;  %v2473_v15 = vsel %vm2465_vm2, %v13253_v13, %v13237_v0  ;;  %v2475_v52 = vsel %vm2467_vm10, %v13239_v22, %v17863_v62 }
 0x240   : > { %v2883_v12 = vmul.f32 %v2882_v33, %v13205_v16  ;;  %v2891_v63 = vxor.u32 2147483648, %v2875_v29  ;;  %v7697_v49 = vsel %vm2730_vm1, nan, %v7696_v9  ;;  %vm7848_vm9 = vcmp.eq.s32.totalorder %v13233_v36, 2 }
 0x241   : > { %v2740_v53 = vsel %vm2730_vm1, nan, %v2739_v25  ;;  %vm2382_vm12 = vcmp.lt.s32.totalorder %v13281_v1, 0  ;;  %v2383_v32 = vsub.s32 0, %v13281_v1  ;;  %v2484_v47 = vand.u32 65535, %v2480_v60 }
 0x242   : > { %v2888_v40 = vxor.u32 2147483648, %v2883_v12  ;;  %v2476_v27 = vsel %vm2466_vm15, %v2473_v15, %v2475_v52  ;;  %v2482_v16 = vand.u32 65535, %v13278_v46  ;;  %v2485_v42 = vshrl.u32 %v2480_v60, 16 }
 0x243   : > { %v7850_v19 = vsel %vm7848_vm9, %v2891_v63, %v2883_v12  ;;  %v2892_v45 = vsel %vm2890_vm5, %v2891_v63, %v2883_v12  ;;  %v2384_v5 = vsel %vm2382_vm12, %v2383_v32, %v13281_v1  ;;  %v2483_v17 = vshrl.u32 %v13278_v46, 16 }
 0x244   : > { %v7847_v50 = vsel %vm7845_vm14, %v2875_v29, %v2888_v40  ;;  %v2889_v11 = vsel %vm2887_vm8, %v2875_v29, %v2888_v40  ;;  %v2385_v38 = vclz %v2384_v5  ;;  %v2487_v43 = vmul.u32 %v2485_v42, %v2482_v16 }
 0x245   : > { %v7851_v57 = vsel %vm7844_vm13, %v7847_v50, %v7850_v19  ;;  %v2893_v2 = vsel %vm2886_vm0, %v2889_v11, %v2892_v45  ;;  %v2486_v9 = vmul.u32 %v2484_v47, %v2482_v16  ;;  %v2488_v25 = vmul.u32 %v2484_v47, %v2483_v17 }
 0x246   : > { %v7852_v20 = vsel %vm2884_vm6, nan, %v7851_v57  ;;  %v2894_v33 = vsel %vm2884_vm6, nan, %v2893_v2  ;;  %v10912_v60 = vadd.s32 4294967294, %v2385_v38  ;;  %v2490_v15 = vshll.u32 %v2487_v43, 16 }
 0x247   : > { %v10649_v62 = vpack.c.bf16 %v7852_v20, %v7697_v49  ;;  %v5673_v29 = vpack.c.bf16 %v2894_v33, %v2740_v53  ;;  %v2489_v52 = vmul.u32 %v2485_v42, %v2483_v17  ;;  %v2506_v12 = vand.u32 65535, %v2476_v27 }
 0x248   : > { %vm10913_vm4 = vcmp.lt.s32.totalorder %v10912_v60, 0  ;;  %vm2494_vm3 = vc.u32 %v2486_v9, %v2490_v15  ;;  %v2496_v36 = vadd.s32 %v2490_v15, %v2486_v9  ;;  %v2507_v63 = vshrl.u32 %v2476_v27, 16 }
 0x249   : > { %vm3984_vm11 = vcmp.gt.s32.totalorder %v13092_v28, 0  ;;  %v13320_v44 = vadd.s32 1, %v13095_v23  ;;  %10674 = vmatpush.bf16.msra.mxu0 %v10649_v62  ;;  %10700 = vmatpush.bf16.msra.mxu2 %v5673_v29  ;;  %v2388_v32 = vsel %vm10913_vm4, 0, %v10912_v60  ;;  %v2492_v54 = vshll.u32 %v2488_v25, 16 }
 0x24a   : > { %v2495_v47 = vsel %vm2494_vm3, 1, %v17760_v18  ;;  %v2373_v49 = vadd.s32 %v13200_v55, %v13191_v30  ;;  %v2389_v53 = vsub.s32 32, %v2388_v32  ;;  %v2393_v40 = vsub.s32 4294967266, %v2388_v32 }
 0x24b   : > { %v2497_v42 = vadd.s32 %v2495_v47, %v2489_v52  ;;  %v13327_v27 = vshrl.u32 %v17701_v48, %v13129_v7  ;;  %vm2498_vm1 = vc.u32 %v2496_v36, %v2492_v54  ;;  %v2509_v19 = vmul.u32 %v2507_v63, %v2482_v16  ;;  %v17864_v36 = vld [vmem:[#allocation20_spill] sm:$0xff] }
 0x24c   : > { %v2510_v23 = vmul.u32 %v2506_v12, %v2483_v17  ;;  %v2390_v45 = vshll.u32 %v13281_v1, %v2388_v32  ;;  %v2391_v5 = vshrl.u32 %v2373_v49, %v2389_v53  ;;  %v2394_v50 = vadd.s32 127, %v2393_v40 }
 0x24d   : > { %v2499_v11 = vsel %vm2498_vm1, 1, %v17760_v18  ;;  %v2491_v38 = vshrl.u32 %v2487_v43, 16  ;;  %v2508_v2 = vmul.u32 %v2506_v12, %v2482_v16  ;;  %v2512_v30 = vshll.u32 %v2509_v19, 16 }
 0x24e   : > { %v2501_v57 = vadd.s32 %v2499_v11, %v2497_v42  ;;  %v13333_v55 = vshrl.u32 %v17689_v37, %v13129_v7  ;;  %v2392_v9 = vor.u32 %v2391_v5, %v2390_v45  ;;  %v2395_v20 = vshll.u32 %v2394_v50, 23  ;;  %v17869_v11 = vld [vmem:[#allocation45_spill] sm:$0xff] }
 0x24f   : > { %v2511_v33 = vmul.u32 %v2507_v63, %v2483_v17  ;;  %v2514_v15 = vshll.u32 %v2510_v23, 16  ;;  %vm2516_vm5 = vc.u32 %v2508_v2, %v2512_v30  ;;  %v2518_v62 = vadd.s32 %v2512_v30, %v2508_v2  ;;  %v17870_v2 = vld [vmem:[#allocation54_spill] sm:$0xff] }
 0x250   : > { %v2502_v60 = vadd.s32 %v2501_v57, %v2491_v38  ;;  %v2396_v1 = vor.u32 4788187, %v2395_v20  ;;  %v2449_v29 = vshrl.u32 %v17757_v31, %v17858_v56  ;;  %v2470_v16 = vsel %vm2468_vm7, %v13239_v22, 2102212464 }
 0x251   : > { %v2517_v43 = vsel %vm2516_vm5, 1, %v17760_v18  ;;  %v2493_v52 = vshrl.u32 %v2488_v25, 16  ;;  %vm2520_vm8 = vc.u32 %v2518_v62, %v2514_v15  ;;  %v17578_v32 = vand.u32 2147483647, %v17864_v36 }
 0x252   : > { %v2519_v12 = vadd.s32 %v2517_v43, %v2511_v33  ;;  %v2397_v17 = vand.u32 2147483647, %v2396_v1  ;;  %v2399_v63 = vcvt.s32.f32 %v2392_v9  ;;  %v2469_v54 = vsel %vm2465_vm2, %v2449_v29, %v13253_v13 }
 0x253   : > { %v2521_v47 = vsel %vm2520_vm8, 1, %v17760_v18  ;;  %v2471_v56 = vsel %vm2467_vm10, %v13237_v0, %v2470_v16  ;;  %v13349_v22 = vadd.s32 %v2502_v60, %v2493_v52  ;;  %v2513_v49 = vshrl.u32 %v2509_v19, 16 }
 0x254   : > { %v2523_v25 = vadd.s32 %v2521_v47, %v2519_v12  ;;  %v13353_v53 = vor.u32 %v13141_v3, %v13117_v39  ;;  %v3985_v40 = vsel %vm3984_vm11, %v13092_v28, 0  ;;  %v13359_v13 = vadd.s32 1, %v13097_v41  ;;  %v17871_v47 = vld [vmem:[#allocation63_spill] sm:$0xff] }
 0x255   : > { %v2400_v42 = vmul.f32 %v2399_v63, %v2397_v17  ;;  %v2515_v45 = vshrl.u32 %v2510_v23, 16  ;;  %v13361_v5 = vadd.s32 %v2518_v62, %v2514_v15  ;;  %v5058_v19 = vand.u32 8388607, %v17578_v32 }
 0x256   : > { %17865 = vst [vmem:[#allocation29_spill] sm:$0xff] %v13353_v53  ;;  %v2524_v0 = vadd.s32 %v2523_v25, %v2513_v49  ;;  %v17866_v50 = vand.u32 2147483647, %v17832_v26  ;;  %vm2281_vm2 = vcmp.lt.s32.totalorder %v17832_v26, 0  ;;  %v2472_v41 = vsel %vm2466_vm15, %v2469_v54, %v2471_v56 }
 0x257   : > { %v2401_v28 = vxor.u32 2147483648, %v2400_v42  ;;  %v2403_v3 = vsub.s32 4, %v13251_v35  ;;  %vm2528_vm10 = vc.u32 %v13349_v22, %v13361_v5  ;;  %v5071_v38 = vshll.u32 %v17793_v10, %v17869_v11 }
 0x258   : > { %vm13367_vm7 = vcmp.le.f32.partialorder %v17866_v50, 0.7853982  ;;  %v2525_v23 = vadd.s32 %v2524_v0, %v2515_v45  ;;  %v5072_v30 = vshrl.u32 %v17794_v51, %v17870_v2  ;;  %v5074_v9 = vshll.u32 %v17794_v51, %v17869_v11 }
 0x259   : > { %v2402_v57 = vsel %vm2281_vm2, %v2401_v28, %v2400_v42  ;;  %v5075_v8 = vshrl.u32 %v17687_v58, %v17870_v2  ;;  %v5059_v60 = vor.u32 8388608, %v5058_v19  ;;  %v5069_v15 = vshrl.u32 %v17793_v10, %v17870_v2  ;;  %v17874_v28 = vld [vmem:[#allocation73_spill] sm:$0xff] }
 0x25a   : > { %v13390_v20 = vsel %vm13367_vm7, %v17832_v26, %v2402_v57  ;;  %v2529_v33 = vadd.s32 1, %v2525_v23  ;;  %vm17611_vm13 = vcmp.lt.s32.totalorder %v13077_v59, 4  ;;  %v2526_v1 = vmul.u32 %v13278_v46, %v2472_v41  ;;  %v17875_v41 = vld [vmem:[#allocation66_spill] sm:$0xff] }
 0x25b   : > { %v2407_v62 = vmul.f32 %v13390_v20, %v13390_v20  ;;  %v13398_v29 = vor.u32 %v5072_v30, %v5071_v38  ;;  %v5076_v16 = vor.u32 %v5075_v8, %v5074_v9  ;;  %v2404_v52 = vsel %vm2281_vm2, %v2403_v3, %v13251_v35 }
 0x25c   : > { %v2530_v12 = vsel %vm2528_vm10, %v2529_v33, %v2525_v23  ;;  %v5068_v17 = vshll.u32 %v17757_v31, %v17869_v11  ;;  %vm5083_vm0 = vcmp.lt.s32.totalorder %v17871_v47, 1  ;;  %v13411_v56 = vshrl.u32 %v3985_v40, 5 }
 0x25d   : > { %v2408_v63 = vmul.f32 -0.001358992, %v2407_v62  ;;  %v2415_v54 = vmul.f32 -0.00019511016, %v2407_v62  ;;  %v2531_v46 = vadd.s32 %v2530_v12, %v2526_v1  ;;  %v5095_v25 = vsel %vm5083_vm0, %v13398_v29, %v5076_v16 }
 0x25e   : > { %17872 = vst [vmem:[#allocation33_spill] sm:$0xff] %v13411_v56  ;;  %v5070_v49 = vor.u32 %v5069_v15, %v5068_v17  ;;  %v13416_v35 = vshll.u32 %v5059_v60, 8  ;;  %vm5085_vm6 = vcmp.lt.s32.totalorder %v17871_v47, 3  ;;  %v13419_v19 = vand.u32 31, %v3985_v40  ;;  %v17877_v15 = vld [vmem:[#allocation72_spill] sm:$0xff] }
 0x25f   : > { %v2409_v42 = vadd.f32 0.041655596, %v2408_v63  ;;  %v2416_v45 = vadd.f32 0.008332121, %v2415_v54  ;;  %v2532_v0 = vadd.s32 536870912, %v2531_v46  ;;  %v2406_v50 = vsel %vm13367_vm7, 0, %v2404_v52 }
 0x260   : > { %17873 = vst [vmem:[#allocation42_spill] sm:$0xff] %v13419_v19  ;;  %vm5084_vm15 = vcmp.lt.s32.totalorder %v17871_v47, 2  ;;  %v5097_v3 = vsel %vm5085_vm6, %v17875_v41, %v17874_v28  ;;  %v13432_v40 = vor.u32 %v13327_v27, %v13133_v61  ;;  %v5100_v39 = vand.u32 65535, %v13416_v35 }
 0x261   : > { %v2410_v23 = vmul.f32 %v2409_v42, %v2407_v62  ;;  %v2417_v11 = vmul.f32 %v2416_v45, %v2407_v62  ;;  %v2533_v38 = vshrl.u32 %v2532_v0, 30  ;;  %v5098_v57 = vsel %vm5084_vm15, %v5095_v25, %v5097_v3 }
 0x262   : > { %17876 = vst [vmem:[#allocation48_spill] sm:$0xff] %v13432_v40  ;;  %v5102_v30 = vand.u32 65535, %v5098_v57  ;;  %v5103_v9 = vshrl.u32 %v5098_v57, 16  ;;  %v5091_v60 = vsel %vm5083_vm0, %v5070_v49, %v13398_v29  ;;  %v5093_v1 = vsel %vm5085_vm6, %v5076_v16, %v17877_v15 }
 0x263   : > { %v2418_v8 = vadd.f32 -0.16666654, %v2417_v11  ;;  %v2534_v33 = vshll.u32 %v2533_v38, 30  ;;  %v13444_v52 = vsel %vm17611_vm13, %v13353_v53, 920167782  ;;  %v7377_v27 = vadd.s32 3, %v2406_v50 }
 0x264   : > { %17878 = vst [vmem:[#allocation37_spill] sm:$0xff] %v13444_v52  ;;  %v13448_v12 = vmul.u32 %v5103_v9, %v5100_v39  ;;  %v13451_v17 = vsub.s32 32, %v13419_v19  ;;  %v2411_v63 = vadd.f32 -0.4999988, %v2410_v23  ;;  %v5101_v25 = vshrl.u32 %v13416_v35, 16 }
 0x265   : > { %v2535_v54 = vsub.s32 %v2531_v46, %v2534_v33  ;;  %vm2435_vm14 = vcmp.lt.s32.totalorder %v17857_v21, 0  ;;  %v5094_v42 = vsel %vm5084_vm15, %v5091_v60, %v5093_v1  ;;  %v5104_v45 = vmul.u32 %v5102_v30, %v5100_v39 }
 0x266   : > { %17879 = vst [vmem:[#allocation11_spill] sm:$0xff] %v13451_v17  ;;  %v5108_v0 = vshll.u32 %v13448_v12, 16  ;;  %v2419_v28 = vmul.f32 %v2418_v8, %v2407_v62  ;;  %v13458_v3 = vmul.u32 %v5102_v30, %v5101_v25  ;;  %vm13462_vm12 = vcmp.le.f32.partialorder %v2433_v24, 0.7853982 }
 0x267   : > { %vm2536_vm9 = vcmp.lt.s32.totalorder %v2535_v54, 0  ;;  %v2537_v41 = vsub.s32 0, %v2535_v54  ;;  %v13466_v46 = vand.u32 3, %v7377_v27  ;;  %v5067_v11 = vshrl.u32 %v17757_v31, %v17870_v2 }
 0x268   : > { %vm5112_vm4 = vc.u32 %v5104_v45, %v5108_v0  ;;  %v2412_v57 = vmul.f32 %v2411_v63, %v2407_v62  ;;  %v5125_v60 = vshrl.u32 %v5094_v42, 16  ;;  %v2557_v30 = vsub.s32 4, %v2533_v38 }
 0x269   : > { %v2538_v33 = vsel %vm2536_vm9, %v2537_v41, %v2535_v54  ;;  %v5113_v8 = vsel %vm5112_vm4, 1, %v17760_v18  ;;  %vm17882_vm3 = vcmp.lt.s32.totalorder %v17871_v47, 4  ;;  %v5107_v24 = vmul.u32 %v5103_v9, %v5101_v25 }
 0x26a   : > { %v2539_v15 = vclz %v2538_v33  ;;  %v5088_v1 = vsel %vm17882_vm3, %v5076_v16, 2102212464  ;;  %v2420_v32 = vadd.f32 1.0, %v2419_v28  ;;  %v5110_v61 = vshll.u32 %v13458_v3, 16 }
 0x26b   : > { %v5114_v27 = vadd.s32 %v5108_v0, %v5104_v45  ;;  %v5124_v43 = vand.u32 65535, %v5094_v42  ;;  %v2527_v2 = vadd.s32 %v13361_v5, %v13349_v22  ;;  %v13476_v62 = vand.u32 3, %v2406_v50 }
 0x26c   : > { %v10915_v52 = vadd.s32 4294967294, %v2539_v15  ;;  %v5115_v63 = vadd.s32 %v5113_v8, %v5107_v24  ;;  %v13478_v41 = vadd.f32 1.0, %v2412_v57  ;;  %v5087_v33 = vsel %vm5083_vm0, %v5067_v11, %v5070_v49 }
 0x26d   : > { %vm5116_vm11 = vc.u32 %v5114_v27, %v5110_v61  ;;  %v5127_v16 = vmul.u32 %v5125_v60, %v5100_v39  ;;  %v2558_v9 = vsel %vm2435_vm14, %v2557_v30, %v2533_v38  ;;  %vm7380_vm5 = vcmp.eq.s32.totalorder %v13466_v46, 0 }
 0x26e   : > { %vm10916_vm1 = vcmp.lt.s32.totalorder %v10915_v52, 0  ;;  %v5089_v22 = vsel %vm5085_vm6, %v13398_v29, %v5088_v1  ;;  %v5117_v5 = vsel %vm5116_vm11, 1, %v17760_v18  ;;  %v13490_v50 = vmul.f32 %v2420_v32, %v13390_v20 }
 0x26f   : > { %v2542_v42 = vsel %vm10916_vm1, 0, %v10915_v52  ;;  %v5128_v45 = vmul.u32 %v5124_v43, %v5101_v25  ;;  %v5130_v49 = vshll.u32 %v5127_v16, 16  ;;  %v5119_v28 = vadd.s32 %v5117_v5, %v5115_v63 }
 0x270   : > { %v2543_v61 = vsub.s32 32, %v2542_v42  ;;  %v2547_v0 = vsub.s32 4294967266, %v2542_v42  ;;  %v5126_v11 = vmul.u32 %v5124_v43, %v5100_v39  ;;  %v2429_v38 = vxor.u32 2147483648, %v13478_v41 }
 0x271   : > { %v2560_v57 = vsel %vm13462_vm12, 0, %v2558_v9  ;;  %v5109_v8 = vshrl.u32 %v13448_v12, 16  ;;  %v5129_v29 = vmul.u32 %v5125_v60, %v5101_v25  ;;  %v2544_v15 = vshll.u32 %v2535_v54, %v2542_v42  ;;  %v17883_v54 = vld [vmem:[#allocation6_spill] sm:$0xff] }
 0x272   : > { %v2545_v30 = vshrl.u32 %v2527_v2, %v2543_v61  ;;  %v2548_v1 = vadd.s32 127, %v2547_v0  ;;  %vm5134_vm8 = vc.u32 %v5126_v11, %v5130_v49  ;;  %v2426_v32 = vxor.u32 2147483648, %v13490_v50 }
 0x273   : > { %vm7379_vm7 = vcmp.lt.s32.totalorder %v13466_v46, 2  ;;  %v5132_v20 = vshll.u32 %v5128_v45, 16  ;;  %v5135_v52 = vsel %vm5134_vm8, 1, %v17760_v18  ;;  %v5136_v43 = vadd.s32 %v5130_v49, %v5126_v11 }
 0x274   : > { %v2546_v39 = vor.u32 %v2545_v30, %v2544_v15  ;;  %v2549_v24 = vshll.u32 %v2548_v1, 23  ;;  %v5120_v27 = vadd.s32 %v5119_v28, %v5109_v8  ;;  %v5137_v63 = vadd.s32 %v5135_v52, %v5129_v29  ;;  %v17885_v30 = vld [vmem:[#allocation21_spill] sm:$0xff] }
 0x275   : > { %vm7383_vm2 = vcmp.eq.s32.totalorder %v13466_v46, 2  ;;  %v5090_v12 = vsel %vm5084_vm15, %v5087_v33, %v5089_v22  ;;  %vm5138_vm10 = vc.u32 %v5136_v43, %v5132_v20  ;;  %v17579_v25 = vand.u32 2147483647, %v17883_v54 }
 0x276   : > { %vm2422_vm0 = vweird.f32 %v17832_v26  ;;  %v2550_v60 = vor.u32 4788187, %v2549_v24  ;;  %v7532_v2 = vadd.s32 3, %v2560_v57  ;;  %v5111_v9 = vshrl.u32 %v13458_v3, 16 }
 0x277   : > { %v5139_v5 = vsel %vm5138_vm10, 1, %v17760_v18  ;;  %v7382_v42 = vsel %vm7380_vm5, %v13478_v41, %v2426_v32  ;;  %v13511_v49 = vand.u32 3, %v2560_v57  ;;  %v5131_v47 = vshrl.u32 %v5127_v16, 16  ;;  %v17884_v57 = vld [vmem:[#allocation19_spill] sm:$0xff] }
 0x278   : > { %v5141_v33 = vadd.s32 %v5139_v5, %v5137_v63  ;;  %v2551_v22 = vand.u32 2147483647, %v2550_v60  ;;  %v2553_v61 = vcvt.s32.f32 %v2546_v39  ;;  %v7385_v0 = vsel %vm7383_vm2, %v2429_v38, %v13490_v50 }
 0x279   : > { %v13516_v28 = vadd.s32 %v5120_v27, %v5111_v9  ;;  %v5133_v3 = vshrl.u32 %v5128_v45, 16  ;;  %v13518_v11 = vadd.s32 %v5136_v43, %v5132_v20  ;;  %v5212_v29 = vand.u32 8388607, %v17579_v25 }
 0x27a   : > { %v5142_v8 = vadd.s32 %v5141_v33, %v5131_v47  ;;  %v2554_v15 = vmul.f32 %v2553_v61, %v2551_v22  ;;  %v5222_v16 = vshll.u32 %v17757_v31, %v17884_v57  ;;  %v5223_v1 = vshrl.u32 %v17793_v10, %v17885_v30  ;;  %v17886_v22 = vld [vmem:[#allocation23_spill] sm:$0xff] }
 0x27b   : > { %v5226_v52 = vshrl.u32 %v17794_v51, %v17885_v30  ;;  %v5225_v45 = vshll.u32 %v17793_v10, %v17884_v57  ;;  %v5228_v20 = vshll.u32 %v17794_v51, %v17884_v57  ;;  %v5229_v43 = vshrl.u32 %v17687_v58, %v17885_v30 }
 0x27c   : > { %v5143_v39 = vadd.s32 %v5142_v8, %v5133_v3  ;;  %v2555_v24 = vxor.u32 2147483648, %v2554_v15  ;;  %v7386_v27 = vsel %vm7379_vm7, %v7382_v42, %v7385_v0  ;;  %vm2425_vm6 = vcmp.eq.s32.totalorder %v13476_v62, 0  ;;  %v17887_v8 = vld [vmem:[#allocation35_spill] sm:$0xff] }
 0x27d   : > { %vm5146_vm15 = vc.u32 %v13516_v28, %v13518_v11  ;;  %v5213_v63 = vor.u32 8388608, %v5212_v29  ;;  %vm2428_vm9 = vcmp.eq.s32.totalorder %v13476_v62, 2  ;;  %v13540_v9 = vor.u32 %v5223_v1, %v5222_v16  ;;  %v17888_v29 = vld [vmem:[#allocation28_spill] sm:$0xff] }
 0x27e   : > { %v5147_v60 = vadd.s32 1, %v5143_v39  ;;  %v13542_v5 = vor.u32 %v5226_v52, %v5225_v45  ;;  %v13544_v47 = vor.u32 %v5229_v43, %v5228_v20  ;;  %v2556_v33 = vsel %vm2435_vm14, %v2555_v24, %v2554_v15  ;;  %v17889_v15 = vld [vmem:[#allocation32_spill] sm:$0xff] }
 0x27f   : > { %v13548_v46 = vand.u32 3, %v7532_v2  ;;  %v5144_v42 = vmul.u32 %v13416_v35, %v5090_v12  ;;  %vm5239_vm4 = vcmp.lt.s32.totalorder %v17886_v22, 3  ;;  %v13555_v61 = vsel %vm13462_vm12, %v17857_v21, %v2556_v33 }
 0x280   : > { %v13559_v0 = vsel %vm2422_vm0, nan, %v7386_v27  ;;  %vm2424_vm3 = vcmp.lt.s32.totalorder %v13476_v62, 2  ;;  %v5148_v3 = vsel %vm5146_vm15, %v5147_v60, %v5143_v39  ;;  %v5251_v2 = vsel %vm5239_vm4, %v17888_v29, %v17887_v8 }
 0x281   : > { %v2561_v35 = vmul.f32 %v13555_v61, %v13555_v61  ;;  %v5149_v12 = vadd.s32 %v5148_v3, %v5144_v42  ;;  %vm5237_vm14 = vcmp.lt.s32.totalorder %v17886_v22, 1  ;;  %vm17581_vm12 = vcmp.lt.s32.totalorder %v17886_v22, 2 }
 0x282   : > { %v5245_v23 = vsel %vm5237_vm14, %v13540_v9, %v13542_v5  ;;  %v5247_v57 = vsel %vm5239_vm4, %v13544_v47, %v17889_v15  ;;  %v5249_v16 = vsel %vm5237_vm14, %v13542_v5, %v13544_v47  ;;  %v13582_v1 = vshll.u32 %v5213_v63, 8 }
 0x283   : > { %v2562_v52 = vmul.f32 -0.001358992, %v2561_v35  ;;  %v2569_v39 = vmul.f32 -0.00019511016, %v2561_v35  ;;  %v5150_v45 = vadd.s32 536870912, %v5149_v12  ;;  %v5252_v20 = vsel %vm17581_vm12, %v5249_v16, %v5251_v2 }
 0x284   : > { %v5254_v43 = vand.u32 65535, %v13582_v1  ;;  %v5255_v24 = vshrl.u32 %v13582_v1, 16  ;;  %v5256_v27 = vand.u32 65535, %v5252_v20  ;;  %v5257_v60 = vshrl.u32 %v5252_v20, 16 }
 0x285   : > { %v2563_v33 = vadd.f32 0.041655596, %v2562_v52  ;;  %v2570_v42 = vadd.f32 0.008332121, %v2569_v39  ;;  %v13588_v3 = vshrl.u32 %v5150_v45, 30  ;;  %v5248_v63 = vsel %vm17581_vm12, %v5245_v23, %v5247_v57 }
 0x286   : > { %v2427_v8 = vsel %vm2425_vm6, %v13478_v41, %v2426_v32  ;;  %v13599_v29 = vshrl.u32 %v17757_v31, %v17885_v30  ;;  %v13601_v2 = vmul.u32 %v5257_v60, %v5254_v43  ;;  %v13603_v15 = vmul.u32 %v5256_v27, %v5255_v24 }
 0x287   : > { %v2564_v16 = vmul.f32 %v2563_v33, %v2561_v35  ;;  %v2571_v52 = vmul.f32 %v2570_v42, %v2561_v35  ;;  %v2430_v23 = vsel %vm2428_vm9, %v2429_v38, %v13490_v50  ;;  %v5152_v57 = vshll.u32 %v13588_v3, 30 }
 0x288   : > { %v5258_v39 = vmul.u32 %v5256_v27, %v5254_v43  ;;  %v5262_v32 = vshll.u32 %v13601_v2, 16  ;;  %v5278_v45 = vand.u32 65535, %v5248_v63  ;;  %v5279_v30 = vshrl.u32 %v5248_v63, 16 }
 0x289   : > { %v2565_v20 = vadd.f32 -0.4999988, %v2564_v16  ;;  %v2572_v25 = vadd.f32 -0.16666654, %v2571_v52  ;;  %vm7538_vm11 = vcmp.eq.s32.totalorder %v13548_v46, 2  ;;  %v2431_v33 = vsel %vm2424_vm3, %v2427_v8, %v2430_v23 }
 0x28a   : > { %v13615_v42 = vsub.s32 %v5149_v12, %v5152_v57  ;;  %vm7535_vm1 = vcmp.eq.s32.totalorder %v13548_v46, 0  ;;  %vm2579_vm5 = vcmp.eq.s32.totalorder %v13511_v49, 0  ;;  %vm2582_vm8 = vcmp.eq.s32.totalorder %v13511_v49, 2 }
 0x28b   : > { %v5261_v41 = vmul.u32 %v5257_v60, %v5255_v24  ;;  %v5264_v50 = vshll.u32 %v13603_v15, 16  ;;  %vm5266_vm7 = vc.u32 %v5258_v39, %v5262_v32  ;;  %v5268_v38 = vadd.s32 %v5262_v32, %v5258_v39 }
 0x28c   : > { %v2566_v27 = vmul.f32 %v2565_v20, %v2561_v35  ;;  %v2573_v63 = vmul.f32 %v2572_v25, %v2561_v35  ;;  %vm7534_vm2 = vcmp.lt.s32.totalorder %v13548_v46, 2  ;;  %vm2578_vm10 = vcmp.lt.s32.totalorder %v13511_v49, 2 }
 0x28d   : > { %vm5154_vm6 = vcmp.lt.s32.totalorder %v13615_v42, 0  ;;  %v5155_v62 = vsub.s32 0, %v13615_v42  ;;  %vm2576_vm15 = vweird.f32 %v17857_v21  ;;  %v5267_v12 = vsel %vm5266_vm7, 1, %v17760_v18 }
 0x28e   : > { %vm5270_vm9 = vc.u32 %v5268_v38, %v5264_v50  ;;  %v13627_v60 = vmul.u32 %v5279_v30, %v5254_v43  ;;  %v13629_v8 = vmul.u32 %v5278_v45, %v5255_v24  ;;  %vm1828_vm3 = vcmp.gt.s32.totalorder %v13320_v44, 0 }
 0x28f   : > { %v2567_v25 = vadd.f32 1.0, %v2566_v27  ;;  %v2574_v35 = vadd.f32 1.0, %v2573_v63  ;;  %v5156_v16 = vsel %vm5154_vm6, %v5155_v62, %v13615_v42  ;;  %v5269_v52 = vadd.s32 %v5267_v12, %v5261_v41 }
 0x290   : > { %v5157_v23 = vclz %v5156_v16  ;;  %v5271_v57 = vsel %vm5270_vm9, 1, %v17760_v18  ;;  %v5280_v39 = vmul.u32 %v5278_v45, %v5254_v43  ;;  %v5284_v32 = vshll.u32 %v13627_v60, 16 }
 0x291   : > { %v2575_v20 = vmul.f32 %v2574_v35, %v13555_v61  ;;  %v2583_v50 = vxor.u32 2147483648, %v2567_v25  ;;  %v2432_v38 = vsel %vm2422_vm0, nan, %v2431_v33  ;;  %v5145_v53 = vadd.s32 %v13518_v11, %v13516_v28 }
 0x292   : > { %vm1058_vm7 = vcmp.gt.s32.totalorder %v13359_v13, 0  ;;  %v10966_v27 = vadd.s32 4294967294, %v5157_v23  ;;  %vm17890_vm6 = vcmp.lt.s32.totalorder %v17886_v22, 4  ;;  %v5273_v63 = vadd.s32 %v5271_v57, %v5269_v52 }
 0x293   : > { %v5242_v41 = vsel %vm17890_vm6, %v13544_v47, 2102212464  ;;  %vm5288_vm9 = vc.u32 %v5280_v39, %v5284_v32  ;;  %v2580_v43 = vxor.u32 2147483648, %v2575_v20  ;;  %v5263_v45 = vshrl.u32 %v13601_v2, 16 }
 0x294   : > { %v5283_v61 = vmul.u32 %v5279_v30, %v5255_v24  ;;  %v5286_v62 = vshll.u32 %v13629_v8, 16  ;;  %vm4162_vm0 = vcmp.lt.s32.totalorder %v13087_v14, 4  ;;  %v7540_v26 = vsel %vm7538_vm11, %v2583_v50, %v2575_v20  ;;  %v17934_v14 = vld [vmem:[#allocation68_spill] sm:$0xff] }
 0x295   : > { %vm10967_vm12 = vcmp.lt.s32.totalorder %v10966_v27, 0  ;;  %v5289_v28 = vsel %vm5288_vm9, 1, %v17760_v18  ;;  %v5290_v11 = vadd.s32 %v5284_v32, %v5280_v39  ;;  %v7537_v47 = vsel %vm7535_vm1, %v2567_v25, %v2580_v43 }
 0x296   : > { %v2581_v33 = vsel %vm2579_vm5, %v2567_v25, %v2580_v43  ;;  %v2584_v24 = vsel %vm2582_vm8, %v2583_v50, %v2575_v20  ;;  %v5160_v2 = vsel %vm10967_vm12, 0, %v10966_v27  ;;  %v7541_v30 = vsel %vm7534_vm2, %v7537_v47, %v7540_v26 }
 0x297   : > { %v2585_v12 = vsel %vm2578_vm10, %v2581_v33, %v2584_v24  ;;  %v5161_v35 = vsub.s32 32, %v5160_v2  ;;  %v5274_v16 = vadd.s32 %v5273_v63, %v5263_v45  ;;  %v7542_v52 = vsel %vm2576_vm15, nan, %v7541_v30 }
 0x298   : > { %v2586_v23 = vsel %vm2576_vm15, nan, %v2585_v12  ;;  %v5165_v57 = vsub.s32 4294967266, %v5160_v2  ;;  %v5291_v25 = vadd.s32 %v5289_v28, %v5283_v61  ;;  %v10648_v39 = vpack.c.bf16 %v7542_v52, %v13559_v0 }
 0x299   : > { %v5672_v32 = vpack.c.bf16 %v2586_v23, %v2432_v38  ;;  %v5163_v20 = vshrl.u32 %v5145_v53, %v5161_v35  ;;  %vm5292_vm12 = vc.u32 %v5290_v11, %v5286_v62  ;;  %v5162_v46 = vshll.u32 %v13615_v42, %v5160_v2 }
 0x29a   : > { %v5166_v50 = vadd.s32 127, %v5165_v57  ;;  %v5265_v49 = vshrl.u32 %v13603_v15, 16  ;;  %v5293_v27 = vsel %vm5292_vm12, 1, %v17760_v18  ;;  %v1829_v63 = vsel %vm1828_vm3, %v13320_v44, 0  ;;  %10675 = vmatpush.bf16.msra.mxu0 %v10648_v39  ;;  %v17903_v57 = vld [vmem:[#allocation39_spill] sm:$0xff] }
 0x29b   : > { %10701 = vmatpush.bf16.msra.mxu2 %v5672_v32  ;;  %v5241_v21 = vsel %vm5237_vm14, %v13599_v29, %v13540_v9  ;;  %v5285_v53 = vshrl.u32 %v13627_v60, 16  ;;  %v5295_v0 = vadd.s32 %v5293_v27, %v5291_v25  ;;  %v5164_v42 = vor.u32 %v5163_v20, %v5162_v46 }
 0x29c   : > { %v5167_v38 = vshll.u32 %v5166_v50, 23  ;;  %v5243_v15 = vsel %vm5239_vm4, %v13542_v5, %v5242_v41  ;;  %v13679_v43 = vadd.s32 %v5274_v16, %v5265_v49  ;;  %v17891_v44 = vor.u32 %v13152_v34, %v13122_v6 }
 0x29d   : > { %v3999_v9 = vshll.u32 %v17687_v58, %v13419_v19  ;;  %v5287_v29 = vshrl.u32 %v13629_v8, 16  ;;  %v5296_v60 = vadd.s32 %v5295_v0, %v5285_v53  ;;  %v13694_v61 = vsel %vm4162_vm0, %v13432_v40, 920167782 }
 0x29e   : > { %v13686_v45 = vsel %vm17611_vm13, %v17891_v44, 1326507024  ;;  %17893 = vst [vmem:[#allocation30_spill] sm:$0xff] %v13694_v61  ;;  %v1059_v5 = vsel %vm1058_vm7, %v13359_v13, 0  ;;  %v5168_v34 = vor.u32 4788187, %v5167_v38  ;;  %v13699_v6 = vadd.s32 %v5290_v11, %v5286_v62 }
 0x29f   : > { %17892 = vst [vmem:[#allocation26_spill] sm:$0xff] %v13686_v45  ;;  %v4000_v41 = vshrl.u32 %v17701_v48, %v13451_v17  ;;  %v13703_v26 = vand.u32 31, %v1829_v63  ;;  %vm17895_vm4 = vcmp.lt.s32.totalorder %v17886_v22, 2  ;;  %v5297_v28 = vadd.s32 %v5296_v60, %v5287_v29 }
 0x2a0   : > { %v5244_v8 = vsel %vm17895_vm4, %v5241_v21, %v5243_v15  ;;  %v4003_v47 = vshrl.u32 %v17689_v37, %v13451_v17  ;;  %v5169_v33 = vand.u32 2147483647, %v5168_v34  ;;  %v5171_v24 = vcvt.s32.f32 %v5164_v42 }
 0x2a1   : > { %17894 = vst [vmem:[#allocation34_spill] sm:$0xff] %v13703_v26  ;;  %vm5300_vm14 = vc.u32 %v13679_v43, %v13699_v6  ;;  %v17896_v13 = vor.u32 %v13333_v55, %v13137_v4  ;;  %v4002_v22 = vshll.u32 %v17701_v48, %v13419_v19  ;;  %v13720_v11 = vand.u32 31, %v1059_v5 }
 0x2a2   : > { %v5301_v2 = vadd.s32 1, %v5297_v28  ;;  %vm17612_vm11 = vcmp.lt.s32.totalorder %v13411_v56, 4  ;;  %v13723_v30 = vshrl.u32 %v1829_v63, 5  ;;  %v5172_v12 = vmul.f32 %v5171_v24, %v5169_v33 }
 0x2a3   : > { %v13716_v62 = vsel %vm4162_vm0, %v17896_v13, 1326507024  ;;  %17898 = vst [vmem:[#allocation40_spill] sm:$0xff] %v13720_v11  ;;  %v5298_v35 = vmul.u32 %v13582_v1, %v5244_v8  ;;  %v13726_v16 = vor.u32 %v4000_v41, %v3999_v9  ;;  %v13729_v4 = vsub.s32 32, %v13703_v26  ;;  %v17906_v1 = vld [vmem:[#allocation36_spill] sm:$0xff] }
 0x2a4   : > { %17897 = vst [vmem:[#allocation52_spill] sm:$0xff] %v13716_v62  ;;  %v13731_v55 = vshrl.u32 %v1059_v5, 5  ;;  %v5302_v52 = vsel %vm5300_vm14, %v5301_v2, %v5297_v28  ;;  %v4004_v23 = vor.u32 %v4003_v47, %v4002_v22  ;;  %v17904_v25 = vand.u32 2139095040, %v17903_v57  ;;  %v568_v47 = vpop.permute.xlu1 %567 }
 0x2a5   : > { %17899 = vst [vmem:[#allocation51_spill] sm:$0xff] %v13723_v30  ;;  %v5173_v32 = vxor.u32 2147483648, %v5172_v12  ;;  %v5303_v20 = vadd.s32 %v5302_v52, %v5298_v35  ;;  %v1843_v46 = vshll.u32 %v17687_v58, %v13703_v26  ;;  %v13738_v50 = vsub.s32 32, %v13720_v11  ;;  %v17913_v35 = vld [vmem:[#allocation24_spill] sm:$0xff] }
 0x2a6   : > { %17900 = vst [vmem:[#allocation18_spill] sm:$0xff] %v13726_v16  ;;  %v3669_v39 = vshrl.u32 %v17904_v25, 23  ;;  %v3822_v49 = vand.u32 2139095040, %v17906_v1  ;;  %vm5053_vm1 = vcmp.lt.s32.totalorder %v17864_v36, 0  ;;  %v1846_v27 = vshll.u32 %v17701_v48, %v13703_v26 }
 0x2a7   : > { %17901 = vst [vmem:[#allocation47_spill] sm:$0xff] %v13729_v4  ;;  %v17907_v63 = vand.u32 2147483647, %v17864_v36  ;;  %v5174_v53 = vsel %vm5053_vm1, %v5173_v32, %v5172_v12  ;;  %v5304_v0 = vadd.s32 536870912, %v5303_v20  ;;  %v13755_v42 = vsel %vm17612_vm11, %v13726_v16, 920167782 }
 0x2a8   : > { %17902 = vst [vmem:[#allocation41_spill] sm:$0xff] %v13731_v55  ;;  %v1844_v38 = vshrl.u32 %v17701_v48, %v13729_v4  ;;  %vm1852_vm8 = vcmp.lt.s32.totalorder %v13723_v30, 4  ;;  %v13767_v44 = vsel %vm17612_vm11, %v4004_v23, 1326507024  ;;  %v1847_v9 = vshrl.u32 %v17689_v37, %v13729_v4 }
 0x2a9   : > { %17905 = vst [vmem:[#allocation59_spill] sm:$0xff] %v13738_v50  ;;  %vm13746_vm5 = vcmp.le.f32.partialorder %v17907_v63, 0.7853982  ;;  %v13775_v60 = vshrl.u32 %v5304_v0, 30  ;;  %v1073_v5 = vshll.u32 %v17687_v58, %v13720_v11  ;;  %v1074_v34 = vshrl.u32 %v17701_v48, %v13738_v50  ;;  %v17914_v63 = vld [vmem:[#allocation46_spill] sm:$0xff] }
 0x2aa   : > { %17910 = vst [vmem:[#allocation71_spill] sm:$0xff] %v13755_v42  ;;  %v13763_v15 = vsel %vm13746_vm5, %v17864_v36, %v5174_v53  ;;  %v13783_v41 = vshll.u32 %v17701_v48, %v13720_v11  ;;  %v13787_v8 = vshrl.u32 %v17689_v37, %v13738_v50  ;;  %v10938_v28 = vadd.s32 4294967169, %v3669_v39  ;;  %v17916_v50 = vld [vmem:[#allocation12_spill] sm:$0xff] }
 0x2ab   : > { %17911 = vst [vmem:[#allocation62_spill] sm:$0xff] %v13767_v44  ;;  %v13773_v29 = vmul.f32 %v13763_v15, %v13763_v15  ;;  %v5306_v13 = vshll.u32 %v13775_v60, 30  ;;  %v13792_v22 = vor.u32 %v1844_v38, %v1843_v46  ;;  %v3823_v2 = vshrl.u32 %v3822_v49, 23  ;;  %v17917_v11 = vld [vmem:[#allocation16_spill] sm:$0xff]  ;;  %v11179_v46 = vld [vmem:[%s11381_s13 + $0x1] ss:$0 sm:$0xff] }
 0x2ac   : > { %v5175_v12 = vsub.s32 4, %v13588_v3  ;;  %v17587_v52 = vand.u32 2147483647, %v17913_v35  ;;  %v1848_v23 = vor.u32 %v1847_v9, %v1846_v27  ;;  %v17586_v39 = vand.u32 2147483647, %v17914_v63 }
 0x2ad   : > { %v5180_v33 = vmul.f32 -0.001358992, %v13773_v29  ;;  %v5187_v24 = vmul.f32 -0.00019511016, %v13773_v29  ;;  %17912 = vst [vmem:[#allocation70_spill] sm:$0xff] %v13792_v22  ;;  %v5307_v32 = vsub.s32 %v5303_v20, %v5306_v13  ;;  %v13797_v53 = vor.u32 %v1074_v34, %v1073_v5 }
 0x2ae   : > { %v13803_v57 = vadd.f32 %v17917_v11, %v17916_v50  ;;  %v680_v49 = vmul.f32 %v11179_v46, %v568_v47  ;;  %v13807_v9 = vadd.s32 1, %v10938_v28  ;;  %v13809_v20 = vadd.s32 4294967169, %v3823_v2 }
 0x2af   : > { %v5188_v25 = vadd.f32 0.008332121, %v5187_v24  ;;  %17915 = vst [vmem:[#allocation20_spill] sm:$0xff] %v13797_v53  ;;  %v5181_v38 = vadd.f32 0.041655596, %v5180_v33  ;;  %vm5308_vm2 = vcmp.lt.s32.totalorder %v5307_v32, 0  ;;  %v5176_v5 = vsel %vm5053_vm1, %v5175_v12, %v13588_v3 }
 0x2b0   : > { %17918 = vst [vmem:[#allocation45_spill] sm:$0xff] %v13803_v57  ;;  %v5309_v27 = vsub.s32 0, %v5307_v32  ;;  %v13816_v34 = vand.u32 8388607, %v17587_v52  ;;  %v13821_v11 = vsel %vm1852_vm8, %v13792_v22, 920167782 }
 0x2b1   : > { %v5189_v45 = vmul.f32 %v5188_v25, %v13773_v29  ;;  %17919 = vst [vmem:[#allocation54_spill] sm:$0xff] %v13821_v11  ;;  %v13825_v50 = vsel %vm1852_vm8, %v1848_v23, 1326507024  ;;  %v4750_v47 = vand.u32 8388607, %v17586_v39  ;;  %v17921_v3 = vld [vmem:[#allocation9_spill] sm:$0xff]  ;;  %v5182_v12 = vmul.f32 %v5181_v38, %v13773_v29 }
 0x2b2   : > { %17920 = vst [vmem:[#allocation63_spill] sm:$0xff] %v13825_v50  ;;  %v5310_v28 = vsel %vm5308_vm2, %v5309_v27, %v5307_v32  ;;  %v13831_v24 = vadd.f32 %v680_v49, %v17921_v3  ;;  %vm5207_vm10 = vcmp.lt.s32.totalorder %v17883_v54, 0  ;;  %v13836_v2 = vsel %vm13746_vm5, 0, %v5176_v5  ;;  %v17926_v38 = vld [vmem:[#allocation89_spill] sm:$0xff]  ;;  %v17928_v3 = vld [vmem:[#allocation86_spill] sm:$0xff] }
 0x2b3   : > { %v5311_v13 = vclz %v5310_v28  ;;  %v5190_v23 = vadd.f32 -0.16666654, %v5189_v45  ;;  %v17922_v25 = vand.u32 2147483647, %v17883_v54  ;;  %v5299_v49 = vadd.s32 %v13699_v6, %v13679_v43  ;;  %v17925_v28 = vld [vmem:[#allocation60_spill] sm:$0xff]  ;;  %v17927_v6 = vld [vmem:[#allocation65_spill] sm:$0xff] }
 0x2b4   : > { %v4914_v21 = vshll.u32 %v17757_v31, %v17925_v28  ;;  %v5329_v5 = vsub.s32 4, %v13775_v60  ;;  %v4751_v39 = vor.u32 8388608, %v4750_v47  ;;  %v4761_v45 = vshrl.u32 %v17793_v10, %v17926_v38 }
 0x2b5   : > { %vm13841_vm15 = vcmp.le.f32.partialorder %v17922_v25, 0.7853982  ;;  %v10969_v27 = vadd.s32 4294967294, %v5311_v13  ;;  %v4917_v25 = vshll.u32 %v17793_v10, %v17925_v28  ;;  %v4764_v52 = vshrl.u32 %v17794_v51, %v17926_v38 }
 0x2b6   : > { %v4767_v43 = vshrl.u32 %v17687_v58, %v17926_v38  ;;  %v4915_v13 = vshrl.u32 %v17793_v10, %v17927_v6  ;;  %v5183_v33 = vadd.f32 -0.4999988, %v5182_v12  ;;  %v5191_v0 = vmul.f32 %v5190_v23, %v13773_v29 }
 0x2b7   : > { %vm10970_vm3 = vcmp.lt.s32.totalorder %v10969_v27, 0  ;;  %v4760_v59 = vshll.u32 %v17757_v31, %v17928_v3  ;;  %v4763_v44 = vshll.u32 %v17793_v10, %v17928_v3  ;;  %v4766_v56 = vshll.u32 %v17794_v51, %v17928_v3 }
 0x2b8   : > { %v5314_v47 = vsel %vm10970_vm3, 0, %v10969_v27  ;;  %v5330_v19 = vsel %vm5207_vm10, %v5329_v5, %v13775_v60  ;;  %v4918_v23 = vshrl.u32 %v17794_v51, %v17927_v6  ;;  %v5184_v11 = vmul.f32 %v5183_v33, %v13773_v29 }
 0x2b9   : > { %v5315_v42 = vsub.s32 32, %v5314_v47  ;;  %v5319_v16 = vsub.s32 4294967266, %v5314_v47  ;;  %v5316_v17 = vshll.u32 %v5307_v32, %v5314_v47  ;;  %v4762_v12 = vor.u32 %v4761_v45, %v4760_v59  ;;  %v17932_v45 = vld [vmem:[#allocation90_spill] sm:$0xff] }
 0x2ba   : > { %v13873_v22 = vor.u32 %v4764_v52, %v4763_v44  ;;  %v4768_v50 = vor.u32 %v4767_v43, %v4766_v56  ;;  %v5192_v30 = vadd.f32 1.0, %v5191_v0  ;;  %v4920_v3 = vshll.u32 %v17794_v51, %v17925_v28 }
 0x2bb   : > { %v5317_v27 = vshrl.u32 %v5299_v49, %v5315_v42  ;;  %v5320_v1 = vadd.s32 127, %v5319_v16  ;;  %v4921_v32 = vshrl.u32 %v17687_v58, %v17927_v6  ;;  %v5332_v59 = vsel %vm13841_vm15, 0, %v5330_v19  ;;  %v17929_v16 = vld [vmem:[#allocation84_spill] sm:$0xff] }
 0x2bc   : > { %v13882_v5 = vshll.u32 %v4751_v39, 8  ;;  %vm4775_vm7 = vcmp.lt.s32.totalorder %v17929_v16, 1  ;;  %vm4777_vm6 = vcmp.lt.s32.totalorder %v17929_v16, 3  ;;  %v13886_v56 = vor.u32 %v4915_v13, %v4914_v21  ;;  %v17931_v21 = vld [vmem:[#allocation96_spill] sm:$0xff] }
 0x2bd   : > { %v5318_v47 = vor.u32 %v5317_v27, %v5316_v17  ;;  %v5321_v60 = vshll.u32 %v5320_v1, 23  ;;  %v13888_v42 = vor.u32 %v4918_v23, %v4917_v25  ;;  %v10167_v29 = vadd.s32 3, %v13836_v2  ;;  %v17930_v1 = vld [vmem:[#allocation95_spill] sm:$0xff] }
 0x2be   : > { %v4783_v17 = vsel %vm4775_vm7, %v4762_v12, %v13873_v22  ;;  %v4785_v19 = vsel %vm4777_vm6, %v4768_v50, %v17930_v1  ;;  %v13897_v52 = vadd.f32 1.0, %v5184_v11  ;;  %v13900_v39 = vmul.f32 %v5192_v30, %v13763_v15 }
 0x2bf   : > { %v5322_v44 = vor.u32 4788187, %v5321_v60  ;;  %v10322_v0 = vadd.s32 3, %v5332_v59  ;;  %v4787_v33 = vsel %vm4775_vm7, %v13873_v22, %v4768_v50  ;;  %v5325_v28 = vcvt.s32.f32 %v5318_v47 }
 0x2c0   : > { %vm4776_vm9 = vcmp.lt.s32.totalorder %v17929_v16, 2  ;;  %v4789_v25 = vsel %vm4777_vm6, %v17932_v45, %v17931_v21  ;;  %v4792_v15 = vand.u32 65535, %v13882_v5  ;;  %v13917_v43 = vor.u32 %v4921_v32, %v4920_v3 }
 0x2c1   : > { %v5323_v49 = vand.u32 2147483647, %v5322_v44  ;;  %v13912_v11 = vsel %vm4776_vm9, %v4783_v17, %v4785_v19  ;;  %v4790_v30 = vsel %vm4776_vm9, %v4787_v33, %v4789_v25  ;;  %v10168_v23 = vand.u32 3, %v10167_v29 }
 0x2c2   : > { %v13919_v27 = vand.u32 3, %v5332_v59  ;;  %v13922_v47 = vshrl.u32 %v13882_v5, 16  ;;  %v13924_v60 = vand.u32 3, %v10322_v0  ;;  %v4759_v44 = vshrl.u32 %v17757_v31, %v17926_v38 }
 0x2c3   : > { %v5326_v13 = vmul.f32 %v5325_v28, %v5323_v49  ;;  %v4794_v17 = vand.u32 65535, %v4790_v30  ;;  %v4795_v1 = vshrl.u32 %v4790_v30, 16  ;;  %v5198_v19 = vxor.u32 2147483648, %v13900_v39 }
 0x2c4   : > { %v5201_v33 = vxor.u32 2147483648, %v13897_v52  ;;  %v4817_v32 = vshrl.u32 %v13912_v11, 16  ;;  %v13933_v59 = vsel %vm4775_vm7, %v4759_v44, %v4762_v12  ;;  %vm17933_vm12 = vcmp.lt.s32.totalorder %v17929_v16, 4 }
 0x2c5   : > { %v5327_v3 = vxor.u32 2147483648, %v5326_v13  ;;  %v4780_v29 = vsel %vm17933_vm12, %v4768_v50, 2102212464  ;;  %v4797_v0 = vmul.u32 %v4795_v1, %v4792_v15  ;;  %v13938_v49 = vmul.u32 %v4794_v17, %v13922_v47 }
 0x2c6   : > { %vm10169_vm4 = vcmp.lt.s32.totalorder %v10168_v23, 2  ;;  %vm10170_vm14 = vcmp.eq.s32.totalorder %v10168_v23, 0  ;;  %v13942_v28 = vmul.u32 %v4817_v32, %v4792_v15  ;;  %v4796_v12 = vmul.u32 %v4794_v17, %v4792_v15 }
 0x2c7   : > { %v5328_v38 = vsel %vm5207_vm10, %v5327_v3, %v5326_v13  ;;  %v4800_v45 = vshll.u32 %v4797_v0, 16  ;;  %v4816_v50 = vand.u32 65535, %v13912_v11  ;;  %v10172_v30 = vsel %vm10170_vm14, %v13897_v52, %v5198_v19 }
 0x2c8   : > { %v13947_v21 = vsel %vm13841_vm15, %v17883_v54, %v5328_v38  ;;  %vm10173_vm1 = vcmp.eq.s32.totalorder %v10168_v23, 2  ;;  %v4799_v13 = vmul.u32 %v4795_v1, %v13922_v47  ;;  %v4802_v44 = vshll.u32 %v13938_v49, 16 }
 0x2c9   : > { %v5333_v25 = vmul.f32 %v13947_v21, %v13947_v21  ;;  %vm4804_vm5 = vc.u32 %v4796_v12, %v4800_v45  ;;  %v4806_v3 = vadd.s32 %v4800_v45, %v4796_v12  ;;  %v4822_v46 = vshll.u32 %v13942_v28, 16 }
 0x2ca   : > { %v5195_v17 = vand.u32 3, %v13836_v2  ;;  %v4805_v11 = vsel %vm4804_vm5, 1, %v17760_v18  ;;  %vm5194_vm2 = vweird.f32 %v17864_v36  ;;  %v4781_v26 = vsel %vm4777_vm6, %v13873_v22, %v4780_v29  ;;  %v17935_v36 = vld [vmem:[#allocation80_spill] sm:$0xff] }
 0x2cb   : > { %v5334_v38 = vmul.f32 -0.001358992, %v5333_v25  ;;  %v5341_v4 = vmul.f32 -0.00019511016, %v5333_v25  ;;  %v4807_v61 = vadd.s32 %v4805_v11, %v4799_v13  ;;  %vm4808_vm10 = vc.u32 %v4806_v3, %v4802_v44 }
 0x2cc   : > { %v4818_v1 = vmul.u32 %v4816_v50, %v4792_v15  ;;  %v10175_v12 = vsel %vm10173_vm1, %v5201_v33, %v13900_v39  ;;  %v4809_v45 = vsel %vm4808_vm10, 1, %v17760_v18  ;;  %vm4929_vm15 = vcmp.lt.s32.totalorder %v17934_v14, 1 }
 0x2cd   : > { %v5335_v40 = vadd.f32 0.041655596, %v5334_v38  ;;  %v5342_v62 = vadd.f32 0.008332121, %v5341_v4  ;;  %v4801_v2 = vshrl.u32 %v4797_v0, 16  ;;  %v4811_v7 = vadd.s32 %v4809_v45, %v4807_v61 }
 0x2ce   : > { %v13967_v37 = vmul.u32 %v4816_v50, %v13922_v47  ;;  %vm4826_vm3 = vc.u32 %v4818_v1, %v4822_v46  ;;  %v10176_v29 = vsel %vm10169_vm4, %v10172_v30, %v10175_v12  ;;  %vm5197_vm7 = vcmp.eq.s32.totalorder %v5195_v17, 0 }
 0x2cf   : > { %v5336_v35 = vmul.f32 %v5335_v40, %v5333_v25  ;;  %v5343_v22 = vmul.f32 %v5342_v62, %v5333_v25  ;;  %vm4931_vm6 = vcmp.lt.s32.totalorder %v17934_v14, 3  ;;  %vm5196_vm12 = vcmp.lt.s32.totalorder %v5195_v17, 2 }
 0x2d0   : > { %v5199_v4 = vsel %vm5197_vm7, %v13897_v52, %v5198_v19  ;;  %vm5354_vm14 = vcmp.eq.s32.totalorder %v13919_v27, 2  ;;  %v4812_v15 = vadd.s32 %v4811_v7, %v4801_v2  ;;  %v4828_v13 = vadd.s32 %v4822_v46, %v4818_v1  ;;  %v17936_v2 = vld [vmem:[#allocation81_spill] sm:$0xff] }
 0x2d1   : > { %vm4930_vm1 = vcmp.lt.s32.totalorder %v17934_v14, 2  ;;  %v5337_v61 = vadd.f32 -0.4999988, %v5336_v35  ;;  %v5344_v0 = vadd.f32 -0.16666654, %v5343_v22  ;;  %vm5200_vm5 = vcmp.eq.s32.totalorder %v5195_v17, 2 }
 0x2d2   : > { %v4827_v40 = vsel %vm4826_vm3, 1, %v17760_v18  ;;  %v5202_v62 = vsel %vm5200_vm5, %v5201_v33, %v13900_v39  ;;  %vm5351_vm4 = vcmp.eq.s32.totalorder %v13919_v27, 0  ;;  %v4803_v23 = vshrl.u32 %v13938_v49, 16  ;;  %v17937_v22 = vld [vmem:[#allocation78_spill] sm:$0xff] }
 0x2d3   : > { %v4821_v50 = vmul.u32 %v4817_v32, %v13922_v47  ;;  %v4824_v52 = vshll.u32 %v13967_v37, 16  ;;  %v5338_v19 = vmul.f32 %v5337_v61, %v5333_v25  ;;  %v5345_v7 = vmul.f32 %v5344_v0, %v5333_v25 }
 0x2d4   : > { %vm10324_vm10 = vcmp.lt.s32.totalorder %v13924_v60, 2  ;;  %vm10325_vm7 = vcmp.eq.s32.totalorder %v13924_v60, 0  ;;  %v5203_v35 = vsel %vm5196_vm12, %v5199_v4, %v5202_v62  ;;  %vm5350_vm3 = vcmp.lt.s32.totalorder %v13919_v27, 2 }
 0x2d5   : > { %vm5348_vm5 = vweird.f32 %v17883_v54  ;;  %vm10328_vm13 = vcmp.eq.s32.totalorder %v13924_v60, 2  ;;  %v13986_v39 = vadd.s32 %v4812_v15, %v4803_v23  ;;  %v4829_v33 = vadd.s32 %v4827_v40, %v4821_v50 }
 0x2d6   : > { %vm4830_vm11 = vc.u32 %v4828_v13, %v4824_v52  ;;  %v5339_v47 = vadd.f32 1.0, %v5338_v19  ;;  %v5346_v32 = vadd.f32 1.0, %v5345_v7  ;;  %v10177_v49 = vsel %vm5194_vm2, nan, %v10176_v29 }
 0x2d7   : > { %v4782_v25 = vsel %vm4776_vm9, %v13933_v59, %v4781_v26  ;;  %vm17616_vm12 = vcmp.lt.s32.totalorder %v13731_v55, 4  ;;  %v5204_v30 = vsel %vm5194_vm2, nan, %v5203_v35  ;;  %v4831_v44 = vsel %vm4830_vm11, 1, %v17760_v18 }
 0x2d8   : > { %v13997_v3 = vadd.s32 %v4828_v13, %v4824_v52  ;;  %v4937_v46 = vsel %vm4929_vm15, %v13886_v56, %v13888_v42  ;;  %v5347_v38 = vmul.f32 %v5346_v32, %v13947_v21  ;;  %v5355_v17 = vxor.u32 2147483648, %v5339_v47 }
 0x2d9   : > { %v4823_v16 = vshrl.u32 %v13942_v28, 16  ;;  %v4825_v26 = vshrl.u32 %v13967_v37, 16  ;;  %v4833_v59 = vadd.s32 %v4831_v44, %v4829_v33  ;;  %v4939_v11 = vsel %vm4931_vm6, %v13917_v43, %v17935_v36 }
 0x2da   : > { %vm4838_vm9 = vc.u32 %v13986_v39, %v13997_v3  ;;  %v4941_v1 = vsel %vm4929_vm15, %v13888_v42, %v13917_v43  ;;  %v5352_v21 = vxor.u32 2147483648, %v5347_v38  ;;  %v10330_v28 = vsel %vm10328_vm13, %v5355_v17, %v5347_v38 }
 0x2db   : > { %v5356_v37 = vsel %vm5354_vm14, %v5355_v17, %v5347_v38  ;;  %v4940_v12 = vsel %vm4930_vm1, %v4937_v46, %v4939_v11  ;;  %v4834_v45 = vadd.s32 %v4833_v59, %v4823_v16  ;;  %v4943_v29 = vsel %vm4931_vm6, %v17937_v22, %v17936_v2 }
 0x2dc   : > { %v17938_v4 = vor.u32 8388608, %v13816_v34  ;;  %v4970_v13 = vand.u32 65535, %v4940_v12  ;;  %v10327_v61 = vsel %vm10325_vm7, %v5339_v47, %v5352_v21  ;;  %v5353_v0 = vsel %vm5351_vm4, %v5339_v47, %v5352_v21 }
 0x2dd   : > { %v4944_v40 = vsel %vm4930_vm1, %v4941_v1, %v4943_v29  ;;  %v4971_v62 = vshrl.u32 %v4940_v12, 16  ;;  %v10331_v23 = vsel %vm10324_vm10, %v10327_v61, %v10330_v28  ;;  %v5357_v50 = vsel %vm5350_vm3, %v5353_v0, %v5356_v37 }
 0x2de   : > { %v14028_v15 = vshll.u32 %v17938_v4, 8  ;;  %v4835_v34 = vadd.s32 %v4834_v45, %v4825_v26  ;;  %v10332_v19 = vsel %vm5348_vm5, nan, %v10331_v23  ;;  %v5358_v7 = vsel %vm5348_vm5, nan, %v5357_v50 }
 0x2df   : > { %v4948_v33 = vand.u32 65535, %v4944_v40  ;;  %v10657_v47 = vpack.c.bf16 %v10332_v19, %v10177_v49  ;;  %v5681_v32 = vpack.c.bf16 %v5358_v7, %v5204_v30  ;;  %v4949_v60 = vshrl.u32 %v4944_v40, 16 }
 0x2e0   : > { %v4946_v52 = vand.u32 65535, %v14028_v15  ;;  %v4947_v35 = vshrl.u32 %v14028_v15, 16  ;;  %v4839_v44 = vadd.s32 1, %v4835_v34  ;;  %v14049_v27 = vsel %vm17616_vm12, %v13797_v53, 920167782 }
 0x2e1   : > { %17939 = vst [vmem:[#allocation73_spill] sm:$0xff] %v14049_v27  ;;  %v4836_v46 = vmul.u32 %v13882_v5, %v4782_v25  ;;  %v17940_v54 = vor.u32 %v13787_v8, %v13783_v41  ;;  %vm3676_vm13 = vcmp.gt.s32.totalorder %v13807_v9, 0  ;;  %10687 = vmatpush.bf16.msra.mxu1 %v10657_v47  ;;  %10713 = vmatpush.bf16.msra.mxu3 %v5681_v32  ;;  %v14064_v5 = vadd.s32 1, %v13809_v20 }
 0x2e2   : > { %v4952_v38 = vmul.u32 %v4948_v33, %v4947_v35  ;;  %v4973_v17 = vmul.u32 %v4971_v62, %v4946_v52  ;;  %v4840_v49 = vsel %vm4838_vm9, %v4839_v44, %v4835_v34  ;;  %v4951_v30 = vmul.u32 %v4949_v60, %v4946_v52 }
 0x2e3   : > { %v14057_v16 = vsel %vm17616_vm12, %v17940_v54, 1326507024  ;;  %v4841_v25 = vadd.s32 %v4840_v49, %v4836_v46  ;;  %v4950_v26 = vmul.u32 %v4948_v33, %v4946_v52  ;;  %v4974_v59 = vmul.u32 %v4970_v13, %v4947_v35 }
 0x2e4   : > { %17941 = vst [vmem:[#allocation66_spill] sm:$0xff] %v14057_v16  ;;  %v4953_v41 = vmul.u32 %v4949_v60, %v4947_v35  ;;  %v4954_v8 = vshll.u32 %v4951_v30, 16  ;;  %v4972_v36 = vmul.u32 %v4970_v13, %v4946_v52  ;;  %v4976_v11 = vshll.u32 %v4973_v17, 16 }
 0x2e5   : > { %v4842_v1 = vadd.s32 536870912, %v4841_v25  ;;  %v4956_v21 = vshll.u32 %v4952_v38, 16  ;;  %v4975_v28 = vmul.u32 %v4971_v62, %v4947_v35  ;;  %v4978_v37 = vshll.u32 %v4974_v59, 16  ;;  %v17943_v35 = vld [vmem:[#allocation74_spill] sm:$0xff] }
 0x2e6   : > { %vm4958_vm11 = vc.u32 %v4950_v26, %v4954_v8  ;;  %v4960_v12 = vadd.s32 %v4954_v8, %v4950_v26  ;;  %vm4980_vm2 = vc.u32 %v4972_v36, %v4976_v11  ;;  %v4982_v45 = vadd.s32 %v4976_v11, %v4972_v36  ;;  %v17947_v11 = vld [vmem:[#allocation94_spill] sm:$0xff] }
 0x2e7   : > { %v14066_v2 = vshrl.u32 %v4842_v1, 30  ;;  %vm17942_vm14 = vcmp.lt.s32.totalorder %v17934_v14, 4  ;;  %v4959_v22 = vsel %vm4958_vm11, 1, %v17760_v18  ;;  %v4981_v29 = vsel %vm4980_vm2, 1, %v17760_v18 }
 0x2e8   : > { %v4934_v20 = vsel %vm17942_vm14, %v13917_v43, 2102212464  ;;  %v4961_v4 = vadd.s32 %v4959_v22, %v4953_v41  ;;  %vm4962_vm4 = vc.u32 %v4960_v12, %v4956_v21  ;;  %v4983_v13 = vadd.s32 %v4981_v29, %v4975_v28 }
 0x2e9   : > { %vm4984_vm10 = vc.u32 %v4982_v45, %v4978_v37  ;;  %v4844_v61 = vshll.u32 %v14066_v2, 30  ;;  %v4913_v0 = vshrl.u32 %v17757_v31, %v17927_v6  ;;  %v4963_v40 = vsel %vm4962_vm4, 1, %v17760_v18 }
 0x2ea   : > { %v4985_v62 = vsel %vm4984_vm10, 1, %v17760_v18  ;;  %v4955_v23 = vshrl.u32 %v4951_v30, 16  ;;  %v4965_v50 = vadd.s32 %v4963_v40, %v4961_v4  ;;  %v4977_v43 = vshrl.u32 %v4973_v17, 16 }
 0x2eb   : > { %v4987_v34 = vadd.s32 %v4985_v62, %v4983_v13  ;;  %v4845_v52 = vsub.s32 %v4841_v25, %v4844_v61  ;;  %v4933_v19 = vsel %vm4929_vm15, %v4913_v0, %v13886_v56  ;;  %v4935_v7 = vsel %vm4931_vm6, %v13888_v42, %v4934_v20  ;;  %v17949_v61 = vld [vmem:[#allocation93_spill] sm:$0xff] }
 0x2ec   : > { %v17613_v33 = vand.u32 2147483647, %v17943_v35  ;;  %v4957_v6 = vshrl.u32 %v4952_v38, 16  ;;  %v4966_v47 = vadd.s32 %v4965_v50, %v4955_v23  ;;  %v4979_v32 = vshrl.u32 %v4974_v59, 16  ;;  %v17950_v23 = vld [vmem:[#allocation109_spill] sm:$0xff] }
 0x2ed   : > { %v4988_v44 = vadd.s32 %v4987_v34, %v4977_v43  ;;  %v3677_v60 = vsel %vm3676_vm13, %v13807_v9, 0  ;;  %v17944_v46 = vand.u32 2139095040, %v13803_v57  ;;  %vm4846_vm7 = vcmp.lt.s32.totalorder %v4845_v52, 0  ;;  %v17945_v9 = vld [vmem:[#allocation98_spill] sm:$0xff]  ;;  %v17951_v50 = vld [vmem:[#allocation101_spill] sm:$0xff] }
 0x2ee   : > { %v4847_v54 = vsub.s32 0, %v4845_v52  ;;  %v4936_v56 = vsel %vm4930_vm1, %v4933_v19, %v4935_v7  ;;  %v14092_v49 = vadd.s32 %v4966_v47, %v4957_v6  ;;  %v14094_v42 = vadd.s32 %v4982_v45, %v4978_v37 }
 0x2ef   : > { %v743_v17 = vshrl.u32 %v17944_v46, 23  ;;  %v4989_v38 = vadd.s32 %v4988_v44, %v4979_v32  ;;  %v1512_v30 = vand.u32 2139095040, %v13831_v24  ;;  %v4442_v26 = vand.u32 8388607, %v17613_v33 }
 0x2f0   : > { %v4848_v25 = vsel %vm4846_vm7, %v4847_v54, %v4845_v52  ;;  %v4456_v59 = vshrl.u32 %v17794_v51, %v17945_v9  ;;  %v14101_v41 = vshrl.u32 %v3677_v60, 5  ;;  %vm4992_vm15 = vc.u32 %v14092_v49, %v14094_v42 }
 0x2f1   : > { %v4849_v8 = vclz %v4848_v25  ;;  %v4993_v14 = vadd.s32 1, %v4989_v38  ;;  %v4990_v36 = vmul.u32 %v14028_v15, %v4936_v56  ;;  %v4455_v1 = vshll.u32 %v17793_v10, %v17947_v11 }
 0x2f2   : > { %17946 = vst [vmem:[#allocation72_spill] sm:$0xff] %v14101_v41  ;;  %v4458_v21 = vshll.u32 %v17794_v51, %v17947_v11  ;;  %v4459_v28 = vshrl.u32 %v17687_v58, %v17945_v9  ;;  %v14112_v37 = vand.u32 31, %v3677_v60  ;;  %v4453_v20 = vshrl.u32 %v17793_v10, %v17945_v9 }
 0x2f3   : > { %v10960_v12 = vadd.s32 4294967294, %v4849_v8  ;;  %v4994_v45 = vsel %vm4992_vm15, %v4993_v14, %v4989_v38  ;;  %v4443_v29 = vor.u32 8388608, %v4442_v26  ;;  %v14116_v4 = vor.u32 %v4456_v59, %v4455_v1 }
 0x2f4   : > { %17948 = vst [vmem:[#allocation6_spill] sm:$0xff] %v14112_v37  ;;  %v4995_v22 = vadd.s32 %v4994_v45, %v4990_v36  ;;  %v14118_v15 = vor.u32 %v4459_v28, %v4458_v21  ;;  %vm3830_vm6 = vcmp.gt.s32.totalorder %v14064_v5, 0  ;;  %v4452_v13 = vshll.u32 %v17757_v31, %v17947_v11 }
 0x2f5   : > { %vm10961_vm1 = vcmp.lt.s32.totalorder %v10960_v12, 0  ;;  %vm4469_vm3 = vcmp.lt.s32.totalorder %v17949_v61, 3  ;;  %v4837_v0 = vadd.s32 %v13997_v3, %v13986_v39  ;;  %vm4467_vm5 = vcmp.lt.s32.totalorder %v17949_v61, 1 }
 0x2f6   : > { %v4852_v40 = vsel %vm10961_vm1, 0, %v10960_v12  ;;  %v4996_v62 = vadd.s32 536870912, %v4995_v22  ;;  %v4481_v43 = vsel %vm4469_vm3, %v17951_v50, %v17950_v23  ;;  %v4454_v7 = vor.u32 %v4453_v20, %v4452_v13  ;;  %v17953_v20 = vld [vmem:[#allocation108_spill] sm:$0xff] }
 0x2f7   : > { %v4853_v34 = vsub.s32 32, %v4852_v40  ;;  %v4857_v19 = vsub.s32 4294967266, %v4852_v40  ;;  %vm4468_vm9 = vcmp.lt.s32.totalorder %v17949_v61, 2  ;;  %v4479_v39 = vsel %vm4467_vm5, %v14116_v4, %v14118_v15 }
 0x2f8   : > { %v4997_v6 = vshrl.u32 %v4996_v62, 30  ;;  %v14136_v3 = vshll.u32 %v4443_v29, 8  ;;  %v4854_v47 = vshll.u32 %v4845_v52, %v4852_v40  ;;  %v4482_v60 = vsel %vm4468_vm9, %v4479_v39, %v4481_v43 }
 0x2f9   : > { %v4855_v32 = vshrl.u32 %v4837_v0, %v4853_v34  ;;  %v4858_v44 = vadd.s32 127, %v4857_v19  ;;  %v14143_v46 = vsel %vm3830_vm6, %v14064_v5, 0  ;;  %v14145_v54 = vadd.s32 4294967169, %v743_v17  ;;  %v17954_v0 = vld [vmem:[#allocation24_spill] sm:$0xff] }
 0x2fa   : > { %v14147_v56 = vshrl.u32 %v1512_v30, 23  ;;  %v4998_v38 = vshll.u32 %v4997_v6, 30  ;;  %v14150_v25 = vsub.s32 32, %v14112_v37  ;;  %v4487_v59 = vshrl.u32 %v4482_v60, 16 }
 0x2fb   : > { %v4856_v26 = vor.u32 %v4855_v32, %v4854_v47  ;;  %v4859_v52 = vshll.u32 %v4858_v44, 23  ;;  %v14154_v8 = vshll.u32 %v17687_v58, %v14112_v37  ;;  %v4867_v14 = vsub.s32 4, %v14066_v2 }
 0x2fc   : > { %17952 = vst [vmem:[#allocation19_spill] sm:$0xff] %v14150_v25  ;;  %v4999_v36 = vsub.s32 %v4995_v22, %v4998_v38  ;;  %v4484_v5 = vand.u32 65535, %v14136_v3  ;;  %v14160_v17 = vshll.u32 %v17701_v48, %v14112_v37  ;;  %vm4745_vm13 = vcmp.lt.s32.totalorder %v17914_v63, 0 }
 0x2fd   : > { %v4860_v30 = vor.u32 4788187, %v4859_v52  ;;  %v4475_v11 = vsel %vm4467_vm5, %v4454_v7, %v14116_v4  ;;  %v5021_v21 = vsub.s32 4, %v4997_v6  ;;  %v4863_v45 = vcvt.s32.f32 %v4856_v26 }
 0x2fe   : > { %vm5000_vm11 = vcmp.lt.s32.totalorder %v4999_v36, 0  ;;  %v5001_v1 = vsub.s32 0, %v4999_v36  ;;  %v14166_v28 = vmul.u32 %v4487_v59, %v4484_v5  ;;  %v4477_v22 = vsel %vm4469_vm3, %v14118_v15, %v17953_v20 }
 0x2ff   : > { %v4861_v12 = vand.u32 2147483647, %v4860_v30  ;;  %v4486_v29 = vand.u32 65535, %v4482_v60  ;;  %v4868_v13 = vsel %vm4745_vm13, %v4867_v14, %v14066_v2  ;;  %v17955_v40 = vand.u32 2147483647, %v17954_v0 }
 0x300   : > { %vm4899_vm14 = vcmp.lt.s32.totalorder %v17954_v0, 0  ;;  %v5002_v23 = vsel %vm5000_vm11, %v5001_v1, %v4999_v36  ;;  %v17958_v50 = vand.u32 2147483647, %v17914_v63  ;;  %v4485_v39 = vshrl.u32 %v14136_v3, 16 }
 0x301   : > { %vm14177_vm2 = vcmp.le.f32.partialorder %v17955_v40, 0.7853982  ;;  %v4864_v34 = vmul.f32 %v4863_v45, %v4861_v12  ;;  %v5003_v19 = vclz %v5002_v23  ;;  %v5022_v2 = vsel %vm4899_vm14, %v5021_v21, %v4997_v6 }
 0x302   : > { %vm14184_vm4 = vcmp.le.f32.partialorder %v17958_v50, 0.7853982  ;;  %v4451_v47 = vshrl.u32 %v17757_v31, %v17945_v9  ;;  %v4478_v32 = vsel %vm4468_vm9, %v4475_v11, %v4477_v22  ;;  %v4492_v44 = vshll.u32 %v14166_v28, 16 }
 0x303   : > { %v4865_v60 = vxor.u32 2147483648, %v4864_v34  ;;  %v4870_v38 = vsel %vm14184_vm4, 0, %v4868_v13  ;;  %v10963_v26 = vadd.s32 4294967294, %v5003_v19  ;;  %v14198_v52 = vmul.u32 %v4486_v29, %v4485_v39 }
 0x304   : > { %v4991_v14 = vadd.s32 %v14094_v42, %v14092_v49  ;;  %v14204_v6 = vsel %vm4467_vm5, %v4451_v47, %v4454_v7  ;;  %vm17961_vm10 = vcmp.lt.s32.totalorder %v17949_v61, 4  ;;  %v4488_v30 = vmul.u32 %v4486_v29, %v4484_v5 }
 0x305   : > { %v4472_v9 = vsel %vm17961_vm10, %v14118_v15, 2102212464  ;;  %v4866_v11 = vsel %vm4745_vm13, %v4865_v60, %v4864_v34  ;;  %vm10964_vm7 = vcmp.lt.s32.totalorder %v10963_v26, 0  ;;  %v5024_v1 = vsel %vm14177_vm2, 0, %v5022_v2 }
 0x306   : > { %v4508_v21 = vand.u32 65535, %v4478_v32  ;;  %v14216_v49 = vsel %vm14184_vm4, %v17914_v63, %v4866_v11  ;;  %v5006_v42 = vsel %vm10964_vm7, 0, %v10963_v26  ;;  %v4491_v7 = vmul.u32 %v4487_v59, %v4485_v39 }
 0x307   : > { %vm4496_vm15 = vc.u32 %v4488_v30, %v4492_v44  ;;  %v4871_v15 = vmul.f32 %v14216_v49, %v14216_v49  ;;  %v5007_v12 = vsub.s32 32, %v5006_v42  ;;  %v5011_v45 = vsub.s32 4294967266, %v5006_v42 }
 0x308   : > { %v4494_v20 = vshll.u32 %v14198_v52, 16  ;;  %v5008_v22 = vshll.u32 %v4999_v36, %v5006_v42  ;;  %v4497_v29 = vsel %vm4496_vm15, 1, %v17760_v18  ;;  %v4498_v13 = vadd.s32 %v4492_v44, %v4488_v30 }
 0x309   : > { %v4509_v40 = vshrl.u32 %v4478_v32, 16  ;;  %v4872_v23 = vmul.f32 -0.001358992, %v4871_v15  ;;  %v4879_v50 = vmul.f32 -0.00019511016, %v4871_v15  ;;  %v5009_v43 = vshrl.u32 %v4991_v14, %v5007_v12 }
 0x30a   : > { %v5012_v34 = vadd.s32 127, %v5011_v45  ;;  %v9857_v19 = vadd.s32 3, %v4870_v38  ;;  %v4499_v2 = vadd.s32 %v4497_v29, %v4491_v7  ;;  %vm4500_vm6 = vc.u32 %v4498_v13, %v4494_v20 }
 0x30b   : > { %v4511_v59 = vmul.u32 %v4509_v40, %v4484_v5  ;;  %v4873_v47 = vadd.f32 0.041655596, %v4872_v23  ;;  %v4880_v60 = vadd.f32 0.008332121, %v4879_v50  ;;  %v5010_v26 = vor.u32 %v5009_v43, %v5008_v22 }
 0x30c   : > { %v5013_v11 = vshll.u32 %v5012_v34, 23  ;;  %v4501_v33 = vsel %vm4500_vm6, 1, %v17760_v18  ;;  %v4510_v57 = vmul.u32 %v4508_v21, %v4484_v5  ;;  %v4512_v36 = vmul.u32 %v4508_v21, %v4485_v39 }
 0x30d   : > { %v4514_v42 = vshll.u32 %v4511_v59, 16  ;;  %v4874_v27 = vmul.f32 %v4873_v47, %v4871_v15  ;;  %v4881_v44 = vmul.f32 %v4880_v60, %v4871_v15  ;;  %v4493_v30 = vshrl.u32 %v14166_v28, 16 }
 0x30e   : > { %v5014_v32 = vor.u32 4788187, %v5013_v11  ;;  %v5017_v14 = vcvt.s32.f32 %v5010_v26  ;;  %v4503_v12 = vadd.s32 %v4501_v33, %v4499_v2  ;;  %v4513_v45 = vmul.u32 %v4509_v40, %v4485_v39 }
 0x30f   : > { %vm4518_vm1 = vc.u32 %v4510_v57, %v4514_v42  ;;  %v4875_v7 = vadd.f32 -0.4999988, %v4874_v27  ;;  %v4882_v20 = vadd.f32 -0.16666654, %v4881_v44  ;;  %v4520_v13 = vadd.s32 %v4514_v42, %v4510_v57 }
 0x310   : > { %v5015_v29 = vand.u32 2147483647, %v5014_v32  ;;  %v10012_v22 = vadd.s32 3, %v5024_v1  ;;  %v4473_v5 = vsel %vm4469_vm3, %v14116_v4, %v4472_v9  ;;  %v4516_v21 = vshll.u32 %v4512_v36, 16  ;;  %v17963_v32 = vld [vmem:[#allocation69_spill] sm:$0xff] }
 0x311   : > { %v4519_v23 = vsel %vm4518_vm1, 1, %v17760_v18  ;;  %v4883_v50 = vmul.f32 %v4882_v20, %v4871_v15  ;;  %v4504_v34 = vadd.s32 %v4503_v12, %v4493_v30  ;;  %v4876_v47 = vmul.f32 %v4875_v7, %v4871_v15  ;;  %v17964_v12 = vld [vmem:[#allocation77_spill] sm:$0xff] }
 0x312   : > { %v5018_v43 = vmul.f32 %v5017_v14, %v5015_v29  ;;  %v4521_v28 = vadd.s32 %v4519_v23, %v4513_v45  ;;  %v14228_v33 = vand.u32 3, %v9857_v19  ;;  %v14230_v39 = vand.u32 3, %v4870_v38 }
 0x313   : > { %vm4522_vm5 = vc.u32 %v4520_v13, %v4516_v21  ;;  %v4884_v27 = vadd.f32 1.0, %v4883_v50  ;;  %v4495_v40 = vshrl.u32 %v14198_v52, 16  ;;  %v14234_v4 = vand.u32 3, %v5024_v1 }
 0x314   : > { %v5019_v57 = vxor.u32 2147483648, %v5018_v43  ;;  %v4523_v2 = vsel %vm4522_vm5, 1, %v17760_v18  ;;  %v4474_v9 = vsel %vm4468_vm9, %v14204_v6, %v4473_v5  ;;  %v4515_v60 = vshrl.u32 %v4511_v59, 16  ;;  %v17962_v6 = vld [vmem:[#allocation31_spill] sm:$0xff] }
 0x315   : > { %v4525_v26 = vadd.s32 %v4523_v2, %v4521_v28  ;;  %v14241_v38 = vand.u32 3, %v10012_v22  ;;  %v4505_v19 = vadd.s32 %v4504_v34, %v4495_v40  ;;  %v4517_v11 = vshrl.u32 %v4512_v36, 16  ;;  %v17965_v2 = vld [vmem:[#allocation79_spill] sm:$0xff] }
 0x316   : > { %v5020_v15 = vsel %vm4899_vm14, %v5019_v57, %v5018_v43  ;;  %v14243_v42 = vadd.f32 1.0, %v4876_v47  ;;  %vm9860_vm3 = vcmp.eq.s32.totalorder %v14228_v33, 0  ;;  %v17618_v1 = vand.u32 2147483647, %v17962_v6 }
 0x317   : > { %v14248_v52 = vsel %vm14177_vm2, %v17954_v0, %v5020_v15  ;;  %v4526_v61 = vadd.s32 %v4525_v26, %v4515_v60  ;;  %v4885_v59 = vmul.f32 %v4884_v27, %v14216_v49  ;;  %vm4889_vm9 = vcmp.eq.s32.totalorder %v14230_v39, 0 }
 0x318   : > { %v5025_v44 = vmul.f32 %v14248_v52, %v14248_v52  ;;  %v4524_v36 = vadd.s32 %v4520_v13, %v4516_v21  ;;  %v4606_v30 = vshll.u32 %v17757_v31, %v17963_v32  ;;  %vm9863_vm13 = vcmp.eq.s32.totalorder %v14228_v33, 2 }
 0x319   : > { %v4527_v62 = vadd.s32 %v4526_v61, %v4517_v11  ;;  %v4528_v14 = vmul.u32 %v14136_v3, %v4474_v9  ;;  %v4607_v45 = vshrl.u32 %v17793_v10, %v17964_v12  ;;  %vm9859_vm11 = vcmp.lt.s32.totalorder %v14228_v33, 2 }
 0x31a   : > { %v5026_v7 = vmul.f32 -0.001358992, %v5025_v44  ;;  %v5033_v20 = vmul.f32 -0.00019511016, %v5025_v44  ;;  %vm4892_vm2 = vcmp.eq.s32.totalorder %v14230_v39, 2  ;;  %v14264_v49 = vadd.s32 %v4524_v36, %v4505_v19 }
 0x31b   : > { %vm4530_vm14 = vc.u32 %v4505_v19, %v4524_v36  ;;  %v4893_v29 = vxor.u32 2147483648, %v14243_v42  ;;  %v4531_v13 = vadd.s32 1, %v4527_v62  ;;  %v4596_v22 = vand.u32 8388607, %v17618_v1 }
 0x31c   : > { %v4609_v3 = vshll.u32 %v17793_v10, %v17963_v32  ;;  %v4890_v5 = vxor.u32 2147483648, %v4885_v59  ;;  %v5027_v21 = vadd.f32 0.041655596, %v5026_v7  ;;  %v5034_v23 = vadd.f32 0.008332121, %v5033_v20 }
 0x31d   : > { %vm4888_vm4 = vcmp.lt.s32.totalorder %v14230_v39, 2  ;;  %v14272_v50 = vor.u32 %v4607_v45, %v4606_v30  ;;  %vm4886_vm10 = vweird.f32 %v17914_v63  ;;  %v4532_v43 = vsel %vm4530_vm14, %v4531_v13, %v4527_v62  ;;  %v17966_v62 = vld [vmem:[#allocation87_spill] sm:$0xff] }
 0x31e   : > { %v4610_v34 = vshrl.u32 %v17794_v51, %v17964_v12  ;;  %v4612_v28 = vshll.u32 %v17794_v51, %v17963_v32  ;;  %v4613_v47 = vshrl.u32 %v17687_v58, %v17964_v12  ;;  %v5028_v27 = vmul.f32 %v5027_v21, %v5025_v44 }
 0x31f   : > { %v5035_v57 = vmul.f32 %v5034_v23, %v5025_v44  ;;  %v4533_v40 = vadd.s32 %v4532_v43, %v4528_v14  ;;  %vm4621_vm7 = vcmp.lt.s32.totalorder %v17965_v2, 1  ;;  %v4597_v9 = vor.u32 8388608, %v4596_v22 }
 0x320   : > { %v14282_v60 = vor.u32 %v4610_v34, %v4609_v3  ;;  %v14284_v26 = vor.u32 %v4613_v47, %v4612_v28  ;;  %vm4623_vm15 = vcmp.lt.s32.totalorder %v17965_v2, 3  ;;  %v5029_v15 = vadd.f32 -0.4999988, %v5028_v27  ;;  %v17968_v3 = vld [vmem:[#allocation82_spill] sm:$0xff] }
 0x321   : > { %v5036_v19 = vadd.f32 -0.16666654, %v5035_v57  ;;  %v9862_v11 = vsel %vm9860_vm3, %v14243_v42, %v4890_v5  ;;  %v4534_v61 = vadd.s32 536870912, %v4533_v40  ;;  %v9865_v36 = vsel %vm9863_vm13, %v4893_v29, %v4885_v59 }
 0x322   : > { %vm10015_vm6 = vcmp.eq.s32.totalorder %v14241_v38, 0  ;;  %vm10018_vm1 = vcmp.eq.s32.totalorder %v14241_v38, 2  ;;  %v4891_v32 = vsel %vm4889_vm9, %v14243_v42, %v4890_v5  ;;  %vm5043_vm5 = vcmp.eq.s32.totalorder %v14234_v4, 0 }
 0x323   : > { %vm5046_vm14 = vcmp.eq.s32.totalorder %v14234_v4, 2  ;;  %v4629_v30 = vsel %vm4621_vm7, %v14272_v50, %v14282_v60  ;;  %v4631_v14 = vsel %vm4623_vm15, %v14284_v26, %v17966_v62  ;;  %v5030_v45 = vmul.f32 %v5029_v15, %v5025_v44 }
 0x324   : > { %v5037_v7 = vmul.f32 %v5036_v19, %v5025_v44  ;;  %vm10014_vm3 = vcmp.lt.s32.totalorder %v14241_v38, 2  ;;  %vm5042_vm9 = vcmp.lt.s32.totalorder %v14234_v4, 2  ;;  %v14309_v42 = vshrl.u32 %v4534_v61, 30  ;;  %v17967_v44 = vld [vmem:[#allocation88_spill] sm:$0xff] }
 0x325   : > { %v4633_v20 = vsel %vm4621_vm7, %v14282_v60, %v14284_v26  ;;  %vm5040_vm13 = vweird.f32 %v17954_v0  ;;  %v9866_v13 = vsel %vm9859_vm11, %v9862_v11, %v9865_v36  ;;  %v4894_v22 = vsel %vm4892_vm2, %v4893_v29, %v4885_v59 }
 0x326   : > { %v4635_v5 = vsel %vm4623_vm15, %v17968_v3, %v17967_v44  ;;  %v14324_v21 = vshll.u32 %v4597_v9, 8  ;;  %v5031_v23 = vadd.f32 1.0, %v5030_v45  ;;  %v5038_v43 = vadd.f32 1.0, %v5037_v7 }
 0x327   : > { %v4536_v34 = vshll.u32 %v14309_v42, 30  ;;  %vm4622_vm12 = vcmp.lt.s32.totalorder %v17965_v2, 2  ;;  %v4895_v33 = vsel %vm4888_vm4, %v4891_v32, %v4894_v22  ;;  %v4605_v28 = vshrl.u32 %v17757_v31, %v17964_v12 }
 0x328   : > { %v4632_v59 = vsel %vm4622_vm12, %v4629_v30, %v4631_v14  ;;  %v4636_v29 = vsel %vm4622_vm12, %v4633_v20, %v4635_v5  ;;  %v5039_v47 = vmul.f32 %v5038_v43, %v14248_v52  ;;  %v5047_v27 = vxor.u32 2147483648, %v5031_v23 }
 0x329   : > { %v9867_v57 = vsel %vm4886_vm10, nan, %v9866_v13  ;;  %v14339_v9 = vsub.s32 %v4533_v40, %v4536_v34  ;;  %v4638_v39 = vand.u32 65535, %v14324_v21  ;;  %v4639_v15 = vshrl.u32 %v14324_v21, 16 }
 0x32a   : > { %v4640_v19 = vand.u32 65535, %v4636_v29  ;;  %v4641_v12 = vshrl.u32 %v4636_v29, 16  ;;  %v5044_v11 = vxor.u32 2147483648, %v5039_v47  ;;  %v4896_v61 = vsel %vm4886_vm10, nan, %v4895_v33 }
 0x32b   : > { %vm4538_vm11 = vcmp.lt.s32.totalorder %v14339_v9, 0  ;;  %v4662_v36 = vand.u32 65535, %v4632_v59  ;;  %v4539_v52 = vsub.s32 0, %v14339_v9  ;;  %v4663_v40 = vshrl.u32 %v4632_v59, 16 }
 0x32c   : > { %v4643_v32 = vmul.u32 %v4641_v12, %v4638_v39  ;;  %v14347_v30 = vmul.u32 %v4640_v19, %v4639_v15  ;;  %v10017_v62 = vsel %vm10015_vm6, %v5031_v23, %v5044_v11  ;;  %v10020_v14 = vsel %vm10018_vm1, %v5047_v27, %v5039_v47 }
 0x32d   : > { %v5045_v45 = vsel %vm5043_vm5, %v5031_v23, %v5044_v11  ;;  %v5048_v63 = vsel %vm5046_vm14, %v5047_v27, %v5039_v47  ;;  %v10021_v7 = vsel %vm10014_vm3, %v10017_v62, %v10020_v14  ;;  %v4540_v13 = vsel %vm4538_vm11, %v4539_v52, %v14339_v9 }
 0x32e   : > { %v5049_v20 = vsel %vm5042_vm9, %v5045_v45, %v5048_v63  ;;  %v4646_v22 = vshll.u32 %v4643_v32, 16  ;;  %v10022_v44 = vsel %vm5040_vm13, nan, %v10021_v7  ;;  %v4541_v5 = vclz %v4540_v13 }
 0x32f   : > { %v5050_v3 = vsel %vm5040_vm13, nan, %v5049_v20  ;;  %v4642_v23 = vmul.u32 %v4640_v19, %v4638_v39  ;;  %v10656_v43 = vpack.c.bf16 %v10022_v44, %v9867_v57  ;;  %v4645_v33 = vmul.u32 %v4641_v12, %v4639_v15 }
 0x330   : > { %v5680_v34 = vpack.c.bf16 %v5050_v3, %v4896_v61  ;;  %v4648_v38 = vshll.u32 %v14347_v30, 16  ;;  %v10954_v59 = vadd.s32 4294967294, %v4541_v5  ;;  %v4665_v29 = vmul.u32 %v4663_v40, %v4638_v39 }
 0x331   : > { %vm4650_vm2 = vc.u32 %v4642_v23, %v4646_v22  ;;  %v4652_v4 = vadd.s32 %v4646_v22, %v4642_v23  ;;  %10688 = vmatpush.bf16.msra.mxu1 %v10656_v43  ;;  %v4625_v47 = vsel %vm4621_vm7, %v4605_v28, %v14272_v50  ;;  %vm17969_vm4 = vcmp.lt.s32.totalorder %v17965_v2, 4 }
 0x332   : > { %10714 = vmatpush.bf16.msra.mxu3 %v5680_v34  ;;  %v4626_v0 = vsel %vm17969_vm4, %v14284_v26, 2102212464  ;;  %v4651_v27 = vsel %vm4650_vm2, 1, %v17760_v18  ;;  %v4666_v57 = vmul.u32 %v4662_v36, %v4639_v15  ;;  %vm10955_vm10 = vcmp.lt.s32.totalorder %v10954_v59, 0 }
 0x333   : > { %v4653_v19 = vadd.s32 %v4651_v27, %v4645_v33  ;;  %vm4654_vm6 = vc.u32 %v4652_v4, %v4648_v38  ;;  %v4668_v12 = vshll.u32 %v4665_v29, 16  ;;  %v4544_v11 = vsel %vm10955_vm10, 0, %v10954_v59 }
 0x334   : > { %v4647_v61 = vshrl.u32 %v4643_v32, 16  ;;  %v4655_v52 = vsel %vm4654_vm6, 1, %v17760_v18  ;;  %v4664_v62 = vmul.u32 %v4662_v36, %v4638_v39  ;;  %v4545_v14 = vsub.s32 32, %v4544_v11  ;;  %v17970_v36 = vld [vmem:[#allocation7_spill] sm:$0xff] }
 0x335   : > { %v4549_v45 = vsub.s32 4294967266, %v4544_v11  ;;  %v4657_v63 = vadd.s32 %v4655_v52, %v4653_v19  ;;  %v4667_v50 = vmul.u32 %v4663_v40, %v4639_v15  ;;  %v4546_v28 = vshll.u32 %v14339_v9, %v4544_v11 }
 0x336   : > { %v4670_v7 = vshll.u32 %v4666_v57, 16  ;;  %vm4672_vm7 = vc.u32 %v4664_v62, %v4668_v12  ;;  %v4674_v26 = vadd.s32 %v4668_v12, %v4664_v62  ;;  %v4547_v20 = vshrl.u32 %v14264_v49, %v4545_v14  ;;  %v17971_v12 = vld [vmem:[#allocation50_spill] sm:$0xff] }
 0x337   : > { %v4550_v13 = vadd.s32 127, %v4549_v45  ;;  %v4658_v22 = vadd.s32 %v4657_v63, %v4647_v61  ;;  %v4673_v44 = vsel %vm4672_vm7, 1, %v17760_v18  ;;  %v4627_v32 = vsel %vm4623_vm15, %v14282_v60, %v4626_v0  ;;  %v17972_v61 = vld [vmem:[#allocation57_spill] sm:$0xff] }
 0x338   : > { %v4675_v39 = vadd.s32 %v4673_v44, %v4667_v50  ;;  %vm4676_vm1 = vc.u32 %v4674_v26, %v4670_v7  ;;  %v17617_v3 = vand.u32 2147483647, %v17970_v36  ;;  %v4548_v15 = vor.u32 %v4547_v20, %v4546_v28  ;;  %v17973_v50 = vld [vmem:[#allocation64_spill] sm:$0xff]  ;;  %v17975_v20 = vld [vmem:[#allocation67_spill] sm:$0xff] }
 0x339   : > { %v4551_v40 = vshll.u32 %v4550_v13, 23  ;;  %v4649_v9 = vshrl.u32 %v14347_v30, 16  ;;  %v4677_v5 = vsel %vm4676_vm1, 1, %v17760_v18  ;;  %v14385_v49 = vshrl.u32 %v14143_v46, 5 }
 0x33a   : > { %v4669_v23 = vshrl.u32 %v4665_v29, 16  ;;  %v4679_v43 = vadd.s32 %v4677_v5, %v4675_v39  ;;  %v1978_v34 = vand.u32 8388607, %v17617_v3  ;;  %v14390_v60 = vand.u32 31, %v14143_v46 }
 0x33b   : > { %v749_v33 = vadd.s32 1, %v14145_v54  ;;  %v4552_v38 = vor.u32 4788187, %v4551_v40  ;;  %v14393_v59 = vadd.s32 %v4658_v22, %v4649_v9  ;;  %v4628_v30 = vsel %vm4622_vm12, %v4625_v47, %v4627_v32 }
 0x33c   : > { %v4671_v4 = vshrl.u32 %v4666_v57, 16  ;;  %v14397_v0 = vadd.s32 %v4674_v26, %v4670_v7  ;;  %v4680_v27 = vadd.s32 %v4679_v43, %v4669_v23  ;;  %v4555_v19 = vcvt.s32.f32 %v4548_v15  ;;  %v17974_v26 = vld [vmem:[#allocation76_spill] sm:$0xff] }
 0x33d   : > { %v4553_v29 = vand.u32 2147483647, %v4552_v38  ;;  %v1991_v11 = vshll.u32 %v17793_v10, %v17971_v12  ;;  %v1992_v46 = vshrl.u32 %v17794_v51, %v17972_v61  ;;  %v1979_v54 = vor.u32 8388608, %v1978_v34 }
 0x33e   : > { %v4681_v52 = vadd.s32 %v4680_v27, %v4671_v4  ;;  %v1994_v62 = vshll.u32 %v17794_v51, %v17971_v12  ;;  %v1995_v2 = vshrl.u32 %v17687_v58, %v17972_v61  ;;  %v3692_v47 = vshrl.u32 %v17701_v48, %v14150_v25 }
 0x33f   : > { %v4556_v57 = vmul.f32 %v4555_v19, %v4553_v29  ;;  %vm4684_vm12 = vc.u32 %v14393_v59, %v14397_v0  ;;  %v14411_v14 = vor.u32 %v1992_v46, %v1991_v11  ;;  %vm4437_vm15 = vcmp.lt.s32.totalorder %v17943_v35, 0 }
 0x340   : > { %v4685_v45 = vadd.s32 1, %v4681_v52  ;;  %v14414_v63 = vor.u32 %v1995_v2, %v1994_v62  ;;  %vm2005_vm5 = vcmp.lt.s32.totalorder %v17973_v50, 3  ;;  %vm3700_vm14 = vcmp.lt.s32.totalorder %v14101_v41, 4  ;;  %v18016_v41 = vld [vmem:[#allocation102_spill] sm:$0xff] }
 0x341   : > { %v4557_v28 = vxor.u32 2147483648, %v4556_v57  ;;  %v4682_v7 = vmul.u32 %v14324_v21, %v4628_v30  ;;  %vm2003_vm3 = vcmp.lt.s32.totalorder %v17973_v50, 1  ;;  %v2017_v13 = vsel %vm2005_vm5, %v17975_v20, %v17974_v26 }
 0x342   : > { %v17976_v22 = vand.u32 2147483647, %v17943_v35  ;;  %v4686_v32 = vsel %vm4684_vm12, %v4685_v45, %v4681_v52  ;;  %v2015_v39 = vsel %vm2003_vm3, %v14411_v14, %v14414_v63  ;;  %v14434_v21 = vshll.u32 %v1979_v54, 8 }
 0x343   : > { %v4558_v15 = vsel %vm4437_vm15, %v4557_v28, %v4556_v57  ;;  %v4687_v40 = vadd.s32 %v4686_v32, %v4682_v7  ;;  %v1989_v9 = vshrl.u32 %v17793_v10, %v17972_v61  ;;  %vm2004_vm13 = vcmp.lt.s32.totalorder %v17973_v50, 2 }
 0x344   : > { %vm14426_vm9 = vcmp.le.f32.partialorder %v17976_v22, 0.7853982  ;;  %v17979_v5 = vmov 1326507024   ;;  %v10896_v43 = vadd.s32 4294967169, %v14147_v56  ;;  %v14451_v38 = vsel %vm2004_vm13, %v2015_v39, %v2017_v13  ;;  %v17982_v39 = vld [vmem:[#allocation75_spill] sm:$0xff] }
 0x345   : > { %v3695_v23 = vshrl.u32 %v17979_v5, %v14150_v25  ;;  %v14447_v34 = vsel %vm14426_vm9, %v17943_v35, %v4558_v15  ;;  %v14454_v30 = vsub.s32 32, %v14390_v60  ;;  %v4688_v27 = vadd.s32 536870912, %v4687_v40 }
 0x346   : > { %v14458_v4 = vmul.f32 %v14447_v34, %v14447_v34  ;;  %v1988_v56 = vshll.u32 %v17757_v31, %v17971_v12  ;;  %v14463_v29 = vor.u32 %v3692_v47, %v14154_v8  ;;  %vm750_vm11 = vcmp.gt.s32.totalorder %v749_v33, 0 }
 0x347   : > { %v14466_v19 = vand.u32 65535, %v14434_v21  ;;  %v2023_v11 = vshrl.u32 %v14451_v38, 16  ;;  %v3845_v46 = vshll.u32 %v17687_v58, %v14390_v60  ;;  %v14472_v54 = vshrl.u32 %v4688_v27, 30 }
 0x348   : > { %17980 = vst [vmem:[#allocation21_spill] sm:$0xff] %v14463_v29  ;;  %v4571_v52 = vmul.f32 -0.00019511016, %v14458_v4  ;;  %v1990_v62 = vor.u32 %v1989_v9, %v1988_v56  ;;  %v3696_v2 = vor.u32 %v3695_v23, %v14160_v17  ;;  %v14477_v8 = vshll.u32 %v17701_v48, %v14390_v60 }
 0x349   : > { %v14479_v12 = vadd.s32 1, %v10896_v43  ;;  %v14482_v47 = vmul.u32 %v2023_v11, %v14466_v19  ;;  %v3846_v57 = vshrl.u32 %v17701_v48, %v14454_v30  ;;  %v751_v45 = vsel %vm750_vm11, %v749_v33, 0 }
 0x34a   : > { %v4572_v28 = vadd.f32 0.008332121, %v4571_v52  ;;  %v4690_v7 = vshll.u32 %v14472_v54, 30  ;;  %v14490_v17 = vsel %vm3700_vm14, %v14463_v29, 920167782  ;;  %v14494_v26 = vshrl.u32 %v17979_v5, %v14454_v30 }
 0x34b   : > { %17981 = vst [vmem:[#allocation23_spill] sm:$0xff] %v14490_v17  ;;  %v4564_v20 = vmul.f32 -0.001358992, %v14458_v4  ;;  %v2022_v13 = vand.u32 65535, %v14451_v38  ;;  %v4559_v22 = vsub.s32 4, %v14309_v42  ;;  %v2011_v33 = vsel %vm2003_vm3, %v1990_v62, %v14411_v14 }
 0x34c   : > { %v4691_v32 = vsub.s32 %v4687_v40, %v4690_v7  ;;  %v2013_v15 = vsel %vm2005_vm5, %v14414_v63, %v17982_v39  ;;  %v14508_v9 = vsel %vm3700_vm14, %v3696_v2, 1326507024  ;;  %v14510_v23 = vshrl.u32 %v751_v45, 5 }
 0x34d   : > { %17983 = vst [vmem:[#allocation35_spill] sm:$0xff] %v14508_v9  ;;  %v2021_v43 = vshrl.u32 %v14434_v21, 16  ;;  %v2028_v38 = vshll.u32 %v14482_v47, 16  ;;  %v14514_v40 = vand.u32 31, %v751_v45  ;;  %v4573_v27 = vmul.f32 %v4572_v28, %v14458_v4 }
 0x34e   : > { %17984 = vst [vmem:[#allocation28_spill] sm:$0xff] %v14510_v23  ;;  %vm4692_vm2 = vcmp.lt.s32.totalorder %v4691_v32, 0  ;;  %v4693_v56 = vsub.s32 0, %v4691_v32  ;;  %v4565_v52 = vadd.f32 0.041655596, %v4564_v20  ;;  %v2014_v7 = vsel %vm2004_vm13, %v2011_v33, %v2013_v15 }
 0x34f   : > { %17985 = vst [vmem:[#allocation32_spill] sm:$0xff] %v14514_v40  ;;  %v2024_v39 = vmul.u32 %v2022_v13, %v14466_v19  ;;  %v14520_v2 = vmul.u32 %v2022_v13, %v2021_v43  ;;  %v14522_v3 = vor.u32 %v3846_v57, %v3845_v46  ;;  %v4560_v45 = vsel %vm4437_vm15, %v4559_v22, %v14309_v42  ;;  %v17993_v57 = vld [vmem:[#allocation110_spill] sm:$0xff] }
 0x350   : > { %v4694_v28 = vsel %vm4692_vm2, %v4693_v56, %v4691_v32  ;;  %vm4591_vm4 = vcmp.lt.s32.totalorder %v17962_v6, 0  ;;  %vm17986_vm10 = vcmp.lt.s32.totalorder %v17973_v50, 4  ;;  %v4574_v13 = vadd.f32 -0.16666654, %v4573_v27 }
 0x351   : > { %v4695_v20 = vclz %v4694_v28  ;;  %v2008_v33 = vsel %vm17986_vm10, %v14414_v63, 2102212464  ;;  %v2034_v15 = vadd.s32 %v2028_v38, %v2024_v39  ;;  %v17987_v46 = vand.u32 2147483647, %v17962_v6 }
 0x352   : > { %v1987_v1 = vshrl.u32 %v17757_v31, %v17972_v61  ;;  %vm2032_vm7 = vc.u32 %v2024_v39, %v2028_v38  ;;  %v2045_v42 = vshrl.u32 %v2014_v7, 16  ;;  %v4562_v22 = vsel %vm14426_vm9, 0, %v4560_v45 }
 0x353   : > { %vm14535_vm6 = vcmp.le.f32.partialorder %v17987_v46, 0.7853982  ;;  %v4566_v56 = vmul.f32 %v4565_v52, %v14458_v4  ;;  %v10957_v28 = vadd.s32 4294967294, %v4695_v20  ;;  %v2030_v63 = vshll.u32 %v14520_v2, 16 }
 0x354   : > { %v4713_v27 = vsub.s32 4, %v14472_v54  ;;  %v2007_v46 = vsel %vm2003_vm3, %v1987_v1, %v1990_v62  ;;  %v2009_v53 = vsel %vm2005_vm5, %v14411_v14, %v2008_v33  ;;  %v2044_v61 = vand.u32 65535, %v2014_v7 }
 0x355   : > { %v4683_v38 = vadd.s32 %v14397_v0, %v14393_v59  ;;  %vm10958_vm1 = vcmp.lt.s32.totalorder %v10957_v28, 0  ;;  %v2033_v44 = vsel %vm2032_vm7, 1, %v17760_v18  ;;  %vm2036_vm12 = vc.u32 %v2034_v15, %v2030_v63 }
 0x356   : > { %v4575_v52 = vmul.f32 %v4574_v13, %v14458_v4  ;;  %v4698_v39 = vsel %vm10958_vm1, 0, %v10957_v28  ;;  %v2027_v45 = vmul.u32 %v2023_v11, %v2021_v43  ;;  %v2047_v20 = vmul.u32 %v2045_v42, %v14466_v19 }
 0x357   : > { %v4567_v16 = vadd.f32 -0.4999988, %v4566_v56  ;;  %v4699_v1 = vsub.s32 32, %v4698_v39  ;;  %v4703_v62 = vsub.s32 4294967266, %v4698_v39  ;;  %v14558_v14 = vsel %vm2004_vm13, %v2007_v46, %v2009_v53 }
 0x358   : > { %v4714_v59 = vsel %vm4591_vm4, %v4713_v27, %v14472_v54  ;;  %v2035_v0 = vadd.s32 %v2033_v44, %v2027_v45  ;;  %v2037_v7 = vsel %vm2036_vm12, 1, %v17760_v18  ;;  %v2046_v33 = vmul.u32 %v2044_v61, %v14466_v19 }
 0x359   : > { %v4700_v15 = vshll.u32 %v4691_v32, %v4698_v39  ;;  %v4701_v11 = vshrl.u32 %v4683_v38, %v4699_v1  ;;  %v4704_v13 = vadd.s32 127, %v4703_v62  ;;  %v2048_v28 = vmul.u32 %v2044_v61, %v2021_v43 }
 0x35a   : > { %v4576_v56 = vadd.f32 1.0, %v4575_v52  ;;  %v2029_v63 = vshrl.u32 %v14482_v47, 16  ;;  %v2039_v55 = vadd.s32 %v2037_v7, %v2035_v0  ;;  %v2050_v50 = vshll.u32 %v2047_v20, 16 }
 0x35b   : > { %v4568_v53 = vmul.f32 %v4567_v16, %v14458_v4  ;;  %v4702_v46 = vor.u32 %v4701_v11, %v4700_v15  ;;  %v4705_v17 = vshll.u32 %v4704_v13, 23  ;;  %v4716_v54 = vsel %vm14535_vm6, 0, %v4714_v59 }
 0x35c   : > { %v9547_v27 = vadd.s32 3, %v4562_v22  ;;  %v2049_v44 = vmul.u32 %v2045_v42, %v2021_v43  ;;  %vm2054_vm15 = vc.u32 %v2046_v33, %v2050_v50  ;;  %v2056_v19 = vadd.s32 %v2050_v50, %v2046_v33  ;;  %v17991_v33 = vld [vmem:[#allocation85_spill] sm:$0xff] }
 0x35d   : > { %v14570_v32 = vsub.s32 32, %v14514_v40  ;;  %v4706_v61 = vor.u32 4788187, %v4705_v17  ;;  %v2052_v38 = vshll.u32 %v2048_v28, 16  ;;  %v2055_v47 = vsel %vm2054_vm15, 1, %v17760_v18 }
 0x35e   : > { %v14574_v52 = vmul.f32 %v4576_v56, %v14447_v34  ;;  %v2040_v16 = vadd.s32 %v2039_v55, %v2029_v63  ;;  %v2057_v4 = vadd.s32 %v2055_v47, %v2049_v44  ;;  %v2064_v39 = vmul.u32 %v14434_v21, %v14558_v14 }
 0x35f   : > { %17990 = vst [vmem:[#allocation46_spill] sm:$0xff] %v14570_v32  ;;  %v4707_v45 = vand.u32 2147483647, %v4706_v61  ;;  %v4709_v1 = vcvt.s32.f32 %v4702_v46  ;;  %v9702_v43 = vadd.s32 3, %v4716_v54  ;;  %vm2058_vm5 = vc.u32 %v2056_v19, %v2052_v38 }
 0x360   : > { %v14578_v42 = vadd.f32 1.0, %v4568_v53  ;;  %v9548_v62 = vand.u32 3, %v9547_v27  ;;  %v2031_v17 = vshrl.u32 %v14520_v2, 16  ;;  %v2059_v59 = vsel %vm2058_vm5, 1, %v17760_v18 }
 0x361   : > { %v4710_v0 = vmul.f32 %v4709_v1, %v4707_v45  ;;  %v2051_v7 = vshrl.u32 %v2047_v20, 16  ;;  %v2061_v34 = vadd.s32 %v2059_v59, %v2057_v4  ;;  %v17622_v55 = vand.u32 2147483647, %v17991_v33 }
 0x362   : > { %v4582_v15 = vxor.u32 2147483648, %v14574_v52  ;;  %v14584_v11 = vand.u32 3, %v4562_v22  ;;  %v14586_v21 = vand.u32 3, %v4716_v54  ;;  %v14588_v14 = vadd.s32 %v2040_v16, %v2031_v17 }
 0x363   : > { %v4711_v13 = vxor.u32 2147483648, %v4710_v0  ;;  %v14590_v56 = vand.u32 3, %v9702_v43  ;;  %v2053_v63 = vshrl.u32 %v2048_v28, 16  ;;  %v2062_v2 = vadd.s32 %v2061_v34, %v2051_v7 }
 0x364   : > { %v4585_v50 = vxor.u32 2147483648, %v14578_v42  ;;  %vm9549_vm3 = vcmp.lt.s32.totalorder %v9548_v62, 2  ;;  %vm9550_vm9 = vcmp.eq.s32.totalorder %v9548_v62, 0  ;;  %v14593_v20 = vadd.s32 %v2056_v19, %v2052_v38  ;;  %v17992_v19 = vld [vmem:[#allocation104_spill] sm:$0xff] }
 0x365   : > { %v4712_v53 = vsel %vm4591_vm4, %v4711_v13, %v4710_v0  ;;  %vm9553_vm13 = vcmp.eq.s32.totalorder %v9548_v62, 2  ;;  %v2063_v22 = vadd.s32 %v2062_v2, %v2053_v63  ;;  %v2132_v46 = vand.u32 8388607, %v17622_v55 }
 0x366   : > { %v14602_v54 = vsel %vm14535_vm6, %v17962_v6, %v4712_v53  ;;  %v9552_v28 = vsel %vm9550_vm9, %v14578_v42, %v4582_v15  ;;  %vm4581_vm11 = vcmp.eq.s32.totalorder %v14584_v11, 0  ;;  %vm2066_vm2 = vc.u32 %v14588_v14, %v14593_v20 }
 0x367   : > { %v4717_v27 = vmul.f32 %v14602_v54, %v14602_v54  ;;  %v2067_v44 = vadd.s32 1, %v2063_v22  ;;  %v2142_v61 = vshll.u32 %v17757_v31, %v17992_v19  ;;  %v2145_v38 = vshll.u32 %v17793_v10, %v17992_v19 }
 0x368   : > { %v2143_v47 = vshrl.u32 %v17793_v10, %v17993_v57  ;;  %v2146_v16 = vshrl.u32 %v17794_v51, %v17993_v57  ;;  %v2148_v4 = vshll.u32 %v17794_v51, %v17992_v19  ;;  %v2149_v45 = vshrl.u32 %v17687_v58, %v17993_v57 }
 0x369   : > { %v4718_v1 = vmul.f32 -0.001358992, %v4717_v27  ;;  %v4725_v43 = vmul.f32 -0.00019511016, %v4717_v27  ;;  %vm4580_vm4 = vcmp.lt.s32.totalorder %v14584_v11, 2  ;;  %v2068_v17 = vsel %vm2066_vm2, %v2067_v44, %v2063_v22 }
 0x36a   : > { %v2133_v59 = vor.u32 8388608, %v2132_v46  ;;  %vm4578_vm10 = vweird.f32 %v17943_v35  ;;  %v2069_v0 = vadd.s32 %v2068_v17, %v2064_v39  ;;  %v14624_v7 = vor.u32 %v2143_v47, %v2142_v61  ;;  %v17994_v46 = vld [vmem:[#allocation103_spill] sm:$0xff] }
 0x36b   : > { %v14626_v34 = vor.u32 %v2146_v16, %v2145_v38  ;;  %v14628_v13 = vor.u32 %v2149_v45, %v2148_v4  ;;  %v4719_v63 = vadd.f32 0.041655596, %v4718_v1  ;;  %v4726_v2 = vadd.f32 0.008332121, %v4725_v43  ;;  %v17995_v38 = vld [vmem:[#allocation56_spill] sm:$0xff]  ;;  %v17996_v43 = vld [vmem:[#allocation49_spill] sm:$0xff] }
 0x36c   : > { %v9555_v53 = vsel %vm9553_vm13, %v4585_v50, %v14574_v52  ;;  %vm4584_vm6 = vcmp.eq.s32.totalorder %v14584_v11, 2  ;;  %v2070_v22 = vadd.s32 536870912, %v2069_v0  ;;  %vm2157_vm7 = vcmp.lt.s32.totalorder %v17994_v46, 1  ;;  %v17997_v17 = vld [vmem:[#allocation43_spill] sm:$0xff] }
 0x36d   : > { %v9556_v19 = vsel %vm9549_vm3, %v9552_v28, %v9555_v53  ;;  %vm2159_vm1 = vcmp.lt.s32.totalorder %v17994_v46, 3  ;;  %v4720_v39 = vmul.f32 %v4719_v63, %v4717_v27  ;;  %v4727_v44 = vmul.f32 %v4726_v2, %v4717_v27 }
 0x36e   : > { %v2165_v61 = vsel %vm2157_vm7, %v14624_v7, %v14626_v34  ;;  %v2167_v47 = vsel %vm2159_vm1, %v14628_v13, %v17995_v38  ;;  %vm9708_vm12 = vcmp.eq.s32.totalorder %v14590_v56, 2  ;;  %v4583_v62 = vsel %vm4581_vm11, %v14578_v42, %v4582_v15 }
 0x36f   : > { %v14648_v28 = vshrl.u32 %v2070_v22, 30  ;;  %v2169_v16 = vsel %vm2157_vm7, %v14626_v34, %v14628_v13  ;;  %v14654_v4 = vshll.u32 %v2133_v59, 8  ;;  %v4721_v45 = vadd.f32 -0.4999988, %v4720_v39 }
 0x370   : > { %v4728_v1 = vadd.f32 -0.16666654, %v4727_v44  ;;  %vm4738_vm15 = vcmp.eq.s32.totalorder %v14586_v21, 2  ;;  %vm2158_vm5 = vcmp.lt.s32.totalorder %v17994_v46, 2  ;;  %v2171_v42 = vsel %vm2159_vm1, %v17997_v17, %v17996_v43 }
 0x371   : > { %vm9705_vm3 = vcmp.eq.s32.totalorder %v14590_v56, 0  ;;  %v4586_v15 = vsel %vm4584_vm6, %v4585_v50, %v14574_v52  ;;  %vm4735_vm9 = vcmp.eq.s32.totalorder %v14586_v21, 0  ;;  %v2072_v59 = vshll.u32 %v14648_v28, 30 }
 0x372   : > { %v14670_v63 = vsel %vm2158_vm5, %v2165_v61, %v2167_v47  ;;  %v2172_v2 = vsel %vm2158_vm5, %v2169_v16, %v2171_v42  ;;  %v4722_v53 = vmul.f32 %v4721_v45, %v4717_v27  ;;  %v4729_v22 = vmul.f32 %v4728_v1, %v4717_v27 }
 0x373   : > { %vm9704_vm13 = vcmp.lt.s32.totalorder %v14590_v56, 2  ;;  %vm4734_vm11 = vcmp.lt.s32.totalorder %v14586_v21, 2  ;;  %v2176_v39 = vand.u32 65535, %v2172_v2  ;;  %v2177_v44 = vshrl.u32 %v2172_v2, 16 }
 0x374   : > { %vm4732_vm2 = vweird.f32 %v17962_v6  ;;  %v4587_v52 = vsel %vm4580_vm4, %v4583_v62, %v4586_v15  ;;  %v2073_v50 = vsub.s32 %v2069_v0, %v2072_v59  ;;  %v2174_v61 = vand.u32 65535, %v14654_v4 }
 0x375   : > { %v2175_v38 = vshrl.u32 %v14654_v4, 16  ;;  %v4723_v47 = vadd.f32 1.0, %v4722_v53  ;;  %v4730_v16 = vadd.f32 1.0, %v4729_v22  ;;  %v9557_v27 = vsel %vm4578_vm10, nan, %v9556_v19 }
 0x376   : > { %v2199_v45 = vshrl.u32 %v14670_v63, 16  ;;  %vm2074_vm6 = vcmp.lt.s32.totalorder %v2073_v50, 0  ;;  %v2075_v1 = vsub.s32 0, %v2073_v50  ;;  %v2179_v43 = vmul.u32 %v2177_v44, %v2174_v61 }
 0x377   : > { %v14684_v17 = vmul.u32 %v2176_v39, %v2175_v38  ;;  %v4731_v11 = vmul.f32 %v4730_v16, %v14602_v54  ;;  %v4739_v62 = vxor.u32 2147483648, %v4723_v47  ;;  %v4588_v0 = vsel %vm4578_vm10, nan, %v4587_v52 }
 0x378   : > { %v2198_v42 = vand.u32 65535, %v14670_v63  ;;  %v2076_v15 = vsel %vm2074_vm6, %v2075_v1, %v2073_v50  ;;  %v2178_v59 = vmul.u32 %v2176_v39, %v2174_v61  ;;  %v2181_v2 = vmul.u32 %v2177_v44, %v2175_v38 }
 0x379   : > { %v2182_v53 = vshll.u32 %v2179_v43, 16  ;;  %v4736_v19 = vxor.u32 2147483648, %v4731_v11  ;;  %v9710_v22 = vsel %vm9708_vm12, %v4739_v62, %v4731_v11  ;;  %v2077_v55 = vclz %v2076_v15 }
 0x37a   : > { %v2184_v29 = vshll.u32 %v14684_v17, 16  ;;  %v4740_v54 = vsel %vm4738_vm15, %v4739_v62, %v4731_v11  ;;  %v2201_v35 = vmul.u32 %v2199_v45, %v2174_v61  ;;  %v2065_v56 = vadd.s32 %v14593_v20, %v14588_v14 }
 0x37b   : > { %vm2186_vm4 = vc.u32 %v2178_v59, %v2182_v53  ;;  %v2188_v16 = vadd.s32 %v2182_v53, %v2178_v59  ;;  %v9707_v63 = vsel %vm9705_vm3, %v4723_v47, %v4736_v19  ;;  %v4737_v39 = vsel %vm4735_vm9, %v4723_v47, %v4736_v19 }
 0x37c   : > { %v10906_v44 = vadd.s32 4294967294, %v2077_v55  ;;  %v2187_v52 = vsel %vm2186_vm4, 1, %v17760_v18  ;;  %v9711_v1 = vsel %vm9704_vm13, %v9707_v63, %v9710_v22  ;;  %v4741_v15 = vsel %vm4734_vm11, %v4737_v39, %v4740_v54 }
 0x37d   : > { %v2189_v9 = vadd.s32 %v2187_v52, %v2181_v2  ;;  %vm2190_vm10 = vc.u32 %v2188_v16, %v2184_v29  ;;  %v9712_v11 = vsel %vm4732_vm2, nan, %v9711_v1  ;;  %v4742_v62 = vsel %vm4732_vm2, nan, %v4741_v15  ;;  %v17999_v16 = vld [vmem:[#allocation111_spill] sm:$0xff] }
 0x37e   : > { %vm10907_vm12 = vcmp.lt.s32.totalorder %v10906_v44, 0  ;;  %v2191_v47 = vsel %vm2190_vm10, 1, %v17760_v18  ;;  %v10655_v55 = vpack.c.bf16 %v9712_v11, %v9557_v27  ;;  %v5679_v59 = vpack.c.bf16 %v4742_v62, %v4588_v0 }
 0x37f   : > { %v2080_v53 = vsel %vm10907_vm12, 0, %v10906_v44  ;;  %v2193_v22 = vadd.s32 %v2191_v47, %v2189_v9  ;;  %v2202_v2 = vmul.u32 %v2198_v42, %v2175_v38  ;;  %vm17998_vm15 = vcmp.lt.s32.totalorder %v17994_v46, 4 }
 0x380   : > { %v2081_v19 = vsub.s32 32, %v2080_v53  ;;  %v2085_v21 = vsub.s32 4294967266, %v2080_v53  ;;  %10689 = vmatpush.bf16.msra.mxu1 %v10655_v55  ;;  %10715 = vmatpush.bf16.msra.mxu3 %v5679_v59  ;;  %v2162_v6 = vsel %vm17998_vm15, %v14628_v13, 2102212464  ;;  %v2200_v29 = vmul.u32 %v2198_v42, %v2174_v61 }
 0x381   : > { %v2204_v54 = vshll.u32 %v2201_v35, 16  ;;  %v17624_v63 = vand.u32 2147483647, %v17999_v16  ;;  %v2082_v27 = vshll.u32 %v2073_v50, %v2080_v53  ;;  %v2183_v52 = vshrl.u32 %v2179_v43, 16 }
 0x382   : > { %v2083_v0 = vshrl.u32 %v2065_v56, %v2081_v19  ;;  %v2086_v39 = vadd.s32 127, %v2085_v21  ;;  %v2203_v14 = vmul.u32 %v2199_v45, %v2175_v38  ;;  %v2206_v20 = vshll.u32 %v2202_v2, 16 }
 0x383   : > { %vm2208_vm3 = vc.u32 %v2200_v29, %v2204_v54  ;;  %v2210_v44 = vadd.s32 %v2204_v54, %v2200_v29  ;;  %v2194_v15 = vadd.s32 %v2193_v22, %v2183_v52  ;;  %v2141_v13 = vshrl.u32 %v17757_v31, %v17993_v57  ;;  %v18004_v54 = vld [vmem:[#allocation58_spill] sm:$0xff] }
 0x384   : > { %v2084_v9 = vor.u32 %v2083_v0, %v2082_v27  ;;  %v2087_v1 = vshll.u32 %v2086_v39, 23  ;;  %v2209_v11 = vsel %vm2208_vm3, 1, %v17760_v18  ;;  %v4134_v50 = vand.u32 8388607, %v17624_v63  ;;  %v18005_v39 = vld [vmem:[#allocation25_spill] sm:$0xff] }
 0x385   : > { %v2211_v61 = vadd.s32 %v2209_v11, %v2203_v14  ;;  %vm2212_vm9 = vc.u32 %v2210_v44, %v2206_v20  ;;  %v14722_v43 = vshll.u32 %v17687_v58, %v14514_v40  ;;  %v2185_v45 = vshrl.u32 %v14684_v17, 16 }
 0x386   : > { %v2088_v38 = vor.u32 4788187, %v2087_v1  ;;  %v2213_v42 = vsel %vm2212_vm9, 1, %v17760_v18  ;;  %vm3854_vm13 = vcmp.lt.s32.totalorder %v14385_v49, 4  ;;  %v2161_v57 = vsel %vm2157_vm7, %v2141_v13, %v14624_v7 }
 0x387   : > { %v2163_v62 = vsel %vm2159_vm1, %v14626_v34, %v2162_v6  ;;  %v2205_v47 = vshrl.u32 %v2201_v35, 16  ;;  %v2215_v55 = vadd.s32 %v2213_v42, %v2211_v61  ;;  %v14735_v59 = vshll.u32 %v17701_v48, %v14514_v40  ;;  %v18007_v42 = vld [vmem:[#allocation52_spill] sm:$0xff] }
 0x388   : > { %v2089_v56 = vand.u32 2147483647, %v2088_v38  ;;  %v2091_v17 = vcvt.s32.f32 %v2084_v9  ;;  %v14737_v53 = vadd.s32 %v2194_v15, %v2185_v45  ;;  %v18001_v19 = vand.u32 2147483647, %v17970_v36 }
 0x389   : > { %18000 = vst [vmem:[#allocation12_spill] sm:$0xff] %v14735_v59  ;;  %v2207_v7 = vshrl.u32 %v2202_v2, 16  ;;  %v2216_v22 = vadd.s32 %v2215_v55, %v2205_v47  ;;  %v4135_v29 = vor.u32 8388608, %v4134_v50  ;;  %vm1520_vm7 = vcmp.gt.s32.totalorder %v14479_v12, 0  ;;  %v18006_v50 = vld [vmem:[#allocation15_spill] sm:$0xff] }
 0x38a   : > { %vm14741_vm11 = vcmp.le.f32.partialorder %v18001_v19, 0.7853982  ;;  %v2092_v34 = vmul.f32 %v2091_v17, %v2089_v56  ;;  %v2164_v35 = vsel %vm2158_vm5, %v2161_v57, %v2163_v62  ;;  %v14748_v6 = vadd.s32 %v2210_v44, %v2206_v20  ;;  %v18008_v57 = vld [vmem:[#allocation48_spill] sm:$0xff] }
 0x38b   : > { %v4147_v27 = vshll.u32 %v17793_v10, %v18004_v54  ;;  %v2217_v0 = vadd.s32 %v2216_v22, %v2207_v7  ;;  %v4148_v52 = vshrl.u32 %v17794_v51, %v18005_v39  ;;  %v4150_v2 = vshll.u32 %v17794_v51, %v18004_v54 }
 0x38c   : > { %v4151_v14 = vshrl.u32 %v17687_v58, %v18005_v39  ;;  %vm1973_vm1 = vcmp.lt.s32.totalorder %v17970_v36, 0  ;;  %v2093_v9 = vxor.u32 2147483648, %v2092_v34  ;;  %v2095_v46 = vsub.s32 4, %v14648_v28 }
 0x38d   : > { %vm2220_vm5 = vc.u32 %v14737_v53, %v14748_v6  ;;  %v2221_v20 = vadd.s32 1, %v2217_v0  ;;  %v4145_v44 = vshrl.u32 %v17793_v10, %v18005_v39  ;;  %v14764_v1 = vor.u32 %v4148_v52, %v4147_v27 }
 0x38e   : > { %v4152_v15 = vor.u32 %v4151_v14, %v4150_v2  ;;  %v2094_v11 = vsel %vm1973_vm1, %v2093_v9, %v2092_v34  ;;  %v2218_v13 = vmul.u32 %v14654_v4, %v2164_v35  ;;  %v4144_v61 = vshll.u32 %v17757_v31, %v18004_v54 }
 0x38f   : > { %vm4161_vm2 = vcmp.lt.s32.totalorder %v18006_v50, 3  ;;  %v14775_v38 = vsel %vm14741_vm11, %v17970_v36, %v2094_v11  ;;  %v2222_v45 = vsel %vm2220_vm5, %v2221_v20, %v2217_v0  ;;  %v14781_v47 = vshll.u32 %v4135_v29, 8 }
 0x390   : > { %v4173_v62 = vsel %vm4161_vm2, %v18008_v57, %v18007_v42  ;;  %v14786_v4 = vsel %vm3854_vm13, %v14522_v3, 920167782  ;;  %v2099_v55 = vmul.f32 %v14775_v38, %v14775_v38  ;;  %v2223_v56 = vadd.s32 %v2222_v45, %v2218_v13 }
 0x391   : > { %vm4159_vm6 = vcmp.lt.s32.totalorder %v18006_v50, 1  ;;  %v2096_v17 = vsel %vm1973_vm1, %v2095_v46, %v14648_v28  ;;  %v4146_v19 = vor.u32 %v4145_v44, %v4144_v61  ;;  %vm4160_vm4 = vcmp.lt.s32.totalorder %v18006_v50, 2  ;;  %v18010_v61 = vld [vmem:[#allocation30_spill] sm:$0xff] }
 0x392   : > { %v4171_v7 = vsel %vm4159_vm6, %v14764_v1, %v4152_v15  ;;  %v2100_v22 = vmul.f32 -0.001358992, %v2099_v55  ;;  %v2107_v29 = vmul.f32 -0.00019511016, %v2099_v55  ;;  %v2224_v34 = vadd.s32 536870912, %v2223_v56 }
 0x393   : > { %v4174_v35 = vsel %vm4160_vm4, %v4171_v7, %v4173_v62  ;;  %v18009_v54 = vor.u32 %v14494_v26, %v14477_v8  ;;  %v14808_v28 = vand.u32 65535, %v14781_v47  ;;  %v2098_v2 = vsel %vm14741_vm11, 0, %v2096_v17 }
 0x394   : > { %v4178_v0 = vand.u32 65535, %v4174_v35  ;;  %v4179_v52 = vshrl.u32 %v4174_v35, 16  ;;  %v2101_v14 = vadd.f32 0.041655596, %v2100_v22  ;;  %v2108_v9 = vadd.f32 0.008332121, %v2107_v29 }
 0x395   : > { %v14805_v27 = vsel %vm3854_vm13, %v18009_v54, 1326507024  ;;  %v2225_v46 = vshrl.u32 %v2224_v34, 30  ;;  %v14815_v20 = vsel %vm1520_vm7, %v14479_v12, 0  ;;  %v4167_v8 = vsel %vm4159_vm6, %v4146_v19, %v14764_v1 }
 0x396   : > { %v14821_v26 = vshrl.u32 %v14781_v47, 16  ;;  %v14824_v44 = vmul.u32 %v4179_v52, %v14808_v28  ;;  %v2102_v21 = vmul.f32 %v2101_v14, %v2099_v55  ;;  %v2109_v11 = vmul.f32 %v2108_v9, %v2099_v55 }
 0x397   : > { %v2226_v13 = vshll.u32 %v2225_v46, 30  ;;  %v4169_v45 = vsel %vm4161_vm2, %v4152_v15, %v18010_v61  ;;  %v7067_v42 = vadd.s32 3, %v2098_v2  ;;  %v4180_v12 = vmul.u32 %v4178_v0, %v14808_v28 }
 0x398   : > { %v14831_v57 = vmul.u32 %v4178_v0, %v14821_v26  ;;  %v4184_v62 = vshll.u32 %v14824_v44, 16  ;;  %v14836_v17 = vshrl.u32 %v17701_v48, %v14570_v32  ;;  %v2103_v7 = vadd.f32 -0.4999988, %v2102_v21 }
 0x399   : > { %v2110_v22 = vadd.f32 -0.16666654, %v2109_v11  ;;  %v2227_v29 = vsub.s32 %v2223_v56, %v2226_v13  ;;  %vm2127_vm10 = vcmp.lt.s32.totalorder %v17991_v33, 0  ;;  %v4170_v34 = vsel %vm4160_vm4, %v4167_v8, %v4169_v45 }
 0x39a   : > { %vm4188_vm12 = vc.u32 %v4180_v12, %v4184_v62  ;;  %v4190_v35 = vadd.s32 %v4184_v62, %v4180_v12  ;;  %v2249_v14 = vsub.s32 4, %v2225_v46  ;;  %v14841_v9 = vand.u32 3, %v7067_v42 }
 0x39b   : > { %v2111_v54 = vmul.f32 %v2110_v22, %v2099_v55  ;;  %vm2228_vm15 = vcmp.lt.s32.totalorder %v2227_v29, 0  ;;  %v2229_v0 = vsub.s32 0, %v2227_v29  ;;  %v4143_v61 = vshrl.u32 %v17757_v31, %v18005_v39 }
 0x39c   : > { %v4164_v21 = vsel %vm4162_vm0, %v4152_v15, 2102212464  ;;  %v4186_v56 = vshll.u32 %v14831_v57, 16  ;;  %v2104_v11 = vmul.f32 %v2103_v7, %v2099_v55  ;;  %v4189_v8 = vsel %vm4188_vm12, 1, %v17760_v18 }
 0x39d   : > { %v2230_v13 = vsel %vm2228_vm15, %v2229_v0, %v2227_v29  ;;  %v4201_v45 = vshrl.u32 %v4170_v34, 16  ;;  %v2112_v12 = vadd.f32 1.0, %v2111_v54  ;;  %v4183_v22 = vmul.u32 %v4179_v52, %v14821_v26 }
 0x39e   : > { %v2231_v62 = vclz %v2230_v13  ;;  %vm4192_vm3 = vc.u32 %v4190_v35, %v4186_v56  ;;  %v14851_v42 = vand.u32 31, %v14815_v20  ;;  %v18011_v39 = vand.u32 2147483647, %v17991_v33 }
 0x39f   : > { %v2250_v15 = vsel %vm2127_vm10, %v2249_v14, %v2225_v46  ;;  %v4200_v55 = vand.u32 65535, %v4170_v34  ;;  %v4163_v54 = vsel %vm4159_vm6, %v4143_v61, %v4146_v19  ;;  %v4165_v52 = vsel %vm4161_vm2, %v14764_v1, %v4164_v21 }
 0x3a0   : > { %vm14855_vm9 = vcmp.le.f32.partialorder %v18011_v39, 0.7853982  ;;  %v10909_v7 = vadd.s32 4294967294, %v2231_v62  ;;  %v4191_v35 = vadd.s32 %v4189_v8, %v4183_v22  ;;  %v14866_v0 = vadd.f32 1.0, %v2104_v11 }
 0x3a1   : > { %v2219_v56 = vadd.s32 %v14748_v6, %v14737_v53  ;;  %v14870_v13 = vand.u32 3, %v2098_v2  ;;  %v4193_v39 = vsel %vm4192_vm3, 1, %v17760_v18  ;;  %v14874_v46 = vmul.f32 %v2112_v12, %v14775_v38 }
 0x3a2   : > { %vm10910_vm0 = vcmp.lt.s32.totalorder %v10909_v7, 0  ;;  %v2252_v19 = vsel %vm14855_vm9, 0, %v2250_v15  ;;  %vm7070_vm11 = vcmp.eq.s32.totalorder %v14841_v9, 0  ;;  %v4203_v1 = vmul.u32 %v4201_v45, %v14808_v28 }
 0x3a3   : > { %v2234_v34 = vsel %vm10910_vm0, 0, %v10909_v7  ;;  %vm7073_vm7 = vcmp.eq.s32.totalorder %v14841_v9, 2  ;;  %v14883_v53 = vsel %vm4160_vm4, %v4163_v54, %v4165_v52  ;;  %v4204_v6 = vmul.u32 %v4200_v55, %v14821_v26 }
 0x3a4   : > { %v2235_v2 = vsub.s32 32, %v2234_v34  ;;  %v2239_v38 = vsub.s32 4294967266, %v2234_v34  ;;  %v4185_v14 = vshrl.u32 %v14824_v44, 16  ;;  %v4195_v61 = vadd.s32 %v4193_v39, %v4191_v35 }
 0x3a5   : > { %v2121_v21 = vxor.u32 2147483648, %v14866_v0  ;;  %v7222_v11 = vadd.s32 3, %v2252_v19  ;;  %v4202_v8 = vmul.u32 %v4200_v55, %v14808_v28  ;;  %v4206_v12 = vshll.u32 %v4203_v1, 16 }
 0x3a6   : > { %v2118_v62 = vxor.u32 2147483648, %v14874_v46  ;;  %v2236_v22 = vshll.u32 %v2227_v29, %v2234_v34  ;;  %v2237_v15 = vshrl.u32 %v2219_v56, %v2235_v2  ;;  %v2240_v50 = vadd.s32 127, %v2239_v38 }
 0x3a7   : > { %vm2117_vm1 = vcmp.eq.s32.totalorder %v14870_v13, 0  ;;  %vm2120_vm5 = vcmp.eq.s32.totalorder %v14870_v13, 2  ;;  %v4205_v7 = vmul.u32 %v4201_v45, %v14821_v26  ;;  %v4208_v54 = vshll.u32 %v4204_v6, 16  ;;  %v18014_v45 = vld [vmem:[#allocation83_spill] sm:$0xff] }
 0x3a8   : > { %vm4210_vm2 = vc.u32 %v4202_v8, %v4206_v12  ;;  %v4212_v44 = vadd.s32 %v4206_v12, %v4202_v8  ;;  %v2238_v52 = vor.u32 %v2237_v15, %v2236_v22  ;;  %v2241_v35 = vshll.u32 %v2240_v50, 23 }
 0x3a9   : > { %v4196_v39 = vadd.s32 %v4195_v61, %v4185_v14  ;;  %v4211_v28 = vsel %vm4210_vm2, 1, %v17760_v18  ;;  %vm7069_vm6 = vcmp.lt.s32.totalorder %v14841_v9, 2  ;;  %v14895_v55 = vand.u32 3, %v2252_v19 }
 0x3aa   : > { %v4187_v29 = vshrl.u32 %v14831_v57, 16  ;;  %v4213_v56 = vadd.s32 %v4211_v28, %v4205_v7  ;;  %vm4214_vm4 = vc.u32 %v4212_v44, %v4208_v54  ;;  %v2242_v34 = vor.u32 4788187, %v2241_v35  ;;  %v18015_v35 = vld [vmem:[#allocation107_spill] sm:$0xff] }
 0x3ab   : > { %v14898_v2 = vand.u32 3, %v7222_v11  ;;  %v4215_v26 = vsel %vm4214_vm4, 1, %v17760_v18  ;;  %v17631_v38 = vand.u32 2147483647, %v18014_v45  ;;  %v7072_v14 = vsel %vm7070_vm11, %v14866_v0, %v2118_v62 }
 0x3ac   : > { %v7075_v19 = vsel %vm7073_vm7, %v2121_v21, %v14874_v46  ;;  %vm2116_vm12 = vcmp.lt.s32.totalorder %v14870_v13, 2  ;;  %v4207_v57 = vshrl.u32 %v4203_v1, 16  ;;  %v4217_v61 = vadd.s32 %v4215_v26, %v4213_v56 }
 0x3ad   : > { %v2243_v8 = vand.u32 2147483647, %v2242_v34  ;;  %v2245_v12 = vcvt.s32.f32 %v2238_v52  ;;  %v4197_v11 = vadd.s32 %v4196_v39, %v4187_v29  ;;  %v4288_v22 = vand.u32 8388607, %v17631_v38 }
 0x3ae   : > { %v4209_v15 = vshrl.u32 %v4204_v6, 16  ;;  %v4216_v50 = vadd.s32 %v4212_v44, %v4208_v54  ;;  %v4218_v7 = vadd.s32 %v4217_v61, %v4207_v57  ;;  %v4299_v28 = vshrl.u32 %v17793_v10, %v18015_v35 }
 0x3af   : > { %v2246_v40 = vmul.f32 %v2245_v12, %v2243_v8  ;;  %v4298_v25 = vshll.u32 %v17757_v31, %v18016_v41  ;;  %v4301_v1 = vshll.u32 %v17793_v10, %v18016_v41  ;;  %v4302_v52 = vshrl.u32 %v17794_v51, %v18015_v35 }
 0x3b0   : > { %v4219_v39 = vadd.s32 %v4218_v7, %v4209_v15  ;;  %v4289_v29 = vor.u32 8388608, %v4288_v22  ;;  %v4304_v6 = vshll.u32 %v17794_v51, %v18016_v41  ;;  %v4305_v54 = vshrl.u32 %v17687_v58, %v18015_v35  ;;  %v18019_v22 = vld [vmem:[#allocation112_spill] sm:$0xff] }
 0x3b1   : > { %vm2114_vm15 = vweird.f32 %v17970_v36  ;;  %v2247_v44 = vxor.u32 2147483648, %v2246_v40  ;;  %v2119_v56 = vsel %vm2117_vm1, %v14866_v0, %v2118_v62  ;;  %v2122_v34 = vsel %vm2120_vm5, %v2121_v21, %v14874_v46  ;;  %v18017_v62 = vld [vmem:[#allocation100_spill] sm:$0xff]  ;;  %v18018_v21 = vld [vmem:[#allocation17_spill] sm:$0xff] }
 0x3b2   : > { %vm4222_vm3 = vc.u32 %v4197_v11, %v4216_v50  ;;  %v4223_v26 = vadd.s32 1, %v4219_v39  ;;  %v14930_v57 = vor.u32 %v4299_v28, %v4298_v25  ;;  %v14932_v61 = vor.u32 %v4302_v52, %v4301_v1 }
 0x3b3   : > { %v14934_v41 = vor.u32 %v4305_v54, %v4304_v6  ;;  %v2248_v8 = vsel %vm2127_vm10, %v2247_v44, %v2246_v40  ;;  %v7076_v12 = vsel %vm7069_vm6, %v7072_v14, %v7075_v19  ;;  %v4220_v0 = vmul.u32 %v14781_v47, %v14883_v53  ;;  %v18020_v14 = vld [vmem:[#allocation38_spill] sm:$0xff] }
 0x3b4   : > { %vm4315_vm0 = vcmp.lt.s32.totalorder %v18017_v62, 3  ;;  %v14946_v25 = vsel %vm14855_vm9, %v17991_v33, %v2248_v8  ;;  %v4224_v46 = vsel %vm4222_vm3, %v4223_v26, %v4219_v39  ;;  %v14952_v40 = vshll.u32 %v4289_v29, 8 }
 0x3b5   : > { %v4327_v15 = vsel %vm4315_vm0, %v18019_v22, %v18018_v21  ;;  %v2253_v9 = vmul.f32 %v14946_v25, %v14946_v25  ;;  %v2123_v47 = vsel %vm2116_vm12, %v2119_v56, %v2122_v34  ;;  %v4225_v53 = vadd.s32 %v4224_v46, %v4220_v0 }
 0x3b6   : > { %vm4313_vm10 = vcmp.lt.s32.totalorder %v18017_v62, 1  ;;  %vm4314_vm9 = vcmp.lt.s32.totalorder %v18017_v62, 2  ;;  %v4323_v19 = vsel %vm4315_vm0, %v14934_v41, %v18020_v14  ;;  %v4330_v39 = vand.u32 65535, %v14952_v40 }
 0x3b7   : > { %v4321_v63 = vsel %vm4313_vm10, %v14930_v57, %v14932_v61  ;;  %v4325_v13 = vsel %vm4313_vm10, %v14932_v61, %v14934_v41  ;;  %v2254_v7 = vmul.f32 -0.001358992, %v2253_v9  ;;  %v2261_v28 = vmul.f32 -0.00019511016, %v2253_v9 }
 0x3b8   : > { %v4226_v1 = vadd.s32 536870912, %v4225_v53  ;;  %v4328_v52 = vsel %vm4314_vm9, %v4325_v13, %v4327_v15  ;;  %v4331_v29 = vshrl.u32 %v14952_v40, 16  ;;  %v4324_v26 = vsel %vm4314_vm9, %v4321_v63, %v4323_v19 }
 0x3b9   : > { %v4332_v6 = vand.u32 65535, %v4328_v52  ;;  %v4333_v54 = vshrl.u32 %v4328_v52, 16  ;;  %v2255_v44 = vadd.f32 0.041655596, %v2254_v7  ;;  %v2262_v56 = vadd.f32 0.008332121, %v2261_v28 }
 0x3ba   : > { %v14976_v34 = vshrl.u32 %v4226_v1, 30  ;;  %v14982_v8 = vsel %vm2114_vm15, nan, %v7076_v12  ;;  %v14986_v0 = vsel %vm2114_vm15, nan, %v2123_v47  ;;  %v14992_v14 = vadd.s32 %v4216_v50, %v4197_v11 }
 0x3bb   : > { %v14988_v46 = vmul.u32 %v4333_v54, %v4330_v39  ;;  %v14990_v21 = vmul.u32 %v4332_v6, %v4331_v29  ;;  %v2256_v22 = vmul.f32 %v2255_v44, %v2253_v9  ;;  %v2263_v15 = vmul.f32 %v2262_v56, %v2253_v9 }
 0x3bc   : > { %v4228_v13 = vshll.u32 %v14976_v34, 30  ;;  %v4334_v7 = vmul.u32 %v4332_v6, %v4330_v39  ;;  %v4354_v19 = vand.u32 65535, %v4324_v26  ;;  %v4355_v12 = vshrl.u32 %v4324_v26, 16 }
 0x3bd   : > { %v4338_v63 = vshll.u32 %v14988_v46, 16  ;;  %v2257_v28 = vadd.f32 -0.4999988, %v2256_v22  ;;  %v2264_v1 = vadd.f32 -0.16666654, %v2263_v15  ;;  %vm7228_vm11 = vcmp.eq.s32.totalorder %v14898_v2, 2 }
 0x3be   : > { %v14997_v36 = vsub.s32 %v4225_v53, %v4228_v13  ;;  %v4297_v47 = vshrl.u32 %v17757_v31, %v18015_v35  ;;  %vm7225_vm7 = vcmp.eq.s32.totalorder %v14898_v2, 0  ;;  %vm2271_vm1 = vcmp.eq.s32.totalorder %v14895_v55, 0 }
 0x3bf   : > { %vm2274_vm5 = vcmp.eq.s32.totalorder %v14895_v55, 2  ;;  %v4337_v11 = vmul.u32 %v4333_v54, %v4331_v29  ;;  %v4340_v50 = vshll.u32 %v14990_v21, 16  ;;  %vm4342_vm2 = vc.u32 %v4334_v7, %v4338_v63 }
 0x3c0   : > { %v4344_v52 = vadd.s32 %v4338_v63, %v4334_v7  ;;  %v2258_v6 = vmul.f32 %v2257_v28, %v2253_v9  ;;  %v2265_v44 = vmul.f32 %v2264_v1, %v2253_v9  ;;  %vm7224_vm6 = vcmp.lt.s32.totalorder %v14898_v2, 2 }
 0x3c1   : > { %vm2270_vm4 = vcmp.lt.s32.totalorder %v14895_v55, 2  ;;  %vm4230_vm12 = vcmp.lt.s32.totalorder %v14997_v36, 0  ;;  %v4231_v35 = vsub.s32 0, %v14997_v36  ;;  %vm2268_vm15 = vweird.f32 %v17991_v33  ;;  %v440_v33 = vpop.permute.xlu2 %439 }
 0x3c2   : > { %v4343_v53 = vsel %vm4342_vm2, 1, %v17760_v18  ;;  %vm4346_vm3 = vc.u32 %v4344_v52, %v4340_v50  ;;  %v4357_v54 = vmul.u32 %v4355_v12, %v4330_v39  ;;  %v15011_v56 = vmul.u32 %v4354_v19, %v4331_v29 }
 0x3c3   : > { %v2259_v26 = vadd.f32 1.0, %v2258_v6  ;;  %v2266_v22 = vadd.f32 1.0, %v2265_v44  ;;  %v4232_v9 = vsel %vm4230_vm12, %v4231_v35, %v14997_v36  ;;  %v4345_v15 = vadd.s32 %v4343_v53, %v4337_v11 }
 0x3c4   : > { %v4233_v13 = vclz %v4232_v9  ;;  %v4347_v7 = vsel %vm4346_vm3, 1, %v17760_v18  ;;  %v4356_v63 = vmul.u32 %v4354_v19, %v4330_v39  ;;  %v4360_v28 = vshll.u32 %v4357_v54, 16 }
 0x3c5   : > { %v2267_v1 = vmul.f32 %v2266_v22, %v14946_v25  ;;  %v2275_v38 = vxor.u32 2147483648, %v2259_v26  ;;  %v4317_v50 = vsel %vm4313_vm10, %v4297_v47, %v14930_v57  ;;  %vm18021_vm2 = vcmp.lt.s32.totalorder %v18017_v62, 4 }
 0x3c6   : > { %v4318_v52 = vsel %vm18021_vm2, %v14934_v41, 2102212464  ;;  %v10948_v6 = vadd.s32 4294967294, %v4233_v13  ;;  %v4339_v44 = vshrl.u32 %v14988_v46, 16  ;;  %v4349_v11 = vadd.s32 %v4347_v7, %v4345_v15 }
 0x3c7   : > { %vm4364_vm12 = vc.u32 %v4356_v63, %v4360_v28  ;;  %v2272_v35 = vxor.u32 2147483648, %v2267_v1  ;;  %v4341_v39 = vshrl.u32 %v14990_v21, 16  ;;  %v4359_v19 = vmul.u32 %v4355_v12, %v4331_v29 }
 0x3c8   : > { %v4362_v25 = vshll.u32 %v15011_v56, 16  ;;  %v7230_v53 = vsel %vm7228_vm11, %v2275_v38, %v2267_v1  ;;  %vm10949_vm3 = vcmp.lt.s32.totalorder %v10948_v6, 0  ;;  %v4365_v57 = vsel %vm4364_vm12, 1, %v17760_v18 }
 0x3c9   : > { %v4366_v47 = vadd.s32 %v4360_v28, %v4356_v63  ;;  %v7227_v41 = vsel %vm7225_vm7, %v2259_v26, %v2272_v35  ;;  %v2273_v46 = vsel %vm2271_vm1, %v2259_v26, %v2272_v35  ;;  %v2276_v22 = vsel %vm2274_vm5, %v2275_v38, %v2267_v1  ;;  %v18022_v35 = vld [vmem:[#allocation8_spill] sm:$0xff] }
 0x3ca   : > { %v4236_v21 = vsel %vm10949_vm3, 0, %v10948_v6  ;;  %v7231_v29 = vsel %vm7224_vm6, %v7227_v41, %v7230_v53  ;;  %v2277_v12 = vsel %vm2270_vm4, %v2273_v46, %v2276_v22  ;;  %v4350_v15 = vadd.s32 %v4349_v11, %v4339_v44  ;;  %v11180_v22 = vld [vmem:[%s11381_s13] ss:$0 sm:$0xff] }
 0x3cb   : > { %v4237_v9 = vsub.s32 32, %v4236_v21  ;;  %v7232_v13 = vsel %vm2268_vm15, nan, %v7231_v29  ;;  %v2278_v7 = vsel %vm2268_vm15, nan, %v2277_v12  ;;  %v4241_v63 = vsub.s32 4294967266, %v4236_v21  ;;  %v445_v29 = vpop.permute.xlu1 %444 }
 0x3cc   : > { %v4367_v26 = vadd.s32 %v4365_v57, %v4359_v19  ;;  %v10647_v28 = vpack.c.bf16 %v7232_v13, %v14982_v8  ;;  %v5671_v38 = vpack.c.bf16 %v2278_v7, %v14986_v0  ;;  %vm4368_vm10 = vc.u32 %v4366_v47, %v4362_v25  ;;  %v18024_v7 = vld [vmem:[#allocation97_spill] sm:$0xff] }
 0x3cd   : > { %v4239_v2 = vshrl.u32 %v14992_v14, %v4237_v9  ;;  %v4238_v55 = vshll.u32 %v14997_v36, %v4236_v21  ;;  %v4242_v1 = vadd.s32 127, %v4241_v63  ;;  %v4319_v6 = vsel %vm4315_vm0, %v14932_v61, %v4318_v52  ;;  %v616_v61 = vpop.permute.xlu0 %615  ;;  %v15072_v9 = vld [vmem:[%s11381_s13 + $0x1] ss:$0 sm:$0xff] }
 0x3ce   : > { %v4369_v44 = vsel %vm4368_vm10, 1, %v17760_v18  ;;  %10676 = vmatpush.bf16.msra.mxu0 %v10647_v28  ;;  %10702 = vmatpush.bf16.msra.mxu2 %v5671_v38  ;;  %v15050_v11 = vadd.s32 %v4350_v15, %v4341_v39  ;;  %v4361_v8 = vshrl.u32 %v4357_v54, 16  ;;  %v17632_v14 = vand.u32 2147483647, %v18022_v35 }
 0x3cf   : > { %v4371_v0 = vadd.s32 %v4369_v44, %v4367_v26  ;;  %v15055_v36 = vshrl.u32 %v17979_v5, %v14570_v32  ;;  %v15058_v19 = vshrl.u32 %v14815_v20, 5  ;;  %v4240_v52 = vor.u32 %v4239_v2, %v4238_v55 }
 0x3d0   : > { %v4243_v53 = vshll.u32 %v4242_v1, 23  ;;  %v15061_v57 = vsub.s32 32, %v14851_v42  ;;  %v4363_v39 = vshrl.u32 %v15011_v56, 16  ;;  %v15064_v54 = vadd.s32 %v4366_v47, %v4362_v25  ;;  %v18025_v1 = vld [vmem:[#allocation92_spill] sm:$0xff] }
 0x3d1   : > { %18023 = vst [vmem:[#allocation16_spill] sm:$0xff] %v15055_v36  ;;  %v4372_v41 = vadd.s32 %v4371_v0, %v4361_v8  ;;  %v1535_v46 = vshll.u32 %v17687_v58, %v14851_v42  ;;  %v530_v21 = vmul.f32 %v11180_v22, %v440_v33  ;;  %v4320_v20 = vsel %vm4314_vm9, %v4317_v50, %v4319_v6 }
 0x3d2   : > { %v4244_v12 = vor.u32 4788187, %v4243_v53  ;;  %v692_v15 = vmul.f32 %v15072_v9, %v616_v61  ;;  %vm4376_vm0 = vc.u32 %v15050_v11, %v15064_v54  ;;  %v1670_v56 = vand.u32 8388607, %v17632_v14 }
 0x3d3   : > { %v4373_v13 = vadd.s32 %v4372_v41, %v4363_v39  ;;  %v4247_v47 = vcvt.s32.f32 %v4240_v52  ;;  %v1684_v63 = vshrl.u32 %v17794_v51, %v18024_v7  ;;  %v1687_v62 = vshrl.u32 %v17687_v58, %v18024_v7  ;;  %v18027_v41 = vld [vmem:[#allocation61_spill] sm:$0xff] }
 0x3d4   : > { %v4245_v25 = vand.u32 2147483647, %v4244_v12  ;;  %v1536_v50 = vshrl.u32 %v17701_v48, %v15061_v57  ;;  %v531_v26 = vmul.f32 %v11180_v22, %v445_v29  ;;  %v4374_v28 = vmul.u32 %v14952_v40, %v4320_v20 }
 0x3d5   : > { %v4377_v38 = vadd.s32 1, %v4373_v13  ;;  %v1681_v55 = vshrl.u32 %v17793_v10, %v18024_v7  ;;  %v1683_v6 = vshll.u32 %v17793_v10, %v18025_v1  ;;  %v1686_v44 = vshll.u32 %v17794_v51, %v18025_v1 }
 0x3d6   : > { %v4248_v2 = vmul.f32 %v4247_v47, %v4245_v25  ;;  %v15092_v33 = vadd.f32 %v692_v15, %v530_v21  ;;  %v1671_v0 = vor.u32 8388608, %v1670_v56  ;;  %v1680_v61 = vshll.u32 %v17757_v31, %v18025_v1  ;;  %v18032_v21 = vld [vmem:[#allocation91_spill] sm:$0xff]  ;;  %v18033_v56 = vld [vmem:[#allocation106_spill] sm:$0xff] }
 0x3d7   : > { %v4378_v8 = vsel %vm4376_vm0, %v4377_v38, %v4373_v13  ;;  %v15096_v53 = vor.u32 %v1684_v63, %v1683_v6  ;;  %v15098_v39 = vor.u32 %v1687_v62, %v1686_v44  ;;  %v15101_v22 = vadd.f32 %v18027_v41, %v531_v26  ;;  %v18034_v25 = vld [vmem:[#allocation99_spill] sm:$0xff] }
 0x3d8   : > { %18026 = vst [vmem:[#allocation9_spill] sm:$0xff] %v15092_v33  ;;  %v4249_v52 = vxor.u32 2147483648, %v4248_v2  ;;  %v4379_v40 = vadd.s32 %v4378_v8, %v4374_v28  ;;  %v18029_v29 = vand.u32 2147483647, %v17999_v16  ;;  %vm4129_vm11 = vcmp.lt.s32.totalorder %v17999_v16, 0 }
 0x3d9   : > { %18028 = vst [vmem:[#allocation60_spill] sm:$0xff] %v15101_v22  ;;  %vm1697_vm7 = vcmp.lt.s32.totalorder %v18032_v21, 3  ;;  %vm17647_vm1 = vcmp.lt.s32.totalorder %v14510_v23, 4  ;;  %v15114_v13 = vor.u32 %v1681_v55, %v1680_v61  ;;  %v1539_v63 = vshrl.u32 %v17979_v5, %v15061_v57 }
 0x3da   : > { %vm15105_vm9 = vcmp.le.f32.partialorder %v18029_v29, 0.7853982  ;;  %v4250_v20 = vsel %vm4129_vm11, %v4249_v52, %v4248_v2  ;;  %v4380_v15 = vadd.s32 536870912, %v4379_v40  ;;  %v1709_v47 = vsel %vm1697_vm7, %v18034_v25, %v18033_v56  ;;  %v18035_v52 = vld [vmem:[#allocation105_spill] sm:$0xff] }
 0x3db   : > { %v15125_v62 = vsel %vm15105_vm9, %v17999_v16, %v4250_v20  ;;  %vm1695_vm5 = vcmp.lt.s32.totalorder %v18032_v21, 1  ;;  %v15128_v26 = vshll.u32 %v1671_v0, 8  ;;  %vm1696_vm6 = vcmp.lt.s32.totalorder %v18032_v21, 2 }
 0x3dc   : > { %v15132_v28 = vmul.f32 %v15125_v62, %v15125_v62  ;;  %v15134_v38 = vshrl.u32 %v4380_v15, 30  ;;  %v1707_v2 = vsel %vm1695_vm5, %v15096_v53, %v15098_v39  ;;  %v1538_v55 = vshll.u32 %v17701_v48, %v14851_v42 }
 0x3dd   : > { %v3360_v1 = vand.u32 2139095040, %v15092_v33  ;;  %v3514_v6 = vand.u32 2139095040, %v15101_v22  ;;  %v1710_v44 = vsel %vm1696_vm6, %v1707_v2, %v1709_v47  ;;  %v1703_v61 = vsel %vm1695_vm5, %v15114_v13, %v15096_v53 }
 0x3de   : > { %v4263_v8 = vmul.f32 -0.00019511016, %v15132_v28  ;;  %v4382_v0 = vshll.u32 %v15134_v38, 30  ;;  %v1705_v41 = vsel %vm1697_vm7, %v15098_v39, %v18035_v52  ;;  %v15159_v29 = vor.u32 %v14836_v17, %v14722_v43 }
 0x3df   : > { %v15164_v15 = vand.u32 65535, %v15128_v26  ;;  %v1715_v56 = vshrl.u32 %v1710_v44, 16  ;;  %v15166_v25 = vor.u32 %v1536_v50, %v1535_v46  ;;  %v1540_v47 = vor.u32 %v1539_v63, %v1538_v55  ;;  %v560_v63 = vpop.permute.xlu1 %559 }
 0x3e0   : > { %18036 = vst [vmem:[#allocation89_spill] sm:$0xff] %v15159_v29  ;;  %v4264_v2 = vadd.f32 0.008332121, %v4263_v8  ;;  %v4383_v14 = vsub.s32 %v4379_v40, %v4382_v0  ;;  %v3361_v32 = vshrl.u32 %v3360_v1, 23  ;;  %v1706_v52 = vsel %vm1696_vm6, %v1703_v61, %v1705_v41 }
 0x3e1   : > { %18037 = vst [vmem:[#allocation65_spill] sm:$0xff] %v15166_v25  ;;  %v1714_v33 = vand.u32 65535, %v1710_v44  ;;  %v15171_v43 = vmul.u32 %v1715_v56, %v15164_v15  ;;  %v3515_v17 = vshrl.u32 %v3514_v6, 23  ;;  %v4256_v20 = vmul.f32 -0.001358992, %v15132_v28 }
 0x3e2   : > { %vm4384_vm4 = vcmp.lt.s32.totalorder %v4383_v14, 0  ;;  %v4385_v59 = vsub.s32 0, %v4383_v14  ;;  %v15177_v46 = vsel %vm17647_vm1, %v15159_v29, 920167782  ;;  %vm1544_vm15 = vcmp.lt.s32.totalorder %v15058_v19, 4 }
 0x3e3   : > { %18038 = vst [vmem:[#allocation86_spill] sm:$0xff] %v15177_v46  ;;  %v4251_v50 = vsub.s32 4, %v14976_v34  ;;  %v1713_v40 = vshrl.u32 %v15128_v26, 16  ;;  %v4265_v55 = vmul.f32 %v4264_v2, %v15132_v28  ;;  %v1720_v6 = vshll.u32 %v15171_v43, 16 }
 0x3e4   : > { %v4386_v1 = vsel %vm4384_vm4, %v4385_v59, %v4383_v14  ;;  %v1737_v44 = vshrl.u32 %v1706_v52, 16  ;;  %v15187_v8 = vsel %vm1544_vm15, %v15166_v25, 920167782  ;;  %v15191_v0 = vsel %vm1544_vm15, %v1540_v47, 1326507024 }
 0x3e5   : > { %18039 = vst [vmem:[#allocation84_spill] sm:$0xff] %v15187_v8  ;;  %v4387_v61 = vclz %v4386_v1  ;;  %v15193_v41 = vmul.u32 %v1714_v33, %v1713_v40  ;;  %v15195_v46 = vadd.s32 4294967169, %v3361_v32  ;;  %v15197_v29 = vadd.s32 4294967169, %v3515_v17 }
 0x3e6   : > { %18040 = vst [vmem:[#allocation95_spill] sm:$0xff] %v15191_v0  ;;  %v4257_v59 = vadd.f32 0.041655596, %v4256_v20  ;;  %v1716_v2 = vmul.u32 %v1714_v33, %v15164_v15  ;;  %v15201_v23 = vmul.f32 %v15072_v9, %v560_v63  ;;  %v4252_v36 = vsel %vm4129_vm11, %v4251_v50, %v14976_v34 }
 0x3e7   : > { %v10951_v37 = vadd.s32 4294967294, %v4387_v61  ;;  %v1736_v47 = vand.u32 65535, %v1706_v52  ;;  %v4266_v22 = vadd.f32 -0.16666654, %v4265_v55  ;;  %v1719_v1 = vmul.u32 %v1715_v56, %v1713_v40 }
 0x3e8   : > { %vm1724_vm2 = vc.u32 %v1716_v2, %v1720_v6  ;;  %v1739_v32 = vmul.u32 %v1737_v44, %v15164_v15  ;;  %v1722_v17 = vshll.u32 %v15193_v41, 16  ;;  %v1726_v33 = vadd.s32 %v1720_v6, %v1716_v2 }
 0x3e9   : > { %vm10952_vm12 = vcmp.lt.s32.totalorder %v10951_v37, 0  ;;  %v1725_v20 = vsel %vm1724_vm2, 1, %v17760_v18  ;;  %v4258_v9 = vmul.f32 %v4257_v59, %v15132_v28  ;;  %v4375_v63 = vadd.s32 %v15064_v54, %v15050_v11 }
 0x3ea   : > { %v4390_v8 = vsel %vm10952_vm12, 0, %v10951_v37  ;;  %v1727_v34 = vadd.s32 %v1725_v20, %v1719_v1  ;;  %vm4283_vm3 = vcmp.lt.s32.totalorder %v18014_v45, 0  ;;  %v1679_v50 = vshrl.u32 %v17757_v31, %v18024_v7 }
 0x3eb   : > { %v4391_v52 = vsub.s32 32, %v4390_v8  ;;  %v4395_v56 = vsub.s32 4294967266, %v4390_v8  ;;  %vm1728_vm10 = vc.u32 %v1726_v33, %v1722_v17  ;;  %v4267_v55 = vmul.f32 %v4266_v22, %v15132_v28 }
 0x3ec   : > { %v4392_v61 = vshll.u32 %v4383_v14, %v4390_v8  ;;  %v1729_v6 = vsel %vm1728_vm10, 1, %v17760_v18  ;;  %v1740_v2 = vmul.u32 %v1736_v47, %v1713_v40  ;;  %v1742_v11 = vshll.u32 %v1739_v32, 16 }
 0x3ed   : > { %v4393_v59 = vshrl.u32 %v4375_v63, %v4391_v52  ;;  %v4396_v25 = vadd.s32 127, %v4395_v56  ;;  %v1731_v0 = vadd.s32 %v1729_v6, %v1727_v34  ;;  %v4254_v37 = vsel %vm15105_vm9, 0, %v4252_v36 }
 0x3ee   : > { %v4259_v54 = vadd.f32 -0.4999988, %v4258_v9  ;;  %v1699_v1 = vsel %vm1695_vm5, %v1679_v50, %v15114_v13  ;;  %v1738_v7 = vmul.u32 %v1736_v47, %v15164_v15  ;;  %v4405_v14 = vsub.s32 4, %v15134_v38 }
 0x3ef   : > { %v4394_v17 = vor.u32 %v4393_v59, %v4392_v61  ;;  %v4397_v22 = vshll.u32 %v4396_v25, 23  ;;  %v1721_v8 = vshrl.u32 %v15171_v43, 16  ;;  %v1741_v20 = vmul.u32 %v1737_v44, %v1713_v40 }
 0x3f0   : > { %v1744_v33 = vshll.u32 %v1740_v2, 16  ;;  %vm1746_vm0 = vc.u32 %v1738_v7, %v1742_v11  ;;  %v1748_v63 = vadd.s32 %v1742_v11, %v1738_v7  ;;  %v4268_v34 = vadd.f32 1.0, %v4267_v55 }
 0x3f1   : > { %v4398_v12 = vor.u32 4788187, %v4397_v22  ;;  %v1732_v36 = vadd.s32 %v1731_v0, %v1721_v8  ;;  %v1747_v9 = vsel %vm1746_vm0, 1, %v17760_v18  ;;  %v4260_v52 = vmul.f32 %v4259_v54, %v15132_v28 }
 0x3f2   : > { %vm18041_vm9 = vcmp.lt.s32.totalorder %v18032_v21, 4  ;;  %v1749_v15 = vadd.s32 %v1747_v9, %v1741_v20  ;;  %vm1750_vm11 = vc.u32 %v1748_v63, %v1744_v33  ;;  %v4401_v47 = vcvt.s32.f32 %v4394_v17 }
 0x3f3   : > { %v1700_v13 = vsel %vm18041_vm9, %v15098_v39, 2102212464  ;;  %v4399_v25 = vand.u32 2147483647, %v4398_v12  ;;  %v1723_v43 = vshrl.u32 %v15193_v41, 16  ;;  %v1751_v40 = vsel %vm1750_vm11, 1, %v17760_v18 }
 0x3f4   : > { %v4406_v44 = vsel %vm4283_vm3, %v4405_v14, %v15134_v38  ;;  %v9237_v0 = vadd.s32 3, %v4254_v37  ;;  %v1743_v56 = vshrl.u32 %v1739_v32, 16  ;;  %v1753_v50 = vadd.s32 %v1751_v40, %v1749_v15  ;;  %v18045_v14 = vld [vmem:[#allocation5_spill] sm:$0xff] }
 0x3f5   : > { %v15236_v28 = vmul.f32 %v4268_v34, %v15125_v62  ;;  %v4402_v55 = vmul.f32 %v4401_v47, %v4399_v25  ;;  %v1701_v39 = vsel %vm1697_vm7, %v15096_v53, %v1700_v13  ;;  %v15241_v61 = vadd.s32 %v1732_v36, %v1723_v43 }
 0x3f6   : > { %v18042_v41 = vand.u32 2147483647, %v18014_v45  ;;  %v15249_v38 = vand.u32 3, %v4254_v37  ;;  %v1745_v32 = vshrl.u32 %v1740_v2, 16  ;;  %v1754_v59 = vadd.s32 %v1753_v50, %v1743_v56 }
 0x3f7   : > { %v4261_v11 = vadd.f32 1.0, %v4260_v52  ;;  %v4403_v62 = vxor.u32 2147483648, %v4402_v55  ;;  %v15253_v7 = vadd.s32 %v1748_v63, %v1744_v33  ;;  %v9238_v53 = vand.u32 3, %v9237_v0 }
 0x3f8   : > { %vm15245_vm5 = vcmp.le.f32.partialorder %v18042_v41, 0.7853982  ;;  %v1702_v17 = vsel %vm1696_vm6, %v1699_v1, %v1701_v39  ;;  %v1755_v22 = vadd.s32 %v1754_v59, %v1745_v32  ;;  %v1817_v8 = vand.u32 2147483647, %v18045_v14 }
 0x3f9   : > { %v4408_v54 = vsel %vm15245_vm5, 0, %v4406_v44  ;;  %v15259_v20 = vadd.s32 1, %v15195_v46  ;;  %v4274_v2 = vxor.u32 2147483648, %v15236_v28  ;;  %v4404_v37 = vsel %vm4283_vm3, %v4403_v62, %v4402_v55  ;;  %v18046_v46 = vld [vmem:[#allocation13_spill] sm:$0xff]  ;;  %v18048_v55 = vld [vmem:[#allocation34_spill] sm:$0xff]  ;;  %v18049_v62 = vld [vmem:[#allocation47_spill] sm:$0xff] }
 0x3fa   : > { %vm1758_vm7 = vc.u32 %v15241_v61, %v15253_v7  ;;  %v15267_v33 = vadd.s32 1, %v15197_v29  ;;  %v15272_v21 = vsel %vm15245_vm5, %v18014_v45, %v4404_v37  ;;  %v9392_v1 = vadd.s32 3, %v4408_v54 }
 0x3fb   : > { %v1759_v63 = vadd.s32 1, %v1755_v22  ;;  %v15276_v34 = vadd.f32 %v15201_v23, %v18046_v46  ;;  %v4277_v12 = vxor.u32 2147483648, %v4261_v11  ;;  %v4409_v36 = vmul.f32 %v15272_v21, %v15272_v21 }
 0x3fc   : > { %v1756_v9 = vmul.u32 %v15128_v26, %v1702_v17  ;;  %vm9240_vm6 = vcmp.eq.s32.totalorder %v9238_v53, 0  ;;  %vm4273_vm4 = vcmp.eq.s32.totalorder %v15249_v38, 0  ;;  %v1824_v52 = vand.u32 8388607, %v1817_v8 }
 0x3fd   : > { %18047 = vst [vmem:[#allocation96_spill] sm:$0xff] %v15276_v34  ;;  %v1760_v29 = vsel %vm1758_vm7, %v1759_v63, %v1755_v22  ;;  %v4410_v13 = vmul.f32 -0.001358992, %v4409_v36  ;;  %v4417_v15 = vmul.f32 -0.00019511016, %v4409_v36  ;;  %v9242_v25 = vsel %vm9240_vm6, %v4261_v11, %v4274_v2 }
 0x3fe   : > { %vm4272_vm2 = vcmp.lt.s32.totalorder %v15249_v38, 2  ;;  %v1761_v23 = vadd.s32 %v1760_v29, %v1756_v9  ;;  %vm9239_vm12 = vcmp.lt.s32.totalorder %v9238_v53, 2  ;;  %vm9243_vm3 = vcmp.eq.s32.totalorder %v9238_v53, 2 }
 0x3ff   : > { %v15285_v47 = vand.u32 3, %v9392_v1  ;;  %v15287_v43 = vand.u32 3, %v4408_v54  ;;  %vm4270_vm10 = vweird.f32 %v17999_v16  ;;  %v4411_v26 = vadd.f32 0.041655596, %v4410_v13 }
 0x400   : > { %v4418_v40 = vadd.f32 0.008332121, %v4417_v15  ;;  %v9245_v44 = vsel %vm9243_vm3, %v4277_v12, %v15236_v28  ;;  %v1762_v0 = vadd.s32 536870912, %v1761_v23  ;;  %vm4276_vm0 = vcmp.eq.s32.totalorder %v15249_v38, 2  ;;  %v18051_v38 = vld [vmem:[#allocation54_spill] sm:$0xff] }
 0x401   : > { %v9246_v56 = vsel %vm9239_vm12, %v9242_v25, %v9245_v44  ;;  %v1825_v50 = vor.u32 8388608, %v1824_v52  ;;  %v1834_v39 = vshll.u32 %v17757_v31, %v18048_v55  ;;  %v4412_v41 = vmul.f32 %v4411_v26, %v4409_v36  ;;  %v18050_v25 = vld [vmem:[#allocation51_spill] sm:$0xff] }
 0x402   : > { %v4419_v6 = vmul.f32 %v4418_v40, %v4409_v36  ;;  %v15294_v32 = vshrl.u32 %v1762_v0, 30  ;;  %v1837_v59 = vshll.u32 %v17793_v10, %v18048_v55  ;;  %v1835_v54 = vshrl.u32 %v17793_v10, %v18049_v62 }
 0x403   : > { %v1838_v53 = vshrl.u32 %v17794_v51, %v18049_v62  ;;  %v1840_v17 = vshll.u32 %v17794_v51, %v18048_v55  ;;  %v1841_v22 = vshrl.u32 %v17687_v58, %v18049_v62  ;;  %v4413_v37 = vadd.f32 -0.4999988, %v4412_v41  ;;  %v18052_v55 = vld [vmem:[#allocation63_spill] sm:$0xff] }
 0x404   : > { %v4420_v1 = vadd.f32 -0.16666654, %v4419_v6  ;;  %vm9398_vm9 = vcmp.eq.s32.totalorder %v15285_v47, 2  ;;  %v4275_v63 = vsel %vm4273_vm4, %v4261_v11, %v4274_v2  ;;  %vm4430_vm11 = vcmp.eq.s32.totalorder %v15287_v43, 2 }
 0x405   : > { %v1764_v46 = vshll.u32 %v15294_v32, 30  ;;  %vm9395_vm5 = vcmp.eq.s32.totalorder %v15285_v47, 0  ;;  %v4278_v9 = vsel %vm4276_vm0, %v4277_v12, %v15236_v28  ;;  %vm4427_vm7 = vcmp.eq.s32.totalorder %v15287_v43, 0 }
 0x406   : > { %v15316_v29 = vor.u32 %v1835_v54, %v1834_v39  ;;  %v15318_v52 = vor.u32 %v1838_v53, %v1837_v59  ;;  %v15320_v13 = vor.u32 %v1841_v22, %v1840_v17  ;;  %v4414_v15 = vmul.f32 %v4413_v37, %v4409_v36  ;;  %v18053_v39 = vld [vmem:[#allocation70_spill] sm:$0xff] }
 0x407   : > { %v4421_v11 = vmul.f32 %v4420_v1, %v4409_v36  ;;  %vm9394_vm6 = vcmp.lt.s32.totalorder %v15285_v47, 2  ;;  %vm4426_vm4 = vcmp.lt.s32.totalorder %v15287_v43, 2  ;;  %v15324_v2 = vsub.s32 %v1761_v23, %v1764_v46 }
 0x408   : > { %vm1849_vm12 = vcmp.lt.s32.totalorder %v18050_v25, 1  ;;  %vm4424_vm3 = vweird.f32 %v18014_v45  ;;  %v4279_v28 = vsel %vm4272_vm2, %v4275_v63, %v4278_v9  ;;  %vm1851_vm0 = vcmp.lt.s32.totalorder %v18050_v25, 3 }
 0x409   : > { %v1857_v12 = vsel %vm1849_vm12, %v15316_v29, %v15318_v52  ;;  %v15335_v36 = vshll.u32 %v1825_v50, 8  ;;  %v4415_v26 = vadd.f32 1.0, %v4414_v15  ;;  %v4422_v40 = vadd.f32 1.0, %v4421_v11 }
 0x40a   : > { %vm1766_vm1 = vcmp.lt.s32.totalorder %v15324_v2, 0  ;;  %v1767_v23 = vsub.s32 0, %v15324_v2  ;;  %v9247_v44 = vsel %vm4270_vm10, nan, %v9246_v56  ;;  %v1859_v0 = vsel %vm1851_vm0, %v15320_v13, %v18051_v38 }
 0x40b   : > { %v1861_v50 = vsel %vm1849_vm12, %v15318_v52, %v15320_v13  ;;  %v1863_v41 = vsel %vm1851_vm0, %v18053_v39, %v18052_v55  ;;  %v4423_v6 = vmul.f32 %v4422_v40, %v15272_v21  ;;  %v4431_v59 = vxor.u32 2147483648, %v4415_v26 }
 0x40c   : > { %v1768_v56 = vsel %vm1766_vm1, %v1767_v23, %v15324_v2  ;;  %vm1850_vm2 = vcmp.lt.s32.totalorder %v18050_v25, 2  ;;  %v4280_v54 = vsel %vm4270_vm10, nan, %v4279_v28  ;;  %v1866_v1 = vand.u32 65535, %v15335_v36 }
 0x40d   : > { %v1769_v53 = vclz %v1768_v56  ;;  %v1860_v17 = vsel %vm1850_vm2, %v1857_v12, %v1859_v0  ;;  %v1864_v22 = vsel %vm1850_vm2, %v1861_v50, %v1863_v41  ;;  %v4428_v37 = vxor.u32 2147483648, %v4423_v6 }
 0x40e   : > { %v1867_v21 = vshrl.u32 %v15335_v36, 16  ;;  %v1868_v63 = vand.u32 65535, %v1864_v22  ;;  %v9400_v46 = vsel %vm9398_vm9, %v4431_v59, %v4423_v6  ;;  %v4432_v16 = vsel %vm4430_vm11, %v4431_v59, %v4423_v6 }
 0x40f   : > { %v10900_v9 = vadd.s32 4294967294, %v1769_v53  ;;  %v1869_v15 = vshrl.u32 %v1864_v22, 16  ;;  %v9397_v11 = vsel %vm9395_vm5, %v4415_v26, %v4428_v37  ;;  %v4429_v28 = vsel %vm4427_vm7, %v4415_v26, %v4428_v37 }
 0x410   : > { %v15372_v12 = vmul.u32 %v1868_v63, %v1867_v21  ;;  %v1891_v40 = vshrl.u32 %v1860_v17, 16  ;;  %v9401_v23 = vsel %vm9394_vm6, %v9397_v11, %v9400_v46  ;;  %v4433_v38 = vsel %vm4426_vm4, %v4429_v28, %v4432_v16 }
 0x411   : > { %vm10901_vm1 = vcmp.lt.s32.totalorder %v10900_v9, 0  ;;  %v1871_v0 = vmul.u32 %v1869_v15, %v1866_v1  ;;  %v9402_v50 = vsel %vm4424_vm3, nan, %v9401_v23  ;;  %v4434_v55 = vsel %vm4424_vm3, nan, %v4433_v38 }
 0x412   : > { %v1772_v39 = vsel %vm10901_vm1, 0, %v10900_v9  ;;  %v1890_v41 = vand.u32 65535, %v1860_v17  ;;  %v10654_v26 = vpack.c.bf16 %v9402_v50, %v9247_v44  ;;  %v5678_v6 = vpack.c.bf16 %v4434_v55, %v4280_v54 }
 0x413   : > { %v1757_v59 = vadd.s32 %v15253_v7, %v15241_v61  ;;  %v1773_v47 = vsub.s32 32, %v1772_v39  ;;  %v1777_v56 = vsub.s32 4294967266, %v1772_v39  ;;  %v1870_v53 = vmul.u32 %v1868_v63, %v1866_v1 }
 0x414   : > { %v1873_v43 = vmul.u32 %v1869_v15, %v1867_v21  ;;  %v1874_v22 = vshll.u32 %v1871_v0, 16  ;;  %10690 = vmatpush.bf16.msra.mxu1 %v10654_v26  ;;  %10716 = vmatpush.bf16.msra.mxu3 %v5678_v6  ;;  %v1774_v37 = vshll.u32 %v15324_v2, %v1772_v39  ;;  %v1876_v45 = vshll.u32 %v15372_v12, 16 }
 0x415   : > { %v1775_v46 = vshrl.u32 %v1757_v59, %v1773_v47  ;;  %v1893_v16 = vmul.u32 %v1891_v40, %v1866_v1  ;;  %v1778_v9 = vadd.s32 127, %v1777_v56  ;;  %v1894_v54 = vmul.u32 %v1890_v41, %v1867_v21  ;;  %v18054_v47 = vld [vmem:[#allocation36_spill] sm:$0xff] }
 0x416   : > { %vm1878_vm10 = vc.u32 %v1870_v53, %v1874_v22  ;;  %v1880_v44 = vadd.s32 %v1874_v22, %v1870_v53  ;;  %vm3368_vm9 = vcmp.gt.s32.totalorder %v15259_v20, 0  ;;  %v1892_v11 = vmul.u32 %v1890_v41, %v1866_v1 }
 0x417   : > { %v1776_v61 = vor.u32 %v1775_v46, %v1774_v37  ;;  %v1879_v7 = vsel %vm1878_vm10, 1, %v17760_v18  ;;  %v1896_v17 = vshll.u32 %v1893_v16, 16  ;;  %v1779_v63 = vshll.u32 %v1778_v9, 23 }
 0x418   : > { %v1881_v15 = vadd.s32 %v1879_v7, %v1873_v43  ;;  %vm1882_vm11 = vc.u32 %v1880_v44, %v1876_v45  ;;  %v1875_v28 = vshrl.u32 %v1871_v0, 16  ;;  %v1895_v23 = vmul.u32 %v1891_v40, %v1867_v21 }
 0x419   : > { %v1883_v2 = vsel %vm1882_vm11, 1, %v17760_v18  ;;  %v1898_v38 = vshll.u32 %v1894_v54, 16  ;;  %v1780_v50 = vor.u32 4788187, %v1779_v63  ;;  %vm1900_vm5 = vc.u32 %v1892_v11, %v1896_v17 }
 0x41a   : > { %v1885_v55 = vadd.s32 %v1883_v2, %v1881_v15  ;;  %v1902_v39 = vadd.s32 %v1896_v17, %v1892_v11  ;;  %v1783_v26 = vcvt.s32.f32 %v1776_v61  ;;  %v1854_v6 = vsel %vm1852_vm8, %v15320_v13, 2102212464 }
 0x41b   : > { %v1901_v59 = vsel %vm1900_vm5, 1, %v17760_v18  ;;  %v3819_v56 = vand.u32 2147483647, %v18054_v47  ;;  %v1781_v53 = vand.u32 2147483647, %v1780_v50  ;;  %v1787_v21 = vsub.s32 4, %v15294_v32 }
 0x41c   : > { %v1886_v1 = vadd.s32 %v1885_v55, %v1875_v28  ;;  %v1903_v0 = vadd.s32 %v1901_v59, %v1895_v23  ;;  %vm1904_vm7 = vc.u32 %v1902_v39, %v1898_v38  ;;  %v1833_v40 = vshrl.u32 %v17757_v31, %v18049_v62 }
 0x41d   : > { %v1877_v41 = vshrl.u32 %v15372_v12, 16  ;;  %v1905_v43 = vsel %vm1904_vm7, 1, %v17760_v18  ;;  %v3369_v13 = vsel %vm3368_vm9, %v15259_v20, 0  ;;  %v1784_v22 = vmul.f32 %v1783_v26, %v1781_v53 }
 0x41e   : > { %v1897_v37 = vshrl.u32 %v1893_v16, 16  ;;  %v1907_v46 = vadd.s32 %v1905_v43, %v1903_v0  ;;  %v1204_v45 = vand.u32 2139095040, %v15276_v34  ;;  %v1853_v9 = vsel %vm1849_vm12, %v1833_v40, %v15316_v29 }
 0x41f   : > { %v1855_v62 = vsel %vm1851_vm0, %v15318_v52, %v1854_v6  ;;  %v15409_v12 = vadd.s32 %v1886_v1, %v1877_v41  ;;  %vm3522_vm8 = vcmp.gt.s32.totalorder %v15267_v33, 0  ;;  %vm1665_vm6 = vcmp.lt.s32.totalorder %v18022_v35, 0 }
 0x420   : > { %v1785_v20 = vxor.u32 2147483648, %v1784_v22  ;;  %v1899_v44 = vshrl.u32 %v1894_v54, 16  ;;  %v1908_v16 = vadd.s32 %v1907_v46, %v1897_v37  ;;  %v18055_v61 = vand.u32 2147483647, %v18022_v35 }
 0x421   : > { %v1788_v29 = vsel %vm1665_vm6, %v1787_v21, %v15294_v32  ;;  %v15420_v17 = vadd.s32 %v1902_v39, %v1898_v38  ;;  %v3826_v52 = vand.u32 8388607, %v3819_v56  ;;  %v1856_v15 = vsel %vm1850_vm2, %v1853_v9, %v1855_v62 }
 0x422   : > { %vm15415_vm4 = vcmp.le.f32.partialorder %v18055_v61, 0.7853982  ;;  %v1786_v63 = vsel %vm1665_vm6, %v1785_v20, %v1784_v22  ;;  %v1909_v11 = vadd.s32 %v1908_v16, %v1899_v44  ;;  %v3840_v54 = vshrl.u32 %v17794_v51, %v14454_v30 }
 0x423   : > { %v15431_v28 = vsel %vm15415_vm4, %v18022_v35, %v1786_v63  ;;  %vm1912_vm12 = vc.u32 %v15409_v12, %v15420_v17  ;;  %v3827_v32 = vor.u32 8388608, %v3826_v52  ;;  %v3839_v2 = vshll.u32 %v17793_v10, %v14390_v60 }
 0x424   : > { %v1791_v25 = vmul.f32 %v15431_v28, %v15431_v28  ;;  %v1913_v23 = vadd.s32 1, %v1909_v11  ;;  %v3842_v38 = vshll.u32 %v17794_v51, %v14390_v60  ;;  %v3843_v50 = vshrl.u32 %v17687_v58, %v14454_v30 }
 0x425   : > { %v15443_v55 = vand.u32 31, %v3369_v13  ;;  %v1910_v39 = vmul.u32 %v15335_v36, %v1856_v15  ;;  %v15446_v26 = vor.u32 %v3840_v54, %v3839_v2  ;;  %vm3853_vm3 = vcmp.lt.s32.totalorder %v14385_v49, 3 }
 0x426   : > { %v1792_v6 = vmul.f32 -0.001358992, %v1791_v25  ;;  %v1799_v59 = vmul.f32 -0.00019511016, %v1791_v25  ;;  %v1914_v53 = vsel %vm1912_vm12, %v1913_v23, %v1909_v11  ;;  %v3844_v1 = vor.u32 %v3843_v50, %v3842_v38 }
 0x427   : > { %18058 = vst [vmem:[#allocation90_spill] sm:$0xff] %v15443_v55  ;;  %v1790_v0 = vsel %vm15415_vm4, 0, %v1788_v29  ;;  %v1915_v21 = vadd.s32 %v1914_v53, %v1910_v39  ;;  %v3837_v40 = vshrl.u32 %v17793_v10, %v14454_v30  ;;  %v3865_v36 = vsel %vm3853_vm3, %v14522_v3, %v14805_v27 }
 0x428   : > { %v1793_v41 = vadd.f32 0.041655596, %v1792_v6  ;;  %v1800_v43 = vadd.f32 0.008332121, %v1799_v59  ;;  %vm3851_vm0 = vcmp.lt.s32.totalorder %v14385_v49, 1  ;;  %v15458_v22 = vshll.u32 %v3827_v32, 8 }
 0x429   : > { %v1916_v37 = vadd.s32 536870912, %v1915_v21  ;;  %v3836_v46 = vshll.u32 %v17757_v31, %v14390_v60  ;;  %vm3852_vm2 = vcmp.lt.s32.totalorder %v14385_v49, 2  ;;  %v3863_v9 = vsel %vm3851_vm0, %v15446_v26, %v3844_v1 }
 0x42a   : > { %v15466_v62 = vshrl.u32 %v3369_v13, 5  ;;  %v1794_v20 = vmul.f32 %v1793_v41, %v1791_v25  ;;  %v1801_v3 = vmul.f32 %v1800_v43, %v1791_v25  ;;  %v3866_v27 = vsel %vm3852_vm2, %v3863_v9, %v3865_v36 }
 0x42b   : > { %v15473_v44 = vsel %vm3522_vm8, %v15267_v33, 0  ;;  %v1917_v16 = vshrl.u32 %v1916_v37, 30  ;;  %v6757_v60 = vadd.s32 3, %v1790_v0  ;;  %v3838_v61 = vor.u32 %v3837_v40, %v3836_v46 }
 0x42c   : > { %18059 = vst [vmem:[#allocation68_spill] sm:$0xff] %v15466_v62  ;;  %v15475_v7 = vshrl.u32 %v1204_v45, 23  ;;  %v1802_v29 = vadd.f32 -0.16666654, %v1801_v3  ;;  %v15478_v52 = vand.u32 65535, %v15458_v22  ;;  %v3871_v13 = vshrl.u32 %v3866_v27, 16 }
 0x42d   : > { %v15481_v63 = vsub.s32 32, %v15443_v55  ;;  %v1795_v15 = vadd.f32 -0.4999988, %v1794_v20  ;;  %v1918_v11 = vshll.u32 %v1917_v16, 30  ;;  %v3870_v54 = vand.u32 65535, %v3866_v27 }
 0x42e   : > { %v15485_v33 = vshll.u32 %v17687_v58, %v15443_v55  ;;  %v15488_v32 = vand.u32 31, %v15473_v44  ;;  %vm1819_vm1 = vcmp.lt.s32.totalorder %v18045_v14, 0  ;;  %v15492_v45 = vmul.u32 %v3871_v13, %v15478_v52 }
 0x42f   : > { %18060 = vst [vmem:[#allocation80_spill] sm:$0xff] %v15481_v63  ;;  %v15494_v2 = vsub.s32 %v1915_v21, %v1918_v11  ;;  %v15496_v23 = vand.u32 3, %v6757_v60  ;;  %v3859_v38 = vsel %vm3851_vm0, %v3838_v61, %v15446_v26  ;;  %v3861_v50 = vsel %vm3853_vm3, %v3844_v1, %v14786_v4 }
 0x430   : > { %v1803_v39 = vmul.f32 %v1802_v29, %v1791_v25  ;;  %v1941_v6 = vsub.s32 4, %v1917_v16  ;;  %v3869_v59 = vshrl.u32 %v15458_v22, 16  ;;  %v3876_v53 = vshll.u32 %v15492_v45, 16 }
 0x431   : > { %v1796_v40 = vmul.f32 %v1795_v15, %v1791_v25  ;;  %vm1920_vm10 = vcmp.lt.s32.totalorder %v15494_v2, 0  ;;  %v1921_v21 = vsub.s32 0, %v15494_v2  ;;  %v3872_v36 = vmul.u32 %v3870_v54, %v15478_v52 }
 0x432   : > { %vm15511_vm9 = vcmp.le.f32.partialorder %v1817_v8, 0.7853982  ;;  %v15515_v4 = vand.u32 3, %v1790_v0  ;;  %v3835_v43 = vshrl.u32 %v17757_v31, %v14454_v30  ;;  %v3856_v25 = vsel %vm3854_vm13, %v3844_v1, 2102212464 }
 0x433   : > { %v1922_v37 = vsel %vm1920_vm10, %v1921_v21, %v15494_v2  ;;  %v3862_v46 = vsel %vm3852_vm2, %v3859_v38, %v3861_v50  ;;  %v15524_v9 = vmul.u32 %v3870_v54, %v3869_v59  ;;  %vm3880_vm11 = vc.u32 %v3872_v36, %v3876_v53 }
 0x434   : > { %v1804_v8 = vadd.f32 1.0, %v1803_v39  ;;  %v1923_v20 = vclz %v1922_v37  ;;  %v1942_v0 = vsel %vm1819_vm1, %v1941_v6, %v1917_v16  ;;  %vm6763_vm5 = vcmp.eq.s32.totalorder %v15496_v23, 2 }
 0x435   : > { %v15529_v3 = vadd.f32 1.0, %v1796_v40  ;;  %v3855_v30 = vsel %vm3851_vm0, %v3835_v43, %v3838_v61  ;;  %v3857_v1 = vsel %vm3853_vm3, %v15446_v26, %v3856_v25  ;;  %v3875_v27 = vmul.u32 %v3871_v13, %v3869_v59 }
 0x436   : > { %v1911_v60 = vadd.s32 %v15420_v17, %v15409_v12  ;;  %v10903_v29 = vadd.s32 4294967294, %v1923_v20  ;;  %v3881_v15 = vsel %vm3880_vm11, 1, %v17760_v18  ;;  %v3892_v11 = vand.u32 65535, %v3862_v46 }
 0x437   : > { %v1944_v16 = vsel %vm15511_vm9, 0, %v1942_v0  ;;  %vm6760_vm13 = vcmp.eq.s32.totalorder %v15496_v23, 0  ;;  %vm1812_vm7 = vcmp.eq.s32.totalorder %v15515_v4, 2  ;;  %v3878_v61 = vshll.u32 %v15524_v9, 16 }
 0x438   : > { %v3882_v54 = vadd.s32 %v3876_v53, %v3872_v36  ;;  %v3883_v38 = vadd.s32 %v3881_v15, %v3875_v27  ;;  %v15545_v26 = vmul.f32 %v1804_v8, %v15431_v28  ;;  %vm10904_vm8 = vcmp.lt.s32.totalorder %v10903_v29, 0  ;;  %v18063_v15 = vld [vmem:[#allocation55_spill] sm:$0xff] }
 0x439   : > { %v15549_v12 = vsel %vm3852_vm2, %v3855_v30, %v3857_v1  ;;  %v3893_v17 = vshrl.u32 %v3862_v46, 16  ;;  %v1813_v13 = vxor.u32 2147483648, %v15529_v3  ;;  %v1926_v50 = vsel %vm10904_vm8, 0, %v10903_v29 }
 0x43a   : > { %v3879_v39 = vshrl.u32 %v15524_v9, 16  ;;  %vm3884_vm6 = vc.u32 %v3882_v54, %v3878_v61  ;;  %v1927_v6 = vsub.s32 32, %v1926_v50  ;;  %v1931_v40 = vsub.s32 4294967266, %v1926_v50 }
 0x43b   : > { %v15553_v21 = vadd.s32 3, %v1944_v16  ;;  %v3885_v53 = vsel %vm3884_vm6, 1, %v17760_v18  ;;  %v15556_v28 = vand.u32 3, %v1944_v16  ;;  %v3895_v49 = vmul.u32 %v3893_v17, %v15478_v52 }
 0x43c   : > { %v3887_v36 = vadd.s32 %v3885_v53, %v3883_v38  ;;  %v3896_v43 = vmul.u32 %v3892_v11, %v3869_v59  ;;  %v1810_v25 = vxor.u32 2147483648, %v15545_v26  ;;  %v1928_v37 = vshll.u32 %v15494_v2, %v1926_v50 }
 0x43d   : > { %v1929_v46 = vshrl.u32 %v1911_v60, %v1927_v6  ;;  %v1932_v8 = vadd.s32 127, %v1931_v40  ;;  %v6765_v9 = vsel %vm6763_vm5, %v1813_v13, %v15545_v26  ;;  %vm1809_vm4 = vcmp.eq.s32.totalorder %v15515_v4, 0  ;;  %v18064_v40 = vld [vmem:[#allocation42_spill] sm:$0xff] }
 0x43e   : > { %v3877_v20 = vshrl.u32 %v15492_v45, 16  ;;  %v3894_v0 = vmul.u32 %v3892_v11, %v15478_v52  ;;  %v3898_v30 = vshll.u32 %v3895_v49, 16  ;;  %v3897_v29 = vmul.u32 %v3893_v17, %v3869_v59 }
 0x43f   : > { %v1930_v1 = vor.u32 %v1929_v46, %v1928_v37  ;;  %v1933_v27 = vshll.u32 %v1932_v8, 23  ;;  %v17649_v16 = vand.u32 2147483647, %v18063_v15  ;;  %v3900_v2 = vshll.u32 %v3896_v43, 16 }
 0x440   : > { %v3888_v61 = vadd.s32 %v3887_v36, %v3877_v20  ;;  %vm3902_vm12 = vc.u32 %v3894_v0, %v3898_v30  ;;  %v3904_v60 = vadd.s32 %v3898_v30, %v3894_v0  ;;  %v6762_v38 = vsel %vm6760_vm13, %v15529_v3, %v1810_v25  ;;  %v18065_v36 = vld [vmem:[#allocation11_spill] sm:$0xff] }
 0x441   : > { %v1934_v54 = vor.u32 4788187, %v1933_v27  ;;  %v1814_v45 = vsel %vm1812_vm7, %v1813_v13, %v15545_v26  ;;  %v3903_v52 = vsel %vm3902_vm12, 1, %v17760_v18  ;;  %v1937_v11 = vcvt.s32.f32 %v1930_v1 }
 0x442   : > { %v3905_v50 = vadd.s32 %v3903_v52, %v3897_v29  ;;  %vm3906_vm3 = vc.u32 %v3904_v60, %v3900_v2  ;;  %v3980_v59 = vand.u32 8388607, %v17649_v16  ;;  %vm6759_vm0 = vcmp.lt.s32.totalorder %v15496_v23, 2 }
 0x443   : > { %v1935_v17 = vand.u32 2147483647, %v1934_v54  ;;  %vm1808_vm2 = vcmp.lt.s32.totalorder %v15515_v4, 2  ;;  %v3907_v6 = vsel %vm3906_vm3, 1, %v17760_v18  ;;  %v3990_v53 = vshll.u32 %v17757_v31, %v18064_v40 }
 0x444   : > { %v3991_v26 = vshrl.u32 %v17793_v10, %v18065_v36  ;;  %v15584_v13 = vadd.s32 %v3888_v61, %v3879_v39  ;;  %v3899_v37 = vshrl.u32 %v3895_v49, 16  ;;  %v3901_v46 = vshrl.u32 %v3896_v43, 16 }
 0x445   : > { %v3909_v8 = vadd.s32 %v3907_v6, %v3905_v50  ;;  %v1938_v20 = vmul.f32 %v1937_v11, %v1935_v17  ;;  %v3993_v30 = vshll.u32 %v17793_v10, %v18064_v40  ;;  %v3994_v1 = vshrl.u32 %v17794_v51, %v18065_v36  ;;  %v18066_v17 = vld [vmem:[#allocation33_spill] sm:$0xff] }
 0x446   : > { %v15586_v0 = vor.u32 %v3991_v26, %v3990_v53  ;;  %v3981_v29 = vor.u32 8388608, %v3980_v59  ;;  %v3996_v54 = vshll.u32 %v17794_v51, %v18064_v40  ;;  %v3997_v39 = vshrl.u32 %v17687_v58, %v18065_v36  ;;  %v18069_v53 = vld [vmem:[#allocation71_spill] sm:$0xff] }
 0x447   : > { %v3910_v27 = vadd.s32 %v3909_v8, %v3899_v37  ;;  %vm1806_vm10 = vweird.f32 %v18022_v35  ;;  %v1939_v49 = vxor.u32 2147483648, %v1938_v20  ;;  %v1811_v43 = vsel %vm1809_vm4, %v15529_v3, %v1810_v25  ;;  %v18067_v3 = vld [vmem:[#allocation62_spill] sm:$0xff] }
 0x448   : > { %v3908_v61 = vadd.s32 %v3904_v60, %v3900_v2  ;;  %v15600_v52 = vor.u32 %v3994_v1, %v3993_v30  ;;  %v3998_v50 = vor.u32 %v3997_v39, %v3996_v54  ;;  %vm4005_vm11 = vcmp.lt.s32.totalorder %v18066_v17, 1  ;;  %v18068_v25 = vld [vmem:[#allocation18_spill] sm:$0xff] }
 0x449   : > { %v3911_v11 = vadd.s32 %v3910_v27, %v3901_v46  ;;  %vm4007_vm5 = vcmp.lt.s32.totalorder %v18066_v17, 3  ;;  %v1940_v59 = vsel %vm1819_vm1, %v1939_v49, %v1938_v20  ;;  %v15623_v37 = vshll.u32 %v3981_v29, 8 }
 0x44a   : > { %vm3914_vm13 = vc.u32 %v15584_v13, %v3908_v61  ;;  %v4013_v6 = vsel %vm4005_vm11, %v15586_v0, %v15600_v52  ;;  %v4019_v2 = vsel %vm4007_vm5, %v18068_v25, %v18067_v3  ;;  %v15618_v60 = vsel %vm15511_vm9, %v18045_v14, %v1940_v59 }
 0x44b   : > { %v3915_v40 = vadd.s32 1, %v3911_v11  ;;  %v4015_v26 = vsel %vm4007_vm5, %v3998_v50, %v18069_v53  ;;  %v1945_v46 = vmul.f32 %v15618_v60, %v15618_v60  ;;  %v3912_v8 = vmul.u32 %v15458_v22, %v15549_v12 }
 0x44c   : > { %vm4006_vm1 = vcmp.lt.s32.totalorder %v18066_v17, 2  ;;  %v4017_v41 = vsel %vm4005_vm11, %v15600_v52, %v3998_v50  ;;  %v6766_v20 = vsel %vm6759_vm0, %v6762_v38, %v6765_v9  ;;  %v1815_v30 = vsel %vm1808_vm2, %v1811_v43, %v1814_v45 }
 0x44d   : > { %v3916_v1 = vsel %vm3914_vm13, %v3915_v40, %v3911_v11  ;;  %v4020_v27 = vsel %vm4006_vm1, %v4017_v41, %v4019_v2  ;;  %v1946_v29 = vmul.f32 -0.001358992, %v1945_v46  ;;  %v1953_v54 = vmul.f32 -0.00019511016, %v1945_v46 }
 0x44e   : > { %v3917_v39 = vadd.s32 %v3916_v1, %v3912_v8  ;;  %v15641_v22 = vsel %vm4006_vm1, %v4013_v6, %v4015_v26  ;;  %v4022_v12 = vand.u32 65535, %v15623_v37  ;;  %v4023_v49 = vshrl.u32 %v15623_v37, 16 }
 0x44f   : > { %v4024_v23 = vand.u32 65535, %v4020_v27  ;;  %v4025_v9 = vshrl.u32 %v4020_v27, 16  ;;  %v1947_v38 = vadd.f32 0.041655596, %v1946_v29  ;;  %v1954_v4 = vadd.f32 0.008332121, %v1953_v54 }
 0x450   : > { %v15646_v45 = vand.u32 3, %v15553_v21  ;;  %v3918_v43 = vadd.s32 536870912, %v3917_v39  ;;  %v15650_v11 = vsel %vm1806_vm10, nan, %v6766_v20  ;;  %v4047_v6 = vshrl.u32 %v15641_v22, 16 }
 0x451   : > { %v4027_v59 = vmul.u32 %v4025_v9, %v4022_v12  ;;  %v15652_v3 = vmul.u32 %v4024_v23, %v4023_v49  ;;  %v1948_v25 = vmul.f32 %v1947_v38, %v1945_v46  ;;  %v1955_v2 = vmul.f32 %v1954_v4, %v1945_v46 }
 0x452   : > { %v15657_v40 = vsel %vm1806_vm10, nan, %v1815_v30  ;;  %v15659_v53 = vshrl.u32 %v3918_v43, 30  ;;  %v3989_v21 = vshrl.u32 %v17757_v31, %v18065_v36  ;;  %v4026_v26 = vmul.u32 %v4024_v23, %v4022_v12 }
 0x453   : > { %v4030_v8 = vshll.u32 %v4027_v59, 16  ;;  %v4046_v41 = vand.u32 65535, %v15641_v22  ;;  %v1949_v20 = vadd.f32 -0.4999988, %v1948_v25  ;;  %v1956_v1 = vadd.f32 -0.16666654, %v1955_v2 }
 0x454   : > { %vm6918_vm9 = vcmp.eq.s32.totalorder %v15646_v45, 2  ;;  %v15666_v27 = vadd.s32 %v3908_v61, %v15584_v13  ;;  %v3920_v35 = vshll.u32 %v15659_v53, 30  ;;  %vm6915_vm7 = vcmp.eq.s32.totalorder %v15646_v45, 0 }
 0x455   : > { %vm1963_vm8 = vcmp.eq.s32.totalorder %v15556_v28, 0  ;;  %vm1966_vm6 = vcmp.eq.s32.totalorder %v15556_v28, 2  ;;  %v4032_v36 = vshll.u32 %v15652_v3, 16  ;;  %vm4034_vm4 = vc.u32 %v4026_v26, %v4030_v8 }
 0x456   : > { %v4036_v30 = vadd.s32 %v4030_v8, %v4026_v26  ;;  %v15673_v29 = vmul.u32 %v4047_v6, %v4022_v12  ;;  %v1950_v54 = vmul.f32 %v1949_v20, %v1945_v46  ;;  %v1957_v22 = vmul.f32 %v1956_v1, %v1945_v46 }
 0x457   : > { %vm6914_vm12 = vcmp.lt.s32.totalorder %v15646_v45, 2  ;;  %vm1962_vm3 = vcmp.lt.s32.totalorder %v15556_v28, 2  ;;  %v15677_v13 = vsub.s32 %v3917_v39, %v3920_v35  ;;  %vm18070_vm0 = vcmp.lt.s32.totalorder %v18066_v17, 4  ;;  %v18071_v45 = vld [vmem:[#allocation22_spill] sm:$0xff] }
 0x458   : > { %v4010_v61 = vsel %vm18070_vm0, %v3998_v50, 2102212464  ;;  %vm1960_vm2 = vweird.f32 %v18045_v14  ;;  %v4029_v23 = vmul.u32 %v4025_v9, %v4023_v49  ;;  %v4035_v38 = vsel %vm4034_vm4, 1, %v17760_v18 }
 0x459   : > { %vm4038_vm10 = vc.u32 %v4036_v30, %v4032_v36  ;;  %v4048_v4 = vmul.u32 %v4046_v41, %v4022_v12  ;;  %v1951_v43 = vadd.f32 1.0, %v1950_v54  ;;  %v1958_v25 = vadd.f32 1.0, %v1957_v22 }
 0x45a   : > { %vm3922_vm13 = vcmp.lt.s32.totalorder %v15677_v13, 0  ;;  %v3923_v46 = vsub.s32 0, %v15677_v13  ;;  %v4037_v2 = vadd.s32 %v4035_v38, %v4029_v23  ;;  %v4039_v39 = vsel %vm4038_vm10, 1, %v17760_v18 }
 0x45b   : > { %v4050_v26 = vmul.u32 %v4046_v41, %v4023_v49  ;;  %v4052_v8 = vshll.u32 %v15673_v29, 16  ;;  %v1959_v50 = vmul.f32 %v1958_v25, %v15618_v60  ;;  %v1967_v20 = vxor.u32 2147483648, %v1951_v43 }
 0x45c   : > { %v3924_v9 = vsel %vm3922_vm13, %v3923_v46, %v15677_v13  ;;  %v4009_v12 = vsel %vm4005_vm11, %v3989_v21, %v15586_v0  ;;  %v4011_v35 = vsel %vm4007_vm5, %v15600_v52, %v4010_v61  ;;  %v4041_v36 = vadd.s32 %v4039_v39, %v4037_v2 }
 0x45d   : > { %v3925_v1 = vclz %v3924_v9  ;;  %vm4056_vm4 = vc.u32 %v4048_v4, %v4052_v8  ;;  %v1964_v30 = vxor.u32 2147483648, %v1959_v50  ;;  %v4031_v41 = vshrl.u32 %v4027_v59, 16 }
 0x45e   : > { %v4051_v54 = vmul.u32 %v4047_v6, %v4023_v49  ;;  %v4057_v22 = vsel %vm4056_vm4, 1, %v17760_v18  ;;  %v6920_v60 = vsel %vm6918_vm9, %v1967_v20, %v1959_v50  ;;  %v4054_v38 = vshll.u32 %v4050_v26, 16 }
 0x45f   : > { %v10942_v23 = vadd.s32 4294967294, %v3925_v1  ;;  %v4058_v25 = vadd.s32 %v4052_v8, %v4048_v4  ;;  %v6917_v0 = vsel %vm6915_vm7, %v1951_v43, %v1964_v30  ;;  %v1965_v21 = vsel %vm1963_vm8, %v1951_v43, %v1964_v30 }
 0x460   : > { %v1968_v52 = vsel %vm1966_vm6, %v1967_v20, %v1959_v50  ;;  %v4042_v61 = vadd.s32 %v4041_v36, %v4031_v41  ;;  %v6921_v49 = vsel %vm6914_vm12, %v6917_v0, %v6920_v60  ;;  %v4059_v6 = vadd.s32 %v4057_v22, %v4051_v54 }
 0x461   : > { %v1969_v59 = vsel %vm1962_vm3, %v1965_v21, %v1968_v52  ;;  %vm10943_vm11 = vcmp.lt.s32.totalorder %v10942_v23, 0  ;;  %v6922_v4 = vsel %vm1960_vm2, nan, %v6921_v49  ;;  %vm4060_vm5 = vc.u32 %v4058_v25, %v4054_v38  ;;  %v18073_v52 = vld [vmem:[#allocation53_spill] sm:$0xff]  ;;  %v18074_v49 = vld [vmem:[#allocation10_spill] sm:$0xff] }
 0x462   : > { %v1970_v46 = vsel %vm1960_vm2, nan, %v1969_v59  ;;  %v3928_v2 = vsel %vm10943_vm11, 0, %v10942_v23  ;;  %v10646_v43 = vpack.c.bf16 %v6922_v4, %v15650_v11  ;;  %v17648_v50 = vand.u32 2147483647, %v18071_v45 }
 0x463   : > { %v5670_v39 = vpack.c.bf16 %v1970_v46, %v15657_v40  ;;  %v3929_v8 = vsub.s32 32, %v3928_v2  ;;  %v15717_v28 = vshll.u32 %v17701_v48, %v15443_v55  ;;  %v3933_v20 = vsub.s32 4294967266, %v3928_v2  ;;  %v15880_v55 = vld [vmem:[%s11381_s13 + $0x1] ss:$0 sm:$0xff] }
 0x464   : > { %v4033_v9 = vshrl.u32 %v15652_v3, 16  ;;  %v4061_v1 = vsel %vm4060_vm5, 1, %v17760_v18  ;;  %v15722_v14 = vsub.s32 32, %v15488_v32  ;;  %10677 = vmatpush.bf16.msra.mxu0 %v10646_v43  ;;  %v4053_v40 = vshrl.u32 %v15673_v29, 16  ;;  %v18076_v43 = vld [vmem:[#allocation26_spill] sm:$0xff] }
 0x465   : > { %18072 = vst [vmem:[#allocation81_spill] sm:$0xff] %v15717_v28  ;;  %10703 = vmatpush.bf16.msra.mxu2 %v5670_v39  ;;  %v3931_v11 = vshrl.u32 %v15666_v27, %v3929_v8  ;;  %v4063_v36 = vadd.s32 %v4061_v1, %v4059_v6  ;;  %v3930_v30 = vshll.u32 %v15677_v13, %v3928_v2  ;;  %v3934_v41 = vadd.s32 127, %v3933_v20  ;;  %v18077_v39 = vld [vmem:[#allocation29_spill] sm:$0xff]  ;;  %v11183_v28 = vld [vmem:[%s11381_s13] ss:$0 sm:$0xff]  ;;  %s11077_s13 = sshll.u32 %s11373_s9, 4 }
 0x466   : > { %v4012_v54 = vsel %vm4006_vm1, %v4009_v12, %v4011_v35  ;;  %v15729_v22 = vadd.s32 %v4042_v61, %v4033_v9  ;;  %v4055_v3 = vshrl.u32 %v4050_v26, 16  ;;  %v15731_v60 = vadd.s32 %v4058_v25, %v4054_v38  ;;  %s17272_s24 = scalar_lea.vmem %s17390_s0, %s11077_s13  ;;  %s17277_s30 = scalar_lea.vmem %s17391_s1, %s11077_s13 }
 0x467   : > { %v4064_v23 = vadd.s32 %v4063_v36, %v4053_v40  ;;  %v1362_v0 = vand.u32 8388607, %v17648_v50  ;;  %v3932_v21 = vor.u32 %v3931_v11, %v3930_v30  ;;  %v3935_v27 = vshll.u32 %v3934_v41, 23  ;;  %s10728_s13 = scalar_lea.sflag [#allocation3], %s283_s5  ;;  %s11198_s9 = sshra.s32 %s10744_s21, 4  ;;  %s11199_s9 = int_to_ptr.hbm [resolvable:$true] %s11198_s9 }
 0x468   : > { %v1375_v29 = vshll.u32 %v17793_v10, %v18073_v52  ;;  %v1376_v13 = vshrl.u32 %v17794_v51, %v18074_v49  ;;  %v10890_v17 = vadd.s32 4294967169, %v15475_v7  ;;  %v1378_v26 = vshll.u32 %v17794_v51, %v18073_v52  ;;  %v18075_v7 = vld [vmem:[#allocation44_spill] sm:$0xff]  ;;  %s11200_s18 = scalar_lea.hbm %s11199_s9, 8  ;;  %p11205_p1 = scmp.lt.s32.totalorder %s11199_s9, %s17394_s4 }
 0x469   : > { %v4065_v12 = vadd.s32 %v4064_v23, %v4055_v3  ;;  %v1379_v35 = vshrl.u32 %v17687_v58, %v18074_v49  ;;  %v3936_v38 = vor.u32 4788187, %v3935_v27  ;;  %v4066_v25 = vmul.u32 %v15623_v37, %v4012_v54  ;;  %p11201_p12 = scmp.ne.s32.totalorder %s11199_s9, %s11200_s18  ;;  %p11206_p2 = scmp.lt.s32.totalorder %s11204_s26, %s11200_s18 }
 0x46a   : > { %vm4068_vm1 = vc.u32 %v15729_v22, %v15731_v60  ;;  %v15747_v61 = vor.u32 %v1376_v13, %v1375_v29  ;;  %v1363_v6 = vor.u32 8388608, %v1362_v0  ;;  %vm1389_vm9 = vcmp.lt.s32.totalorder %v18075_v7, 3 }
 0x46b   : > { %v4069_v59 = vadd.s32 1, %v4065_v12  ;;  %v15749_v4 = vor.u32 %v1379_v35, %v1378_v26  ;;  %v3937_v46 = vand.u32 2147483647, %v3936_v38  ;;  %v3939_v2 = vcvt.s32.f32 %v3932_v21  ;;  %p11202_p13 = pnand %p11201_p12, %p11337_p4  ;;  %p11207_p3 = por %p11206_p2, %p11205_p1 }
 0x46c   : > { %vm1387_vm7 = vcmp.lt.s32.totalorder %v18075_v7, 1  ;;  %v1401_v37 = vsel %vm1389_vm9, %v18077_v39, %v18076_v43  ;;  %v15758_v8 = vshrl.u32 %v15473_v44, 5  ;;  %v1211_v20 = vadd.s32 1, %v10890_v17 }
 0x46d   : > { %v4070_v9 = vsel %vm4068_vm1, %v4069_v59, %v4065_v12  ;;  %v1399_v1 = vsel %vm1387_vm7, %v15747_v61, %v15749_v4  ;;  %v3384_v11 = vshrl.u32 %v17701_v48, %v15481_v63  ;;  %v3940_v40 = vmul.f32 %v3939_v2, %v3937_v46  ;;  %p11203_p0 = pneg %p11202_p13 }
 0x46e   : > { %v4071_v36 = vadd.s32 %v4070_v9, %v4066_v25  ;;  %vm1388_vm8 = vcmp.lt.s32.totalorder %v18075_v7, 2  ;;  %v15769_v30 = vshrl.u32 %v17979_v5, %v15481_v63  ;;  %v3537_v44 = vshll.u32 %v17687_v58, %v15488_v32 }
 0x46f   : > { %v15775_v41 = vsel %vm1388_vm8, %v1399_v1, %v1401_v37  ;;  %v15777_v54 = vshll.u32 %v1363_v6, 8  ;;  %vm3392_vm6 = vcmp.lt.s32.totalorder %v15466_v62, 4  ;;  %v3538_v3 = vshrl.u32 %v17701_v48, %v15722_v14  ;;  %p11208_p5 = pnand %p11207_p3, %p11203_p0 }
 0x470   : > { %18078 = vst [vmem:[#allocation78_spill] sm:$0xff] %v15769_v30  ;;  %v3540_v23 = vshll.u32 %v17701_v48, %v15488_v32  ;;  %v3941_v0 = vxor.u32 2147483648, %v3940_v40  ;;  %v4072_v21 = vadd.s32 536870912, %v4071_v36  ;;  %v3541_v27 = vshrl.u32 %v17979_v5, %v15722_v14 }
 0x471   : > { %vm1212_vm12 = vcmp.gt.s32.totalorder %v1211_v20, 0  ;;  %vm3821_vm3 = vcmp.lt.s32.totalorder %v18054_v47, 0  ;;  %v1373_v29 = vshrl.u32 %v17793_v10, %v18074_v49  ;;  %vm15791_vm0 = vcmp.le.f32.partialorder %v3819_v56, 0.7853982 }
 0x472   : > { %v3942_v17 = vsel %vm3821_vm3, %v3941_v0, %v3940_v40  ;;  %v15797_v12 = vshrl.u32 %v4072_v21, 30  ;;  %v1407_v26 = vshrl.u32 %v15775_v41, 16  ;;  %v1372_v38 = vshll.u32 %v17757_v31, %v18073_v52 }
 0x473   : > { %v15803_v35 = vsel %vm15791_vm0, %v18054_v47, %v3942_v17  ;;  %v15808_v56 = vand.u32 65535, %v15777_v54  ;;  %v1406_v25 = vand.u32 65535, %v15775_v41  ;;  %v15812_v59 = vor.u32 %v3384_v11, %v15485_v33 }
 0x474   : > { %vm3546_vm2 = vcmp.lt.s32.totalorder %v15758_v8, 4  ;;  %v15817_v6 = vmul.f32 %v15803_v35, %v15803_v35  ;;  %v4074_v46 = vshll.u32 %v15797_v12, 30  ;;  %v15822_v52 = vor.u32 %v1373_v29, %v1372_v38  ;;  %v612_v38 = vpop.permute.xlu2 %611 }
 0x475   : > { %18081 = vst [vmem:[#allocation74_spill] sm:$0xff] %v15812_v59  ;;  %v15825_v43 = vshrl.u32 %v15777_v54, 16  ;;  %v15828_v39 = vmul.u32 %v1407_v26, %v15808_v56  ;;  %v15830_v33 = vor.u32 %v3538_v3, %v3537_v44  ;;  %v1213_v37 = vsel %vm1212_vm12, %v1211_v20, 0 }
 0x476   : > { %v3955_v9 = vmul.f32 -0.00019511016, %v15817_v6  ;;  %v15834_v1 = vsub.s32 %v4071_v36, %v4074_v46  ;;  %v3542_v11 = vor.u32 %v3541_v27, %v3540_v23  ;;  %v1408_v40 = vmul.u32 %v1406_v25, %v15808_v56  ;;  %v18083_v23 = vld [vmem:[#allocation37_spill] sm:$0xff] }
 0x477   : > { %v15838_v41 = vmul.u32 %v1406_v25, %v15825_v43  ;;  %v1412_v0 = vshll.u32 %v15828_v39, 16  ;;  %v3948_v21 = vmul.f32 -0.001358992, %v15817_v6  ;;  %v15847_v20 = vsel %vm3392_vm6, %v15812_v59, 920167782 }
 0x478   : > { %v3956_v29 = vadd.f32 0.008332121, %v3955_v9  ;;  %vm4076_vm10 = vcmp.lt.s32.totalorder %v15834_v1, 0  ;;  %v4077_v44 = vsub.s32 0, %v15834_v1  ;;  %18082 = vst [vmem:[#allocation98_spill] sm:$0xff] %v15847_v20  ;;  %v15849_v36 = vand.u32 31, %v1213_v37 }
 0x479   : > { %v1395_v3 = vsel %vm1387_vm7, %v15822_v52, %v15747_v61  ;;  %v1397_v27 = vsel %vm1389_vm9, %v15749_v4, %v18083_v23  ;;  %v15862_v17 = vsel %vm3546_vm2, %v15830_v33, 920167782  ;;  %vm1416_vm13 = vc.u32 %v1408_v40, %v1412_v0  ;;  %v435_v23 = vpop.permute.xlu1 %434 }
 0x47a   : > { %v3957_v25 = vmul.f32 %v3956_v29, %v15817_v6  ;;  %v4078_v46 = vsel %vm4076_vm10, %v4077_v44, %v15834_v1  ;;  %v15868_v9 = vsel %vm3546_vm2, %v3542_v11, 1326507024  ;;  %v15870_v2 = vshrl.u32 %v1213_v37, 5 }
 0x47b   : > { %v3943_v50 = vsub.s32 4, %v15659_v53  ;;  %v4079_v16 = vclz %v4078_v46  ;;  %v3949_v20 = vadd.f32 0.041655596, %v3948_v21  ;;  %v1398_v59 = vsel %vm1388_vm8, %v1395_v3, %v1397_v27 }
 0x47c   : > { %18084 = vst [vmem:[#allocation94_spill] sm:$0xff] %v15870_v2  ;;  %v1414_v29 = vshll.u32 %v15838_v41, 16  ;;  %v1418_v63 = vadd.s32 %v1412_v0, %v1408_v40  ;;  %v15877_v44 = vsub.s32 32, %v15849_v36  ;;  %v691_v11 = vmul.f32 %v15880_v55, %v612_v38 }
 0x47d   : > { %v10945_v37 = vadd.s32 4294967294, %v4079_v16  ;;  %v1417_v62 = vsel %vm1416_vm13, 1, %v17760_v18  ;;  %v529_v30 = vmul.f32 %v11183_v28, %v435_v23  ;;  %v3958_v46 = vadd.f32 -0.16666654, %v3957_v25 }
 0x47e   : > { %v1411_v21 = vmul.u32 %v1407_v26, %v15825_v43  ;;  %vm1420_vm4 = vc.u32 %v1418_v63, %v1414_v29  ;;  %v3944_v40 = vsel %vm3821_vm3, %v3943_v50, %v15659_v53  ;;  %v1428_v0 = vand.u32 65535, %v1398_v59 }
 0x47f   : > { %vm10946_vm11 = vcmp.lt.s32.totalorder %v10945_v37, 0  ;;  %v1429_v3 = vshrl.u32 %v1398_v59, 16  ;;  %v3950_v27 = vmul.f32 %v3949_v20, %v15817_v6  ;;  %v4067_v16 = vadd.s32 %v15731_v60, %v15729_v22 }
 0x480   : > { %v4082_v38 = vsel %vm10946_vm11, 0, %v10945_v37  ;;  %v1419_v34 = vadd.s32 %v1417_v62, %v1411_v21  ;;  %v1421_v25 = vsel %vm1420_vm4, 1, %v17760_v18  ;;  %v15894_v26 = vadd.f32 %v691_v11, %v529_v30 }
 0x481   : > { %v4083_v2 = vsub.s32 32, %v4082_v38  ;;  %v4087_v28 = vsub.s32 4294967266, %v4082_v38  ;;  %v1431_v63 = vmul.u32 %v1429_v3, %v15808_v56  ;;  %v3959_v53 = vmul.f32 %v3958_v46, %v15817_v6 }
 0x482   : > { %vm3975_vm5 = vcmp.lt.s32.totalorder %v18063_v15, 0  ;;  %v4084_v50 = vshll.u32 %v15834_v1, %v4082_v38  ;;  %v1432_v22 = vmul.u32 %v1428_v0, %v15825_v43  ;;  %v3946_v62 = vsel %vm15791_vm0, 0, %v3944_v40 }
 0x483   : > { %v4085_v59 = vshrl.u32 %v4067_v16, %v4083_v2  ;;  %v4088_v20 = vadd.s32 127, %v4087_v28  ;;  %v1434_v60 = vshll.u32 %v1431_v63, 16  ;;  %v3951_v23 = vadd.f32 -0.4999988, %v3950_v27 }
 0x484   : > { %v18085_v29 = vand.u32 2147483647, %v18063_v15  ;;  %v1423_v11 = vadd.s32 %v1421_v25, %v1419_v34  ;;  %v1430_v37 = vmul.u32 %v1428_v0, %v15808_v56  ;;  %v4097_v2 = vsub.s32 4, %v15797_v12 }
 0x485   : > { %v4086_v46 = vor.u32 %v4085_v59, %v4084_v50  ;;  %v4089_v1 = vshll.u32 %v4088_v20, 23  ;;  %v1413_v21 = vshrl.u32 %v15828_v39, 16  ;;  %v3960_v16 = vadd.f32 1.0, %v3959_v53 }
 0x486   : > { %vm15904_vm1 = vcmp.le.f32.partialorder %v18085_v29, 0.7853982  ;;  %v1433_v13 = vmul.u32 %v1429_v3, %v15825_v43  ;;  %vm1438_vm12 = vc.u32 %v1430_v37, %v1434_v60  ;;  %v1440_v40 = vadd.s32 %v1434_v60, %v1430_v37 }
 0x487   : > { %v4090_v27 = vor.u32 4788187, %v4089_v1  ;;  %v1371_v38 = vshrl.u32 %v17757_v31, %v18074_v49  ;;  %v1436_v28 = vshll.u32 %v1432_v22, 16  ;;  %v1439_v34 = vsel %vm1438_vm12, 1, %v17760_v18 }
 0x488   : > { %v3952_v56 = vmul.f32 %v3951_v23, %v15817_v6  ;;  %v8927_v0 = vadd.s32 3, %v3946_v62  ;;  %v1424_v25 = vadd.s32 %v1423_v11, %v1413_v21  ;;  %v1441_v50 = vadd.s32 %v1439_v34, %v1433_v13 }
 0x489   : > { %v4091_v59 = vand.u32 2147483647, %v4090_v27  ;;  %v4093_v20 = vcvt.s32.f32 %v4086_v46  ;;  %vm18088_vm3 = vcmp.lt.s32.totalorder %v18075_v7, 4  ;;  %vm1442_vm0 = vc.u32 %v1440_v40, %v1436_v28 }
 0x48a   : > { %v1392_v43 = vsel %vm18088_vm3, %v15749_v4, 2102212464  ;;  %v15920_v39 = vmul.f32 %v3960_v16, %v15803_v35  ;;  %v4098_v49 = vsel %vm3975_vm5, %v4097_v2, %v15797_v12  ;;  %v1415_v3 = vshrl.u32 %v15838_v41, 16 }
 0x48b   : > { %v1443_v6 = vsel %vm1442_vm0, 1, %v17760_v18  ;;  %v4094_v53 = vmul.f32 %v4093_v20, %v4091_v59  ;;  %v1391_v60 = vsel %vm1387_vm7, %v1371_v38, %v15822_v52  ;;  %v1435_v23 = vshrl.u32 %v1431_v63, 16 }
 0x48c   : > { %v1445_v29 = vadd.s32 %v1443_v6, %v1441_v50  ;;  %v3953_v4 = vadd.f32 1.0, %v3952_v56  ;;  %v8928_v11 = vand.u32 3, %v8927_v0  ;;  %v1393_v35 = vsel %vm1389_vm9, %v15747_v61, %v1392_v43 }
 0x48d   : > { %v15933_v37 = vadd.s32 %v1424_v25, %v1415_v3  ;;  %v4095_v12 = vxor.u32 2147483648, %v4094_v53  ;;  %v4100_v41 = vsel %vm15904_vm1, 0, %v4098_v49  ;;  %v1437_v46 = vshrl.u32 %v1432_v22, 16 }
 0x48e   : > { %v1446_v1 = vadd.s32 %v1445_v29, %v1435_v23  ;;  %v15939_v2 = vshll.u32 %v17687_v58, %v15849_v36  ;;  %v15943_v52 = vshll.u32 %v17701_v48, %v15849_v36  ;;  %v3966_v63 = vxor.u32 2147483648, %v15920_v39 }
 0x48f   : > { %v15946_v21 = vadd.s32 %v1440_v40, %v1436_v28  ;;  %v3206_v61 = vand.u32 2139095040, %v15894_v26  ;;  %v4096_v16 = vsel %vm3975_vm5, %v4095_v12, %v4094_v53  ;;  %v1394_v22 = vsel %vm1388_vm8, %v1391_v60, %v1393_v35 }
 0x490   : > { %v1447_v13 = vadd.s32 %v1446_v1, %v1437_v46  ;;  %v3969_v27 = vxor.u32 2147483648, %v3953_v4  ;;  %v15956_v38 = vsel %vm15904_vm1, %v18063_v15, %v4096_v16  ;;  %v9082_v34 = vadd.s32 3, %v4100_v41 }
 0x491   : > { %vm1450_vm9 = vc.u32 %v15933_v37, %v15946_v21  ;;  %v4101_v40 = vmul.f32 %v15956_v38, %v15956_v38  ;;  %vm8930_vm7 = vcmp.eq.s32.totalorder %v8928_v11, 0  ;;  %v1509_v56 = vand.u32 2147483647, %v13831_v24 }
 0x492   : > { %v1451_v28 = vadd.s32 1, %v1447_v13  ;;  %vm8929_vm10 = vcmp.lt.s32.totalorder %v8928_v11, 2  ;;  %v8932_v7 = vsel %vm8930_vm7, %v3953_v4, %v3966_v63  ;;  %v3963_v0 = vand.u32 3, %v3946_v62 }
 0x493   : > { %v1448_v25 = vmul.u32 %v15777_v54, %v1394_v22  ;;  %v4102_v50 = vmul.f32 -0.001358992, %v4101_v40  ;;  %v4109_v30 = vmul.f32 -0.00019511016, %v4101_v40  ;;  %vm8933_vm8 = vcmp.eq.s32.totalorder %v8928_v11, 2 }
 0x494   : > { %v1452_v59 = vsel %vm1450_vm9, %v1451_v28, %v1447_v13  ;;  %v8935_v20 = vsel %vm8933_vm8, %v3969_v27, %v15920_v39  ;;  %v15965_v43 = vand.u32 3, %v9082_v34  ;;  %v15967_v49 = vand.u32 3, %v4100_v41 }
 0x495   : > { %v1453_v3 = vadd.s32 %v1452_v59, %v1448_v25  ;;  %v4103_v6 = vadd.f32 0.041655596, %v4102_v50  ;;  %v4110_v53 = vadd.f32 0.008332121, %v4109_v30  ;;  %v8936_v60 = vsel %vm8929_vm10, %v8932_v7, %v8935_v20 }
 0x496   : > { %v1516_v23 = vand.u32 8388607, %v1509_v56  ;;  %v15973_v54 = vshrl.u32 %v17701_v48, %v15877_v44  ;;  %v15975_v62 = vshrl.u32 %v3206_v61, 23  ;;  %vm3962_vm13 = vweird.f32 %v18054_v47 }
 0x497   : > { %v1454_v29 = vadd.s32 536870912, %v1453_v3  ;;  %v4104_v11 = vmul.f32 %v4103_v6, %v4101_v40  ;;  %v4111_v35 = vmul.f32 %v4110_v53, %v4101_v40  ;;  %vm3964_vm4 = vcmp.lt.s32.totalorder %v3963_v0, 2 }
 0x498   : > { %vm3965_vm11 = vcmp.eq.s32.totalorder %v3963_v0, 0  ;;  %v15980_v12 = vsel %vm3962_vm13, nan, %v8936_v60  ;;  %vm3968_vm5 = vcmp.eq.s32.totalorder %v3963_v0, 2  ;;  %vm9088_vm1 = vcmp.eq.s32.totalorder %v15965_v43, 2 }
 0x499   : > { %v3967_v41 = vsel %vm3965_vm11, %v3953_v4, %v3966_v63  ;;  %v15982_v46 = vshrl.u32 %v1454_v29, 30  ;;  %v4105_v1 = vadd.f32 -0.4999988, %v4104_v11  ;;  %v4112_v16 = vadd.f32 -0.16666654, %v4111_v35  ;;  %v18089_v29 = vld [vmem:[#allocation95_spill] sm:$0xff] }
 0x49a   : > { %v3970_v61 = vsel %vm3968_vm5, %v3969_v27, %v15920_v39  ;;  %vm4122_vm12 = vcmp.eq.s32.totalorder %v15967_v49, 2  ;;  %v1517_v22 = vor.u32 8388608, %v1516_v23  ;;  %vm9085_vm3 = vcmp.eq.s32.totalorder %v15965_v43, 0  ;;  %v18090_v11 = vld [vmem:[#allocation65_spill] sm:$0xff] }
 0x49b   : > { %vm4119_vm0 = vcmp.eq.s32.totalorder %v15967_v49, 0  ;;  %v1456_v13 = vshll.u32 %v15982_v46, 30  ;;  %v1526_v4 = vshll.u32 %v17757_v31, %v14851_v42  ;;  %v1527_v63 = vshrl.u32 %v17793_v10, %v15061_v57 }
 0x49c   : > { %v1529_v34 = vshll.u32 %v17793_v10, %v14851_v42  ;;  %v4106_v28 = vmul.f32 %v4105_v1, %v4101_v40  ;;  %v4113_v39 = vmul.f32 %v4112_v16, %v4101_v40  ;;  %vm9084_vm9 = vcmp.lt.s32.totalorder %v15965_v43, 2  ;;  %v18091_v1 = vld [vmem:[#allocation84_spill] sm:$0xff] }
 0x49d   : > { %vm4118_vm7 = vcmp.lt.s32.totalorder %v15967_v49, 2  ;;  %v1530_v27 = vshrl.u32 %v17794_v51, %v15061_v57  ;;  %v1533_v7 = vshrl.u32 %v17687_v58, %v15061_v57  ;;  %vm4116_vm10 = vweird.f32 %v18063_v15 }
 0x49e   : > { %v3971_v25 = vsel %vm3964_vm4, %v3967_v41, %v3970_v61  ;;  %v1457_v50 = vsub.s32 %v1453_v3, %v1456_v13  ;;  %v16004_v30 = vor.u32 %v1527_v63, %v1526_v4  ;;  %v1532_v40 = vshll.u32 %v17794_v51, %v14851_v42 }
 0x49f   : > { %v4107_v59 = vadd.f32 1.0, %v4106_v28  ;;  %v4114_v20 = vadd.f32 1.0, %v4113_v39  ;;  %v16008_v6 = vor.u32 %v1530_v27, %v1529_v34  ;;  %v16010_v53 = vshll.u32 %v1517_v22, 8 }
 0x4a0   : > { %vm1458_vm8 = vcmp.lt.s32.totalorder %v1457_v50, 0  ;;  %v1459_v60 = vsub.s32 0, %v1457_v50  ;;  %v16012_v23 = vor.u32 %v1533_v7, %v1532_v40  ;;  %vm1543_vm11 = vcmp.lt.s32.totalorder %v15058_v19, 3 }
 0x4a1   : > { %v4115_v0 = vmul.f32 %v4114_v20, %v15956_v38  ;;  %v4123_v3 = vxor.u32 2147483648, %v4107_v59  ;;  %vm1541_vm4 = vcmp.lt.s32.totalorder %v15058_v19, 1  ;;  %v1555_v42 = vsel %vm1543_vm11, %v18090_v11, %v18089_v29 }
 0x4a2   : > { %v1460_v35 = vsel %vm1458_vm8, %v1459_v60, %v1457_v50  ;;  %v1549_v41 = vsel %vm1541_vm4, %v16004_v30, %v16008_v6  ;;  %v1551_v16 = vsel %vm1543_vm11, %v16012_v23, %v18091_v1  ;;  %v1553_v38 = vsel %vm1541_vm4, %v16008_v6, %v16012_v23 }
 0x4a3   : > { %v4120_v61 = vxor.u32 2147483648, %v4115_v0  ;;  %v3972_v22 = vsel %vm3962_vm13, nan, %v3971_v25  ;;  %v1461_v13 = vclz %v1460_v35  ;;  %vm1542_vm5 = vcmp.lt.s32.totalorder %v15058_v19, 2 }
 0x4a4   : > { %v9090_v4 = vsel %vm9088_vm1, %v4123_v3, %v4115_v0  ;;  %v4124_v63 = vsel %vm4122_vm12, %v4123_v3, %v4115_v0  ;;  %v1556_v34 = vsel %vm1542_vm5, %v1553_v38, %v1555_v42  ;;  %v1558_v28 = vand.u32 65535, %v16010_v53 }
 0x4a5   : > { %v9087_v39 = vsel %vm9085_vm3, %v4107_v59, %v4120_v61  ;;  %v4121_v47 = vsel %vm4119_vm0, %v4107_v59, %v4120_v61  ;;  %v10894_v27 = vadd.s32 4294967294, %v1461_v13  ;;  %v1552_v7 = vsel %vm1542_vm5, %v1549_v41, %v1551_v16  ;;  %v18092_v61 = vld [vmem:[#allocation60_spill] sm:$0xff] }
 0x4a6   : > { %v9091_v25 = vsel %vm9084_vm9, %v9087_v39, %v9090_v4  ;;  %v4125_v40 = vsel %vm4118_vm7, %v4121_v47, %v4124_v63  ;;  %v1560_v20 = vand.u32 65535, %v1556_v34  ;;  %v1561_v60 = vshrl.u32 %v1556_v34, 16 }
 0x4a7   : > { %v9092_v0 = vsel %vm4116_vm10, nan, %v9091_v25  ;;  %v4126_v3 = vsel %vm4116_vm10, nan, %v4125_v40  ;;  %vm10895_vm13 = vcmp.lt.s32.totalorder %v10894_v27, 0  ;;  %v1559_v59 = vshrl.u32 %v16010_v53, 16 }
 0x4a8   : > { %v10653_v29 = vpack.c.bf16 %v9092_v0, %v15980_v12  ;;  %v5677_v11 = vpack.c.bf16 %v4126_v3, %v3972_v22  ;;  %v1464_v42 = vsel %vm10895_vm13, 0, %v10894_v27  ;;  %v1582_v43 = vand.u32 65535, %v1552_v7 }
 0x4a9   : > { %v1449_v49 = vadd.s32 %v15946_v21, %v15933_v37  ;;  %v1465_v35 = vsub.s32 32, %v1464_v42  ;;  %v1469_v41 = vsub.s32 4294967266, %v1464_v42  ;;  %v1563_v1 = vmul.u32 %v1561_v60, %v1558_v28 }
 0x4aa   : > { %10691 = vmatpush.bf16.msra.mxu1 %v10653_v29  ;;  %10717 = vmatpush.bf16.msra.mxu3 %v5677_v11  ;;  %v1562_v16 = vmul.u32 %v1560_v20, %v1558_v28  ;;  %v1564_v38 = vmul.u32 %v1560_v20, %v1559_v59  ;;  %v1583_v15 = vshrl.u32 %v1552_v7, 16  ;;  %v3511_v13 = vand.u32 2147483647, %v18092_v61 }
 0x4ab   : > { %v1466_v4 = vshll.u32 %v1457_v50, %v1464_v42  ;;  %v1467_v63 = vshrl.u32 %v1449_v49, %v1465_v35  ;;  %v1470_v34 = vadd.s32 127, %v1469_v41  ;;  %v1566_v12 = vshll.u32 %v1563_v1, 16 }
 0x4ac   : > { %v1565_v22 = vmul.u32 %v1561_v60, %v1559_v59  ;;  %v1568_v39 = vshll.u32 %v1564_v38, 16  ;;  %v1585_v47 = vmul.u32 %v1583_v15, %v1558_v28  ;;  %v1586_v27 = vmul.u32 %v1582_v43, %v1559_v59 }
 0x4ad   : > { %v1468_v25 = vor.u32 %v1467_v63, %v1466_v4  ;;  %v1471_v37 = vshll.u32 %v1470_v34, 23  ;;  %vm1570_vm1 = vc.u32 %v1562_v16, %v1566_v12  ;;  %v1572_v21 = vadd.s32 %v1566_v12, %v1562_v16 }
 0x4ae   : > { %v1567_v40 = vshrl.u32 %v1563_v1, 16  ;;  %v1571_v0 = vsel %vm1570_vm1, 1, %v17760_v18  ;;  %v1584_v3 = vmul.u32 %v1582_v43, %v1558_v28  ;;  %v1588_v20 = vshll.u32 %v1585_v47, 16 }
 0x4af   : > { %v1472_v7 = vor.u32 4788187, %v1471_v37  ;;  %v1573_v29 = vadd.s32 %v1571_v0, %v1565_v22  ;;  %vm1574_vm12 = vc.u32 %v1572_v21, %v1568_v39  ;;  %v1587_v50 = vmul.u32 %v1583_v15, %v1559_v59 }
 0x4b0   : > { %v1475_v11 = vcvt.s32.f32 %v1468_v25  ;;  %v1575_v42 = vsel %vm1574_vm12, 1, %v17760_v18  ;;  %v1590_v60 = vshll.u32 %v1586_v27, 16  ;;  %vm1592_vm3 = vc.u32 %v1584_v3, %v1588_v20 }
 0x4b1   : > { %v1473_v49 = vand.u32 2147483647, %v1472_v7  ;;  %v1577_v35 = vadd.s32 %v1575_v42, %v1573_v29  ;;  %v1593_v41 = vsel %vm1592_vm3, 1, %v17760_v18  ;;  %v1594_v4 = vadd.s32 %v1588_v20, %v1584_v3 }
 0x4b2   : > { %v10929_v1 = vadd.s32 4294967169, %v15975_v62  ;;  %v1525_v28 = vshrl.u32 %v17757_v31, %v15061_v57  ;;  %v1546_v43 = vsel %vm1544_vm15, %v16012_v23, 2102212464  ;;  %v1595_v59 = vadd.s32 %v1593_v41, %v1587_v50 }
 0x4b3   : > { %v1476_v16 = vmul.f32 %v1475_v11, %v1473_v49  ;;  %v1479_v15 = vsub.s32 4, %v15982_v46  ;;  %v1578_v63 = vadd.s32 %v1577_v35, %v1567_v40  ;;  %vm1596_vm0 = vc.u32 %v1594_v4, %v1590_v60 }
 0x4b4   : > { %v1545_v34 = vsel %vm1541_vm4, %v1525_v28, %v16004_v30  ;;  %v1569_v12 = vshrl.u32 %v1564_v38, 16  ;;  %v1597_v62 = vsel %vm1596_vm0, 1, %v17760_v18  ;;  %v3518_v57 = vand.u32 8388607, %v3511_v13 }
 0x4b5   : > { %v1477_v22 = vxor.u32 2147483648, %v1476_v16  ;;  %v1547_v23 = vsel %vm1543_vm11, %v16008_v6, %v1546_v43  ;;  %v1589_v39 = vshrl.u32 %v1585_v47, 16  ;;  %v1599_v25 = vadd.s32 %v1597_v62, %v1595_v59  ;;  %v552_v59 = vpop.permute.xlu1 %551 }
 0x4b6   : > { %v3213_v37 = vadd.s32 1, %v10929_v1  ;;  %v18093_v21 = vand.u32 2147483647, %v18071_v45  ;;  %vm1357_vm9 = vcmp.lt.s32.totalorder %v18071_v45, 0  ;;  %v16088_v30 = vadd.s32 %v1578_v63, %v1569_v12 }
 0x4b7   : > { %v1478_v38 = vsel %vm1357_vm9, %v1477_v22, %v1476_v16  ;;  %v1480_v0 = vsel %vm1357_vm9, %v1479_v15, %v15982_v46  ;;  %v1591_v3 = vshrl.u32 %v1586_v27, 16  ;;  %v1600_v20 = vadd.s32 %v1599_v25, %v1589_v39 }
 0x4b8   : > { %vm16083_vm15 = vcmp.le.f32.partialorder %v18093_v21, 0.7853982  ;;  %v1548_v47 = vsel %vm1542_vm5, %v1545_v34, %v1547_v23  ;;  %v16098_v7 = vadd.s32 %v1594_v4, %v1590_v60  ;;  %v3519_v29 = vor.u32 8388608, %v3518_v57 }
 0x4b9   : > { %v16094_v6 = vsel %vm16083_vm15, %v18071_v45, %v1478_v38  ;;  %v1601_v11 = vadd.s32 %v1600_v20, %v1591_v3  ;;  %v3531_v46 = vshll.u32 %v17793_v10, %v15488_v32  ;;  %v3532_v27 = vshrl.u32 %v17794_v51, %v15722_v14 }
 0x4ba   : > { %v1483_v50 = vmul.f32 %v16094_v6, %v16094_v6  ;;  %vm1604_vm7 = vc.u32 %v16088_v30, %v16098_v7  ;;  %v3529_v19 = vshrl.u32 %v17793_v10, %v15722_v14  ;;  %v3534_v42 = vshll.u32 %v17794_v51, %v15488_v32 }
 0x4bb   : > { %v3535_v60 = vshrl.u32 %v17687_v58, %v15722_v14  ;;  %v1605_v41 = vadd.s32 1, %v1601_v11  ;;  %v3533_v4 = vor.u32 %v3532_v27, %v3531_v46  ;;  %vm3214_vm10 = vcmp.gt.s32.totalorder %v3213_v37, 0 }
 0x4bc   : > { %v1484_v49 = vmul.f32 -0.001358992, %v1483_v50  ;;  %v1491_v35 = vmul.f32 -0.00019511016, %v1483_v50  ;;  %v1602_v1 = vmul.u32 %v16010_v53, %v1548_v47  ;;  %v3528_v28 = vshll.u32 %v17757_v31, %v15488_v32 }
 0x4bd   : > { %v3536_v43 = vor.u32 %v3535_v60, %v3534_v42  ;;  %v1606_v63 = vsel %vm1604_vm7, %v1605_v41, %v1601_v11  ;;  %vm3543_vm8 = vcmp.lt.s32.totalorder %v15758_v8, 1  ;;  %v1482_v34 = vsel %vm16083_vm15, 0, %v1480_v0  ;;  %v18096_v42 = vld [vmem:[#allocation14_spill] sm:$0xff] }
 0x4be   : > { %v1485_v16 = vadd.f32 0.041655596, %v1484_v49  ;;  %v1492_v15 = vadd.f32 0.008332121, %v1491_v35  ;;  %v1607_v12 = vadd.s32 %v1606_v63, %v1602_v1  ;;  %v3530_v62 = vor.u32 %v3529_v19, %v3528_v28 }
 0x4bf   : > { %v3555_v57 = vsel %vm3543_vm8, %v3533_v4, %v3536_v43  ;;  %vm3545_vm11 = vcmp.lt.s32.totalorder %v15758_v8, 3  ;;  %v16123_v32 = vshll.u32 %v3519_v29, 8  ;;  %v676_v23 = vmul.f32 %v15880_v55, %v552_v59 }
 0x4c0   : > { %v1486_v22 = vmul.f32 %v1485_v16, %v1483_v50  ;;  %v1493_v53 = vmul.f32 %v1492_v15, %v1483_v50  ;;  %v1608_v39 = vadd.s32 536870912, %v1607_v12  ;;  %vm3544_vm4 = vcmp.lt.s32.totalorder %v15758_v8, 2 }
 0x4c1   : > { %v3557_v25 = vsel %vm3545_vm11, %v15830_v33, %v15868_v9  ;;  %v6447_v38 = vadd.s32 3, %v1482_v34  ;;  %v16135_v3 = vshrl.u32 %v17979_v5, %v15877_v44  ;;  %v16138_v55 = vsel %vm3214_vm10, %v3213_v37, 0 }
 0x4c2   : > { %v1487_v21 = vadd.f32 -0.4999988, %v1486_v22  ;;  %v1494_v40 = vadd.f32 -0.16666654, %v1493_v53  ;;  %v3558_v0 = vsel %vm3544_vm4, %v3555_v57, %v3557_v25  ;;  %v1609_v20 = vshrl.u32 %v1608_v39, 30 }
 0x4c3   : > { %v3563_v47 = vshrl.u32 %v3558_v0, 16  ;;  %v3527_v29 = vshrl.u32 %v17757_v31, %v15722_v14  ;;  %v3548_v33 = vsel %vm3546_vm2, %v3536_v43, 2102212464  ;;  %v3551_v9 = vsel %vm3543_vm8, %v3530_v62, %v3533_v4 }
 0x4c4   : > { %v3560_v11 = vand.u32 65535, %v16123_v32  ;;  %v1495_v46 = vmul.f32 %v1494_v40, %v1483_v50  ;;  %v1610_v27 = vshll.u32 %v1609_v20, 30  ;;  %v1633_v19 = vsub.s32 4, %v1609_v20 }
 0x4c5   : > { %v3553_v37 = vsel %vm3545_vm11, %v3536_v43, %v15862_v17  ;;  %v16151_v60 = vadd.f32 %v676_v23, %v18096_v42  ;;  %v1488_v49 = vmul.f32 %v1487_v21, %v1483_v50  ;;  %v16153_v14 = vand.u32 3, %v6447_v38 }
 0x4c6   : > { %v3565_v35 = vmul.u32 %v3563_v47, %v3560_v11  ;;  %v16155_v41 = vsub.s32 %v1607_v12, %v1610_v27  ;;  %v3547_v1 = vsel %vm3543_vm8, %v3527_v29, %v3530_v62  ;;  %v3549_v28 = vsel %vm3545_vm11, %v3533_v4, %v3548_v33 }
 0x4c7   : > { %18097 = vst [vmem:[#allocation93_spill] sm:$0xff] %v16151_v60  ;;  %v3562_v59 = vand.u32 65535, %v3558_v0  ;;  %vm1511_vm2 = vcmp.lt.s32.totalorder %v13831_v24, 0  ;;  %v16162_v16 = vand.u32 3, %v1482_v34  ;;  %v3554_v17 = vsel %vm3544_vm4, %v3551_v9, %v3553_v37 }
 0x4c8   : > { %v3561_v50 = vshrl.u32 %v16123_v32, 16  ;;  %v1496_v43 = vadd.f32 1.0, %v1495_v46  ;;  %vm1612_vm5 = vcmp.lt.s32.totalorder %v16155_v41, 0  ;;  %v1613_v15 = vsub.s32 0, %v16155_v41 }
 0x4c9   : > { %v1634_v63 = vsel %vm1511_vm2, %v1633_v19, %v1609_v20  ;;  %v16171_v12 = vadd.f32 1.0, %v1488_v49  ;;  %vm16175_vm13 = vcmp.le.f32.partialorder %v1509_v56, 0.7853982  ;;  %v16181_v34 = vsel %vm3544_vm4, %v3547_v1, %v3549_v28 }
 0x4ca   : > { %v3568_v62 = vshll.u32 %v3565_v35, 16  ;;  %v1603_v57 = vadd.s32 %v16098_v7, %v16088_v30  ;;  %v1614_v22 = vsel %vm1612_vm5, %v1613_v15, %v16155_v41  ;;  %vm6453_vm1 = vcmp.eq.s32.totalorder %v16153_v14, 2 }
 0x4cb   : > { %v3566_v53 = vmul.u32 %v3562_v59, %v3561_v50  ;;  %v1615_v23 = vclz %v1614_v22  ;;  %v1636_v56 = vsel %vm16175_vm13, 0, %v1634_v63  ;;  %v3564_v39 = vmul.u32 %v3562_v59, %v3560_v11  ;;  %v18100_v22 = vld [vmem:[#allocation39_spill] sm:$0xff] }
 0x4cc   : > { %v3585_v25 = vshrl.u32 %v3554_v17, 16  ;;  %v16190_v21 = vmul.f32 %v1496_v43, %v16094_v6  ;;  %vm1504_vm12 = vcmp.eq.s32.totalorder %v16162_v16, 2  ;;  %v3567_v8 = vmul.u32 %v3563_v47, %v3561_v50 }
 0x4cd   : > { %v3584_v40 = vand.u32 65535, %v3554_v17  ;;  %v3604_v30 = vmul.u32 %v16123_v32, %v16181_v34  ;;  %v1505_v7 = vxor.u32 2147483648, %v16171_v12  ;;  %v10897_v38 = vadd.s32 4294967294, %v1615_v23 }
 0x4ce   : > { %vm6450_vm3 = vcmp.eq.s32.totalorder %v16153_v14, 0  ;;  %v3569_v0 = vshrl.u32 %v3565_v35, 16  ;;  %vm3572_vm0 = vc.u32 %v3564_v39, %v3568_v62  ;;  %v16197_v20 = vadd.s32 3, %v1636_v56 }
 0x4cf   : > { %v3570_v29 = vshll.u32 %v3566_v53, 16  ;;  %v3573_v6 = vsel %vm3572_vm0, 1, %v17760_v18  ;;  %v3574_v33 = vadd.s32 %v3568_v62, %v3564_v39  ;;  %vm10898_vm15 = vcmp.lt.s32.totalorder %v10897_v38, 0 }
 0x4d0   : > { %v16200_v9 = vand.u32 3, %v1636_v56  ;;  %v3575_v47 = vadd.s32 %v3573_v6, %v3567_v8  ;;  %v3587_v46 = vmul.u32 %v3585_v25, %v3560_v11  ;;  %v1502_v27 = vxor.u32 2147483648, %v16190_v21 }
 0x4d1   : > { %v1618_v19 = vsel %vm10898_vm15, 0, %v10897_v38  ;;  %vm3576_vm9 = vc.u32 %v3574_v33, %v3570_v29  ;;  %v3588_v37 = vmul.u32 %v3584_v40, %v3561_v50  ;;  %v6455_v35 = vsel %vm6453_vm1, %v1505_v7, %v16190_v21 }
 0x4d2   : > { %v1619_v42 = vsub.s32 32, %v1618_v19  ;;  %v1623_v49 = vsub.s32 4294967266, %v1618_v19  ;;  %v3577_v1 = vsel %vm3576_vm9, 1, %v17760_v18  ;;  %v3586_v59 = vmul.u32 %v3584_v40, %v3560_v11 }
 0x4d3   : > { %v3579_v28 = vadd.s32 %v3577_v1, %v3575_v47  ;;  %v3589_v17 = vmul.u32 %v3585_v25, %v3561_v50  ;;  %v3590_v43 = vshll.u32 %v3587_v46, 16  ;;  %v1620_v15 = vshll.u32 %v16155_v41, %v1618_v19  ;;  %v18101_v1 = vld [vmem:[#allocation6_spill] sm:$0xff] }
 0x4d4   : > { %v1621_v63 = vshrl.u32 %v1603_v57, %v1619_v42  ;;  %v1624_v62 = vadd.s32 127, %v1623_v49  ;;  %vm1501_vm7 = vcmp.eq.s32.totalorder %v16162_v16, 0  ;;  %v17663_v23 = vand.u32 2147483647, %v18100_v22 }
 0x4d5   : > { %v3580_v56 = vadd.s32 %v3579_v28, %v3569_v0  ;;  %v3592_v39 = vshll.u32 %v3588_v37, 16  ;;  %vm3594_vm10 = vc.u32 %v3586_v59, %v3590_v43  ;;  %v3596_v8 = vadd.s32 %v3590_v43, %v3586_v59  ;;  %v18102_v28 = vld [vmem:[#allocation19_spill] sm:$0xff] }
 0x4d6   : > { %v1622_v38 = vor.u32 %v1621_v63, %v1620_v15  ;;  %v1625_v29 = vshll.u32 %v1624_v62, 23  ;;  %v1506_v11 = vsel %vm1504_vm12, %v1505_v7, %v16190_v21  ;;  %v3595_v50 = vsel %vm3594_vm10, 1, %v17760_v18 }
 0x4d7   : > { %vm6449_vm8 = vcmp.lt.s32.totalorder %v16153_v14, 2  ;;  %v6452_v41 = vsel %vm6450_vm3, %v16171_v12, %v1502_v27  ;;  %v3571_v57 = vshrl.u32 %v3566_v53, 16  ;;  %v3597_v25 = vadd.s32 %v3595_v50, %v3589_v17 }
 0x4d8   : > { %vm3598_vm11 = vc.u32 %v3596_v8, %v3592_v39  ;;  %v1626_v40 = vor.u32 4788187, %v1625_v29  ;;  %vm1500_vm4 = vcmp.lt.s32.totalorder %v16162_v16, 2  ;;  %v3591_v0 = vshrl.u32 %v3587_v46, 16 }
 0x4d9   : > { %v3599_v6 = vsel %vm3598_vm11, 1, %v17760_v18  ;;  %v3672_v21 = vand.u32 8388607, %v17663_v23  ;;  %v3581_v7 = vadd.s32 %v3580_v56, %v3571_v57  ;;  %v3593_v33 = vshrl.u32 %v3588_v37, 16  ;;  %v18103_v57 = vld [vmem:[#allocation72_spill] sm:$0xff] }
 0x4da   : > { %v3600_v47 = vadd.s32 %v3596_v8, %v3592_v39  ;;  %v3601_v19 = vadd.s32 %v3599_v6, %v3597_v25  ;;  %v1627_v42 = vand.u32 2147483647, %v1626_v40  ;;  %v1629_v49 = vcvt.s32.f32 %v1622_v38  ;;  %v18105_v6 = vld [vmem:[#allocation21_spill] sm:$0xff] }
 0x4db   : > { %v3682_v53 = vshll.u32 %v17757_v31, %v18101_v1  ;;  %v3683_v59 = vshrl.u32 %v17793_v10, %v18102_v28  ;;  %v3673_v43 = vor.u32 8388608, %v3672_v21  ;;  %v3685_v46 = vshll.u32 %v17793_v10, %v18101_v1 }
 0x4dc   : > { %v3602_v17 = vadd.s32 %v3601_v19, %v3591_v0  ;;  %v3686_v15 = vshrl.u32 %v17794_v51, %v18102_v28  ;;  %vm1498_vm5 = vweird.f32 %v18071_v45  ;;  %v1630_v37 = vmul.f32 %v1629_v49, %v1627_v42  ;;  %v18104_v0 = vld [vmem:[#allocation35_spill] sm:$0xff] }
 0x4dd   : > { %v3684_v63 = vor.u32 %v3683_v59, %v3682_v53  ;;  %v3688_v62 = vshll.u32 %v17794_v51, %v18101_v1  ;;  %v3689_v56 = vshrl.u32 %v17687_v58, %v18102_v28  ;;  %v1503_v39 = vsel %vm1501_vm7, %v16171_v12, %v1502_v27  ;;  %v18106_v19 = vld [vmem:[#allocation23_spill] sm:$0xff] }
 0x4de   : > { %v3603_v8 = vadd.s32 %v3602_v17, %v3593_v33  ;;  %vm3606_vm1 = vc.u32 %v3581_v7, %v3600_v47  ;;  %v16238_v38 = vor.u32 %v3686_v15, %v3685_v46  ;;  %v1631_v29 = vxor.u32 2147483648, %v1630_v37 }
 0x4df   : > { %v3690_v50 = vor.u32 %v3689_v56, %v3688_v62  ;;  %vm3697_vm12 = vcmp.lt.s32.totalorder %v18103_v57, 1  ;;  %vm3699_vm3 = vcmp.lt.s32.totalorder %v18103_v57, 3  ;;  %v16249_v27 = vshll.u32 %v3673_v43, 8 }
 0x4e0   : > { %v3607_v25 = vadd.s32 1, %v3603_v8  ;;  %v3705_v40 = vsel %vm3697_vm12, %v3684_v63, %v16238_v38  ;;  %v3711_v12 = vsel %vm3699_vm3, %v18105_v6, %v18104_v0  ;;  %v1632_v21 = vsel %vm1511_vm2, %v1631_v29, %v1630_v37 }
 0x4e1   : > { %v6456_v33 = vsel %vm6449_vm8, %v6452_v41, %v6455_v35  ;;  %v3707_v42 = vsel %vm3699_vm3, %v3690_v50, %v18106_v19  ;;  %v3709_v49 = vsel %vm3697_vm12, %v16238_v38, %v3690_v50  ;;  %v16264_v1 = vsel %vm16175_vm13, %v13831_v24, %v1632_v21 }
 0x4e2   : > { %v1507_v53 = vsel %vm1500_vm4, %v1503_v39, %v1506_v11  ;;  %v3608_v59 = vsel %vm3606_vm1, %v3607_v25, %v3603_v8  ;;  %vm3698_vm2 = vcmp.lt.s32.totalorder %v18103_v57, 2  ;;  %v1637_v14 = vmul.f32 %v16264_v1, %v16264_v1  ;;  %v18109_v57 = vld [vmem:[#allocation59_spill] sm:$0xff] }
 0x4e3   : > { %v3609_v35 = vadd.s32 %v3608_v59, %v3604_v30  ;;  %v3708_v41 = vsel %vm3698_vm2, %v3705_v40, %v3707_v42  ;;  %v3712_v4 = vsel %vm3698_vm2, %v3709_v49, %v3711_v12  ;;  %v3714_v16 = vand.u32 65535, %v16249_v27 }
 0x4e4   : > { %v3715_v11 = vshrl.u32 %v16249_v27, 16  ;;  %v3716_v17 = vand.u32 65535, %v3712_v4  ;;  %v3717_v43 = vshrl.u32 %v3712_v4, 16  ;;  %v1638_v46 = vmul.f32 -0.001358992, %v1637_v14 }
 0x4e5   : > { %v1645_v15 = vmul.f32 -0.00019511016, %v1637_v14  ;;  %v16282_v37 = vand.u32 3, %v16197_v20  ;;  %v3610_v62 = vadd.s32 536870912, %v3609_v35  ;;  %v16286_v32 = vsel %vm1498_vm5, nan, %v6456_v33 }
 0x4e6   : > { %v16290_v34 = vsel %vm1498_vm5, nan, %v1507_v53  ;;  %v3719_v30 = vmul.u32 %v3717_v43, %v3714_v16  ;;  %v16292_v56 = vmul.u32 %v3716_v17, %v3715_v11  ;;  %v1639_v39 = vadd.f32 0.041655596, %v1638_v46 }
 0x4e7   : > { %v1646_v8 = vadd.f32 0.008332121, %v1645_v15  ;;  %v16294_v29 = vshrl.u32 %v3610_v62, 30  ;;  %v3739_v25 = vshrl.u32 %v3708_v41, 16  ;;  %v16296_v40 = vadd.s32 %v3600_v47, %v3581_v7 }
 0x4e8   : > { %v3681_v20 = vshrl.u32 %v17757_v31, %v18102_v28  ;;  %v3718_v0 = vmul.u32 %v3716_v17, %v3714_v16  ;;  %v3722_v6 = vshll.u32 %v3719_v30, 16  ;;  %v1640_v12 = vmul.f32 %v1639_v39, %v1637_v14 }
 0x4e9   : > { %v1647_v21 = vmul.f32 %v1646_v8, %v1637_v14  ;;  %v3612_v45 = vshll.u32 %v16294_v29, 30  ;;  %v3738_v33 = vand.u32 65535, %v3708_v41  ;;  %v3724_v19 = vshll.u32 %v16292_v56, 16 }
 0x4ea   : > { %vm3726_vm13 = vc.u32 %v3718_v0, %v3722_v6  ;;  %v3728_v42 = vadd.s32 %v3722_v6, %v3718_v0  ;;  %v16302_v49 = vmul.u32 %v3739_v25, %v3714_v16  ;;  %v1641_v53 = vadd.f32 -0.4999988, %v1640_v12 }
 0x4eb   : > { %v1648_v59 = vadd.f32 -0.16666654, %v1647_v21  ;;  %vm6608_vm0 = vcmp.eq.s32.totalorder %v16282_v37, 2  ;;  %vm1658_vm15 = vcmp.eq.s32.totalorder %v16200_v9, 2  ;;  %v16306_v7 = vsub.s32 %v3609_v35, %v3612_v45 }
 0x4ec   : > { %v16310_v47 = vsel %vm3697_vm12, %v3681_v20, %v3684_v63  ;;  %vm6605_vm9 = vcmp.eq.s32.totalorder %v16282_v37, 0  ;;  %vm1655_vm7 = vcmp.eq.s32.totalorder %v16200_v9, 0  ;;  %v3702_v28 = vsel %vm3700_vm14, %v3690_v50, 2102212464 }
 0x4ed   : > { %v3721_v41 = vmul.u32 %v3717_v43, %v3715_v11  ;;  %v3727_v4 = vsel %vm3726_vm13, 1, %v17760_v18  ;;  %vm3730_vm10 = vc.u32 %v3728_v42, %v3724_v19  ;;  %v1642_v17 = vmul.f32 %v1641_v53, %v1637_v14 }
 0x4ee   : > { %v1649_v46 = vmul.f32 %v1648_v59, %v1637_v14  ;;  %vm6604_vm8 = vcmp.lt.s32.totalorder %v16282_v37, 2  ;;  %vm1654_vm11 = vcmp.lt.s32.totalorder %v16200_v9, 2  ;;  %vm3614_vm4 = vcmp.lt.s32.totalorder %v16306_v7, 0 }
 0x4ef   : > { %v3615_v63 = vsub.s32 0, %v16306_v7  ;;  %vm1652_vm5 = vweird.f32 %v13831_v24  ;;  %v3729_v35 = vadd.s32 %v3727_v4, %v3721_v41  ;;  %v3731_v15 = vsel %vm3730_vm10, 1, %v17760_v18 }
 0x4f0   : > { %v3742_v50 = vmul.u32 %v3738_v33, %v3715_v11  ;;  %v3744_v43 = vshll.u32 %v16302_v49, 16  ;;  %v1643_v62 = vadd.f32 1.0, %v1642_v17  ;;  %v1650_v39 = vadd.f32 1.0, %v1649_v46 }
 0x4f1   : > { %v3616_v14 = vsel %vm3614_vm4, %v3615_v63, %v16306_v7  ;;  %v3740_v8 = vmul.u32 %v3738_v33, %v3714_v16  ;;  %v3723_v0 = vshrl.u32 %v3719_v30, 16  ;;  %v3733_v6 = vadd.s32 %v3731_v15, %v3729_v35 }
 0x4f2   : > { %v3617_v20 = vclz %v3616_v14  ;;  %v3743_v12 = vmul.u32 %v3739_v25, %v3715_v11  ;;  %v1651_v21 = vmul.f32 %v1650_v39, %v16264_v1  ;;  %v1659_v45 = vxor.u32 2147483648, %v1643_v62 }
 0x4f3   : > { %vm3748_vm14 = vc.u32 %v3740_v8, %v3744_v43  ;;  %v3750_v19 = vadd.s32 %v3744_v43, %v3740_v8  ;;  %v3703_v53 = vsel %vm3699_vm3, %v16238_v38, %v3702_v28  ;;  %v3746_v59 = vshll.u32 %v3742_v50, 16 }
 0x4f4   : > { %v10936_v42 = vadd.s32 4294967294, %v3617_v20  ;;  %v3749_v41 = vsel %vm3748_vm14, 1, %v17760_v18  ;;  %v1656_v4 = vxor.u32 2147483648, %v1651_v21  ;;  %v3725_v16 = vshrl.u32 %v16292_v56, 16 }
 0x4f5   : > { %v3734_v33 = vadd.s32 %v3733_v6, %v3723_v0  ;;  %v3751_v30 = vadd.s32 %v3749_v41, %v3743_v12  ;;  %v6610_v11 = vsel %vm6608_vm0, %v1659_v45, %v1651_v21  ;;  %v1660_v1 = vsel %vm1658_vm15, %v1659_v45, %v1651_v21 }
 0x4f6   : > { %vm10937_vm1 = vcmp.lt.s32.totalorder %v10936_v42, 0  ;;  %vm3752_vm12 = vc.u32 %v3750_v19, %v3746_v59  ;;  %v6607_v25 = vsel %vm6605_vm9, %v1643_v62, %v1656_v4  ;;  %v1657_v38 = vsel %vm1655_vm7, %v1643_v62, %v1656_v4 }
 0x4f7   : > { %v3620_v28 = vsel %vm10937_vm1, 0, %v10936_v42  ;;  %v3753_v17 = vsel %vm3752_vm12, 1, %v17760_v18  ;;  %v6611_v56 = vsel %vm6604_vm8, %v6607_v25, %v6610_v11  ;;  %v1661_v46 = vsel %vm1654_vm11, %v1657_v38, %v1660_v1  ;;  %v18110_v25 = vld [vmem:[#allocation94_spill] sm:$0xff] }
 0x4f8   : > { %v3621_v63 = vsub.s32 32, %v3620_v28  ;;  %v3745_v35 = vshrl.u32 %v16302_v49, 16  ;;  %v6612_v15 = vsel %vm1652_vm5, nan, %v6611_v56  ;;  %v1662_v43 = vsel %vm1652_vm5, nan, %v1661_v46  ;;  %v18111_v46 = vld [vmem:[#allocation41_spill] sm:$0xff] }
 0x4f9   : > { %v3625_v39 = vsub.s32 4294967266, %v3620_v28  ;;  %v3755_v62 = vadd.s32 %v3753_v17, %v3751_v30  ;;  %v10645_v14 = vpack.c.bf16 %v6612_v15, %v16286_v32  ;;  %v5669_v8 = vpack.c.bf16 %v1662_v43, %v16290_v34  ;;  %v18107_v34 = vld [vmem:[#allocation27_spill] sm:$0xff]  ;;  %v18112_v43 = vld [vmem:[#allocation66_spill] sm:$0xff] }
 0x4fa   : > { %v3623_v37 = vshrl.u32 %v16296_v40, %v3621_v63  ;;  %v16352_v20 = vadd.s32 %v3734_v33, %v3725_v16  ;;  %v3622_v9 = vshll.u32 %v16306_v7, %v3620_v28  ;;  %v3747_v49 = vshrl.u32 %v3742_v50, 16 }
 0x4fb   : > { %v3626_v0 = vadd.s32 127, %v3625_v39  ;;  %v3756_v6 = vadd.s32 %v3755_v62, %v3745_v35  ;;  %v16357_v12 = vor.u32 %v15973_v54, %v15939_v2  ;;  %10678 = vmatpush.bf16.msra.mxu0 %v10645_v14  ;;  %10704 = vmatpush.bf16.msra.mxu2 %v5669_v8  ;;  %v3704_v24 = vsel %vm3698_vm2, %v16310_v47, %v3703_v53  ;;  %v18108_v2 = vld [vmem:[#allocation40_spill] sm:$0xff] }
 0x4fc   : > { %v16362_v32 = vadd.s32 %v3750_v19, %v3746_v59  ;;  %v17662_v40 = vand.u32 2147483647, %v18107_v34  ;;  %v16366_v21 = vand.u32 31, %v16138_v55  ;;  %v3624_v7 = vor.u32 %v3623_v37, %v3622_v9  ;;  %v18113_v39 = vld [vmem:[#allocation20_spill] sm:$0xff] }
 0x4fd   : > { %v3627_v50 = vshll.u32 %v3626_v0, 23  ;;  %v3757_v45 = vadd.s32 %v3756_v6, %v3747_v49  ;;  %v896_v42 = vand.u32 2139095040, %v16151_v60  ;;  %v1067_v54 = vshll.u32 %v17793_v10, %v18108_v2 }
 0x4fe   : > { %vm3760_vm3 = vc.u32 %v16352_v20, %v16362_v32  ;;  %v1068_v47 = vshrl.u32 %v17794_v51, %v18109_v57  ;;  %v1232_v19 = vor.u32 %v16135_v3, %v15943_v52  ;;  %v3758_v59 = vmul.u32 %v16249_v27, %v3704_v24 }
 0x4ff   : > { %v3628_v53 = vor.u32 4788187, %v3627_v50  ;;  %v3761_v41 = vadd.s32 1, %v3757_v45  ;;  %v1054_v4 = vand.u32 8388607, %v17662_v40  ;;  %v1070_v33 = vshll.u32 %v17794_v51, %v18108_v2 }
 0x500   : > { %v16380_v16 = vor.u32 %v1068_v47, %v1067_v54  ;;  %v1071_v30 = vshrl.u32 %v17687_v58, %v18109_v57  ;;  %v16387_v11 = vsub.s32 32, %v16366_v21  ;;  %v3631_v52 = vcvt.s32.f32 %v3624_v7 }
 0x501   : > { %v3629_v1 = vand.u32 2147483647, %v3628_v53  ;;  %v3762_v3 = vsel %vm3760_vm3, %v3761_v41, %v3757_v45  ;;  %vm1236_vm2 = vcmp.lt.s32.totalorder %v18110_v25, 4  ;;  %v897_v27 = vshrl.u32 %v896_v42, 23 }
 0x502   : > { %v3763_v38 = vadd.s32 %v3762_v3, %v3758_v59  ;;  %v1072_v28 = vor.u32 %v1071_v30, %v1070_v33  ;;  %v16393_v17 = vsel %vm1236_vm2, %v16357_v12, 920167782  ;;  %vm1079_vm13 = vcmp.lt.s32.totalorder %v18111_v46, 1 }
 0x503   : > { %v3632_v56 = vmul.f32 %v3631_v52, %v3629_v1  ;;  %vm1081_vm0 = vcmp.lt.s32.totalorder %v18111_v46, 3  ;;  %v1055_v35 = vor.u32 8388608, %v1054_v4  ;;  %v16406_v14 = vsel %vm1236_vm2, %v1232_v19, 1326507024 }
 0x504   : > { %v3764_v63 = vadd.s32 536870912, %v3763_v38  ;;  %v1091_v15 = vsel %vm1079_vm13, %v16380_v16, %v1072_v28  ;;  %v1093_v62 = vsel %vm1081_vm0, %v18113_v39, %v18112_v43  ;;  %v16410_v8 = vshrl.u32 %v17979_v5, %v16387_v11 }
 0x505   : > { %v3633_v37 = vxor.u32 2147483648, %v3632_v56  ;;  %v1065_v9 = vshrl.u32 %v17793_v10, %v18109_v57  ;;  %v10884_v0 = vadd.s32 4294967169, %v897_v27  ;;  %vm3513_vm15 = vcmp.lt.s32.totalorder %v18092_v61, 0 }
 0x506   : > { %v16415_v49 = vshrl.u32 %v3764_v63, 30  ;;  %vm1080_vm9 = vcmp.lt.s32.totalorder %v18111_v46, 2  ;;  %vm16420_vm7 = vcmp.le.f32.partialorder %v3511_v13, 0.7853982  ;;  %v1064_v7 = vshll.u32 %v17757_v31, %v18108_v2 }
 0x507   : > { %v3634_v24 = vsel %vm3513_vm15, %v3633_v37, %v3632_v56  ;;  %v1094_v50 = vsel %vm1080_vm9, %v1091_v15, %v1093_v62  ;;  %v16431_v45 = vshrl.u32 %v16138_v55, 5  ;;  %v16439_v54 = vshll.u32 %v1055_v35, 8 }
 0x508   : > { %v16436_v42 = vsel %vm16420_vm7, %v18092_v61, %v3634_v24  ;;  %v3766_v13 = vshll.u32 %v16415_v49, 30  ;;  %v16443_v47 = vshll.u32 %v17701_v48, %v16366_v21  ;;  %v3635_v2 = vsub.s32 4, %v16294_v29 }
 0x509   : > { %v3639_v19 = vmul.f32 %v16436_v42, %v16436_v42  ;;  %v1066_v55 = vor.u32 %v1065_v9, %v1064_v7  ;;  %v16450_v53 = vshll.u32 %v17687_v58, %v16366_v21  ;;  %v16454_v59 = vshrl.u32 %v17701_v48, %v16387_v11  ;;  %v18117_v7 = vld [vmem:[#allocation73_spill] sm:$0xff] }
 0x50a   : > { %v3767_v41 = vsub.s32 %v3763_v38, %v3766_v13  ;;  %v1099_v4 = vshrl.u32 %v1094_v50, 16  ;;  %v16458_v30 = vadd.s32 1, %v10884_v0  ;;  %v16461_v27 = vand.u32 65535, %v16439_v54 }
 0x50b   : > { %v3640_v1 = vmul.f32 -0.001358992, %v3639_v19  ;;  %v3647_v52 = vmul.f32 -0.00019511016, %v3639_v19  ;;  %v1098_v56 = vand.u32 65535, %v1094_v50  ;;  %v3636_v63 = vsel %vm3513_vm15, %v3635_v2, %v16294_v29 }
 0x50c   : > { %vm3768_vm10 = vcmp.lt.s32.totalorder %v3767_v41, 0  ;;  %v3769_v3 = vsub.s32 0, %v3767_v41  ;;  %v1087_v15 = vsel %vm1079_vm13, %v1066_v55, %v16380_v16  ;;  %vm18116_vm8 = vcmp.lt.s32.totalorder %v18111_v46, 4 }
 0x50d   : > { %v3641_v35 = vadd.f32 0.041655596, %v3640_v1  ;;  %v3648_v38 = vadd.f32 0.008332121, %v3647_v52  ;;  %v1084_v39 = vsel %vm18116_vm8, %v1072_v28, 2102212464  ;;  %v1101_v37 = vmul.u32 %v1099_v4, %v16461_v27 }
 0x50e   : > { %v3770_v43 = vsel %vm3768_vm10, %v3769_v3, %v3767_v41  ;;  %v1097_v62 = vshrl.u32 %v16439_v54, 16  ;;  %v1089_v29 = vsel %vm1081_vm0, %v1072_v28, %v18117_v7  ;;  %vm3667_vm11 = vcmp.lt.s32.totalorder %v18100_v22, 0 }
 0x50f   : > { %v3642_v9 = vmul.f32 %v3641_v35, %v3639_v19  ;;  %v3649_v0 = vmul.f32 %v3648_v38, %v3639_v19  ;;  %v3771_v24 = vclz %v3770_v43  ;;  %v1063_v50 = vshrl.u32 %v17757_v31, %v18109_v57 }
 0x510   : > { %v16479_v13 = vmul.u32 %v1098_v56, %v1097_v62  ;;  %v1104_v2 = vshll.u32 %v1101_v37, 16  ;;  %v3638_v1 = vsel %vm16420_vm7, 0, %v3636_v63  ;;  %v3759_v3 = vadd.s32 %v16362_v32, %v16352_v20 }
 0x511   : > { %v3650_v52 = vadd.f32 -0.16666654, %v3649_v0  ;;  %v10939_v35 = vadd.s32 4294967294, %v3771_v24  ;;  %v1083_v38 = vsel %vm1079_vm13, %v1063_v50, %v1066_v55  ;;  %v1085_v28 = vsel %vm1081_vm0, %v16380_v16, %v1084_v39 }
 0x512   : > { %v1090_v57 = vsel %vm1080_vm9, %v1087_v15, %v1089_v29  ;;  %v1100_v43 = vmul.u32 %v1098_v56, %v16461_v27  ;;  %v3643_v7 = vadd.f32 -0.4999988, %v3642_v9  ;;  %v3789_v63 = vsub.s32 4, %v16415_v49 }
 0x513   : > { %v3651_v6 = vmul.f32 %v3650_v52, %v3639_v19  ;;  %vm10940_vm4 = vcmp.lt.s32.totalorder %v10939_v35, 0  ;;  %v1106_v20 = vshll.u32 %v16479_v13, 16  ;;  %v1103_v50 = vmul.u32 %v1099_v4, %v1097_v62 }
 0x514   : > { %v3774_v0 = vsel %vm10940_vm4, 0, %v10939_v35  ;;  %vm1108_vm5 = vc.u32 %v1100_v43, %v1104_v2  ;;  %v1110_v32 = vadd.s32 %v1104_v2, %v1100_v43  ;;  %v1120_v40 = vand.u32 65535, %v1090_v57 }
 0x515   : > { %v3652_v55 = vadd.f32 1.0, %v3651_v6  ;;  %v3775_v24 = vsub.s32 32, %v3774_v0  ;;  %v3779_v16 = vsub.s32 4294967266, %v3774_v0  ;;  %v1109_v39 = vsel %vm1108_vm5, 1, %v17760_v18 }
 0x516   : > { %vm1112_vm14 = vc.u32 %v1110_v32, %v1106_v20  ;;  %v1121_v15 = vshrl.u32 %v1090_v57, 16  ;;  %v3776_v56 = vshll.u32 %v3767_v41, %v3774_v0  ;;  %v8617_v29 = vadd.s32 3, %v3638_v1 }
 0x517   : > { %v3777_v9 = vshrl.u32 %v3759_v3, %v3775_v24  ;;  %v1111_v52 = vadd.s32 %v1109_v39, %v1103_v50  ;;  %v3644_v33 = vmul.f32 %v3643_v7, %v3639_v19  ;;  %v3780_v23 = vadd.s32 127, %v3779_v16 }
 0x518   : > { %v1113_v35 = vsel %vm1112_vm14, 1, %v17760_v18  ;;  %v1123_v60 = vmul.u32 %v1121_v15, %v16461_v27  ;;  %v16499_v2 = vmul.f32 %v3652_v55, %v16436_v42  ;;  %v3790_v43 = vsel %vm3667_vm11, %v3789_v63, %v16415_v49 }
 0x519   : > { %v3778_v4 = vor.u32 %v3777_v9, %v3776_v56  ;;  %v1115_v6 = vadd.s32 %v1113_v35, %v1111_v52  ;;  %v18118_v41 = vand.u32 2147483647, %v18100_v22  ;;  %v3781_v19 = vshll.u32 %v3780_v23, 23 }
 0x51a   : > { %v1124_v57 = vmul.u32 %v1120_v40, %v1097_v62  ;;  %v1126_v7 = vshll.u32 %v1123_v60, 16  ;;  %v16510_v0 = vand.u32 3, %v8617_v29  ;;  %v16512_v20 = vand.u32 3, %v3638_v1 }
 0x51b   : > { %vm16506_vm1 = vcmp.le.f32.partialorder %v18118_v41, 0.7853982  ;;  %v16516_v42 = vsel %vm1080_vm9, %v1083_v38, %v1085_v28  ;;  %v1105_v32 = vshrl.u32 %v1101_v37, 16  ;;  %v16518_v49 = vadd.f32 1.0, %v3644_v33  ;;  %v18121_v38 = vld [vmem:[#allocation96_spill] sm:$0xff] }
 0x51c   : > { %v3782_v63 = vor.u32 4788187, %v3781_v19  ;;  %v3792_v55 = vsel %vm16506_vm1, 0, %v3790_v43  ;;  %v1122_v24 = vmul.u32 %v1120_v40, %v16461_v27  ;;  %v3658_v23 = vxor.u32 2147483648, %v16499_v2 }
 0x51d   : > { %v3785_v50 = vcvt.s32.f32 %v3778_v4  ;;  %v1116_v16 = vadd.s32 %v1115_v6, %v1105_v32  ;;  %v1125_v39 = vmul.u32 %v1121_v15, %v1097_v62  ;;  %v1128_v56 = vshll.u32 %v1124_v57, 16 }
 0x51e   : > { %v3783_v1 = vand.u32 2147483647, %v3782_v63  ;;  %vm1130_vm12 = vc.u32 %v1122_v24, %v1126_v7  ;;  %v1132_v46 = vadd.s32 %v1126_v7, %v1122_v24  ;;  %vm8620_vm3 = vcmp.eq.s32.totalorder %v16510_v0, 0 }
 0x51f   : > { %v8772_v37 = vadd.s32 3, %v3792_v55  ;;  %v1131_v33 = vsel %vm1130_vm12, 1, %v17760_v18  ;;  %v1201_v28 = vand.u32 2147483647, %v18121_v38  ;;  %vm8623_vm13 = vcmp.eq.s32.totalorder %v16510_v0, 2 }
 0x520   : > { %v3786_v9 = vmul.f32 %v3785_v50, %v3783_v1  ;;  %v1107_v40 = vshrl.u32 %v16479_v13, 16  ;;  %v1133_v27 = vadd.s32 %v1131_v33, %v1125_v39  ;;  %vm1134_vm0 = vc.u32 %v1132_v46, %v1128_v56 }
 0x521   : > { %v3661_v62 = vxor.u32 2147483648, %v16518_v49  ;;  %v8622_v15 = vsel %vm8620_vm3, %v16518_v49, %v3658_v23  ;;  %v16533_v29 = vand.u32 3, %v3792_v55  ;;  %v1135_v52 = vsel %vm1134_vm0, 1, %v17760_v18 }
 0x522   : > { %v3787_v35 = vxor.u32 2147483648, %v3786_v9  ;;  %vm8619_vm15 = vcmp.lt.s32.totalorder %v16510_v0, 2  ;;  %v16537_v4 = vadd.s32 %v1116_v16, %v1107_v40  ;;  %v1127_v43 = vshrl.u32 %v1123_v60, 16 }
 0x523   : > { %v1137_v6 = vadd.s32 %v1135_v52, %v1133_v27  ;;  %v1129_v13 = vshrl.u32 %v1124_v57, 16  ;;  %v16539_v41 = vadd.s32 %v1132_v46, %v1128_v56  ;;  %v1208_v19 = vand.u32 8388607, %v1201_v28 }
 0x524   : > { %v1219_v7 = vshrl.u32 %v17793_v10, %v15877_v44  ;;  %v3788_v32 = vsel %vm3667_vm11, %v3787_v35, %v3786_v9  ;;  %v1221_v55 = vshll.u32 %v17793_v10, %v15849_v36  ;;  %v1222_v60 = vshrl.u32 %v17794_v51, %v15877_v44 }
 0x525   : > { %v1138_v63 = vadd.s32 %v1137_v6, %v1127_v43  ;;  %v16554_v57 = vsel %vm16506_vm1, %v18100_v22, %v3788_v32  ;;  %vm3657_vm9 = vcmp.eq.s32.totalorder %v16512_v20, 0  ;;  %v1218_v24 = vshll.u32 %v17757_v31, %v15849_v36 }
 0x526   : > { %v1224_v50 = vshll.u32 %v17794_v51, %v15849_v36  ;;  %v1225_v16 = vshrl.u32 %v17687_v58, %v15877_v44  ;;  %v3793_v39 = vmul.f32 %v16554_v57, %v16554_v57  ;;  %vm3660_vm7 = vcmp.eq.s32.totalorder %v16512_v20, 2 }
 0x527   : > { %v1139_v1 = vadd.s32 %v1138_v63, %v1129_v13  ;;  %vm1142_vm10 = vc.u32 %v16537_v4, %v16539_v41  ;;  %v16568_v3 = vor.u32 %v1222_v60, %v1221_v55  ;;  %v1209_v56 = vor.u32 8388608, %v1208_v19 }
 0x528   : > { %v16570_v46 = vor.u32 %v1219_v7, %v1218_v24  ;;  %v16572_v33 = vor.u32 %v1225_v16, %v1224_v50  ;;  %vm1233_vm8 = vcmp.lt.s32.totalorder %v18110_v25, 1  ;;  %vm3654_vm11 = vweird.f32 %v18092_v61 }
 0x529   : > { %v3794_v36 = vmul.f32 -0.001358992, %v3793_v39  ;;  %v3801_v9 = vmul.f32 -0.00019511016, %v3793_v39  ;;  %vm3656_vm4 = vcmp.lt.s32.totalorder %v16512_v20, 2  ;;  %v1143_v40 = vadd.s32 1, %v1139_v1 }
 0x52a   : > { %vm1235_vm5 = vcmp.lt.s32.totalorder %v18110_v25, 3  ;;  %v8625_v27 = vsel %vm8623_vm13, %v3661_v62, %v16499_v2  ;;  %v1140_v52 = vmul.u32 %v16439_v54, %v16516_v42  ;;  %v1245_v35 = vsel %vm1233_vm8, %v16568_v3, %v16572_v33 }
 0x52b   : > { %v1247_v43 = vsel %vm1235_vm5, %v16357_v12, %v16406_v14  ;;  %v3795_v6 = vadd.f32 0.041655596, %v3794_v36  ;;  %v3802_v13 = vadd.f32 0.008332121, %v3801_v9  ;;  %v1144_v19 = vsel %vm1142_vm10, %v1143_v40, %v1139_v1 }
 0x52c   : > { %vm1234_vm14 = vcmp.lt.s32.totalorder %v18110_v25, 2  ;;  %v8626_v54 = vsel %vm8619_vm15, %v8622_v15, %v8625_v27  ;;  %v16599_v42 = vand.u32 3, %v8772_v37  ;;  %v1145_v7 = vadd.s32 %v1144_v19, %v1140_v52 }
 0x52d   : > { %v1248_v32 = vsel %vm1234_vm14, %v1245_v35, %v1247_v43  ;;  %v3796_v63 = vmul.f32 %v3795_v6, %v3793_v39  ;;  %v3803_v55 = vmul.f32 %v3802_v13, %v3793_v39  ;;  %v1241_v12 = vsel %vm1233_vm8, %v16570_v46, %v16568_v3 }
 0x52e   : > { %v16607_v14 = vshll.u32 %v1209_v56, 8  ;;  %v1146_v60 = vadd.s32 536870912, %v1145_v7  ;;  %v1243_v0 = vsel %vm1235_vm5, %v16572_v33, %v16393_v17  ;;  %v1252_v37 = vand.u32 65535, %v1248_v32 }
 0x52f   : > { %v1253_v15 = vshrl.u32 %v1248_v32, 16  ;;  %v3797_v24 = vadd.f32 -0.4999988, %v3796_v63  ;;  %v3804_v50 = vadd.f32 -0.16666654, %v3803_v55  ;;  %v3659_v16 = vsel %vm3657_vm9, %v16518_v49, %v3658_v23 }
 0x530   : > { %vm3814_vm1 = vcmp.eq.s32.totalorder %v16533_v29, 2  ;;  %v1250_v1 = vand.u32 65535, %v16607_v14  ;;  %vm8775_vm12 = vcmp.eq.s32.totalorder %v16599_v42, 0  ;;  %vm8778_vm3 = vcmp.eq.s32.totalorder %v16599_v42, 2 }
 0x531   : > { %v3662_v17 = vsel %vm3660_vm7, %v3661_v62, %v16499_v2  ;;  %vm3811_vm13 = vcmp.eq.s32.totalorder %v16533_v29, 0  ;;  %v16628_v56 = vshrl.u32 %v1146_v60, 30  ;;  %v1251_v23 = vshrl.u32 %v16607_v14, 16 }
 0x532   : > { %v3798_v36 = vmul.f32 %v3797_v24, %v3793_v39  ;;  %v3805_v9 = vmul.f32 %v3804_v50, %v3793_v39  ;;  %vm8774_vm0 = vcmp.lt.s32.totalorder %v16599_v42, 2  ;;  %vm3810_vm15 = vcmp.lt.s32.totalorder %v16533_v29, 2 }
 0x533   : > { %v1244_v40 = vsel %vm1234_vm14, %v1241_v12, %v1243_v0  ;;  %v1255_v27 = vmul.u32 %v1253_v15, %v1250_v1  ;;  %vm3808_vm9 = vweird.f32 %v18100_v22  ;;  %v8627_v2 = vsel %vm3654_vm11, nan, %v8626_v54 }
 0x534   : > { %v3663_v49 = vsel %vm3656_vm4, %v3659_v16, %v3662_v17  ;;  %v1148_v62 = vshll.u32 %v16628_v56, 30  ;;  %v16641_v52 = vmul.u32 %v1252_v37, %v1251_v23  ;;  %v3799_v39 = vadd.f32 1.0, %v3798_v36 }
 0x535   : > { %v3806_v35 = vadd.f32 1.0, %v3805_v9  ;;  %v1254_v43 = vmul.u32 %v1252_v37, %v1250_v1  ;;  %v1258_v6 = vshll.u32 %v1255_v27, 16  ;;  %v1257_v19 = vmul.u32 %v1253_v15, %v1251_v23 }
 0x536   : > { %v16643_v13 = vsub.s32 %v1145_v7, %v1148_v62  ;;  %v1274_v32 = vand.u32 65535, %v1244_v40  ;;  %v1275_v63 = vshrl.u32 %v1244_v40, 16  ;;  %v3815_v12 = vxor.u32 2147483648, %v3799_v39 }
 0x537   : > { %v3807_v55 = vmul.f32 %v3806_v35, %v16554_v57  ;;  %v1260_v54 = vshll.u32 %v16641_v52, 16  ;;  %vm1262_vm7 = vc.u32 %v1254_v43, %v1258_v6  ;;  %v1264_v0 = vadd.s32 %v1258_v6, %v1254_v43 }
 0x538   : > { %vm1150_vm10 = vcmp.lt.s32.totalorder %v16643_v13, 0  ;;  %v1151_v20 = vsub.s32 0, %v16643_v13  ;;  %v1263_v60 = vsel %vm1262_vm7, 1, %v17760_v18  ;;  %v3664_v15 = vsel %vm3654_vm11, nan, %v3663_v49 }
 0x539   : > { %v3812_v37 = vxor.u32 2147483648, %v3807_v55  ;;  %v8780_v7 = vsel %vm8778_vm3, %v3815_v12, %v3807_v55  ;;  %v1265_v24 = vadd.s32 %v1263_v60, %v1257_v19  ;;  %v3816_v57 = vsel %vm3814_vm1, %v3815_v12, %v3807_v55 }
 0x53a   : > { %v1152_v50 = vsel %vm1150_vm10, %v1151_v20, %v16643_v13  ;;  %vm1266_vm4 = vc.u32 %v1264_v0, %v1260_v54  ;;  %v1277_v16 = vmul.u32 %v1275_v63, %v1250_v1  ;;  %v1141_v62 = vadd.s32 %v16539_v41, %v16537_v4 }
 0x53b   : > { %v8777_v17 = vsel %vm8775_vm12, %v3799_v39, %v3812_v37  ;;  %v3813_v36 = vsel %vm3811_vm13, %v3799_v39, %v3812_v37  ;;  %v1153_v9 = vclz %v1152_v50  ;;  %v1267_v40 = vsel %vm1266_vm4, 1, %v17760_v18 }
 0x53c   : > { %v8781_v61 = vsel %vm8774_vm0, %v8777_v17, %v8780_v7  ;;  %v3817_v49 = vsel %vm3810_vm15, %v3813_v36, %v3816_v57  ;;  %v1278_v35 = vmul.u32 %v1274_v32, %v1251_v23  ;;  %vm904_vm11 = vcmp.gt.s32.totalorder %v16458_v30, 0 }
 0x53d   : > { %v8782_v43 = vsel %vm3808_vm9, nan, %v8781_v61  ;;  %v3818_v39 = vsel %vm3808_vm9, nan, %v3817_v49  ;;  %v10888_v6 = vadd.s32 4294967294, %v1153_v9  ;;  %v1269_v19 = vadd.s32 %v1267_v40, %v1265_v24  ;;  %v18123_v40 = vld [vmem:[#allocation81_spill] sm:$0xff]  ;;  %v18125_v49 = vld [vmem:[#allocation68_spill] sm:$0xff] }
 0x53e   : > { %v10652_v55 = vpack.c.bf16 %v8782_v43, %v8627_v2  ;;  %v5676_v42 = vpack.c.bf16 %v3818_v39, %v3664_v15  ;;  %v1276_v12 = vmul.u32 %v1274_v32, %v1250_v1  ;;  %v1280_v54 = vshll.u32 %v1277_v16, 16 }
 0x53f   : > { %vm10889_vm1 = vcmp.lt.s32.totalorder %v10888_v6, 0  ;;  %v1217_v29 = vshrl.u32 %v17757_v31, %v15877_v44  ;;  %v1259_v4 = vshrl.u32 %v1255_v27, 16  ;;  %v1279_v41 = vmul.u32 %v1275_v63, %v1251_v23 }
 0x540   : > { %10692 = vmatpush.bf16.msra.mxu1 %v10652_v55  ;;  %10718 = vmatpush.bf16.msra.mxu3 %v5676_v42  ;;  %v1156_v20 = vsel %vm10889_vm1, 0, %v10888_v6  ;;  %v1282_v60 = vshll.u32 %v1278_v35, 16  ;;  %vm1284_vm12 = vc.u32 %v1276_v12, %v1280_v54  ;;  %v1286_v0 = vadd.s32 %v1280_v54, %v1276_v12 }
 0x541   : > { %v1157_v22 = vsub.s32 32, %v1156_v20  ;;  %v1161_v37 = vsub.s32 4294967266, %v1156_v20  ;;  %v1270_v7 = vadd.s32 %v1269_v19, %v1259_v4  ;;  %v1285_v2 = vsel %vm1284_vm12, 1, %v17760_v18 }
 0x542   : > { %v1238_v1 = vsel %vm1236_vm2, %v16572_v33, 2102212464  ;;  %v1261_v32 = vshrl.u32 %v16641_v52, 16  ;;  %v1287_v44 = vadd.s32 %v1285_v2, %v1279_v41  ;;  %vm1288_vm3 = vc.u32 %v1286_v0, %v1282_v60 }
 0x543   : > { %v1158_v23 = vshll.u32 %v16643_v13, %v1156_v20  ;;  %v1159_v27 = vshrl.u32 %v1141_v62, %v1157_v22  ;;  %v1162_v63 = vadd.s32 127, %v1161_v37  ;;  %v1289_v15 = vsel %vm1288_vm3, 1, %v17760_v18  ;;  %v18122_v13 = vld [vmem:[#allocation78_spill] sm:$0xff] }
 0x544   : > { %v1237_v24 = vsel %vm1233_vm8, %v1217_v29, %v16570_v46  ;;  %v1281_v57 = vshrl.u32 %v1277_v16, 16  ;;  %v1291_v50 = vadd.s32 %v1289_v15, %v1287_v44  ;;  %v3203_v17 = vand.u32 2147483647, %v15894_v26 }
 0x545   : > { %v1160_v36 = vor.u32 %v1159_v27, %v1158_v23  ;;  %v1163_v33 = vshll.u32 %v1162_v63, 23  ;;  %v1239_v52 = vsel %vm1235_vm5, %v16568_v3, %v1238_v1  ;;  %v16689_v9 = vadd.s32 %v1270_v7, %v1261_v32 }
 0x546   : > { %v18124_v61 = vor.u32 %v18122_v13, %v18123_v40  ;;  %vm3238_vm2 = vcmp.lt.s32.totalorder %v16431_v45, 4  ;;  %v1283_v46 = vshrl.u32 %v1278_v35, 16  ;;  %v1292_v16 = vadd.s32 %v1291_v50, %v1281_v57 }
 0x547   : > { %v3231_v43 = vor.u32 %v16454_v59, %v16450_v53  ;;  %v18126_v39 = vor.u32 %v16410_v8, %v16443_v47  ;;  %v1164_v6 = vor.u32 4788187, %v1163_v33  ;;  %v16706_v19 = vadd.s32 %v1286_v0, %v1282_v60 }
 0x548   : > { %v16696_v62 = vsel %vm3392_vm6, %v18124_v61, 1326507024  ;;  %v16711_v55 = vsel %vm904_vm11, %v16458_v30, 0  ;;  %v1240_v35 = vsel %vm1234_vm14, %v1237_v24, %v1239_v52  ;;  %v1293_v42 = vadd.s32 %v1292_v16, %v1283_v46 }
 0x549   : > { %v3248_v3 = vsel %vm3238_vm2, %v18126_v39, 1326507024  ;;  %v3210_v53 = vand.u32 8388607, %v3203_v17  ;;  %v1165_v59 = vand.u32 2147483647, %v1164_v6  ;;  %v1167_v8 = vcvt.s32.f32 %v1160_v36 }
 0x54a   : > { %v1171_v47 = vsub.s32 4, %v16628_v56  ;;  %vm1296_vm8 = vc.u32 %v16689_v9, %v16706_v19  ;;  %v1297_v12 = vadd.s32 1, %v1293_v42  ;;  %v3223_v30 = vshll.u32 %v17793_v10, %v16366_v21 }
 0x54b   : > { %v3211_v54 = vor.u32 8388608, %v3210_v53  ;;  %v3224_v25 = vshrl.u32 %v17794_v51, %v16387_v11  ;;  %v1168_v29 = vmul.f32 %v1167_v8, %v1165_v59  ;;  %v1294_v4 = vmul.u32 %v16607_v14, %v1240_v35 }
 0x54c   : > { %v3226_v41 = vshll.u32 %v17794_v51, %v16366_v21  ;;  %v3227_v20 = vshrl.u32 %v17687_v58, %v16387_v11  ;;  %vm1049_vm5 = vcmp.lt.s32.totalorder %v18107_v34, 0  ;;  %v1298_v60 = vsel %vm1296_vm8, %v1297_v12, %v1293_v42 }
 0x54d   : > { %v3221_v0 = vshrl.u32 %v17793_v10, %v16387_v11  ;;  %v16732_v22 = vor.u32 %v3224_v25, %v3223_v30  ;;  %v1169_v37 = vxor.u32 2147483648, %v1168_v29  ;;  %v1299_v7 = vadd.s32 %v1298_v60, %v1294_v4 }
 0x54e   : > { %v3228_v2 = vor.u32 %v3227_v20, %v3226_v41  ;;  %vm3237_vm14 = vcmp.lt.s32.totalorder %v16431_v45, 3  ;;  %v1172_v14 = vsel %vm1049_vm5, %v1171_v47, %v16628_v56  ;;  %v3220_v1 = vshll.u32 %v17757_v31, %v16366_v21  ;;  %v18133_v41 = vld [vmem:[#allocation74_spill] sm:$0xff] }
 0x54f   : > { %v3249_v32 = vsel %vm3237_vm14, %v3231_v43, %v3248_v3  ;;  %v16740_v44 = vshll.u32 %v3211_v54, 8  ;;  %v18127_v23 = vand.u32 2147483647, %v18107_v34  ;;  %v1170_v27 = vsel %vm1049_vm5, %v1169_v37, %v1168_v29 }
 0x550   : > { %v1300_v63 = vadd.s32 536870912, %v1299_v7  ;;  %vm3235_vm0 = vcmp.lt.s32.totalorder %v16431_v45, 1  ;;  %v16748_v24 = vor.u32 %v3221_v0, %v3220_v1  ;;  %vm3236_vm15 = vcmp.lt.s32.totalorder %v16431_v45, 2 }
 0x551   : > { %vm1048_vm13 = vcmp.le.f32.partialorder %v18127_v23, 0.7853982  ;;  %v3247_v21 = vsel %vm3235_vm0, %v16732_v22, %v3228_v2  ;;  %v3244_v33 = vsel %vm3238_vm2, %v3231_v43, 920167782  ;;  %v16761_v52 = vand.u32 65535, %v16740_v44 }
 0x552   : > { %v16746_v15 = vsel %vm1048_vm13, %v18107_v34, %v1170_v27  ;;  %v1174_v56 = vsel %vm1048_vm13, 0, %v1172_v14  ;;  %v1301_v50 = vshrl.u32 %v1300_v63, 30  ;;  %v3250_v36 = vsel %vm3236_vm15, %v3247_v21, %v3249_v32 }
 0x553   : > { %v1175_v57 = vmul.f32 %v16746_v15, %v16746_v15  ;;  %v3254_v13 = vand.u32 65535, %v3250_v36  ;;  %v3255_v40 = vshrl.u32 %v3250_v36, 16  ;;  %v16764_v61 = vand.u32 31, %v16711_v55 }
 0x554   : > { %v1302_v39 = vshll.u32 %v1301_v50, 30  ;;  %v6137_v3 = vadd.s32 3, %v1174_v56  ;;  %v3243_v6 = vsel %vm3235_vm0, %v16748_v24, %v16732_v22  ;;  %v16771_v35 = vshrl.u32 %v16740_v44, 16 }
 0x555   : > { %v1176_v46 = vmul.f32 -0.001358992, %v1175_v57  ;;  %v1183_v16 = vmul.f32 -0.00019511016, %v1175_v57  ;;  %v16774_v43 = vmul.u32 %v3255_v40, %v16761_v52  ;;  %v3245_v8 = vsel %vm3237_vm14, %v3228_v2, %v3244_v33 }
 0x556   : > { %v1303_v59 = vsub.s32 %v1299_v7, %v1302_v39  ;;  %v1325_v47 = vsub.s32 4, %v1301_v50  ;;  %v3256_v12 = vmul.u32 %v3254_v13, %v16761_v52  ;;  %v16780_v54 = vmul.u32 %v3254_v13, %v16771_v35 }
 0x557   : > { %v1177_v42 = vadd.f32 0.041655596, %v1176_v46  ;;  %v1184_v53 = vadd.f32 0.008332121, %v1183_v16  ;;  %v3260_v30 = vshll.u32 %v16774_v43, 16  ;;  %vm1203_vm10 = vcmp.lt.s32.totalorder %v18121_v38, 0 }
 0x558   : > { %vm1304_vm9 = vcmp.lt.s32.totalorder %v1303_v59, 0  ;;  %v1305_v4 = vsub.s32 0, %v1303_v59  ;;  %vm16785_vm7 = vcmp.le.f32.partialorder %v1201_v28, 0.7853982  ;;  %v16790_v20 = vand.u32 3, %v6137_v3 }
 0x559   : > { %v1178_v25 = vmul.f32 %v1177_v42, %v1175_v57  ;;  %v1185_v29 = vmul.f32 %v1184_v53, %v1175_v57  ;;  %vm3264_vm4 = vc.u32 %v3256_v12, %v3260_v30  ;;  %v3246_v7 = vsel %vm3236_vm15, %v3243_v6, %v3245_v8 }
 0x55a   : > { %v1306_v37 = vsel %vm1304_vm9, %v1305_v4, %v1303_v59  ;;  %v1326_v1 = vsel %vm1203_vm10, %v1325_v47, %v1301_v50  ;;  %v3259_v28 = vmul.u32 %v3255_v40, %v16771_v35  ;;  %v3265_v32 = vsel %vm3264_vm4, 1, %v17760_v18 }
 0x55b   : > { %v1179_v60 = vadd.f32 -0.4999988, %v1178_v25  ;;  %v1186_v0 = vadd.f32 -0.16666654, %v1185_v29  ;;  %v1307_v14 = vclz %v1306_v37  ;;  %v3262_v63 = vshll.u32 %v16780_v54, 16 }
 0x55c   : > { %v3266_v21 = vadd.s32 %v3260_v30, %v3256_v12  ;;  %v16799_v33 = vand.u32 3, %v1174_v56  ;;  %v3219_v13 = vshrl.u32 %v17757_v31, %v16387_v11  ;;  %v3240_v46 = vsel %vm3238_vm2, %v3228_v2, 2102212464 }
 0x55d   : > { %v1180_v23 = vmul.f32 %v1179_v60, %v1175_v57  ;;  %v1187_v27 = vmul.f32 %v1186_v0, %v1175_v57  ;;  %v10891_v36 = vadd.s32 4294967294, %v1307_v14  ;;  %v3267_v40 = vadd.s32 %v3265_v32, %v3259_v28 }
 0x55e   : > { %vm3268_vm11 = vc.u32 %v3266_v21, %v3262_v63  ;;  %v1328_v57 = vsel %vm16785_vm7, 0, %v1326_v1  ;;  %v3277_v3 = vshrl.u32 %v3246_v7, 16  ;;  %v1295_v56 = vadd.s32 %v16706_v19, %v16689_v9 }
 0x55f   : > { %v16805_v16 = vadd.f32 1.0, %v1180_v23  ;;  %v1188_v50 = vadd.f32 1.0, %v1187_v27  ;;  %vm10892_vm1 = vcmp.lt.s32.totalorder %v10891_v36, 0  ;;  %v3269_v39 = vsel %vm3268_vm11, 1, %v17760_v18 }
 0x560   : > { %v1310_v6 = vsel %vm10892_vm1, 0, %v10891_v36  ;;  %vm6143_vm12 = vcmp.eq.s32.totalorder %v16790_v20, 2  ;;  %v3276_v11 = vand.u32 65535, %v3246_v7  ;;  %vm6140_vm3 = vcmp.eq.s32.totalorder %v16790_v20, 0 }
 0x561   : > { %v1311_v2 = vsub.s32 32, %v1310_v6  ;;  %v1315_v42 = vsub.s32 4294967266, %v1310_v6  ;;  %v3239_v53 = vsel %vm3235_vm0, %v3219_v13, %v16748_v24  ;;  %v3241_v8 = vsel %vm3237_vm14, %v16732_v22, %v3240_v46 }
 0x562   : > { %v16821_v47 = vmul.f32 %v1188_v50, %v16746_v15  ;;  %v1197_v9 = vxor.u32 2147483648, %v16805_v16  ;;  %v6292_v19 = vadd.s32 3, %v1328_v57  ;;  %v3271_v12 = vadd.s32 %v3269_v39, %v3267_v40 }
 0x563   : > { %v1312_v30 = vshll.u32 %v1303_v59, %v1310_v6  ;;  %v1313_v25 = vshrl.u32 %v1295_v56, %v1311_v2  ;;  %v1316_v29 = vadd.s32 127, %v1315_v42  ;;  %v3279_v4 = vmul.u32 %v3277_v3, %v16761_v52  ;;  %v18131_v2 = vld [vmem:[#allocation90_spill] sm:$0xff] }
 0x564   : > { %vm1196_vm2 = vcmp.eq.s32.totalorder %v16799_v33, 2  ;;  %v16828_v24 = vsel %vm3236_vm15, %v3239_v53, %v3241_v8  ;;  %v3261_v22 = vshrl.u32 %v16774_v43, 16  ;;  %v3280_v15 = vmul.u32 %v3276_v11, %v16771_v35  ;;  %v18132_v53 = vld [vmem:[#allocation80_spill] sm:$0xff] }
 0x565   : > { %v1314_v60 = vor.u32 %v1313_v25, %v1312_v30  ;;  %v1317_v0 = vshll.u32 %v1316_v29, 23  ;;  %v16832_v37 = vand.u32 3, %v1328_v57  ;;  %v3263_v59 = vshrl.u32 %v16780_v54, 16  ;;  %v18130_v54 = vld [vmem:[#allocation9_spill] sm:$0xff] }
 0x566   : > { %v1194_v7 = vxor.u32 2147483648, %v16821_v47  ;;  %v3272_v14 = vadd.s32 %v3271_v12, %v3261_v22  ;;  %v3278_v1 = vmul.u32 %v3276_v11, %v16761_v52  ;;  %v3282_v28 = vshll.u32 %v3279_v4, 16 }
 0x567   : > { %v1318_v32 = vor.u32 4788187, %v1317_v0  ;;  %v16840_v45 = vsel %vm6143_vm12, %v1197_v9, %v16821_v47  ;;  %v16842_v43 = vand.u32 3, %v6292_v19  ;;  %v3281_v23 = vmul.u32 %v3277_v3, %v16771_v35 }
 0x568   : > { %v3284_v27 = vshll.u32 %v3280_v15, 16  ;;  %vm3286_vm8 = vc.u32 %v3278_v1, %v3282_v28  ;;  %v3288_v63 = vadd.s32 %v3282_v28, %v3278_v1  ;;  %v3357_v21 = vand.u32 2147483647, %v18130_v54 }
 0x569   : > { %v1319_v36 = vand.u32 2147483647, %v1318_v32  ;;  %v1321_v13 = vcvt.s32.f32 %v1314_v60  ;;  %vm1193_vm5 = vcmp.eq.s32.totalorder %v16799_v33, 0  ;;  %v1198_v52 = vsel %vm1196_vm2, %v1197_v9, %v16821_v47 }
 0x56a   : > { %v3287_v46 = vsel %vm3286_vm8, 1, %v17760_v18  ;;  %v6142_v50 = vsel %vm6140_vm3, %v16805_v16, %v1194_v7  ;;  %v16854_v35 = vadd.s32 %v3272_v14, %v3263_v59  ;;  %vm3290_vm14 = vc.u32 %v3288_v63, %v3284_v27 }
 0x56b   : > { %v3289_v40 = vadd.s32 %v3287_v46, %v3281_v23  ;;  %v1322_v57 = vmul.f32 %v1321_v13, %v1319_v36  ;;  %v3283_v39 = vshrl.u32 %v3279_v4, 16  ;;  %v3291_v3 = vsel %vm3290_vm14, 1, %v17760_v18 }
 0x56c   : > { %v3364_v56 = vand.u32 8388607, %v3357_v21  ;;  %v3285_v6 = vshrl.u32 %v3280_v15, 16  ;;  %v3374_v42 = vshll.u32 %v17757_v31, %v18131_v2  ;;  %v3375_v8 = vshrl.u32 %v17793_v10, %v18132_v53 }
 0x56d   : > { %v3293_v11 = vadd.s32 %v3291_v3, %v3289_v40  ;;  %v1323_v47 = vxor.u32 2147483648, %v1322_v57  ;;  %vm6139_vm13 = vcmp.lt.s32.totalorder %v16790_v20, 2  ;;  %v16864_v9 = vadd.s32 %v3288_v63, %v3284_v27  ;;  %v18134_v63 = vld [vmem:[#allocation98_spill] sm:$0xff] }
 0x56e   : > { %v3377_v19 = vshll.u32 %v17793_v10, %v18131_v2  ;;  %v3378_v12 = vshrl.u32 %v17794_v51, %v18132_v53  ;;  %vm1192_vm0 = vcmp.lt.s32.totalorder %v16799_v33, 2  ;;  %v16871_v25 = vor.u32 %v3375_v8, %v3374_v42 }
 0x56f   : > { %v3294_v30 = vadd.s32 %v3293_v11, %v3283_v39  ;;  %v3380_v29 = vshll.u32 %v17794_v51, %v18131_v2  ;;  %v3381_v4 = vshrl.u32 %v17687_v58, %v18132_v53  ;;  %v1324_v22 = vsel %vm1203_vm10, %v1323_v47, %v1322_v57 }
 0x570   : > { %v3365_v15 = vor.u32 8388608, %v3364_v56  ;;  %v16879_v60 = vor.u32 %v3378_v12, %v3377_v19  ;;  %vm3389_vm15 = vcmp.lt.s32.totalorder %v18125_v49, 1  ;;  %vm1190_vm9 = vweird.f32 %v18107_v34 }
 0x571   : > { %v16886_v0 = vsel %vm16785_vm7, %v18121_v38, %v1324_v22  ;;  %v3295_v59 = vadd.s32 %v3294_v30, %v3285_v6  ;;  %v16888_v14 = vor.u32 %v3381_v4, %v3380_v29  ;;  %vm3391_vm4 = vcmp.lt.s32.totalorder %v18125_v49, 3 }
 0x572   : > { %v1329_v1 = vmul.f32 %v16886_v0, %v16886_v0  ;;  %vm3298_vm10 = vc.u32 %v16854_v35, %v16864_v9  ;;  %v3397_v28 = vsel %vm3389_vm15, %v16871_v25, %v16879_v60  ;;  %v3403_v32 = vsel %vm3391_vm4, %v18133_v41, %v16696_v62 }
 0x573   : > { %v1195_v23 = vsel %vm1193_vm5, %v16805_v16, %v1194_v7  ;;  %v3299_v27 = vadd.s32 1, %v3295_v59  ;;  %v3399_v36 = vsel %vm3391_vm4, %v16888_v14, %v18134_v63  ;;  %v3401_v13 = vsel %vm3389_vm15, %v16879_v60, %v16888_v14 }
 0x574   : > { %v1330_v46 = vmul.f32 -0.001358992, %v1329_v1  ;;  %v1337_v40 = vmul.f32 -0.00019511016, %v1329_v1  ;;  %v3296_v62 = vmul.u32 %v16740_v44, %v16828_v24  ;;  %vm3390_vm7 = vcmp.lt.s32.totalorder %v18125_v49, 2 }
 0x575   : > { %v3300_v57 = vsel %vm3298_vm10, %v3299_v27, %v3295_v59  ;;  %v3400_v16 = vsel %vm3390_vm7, %v3397_v28, %v3399_v36  ;;  %v3404_v7 = vsel %vm3390_vm7, %v3401_v13, %v3403_v32  ;;  %v16921_v39 = vshll.u32 %v3365_v15, 8 }
 0x576   : > { %v1331_v3 = vadd.f32 0.041655596, %v1330_v46  ;;  %v1338_v56 = vadd.f32 0.008332121, %v1337_v40  ;;  %v3301_v6 = vadd.s32 %v3300_v57, %v3296_v62  ;;  %v3408_v11 = vand.u32 65535, %v3404_v7 }
 0x577   : > { %v6146_v2 = vsel %vm6139_vm13, %v6142_v50, %v16840_v45  ;;  %v3406_v44 = vand.u32 65535, %v16921_v39  ;;  %v3407_v24 = vshrl.u32 %v16921_v39, 16  ;;  %v3409_v42 = vshrl.u32 %v3404_v7, 16 }
 0x578   : > { %v1332_v8 = vmul.f32 %v1331_v3, %v1329_v1  ;;  %v1339_v47 = vmul.f32 %v1338_v56, %v1329_v1  ;;  %v1199_v19 = vsel %vm1192_vm0, %v1195_v23, %v1198_v52  ;;  %v3302_v12 = vadd.s32 536870912, %v3301_v6 }
 0x579   : > { %vm6298_vm11 = vcmp.eq.s32.totalorder %v16842_v43, 2  ;;  %v3411_v30 = vmul.u32 %v3409_v42, %v3406_v44  ;;  %v16931_v29 = vmul.u32 %v3408_v11, %v3407_v24  ;;  %v3431_v4 = vshrl.u32 %v3400_v16, 16 }
 0x57a   : > { %v1333_v22 = vadd.f32 -0.4999988, %v1332_v8  ;;  %v1340_v20 = vadd.f32 -0.16666654, %v1339_v47  ;;  %v16935_v45 = vsel %vm1190_vm9, nan, %v6146_v2  ;;  %vm1350_vm1 = vcmp.eq.s32.totalorder %v16832_v37, 2 }
 0x57b   : > { %v16938_v50 = vshrl.u32 %v3302_v12, 30  ;;  %vm6295_vm12 = vcmp.eq.s32.totalorder %v16842_v43, 0  ;;  %v1200_v33 = vsel %vm1190_vm9, nan, %v1199_v19  ;;  %vm1347_vm3 = vcmp.eq.s32.totalorder %v16832_v37, 0 }
 0x57c   : > { %v3410_v52 = vmul.u32 %v3408_v11, %v3406_v44  ;;  %v3414_v15 = vshll.u32 %v3411_v30, 16  ;;  %v3430_v59 = vand.u32 65535, %v3400_v16  ;;  %v1334_v28 = vmul.f32 %v1333_v22, %v1329_v1 }
 0x57d   : > { %v1341_v41 = vmul.f32 %v1340_v20, %v1329_v1  ;;  %vm6294_vm2 = vcmp.lt.s32.totalorder %v16842_v43, 2  ;;  %vm1346_vm8 = vcmp.lt.s32.totalorder %v16832_v37, 2  ;;  %v3304_v32 = vshll.u32 %v16938_v50, 30 }
 0x57e   : > { %v3373_v23 = vshrl.u32 %v17757_v31, %v18132_v53  ;;  %vm1344_vm5 = vweird.f32 %v18121_v38  ;;  %v3416_v34 = vshll.u32 %v16931_v29, 16  ;;  %vm3418_vm14 = vc.u32 %v3410_v52, %v3414_v15 }
 0x57f   : > { %v3420_v27 = vadd.s32 %v3414_v15, %v3410_v52  ;;  %v16951_v63 = vmul.u32 %v3431_v4, %v3406_v44  ;;  %v1335_v36 = vadd.f32 1.0, %v1334_v28  ;;  %v1342_v13 = vadd.f32 1.0, %v1341_v41 }
 0x580   : > { %v3305_v1 = vsub.s32 %v3301_v6, %v3304_v32  ;;  %v3413_v46 = vmul.u32 %v3409_v42, %v3407_v24  ;;  %v3419_v40 = vsel %vm3418_vm14, 1, %v17760_v18  ;;  %v3432_v62 = vmul.u32 %v3430_v59, %v3406_v44 }
 0x581   : > { %vm3422_vm13 = vc.u32 %v3420_v27, %v3416_v34  ;;  %v3434_v57 = vmul.u32 %v3430_v59, %v3407_v24  ;;  %v1343_v16 = vmul.f32 %v1342_v13, %v16886_v0  ;;  %v1351_v53 = vxor.u32 2147483648, %v1335_v36 }
 0x582   : > { %vm3306_vm0 = vcmp.lt.s32.totalorder %v3305_v1, 0  ;;  %v3307_v7 = vsub.s32 0, %v3305_v1  ;;  %v3415_v3 = vshrl.u32 %v3411_v30, 16  ;;  %v3421_v56 = vadd.s32 %v3419_v40, %v3413_v46 }
 0x583   : > { %v3423_v11 = vsel %vm3422_vm13, 1, %v17760_v18  ;;  %v3436_v2 = vshll.u32 %v16951_v63, 16  ;;  %v1348_v8 = vxor.u32 2147483648, %v1343_v16  ;;  %v6300_v6 = vsel %vm6298_vm11, %v1351_v53, %v1343_v16 }
 0x584   : > { %v3308_v42 = vsel %vm3306_vm0, %v3307_v7, %v3305_v1  ;;  %v3435_v47 = vmul.u32 %v3431_v4, %v3407_v24  ;;  %v1352_v44 = vsel %vm1350_vm1, %v1351_v53, %v1343_v16  ;;  %v3425_v0 = vadd.s32 %v3423_v11, %v3421_v56  ;;  %v18137_v56 = vld [vmem:[#allocation12_spill] sm:$0xff] }
 0x585   : > { %v3309_v19 = vclz %v3308_v42  ;;  %v3438_v12 = vshll.u32 %v3434_v57, 16  ;;  %v6297_v30 = vsel %vm6295_vm12, %v1335_v36, %v1348_v8  ;;  %v1349_v22 = vsel %vm1347_vm3, %v1335_v36, %v1348_v8 }
 0x586   : > { %vm3440_vm9 = vc.u32 %v3432_v62, %v3436_v2  ;;  %v3442_v20 = vadd.s32 %v3436_v2, %v3432_v62  ;;  %v6301_v52 = vsel %vm6294_vm2, %v6297_v30, %v6300_v6  ;;  %v1353_v24 = vsel %vm1346_vm8, %v1349_v22, %v1352_v44  ;;  %v18139_v2 = vld [vmem:[#allocation28_spill] sm:$0xff]  ;;  %v18142_v30 = vld [vmem:[#allocation46_spill] sm:$0xff] }
 0x587   : > { %v10930_v4 = vadd.s32 4294967294, %v3309_v19  ;;  %v3426_v15 = vadd.s32 %v3425_v0, %v3415_v3  ;;  %v6302_v59 = vsel %vm1344_vm5, nan, %v6301_v52  ;;  %v1354_v28 = vsel %vm1344_vm5, nan, %v1353_v24  ;;  %v18135_v3 = vld [vmem:[#allocation45_spill] sm:$0xff]  ;;  %v18141_v19 = vld [vmem:[#allocation32_spill] sm:$0xff] }
 0x588   : > { %v3441_v41 = vsel %vm3440_vm9, 1, %v17760_v18  ;;  %vm3444_vm10 = vc.u32 %v3442_v20, %v3438_v12  ;;  %v10644_v32 = vpack.c.bf16 %v6302_v59, %v16935_v45  ;;  %v5668_v34 = vpack.c.bf16 %v1354_v28, %v1200_v33 }
 0x589   : > { %vm10931_vm11 = vcmp.lt.s32.totalorder %v10930_v4, 0  ;;  %v3394_v37 = vsel %vm3392_vm6, %v16888_v14, 2102212464  ;;  %v3417_v27 = vshrl.u32 %v16931_v29, 16  ;;  %v3443_v36 = vadd.s32 %v3441_v41, %v3435_v47 }
 0x58a   : > { %v3312_v43 = vsel %vm10931_vm11, 0, %v10930_v4  ;;  %v3445_v13 = vsel %vm3444_vm10, 1, %v17760_v18  ;;  %10679 = vmatpush.bf16.msra.mxu0 %v10644_v32  ;;  %10705 = vmatpush.bf16.msra.mxu2 %v5668_v34  ;;  %v3297_v38 = vadd.s32 %v16864_v9, %v16854_v35  ;;  %v3393_v45 = vsel %vm3389_vm15, %v3373_v23, %v16871_v25  ;;  %v18136_v9 = vld [vmem:[#allocation16_spill] sm:$0xff] }
 0x58b   : > { %v3313_v46 = vsub.s32 32, %v3312_v43  ;;  %v3317_v40 = vsub.s32 4294967266, %v3312_v43  ;;  %v3395_v14 = vsel %vm3391_vm4, %v16879_v60, %v3394_v37  ;;  %v16988_v33 = vadd.s32 %v3426_v15, %v3417_v27  ;;  %v18143_v27 = vld [vmem:[#allocation89_spill] sm:$0xff] }
 0x58c   : > { %v3437_v29 = vshrl.u32 %v16951_v63, 16  ;;  %v3447_v62 = vadd.s32 %v3445_v13, %v3443_v36  ;;  %v3314_v16 = vshll.u32 %v3305_v1, %v3312_v43  ;;  %v739_v35 = vand.u32 2147483647, %v18135_v3 }
 0x58d   : > { %v3315_v53 = vshrl.u32 %v3297_v38, %v3313_v46  ;;  %v3318_v7 = vadd.s32 127, %v3317_v40  ;;  %v18138_v11 = vor.u32 %v18136_v9, %v18137_v56  ;;  %vm18140_vm6 = vcmp.lt.s32.totalorder %v18139_v2, 4 }
 0x58e   : > { %v16998_v23 = vshrl.u32 %v16711_v55, 5  ;;  %v3439_v60 = vshrl.u32 %v3434_v57, 16  ;;  %v3448_v8 = vadd.s32 %v3447_v62, %v3437_v29  ;;  %v17000_v63 = vadd.s32 %v3442_v20, %v3438_v12  ;;  %vm18147_vm14 = vmmov %vm18140_vm6 }
 0x58f   : > { %v784_v25 = vsel %vm18140_vm6, %v18138_v11, 1326507024  ;;  %v3316_v6 = vor.u32 %v3315_v53, %v3314_v16  ;;  %v3319_v42 = vshll.u32 %v3318_v7, 23  ;;  %v746_v1 = vand.u32 8388607, %v739_v35 }
 0x590   : > { %v3396_v47 = vsel %vm3390_vm7, %v3393_v45, %v3395_v14  ;;  %v3449_v44 = vadd.s32 %v3448_v8, %v3439_v60  ;;  %v759_v0 = vshll.u32 %v17793_v10, %v18141_v19  ;;  %v760_v55 = vshrl.u32 %v17794_v51, %v18142_v30 }
 0x591   : > { %v17011_v57 = vsub.s32 32, %v16764_v61  ;;  %v3320_v22 = vor.u32 4788187, %v3319_v42  ;;  %vm3452_vm15 = vc.u32 %v16988_v33, %v17000_v63  ;;  %v747_v12 = vor.u32 8388608, %v746_v1 }
 0x592   : > { %v3453_v20 = vadd.s32 1, %v3449_v44  ;;  %v17015_v52 = vor.u32 %v760_v55, %v759_v0  ;;  %v762_v49 = vshll.u32 %v17794_v51, %v18141_v19  ;;  %v763_v24 = vshrl.u32 %v17687_v58, %v18142_v30 }
 0x593   : > { %v3321_v4 = vand.u32 2147483647, %v3320_v22  ;;  %v3323_v15 = vcvt.s32.f32 %v3316_v6  ;;  %v3450_v59 = vmul.u32 %v16921_v39, %v3396_v47  ;;  %v757_v28 = vshrl.u32 %v17793_v10, %v18142_v30  ;;  %v18146_v6 = vld [vmem:[#allocation86_spill] sm:$0xff] }
 0x594   : > { %v3454_v41 = vsel %vm3452_vm15, %v3453_v20, %v3449_v44  ;;  %v756_v32 = vshll.u32 %v17757_v31, %v18141_v19  ;;  %v764_v34 = vor.u32 %v763_v24, %v762_v49  ;;  %vm773_vm4 = vcmp.lt.s32.totalorder %v18139_v2, 3 }
 0x595   : > { %v3324_v37 = vmul.f32 %v3323_v15, %v3321_v4  ;;  %v3455_v43 = vadd.s32 %v3454_v41, %v3450_v59  ;;  %vm771_vm7 = vcmp.lt.s32.totalorder %v18139_v2, 1  ;;  %v785_v36 = vsel %vm773_vm4, %v18143_v27, %v784_v25 }
 0x596   : > { %v919_v39 = vshll.u32 %v17687_v58, %v16764_v61  ;;  %v920_v13 = vshrl.u32 %v17701_v48, %v17011_v57  ;;  %v783_v38 = vsel %vm771_vm7, %v17015_v52, %v764_v34  ;;  %v17038_v46 = vshll.u32 %v747_v12, 8 }
 0x597   : > { %v3325_v40 = vxor.u32 2147483648, %v3324_v37  ;;  %v3456_v45 = vadd.s32 536870912, %v3455_v43  ;;  %v758_v14 = vor.u32 %v757_v28, %v756_v32  ;;  %vm772_vm1 = vcmp.lt.s32.totalorder %v18139_v2, 2 }
 0x598   : > { %v922_v29 = vshll.u32 %v17701_v48, %v16764_v61  ;;  %v923_v62 = vshrl.u32 %v17979_v5, %v17011_v57  ;;  %vm3205_vm12 = vcmp.lt.s32.totalorder %v15894_v26, 0  ;;  %v786_v16 = vsel %vm772_vm1, %v783_v38, %v785_v36 }
 0x599   : > { %vm17050_vm3 = vcmp.le.f32.partialorder %v3203_v17, 0.7853982  ;;  %v3326_v7 = vsel %vm3205_vm12, %v3325_v40, %v3324_v37  ;;  %v17056_v9 = vshrl.u32 %v3456_v45, 30  ;;  %v791_v48 = vshrl.u32 %v786_v16, 16 }
 0x59a   : > { %v17058_v56 = vor.u32 %v920_v13, %v919_v39  ;;  %v17063_v5 = vsel %vm17050_vm3, %v15894_v26, %v3326_v7  ;;  %v17066_v11 = vand.u32 65535, %v17038_v46  ;;  %v790_v17 = vand.u32 65535, %v786_v16 }
 0x59b   : > { %v3331_v25 = vmul.f32 %v17063_v5, %v17063_v5  ;;  %v3458_v60 = vshll.u32 %v17056_v9, 30  ;;  %v779_v8 = vsel %vm771_vm7, %v758_v14, %v17015_v52  ;;  %v781_v42 = vsel %vm773_vm4, %v764_v34, %v18146_v6 }
 0x59c   : > { %v924_v1 = vor.u32 %v923_v62, %v922_v29  ;;  %v3327_v47 = vsub.s32 4, %v16938_v50  ;;  %v17079_v44 = vshrl.u32 %v17038_v46, 16  ;;  %v17082_v19 = vmul.u32 %v791_v48, %v17066_v11 }
 0x59d   : > { %vm928_vm2 = vcmp.lt.s32.totalorder %v16998_v23, 4  ;;  %v3332_v0 = vmul.f32 -0.001358992, %v3331_v25  ;;  %v3339_v55 = vmul.f32 -0.00019511016, %v3331_v25  ;;  %v3459_v22 = vsub.s32 %v3455_v43, %v3458_v60 }
 0x59e   : > { %v17087_v12 = vsel %vm772_vm1, %v779_v8, %v781_v42  ;;  %v792_v20 = vmul.u32 %v790_v17, %v17066_v11  ;;  %v17091_v49 = vmul.u32 %v790_v17, %v17079_v44  ;;  %v796_v24 = vshll.u32 %v17082_v19, 16 }
 0x59f   : > { %v3333_v4 = vadd.f32 0.041655596, %v3332_v0  ;;  %v3340_v15 = vadd.f32 0.008332121, %v3339_v55  ;;  %vm3460_vm8 = vcmp.lt.s32.totalorder %v3459_v22, 0  ;;  %v3461_v59 = vsub.s32 0, %v3459_v22 }
 0x5a0   : > { %v17097_v28 = vsel %vm928_vm2, %v17058_v56, 920167782  ;;  %v17101_v41 = vsel %vm928_vm2, %v924_v1, 1326507024  ;;  %v3328_v32 = vsel %vm3205_vm12, %v3327_v47, %v16938_v50  ;;  %vm800_vm5 = vc.u32 %v792_v20, %v796_v24 }
 0x5a1   : > { %v3334_v37 = vmul.f32 %v3333_v4, %v3331_v25  ;;  %v3341_v43 = vmul.f32 %v3340_v15, %v3331_v25  ;;  %v3462_v27 = vsel %vm3460_vm8, %v3461_v59, %v3459_v22  ;;  %v776_v36 = vsel %vm18147_vm14, %v764_v34, 2102212464 }
 0x5a2   : > { %v3463_v39 = vclz %v3462_v27  ;;  %v755_v13 = vshrl.u32 %v17757_v31, %v18142_v30  ;;  %v801_v38 = vsel %vm800_vm5, 1, %v17760_v18  ;;  %v813_v40 = vshrl.u32 %v17087_v12, 16 }
 0x5a3   : > { %v3342_v45 = vadd.f32 -0.16666654, %v3341_v43  ;;  %v795_v29 = vmul.u32 %v791_v48, %v17079_v44  ;;  %v798_v50 = vshll.u32 %v17091_v49, 16  ;;  %v802_v62 = vadd.s32 %v796_v24, %v792_v20 }
 0x5a4   : > { %v10933_v16 = vadd.s32 4294967294, %v3463_v39  ;;  %v3481_v7 = vsub.s32 4, %v17056_v9  ;;  %v775_v34 = vsel %vm771_vm7, %v755_v13, %v758_v14  ;;  %v777_v30 = vsel %vm773_vm4, %v17015_v52, %v776_v36 }
 0x5a5   : > { %v3335_v17 = vadd.f32 -0.4999988, %v3334_v37  ;;  %v3343_v60 = vmul.f32 %v3342_v45, %v3331_v25  ;;  %v803_v8 = vadd.s32 %v801_v38, %v795_v29  ;;  %vm804_vm13 = vc.u32 %v802_v62, %v798_v50 }
 0x5a6   : > { %vm3359_vm0 = vcmp.lt.s32.totalorder %v18130_v54, 0  ;;  %vm10934_vm9 = vcmp.lt.s32.totalorder %v10933_v16, 0  ;;  %v805_v48 = vsel %vm804_vm13, 1, %v17760_v18  ;;  %v815_v6 = vmul.u32 %v813_v40, %v17066_v11 }
 0x5a7   : > { %v3330_v42 = vsel %vm17050_vm3, 0, %v3328_v32  ;;  %v3344_v1 = vadd.f32 1.0, %v3343_v60  ;;  %v3466_v14 = vsel %vm10934_vm9, 0, %v10933_v16  ;;  %v812_v47 = vand.u32 65535, %v17087_v12 }
 0x5a8   : > { %v3451_v52 = vadd.s32 %v17000_v63, %v16988_v33  ;;  %v3467_v0 = vsub.s32 32, %v3466_v14  ;;  %v3471_v55 = vsub.s32 4294967266, %v3466_v14  ;;  %v17130_v20 = vsel %vm772_vm1, %v775_v34, %v777_v30 }
 0x5a9   : > { %v3336_v24 = vmul.f32 %v3335_v17, %v3331_v25  ;;  %v3468_v4 = vshll.u32 %v3459_v22, %v3466_v14  ;;  %v3482_v53 = vsel %vm3359_vm0, %v3481_v7, %v17056_v9  ;;  %v807_v15 = vadd.s32 %v805_v48, %v803_v8 }
 0x5aa   : > { %v3469_v59 = vshrl.u32 %v3451_v52, %v3467_v0  ;;  %v3472_v32 = vadd.s32 127, %v3471_v55  ;;  %v8307_v37 = vadd.s32 3, %v3330_v42  ;;  %v818_v12 = vshll.u32 %v815_v6, 16 }
 0x5ab   : > { %v17136_v43 = vmul.f32 %v3344_v1, %v17063_v5  ;;  %vm17140_vm10 = vcmp.le.f32.partialorder %v3357_v21, 0.7853982  ;;  %v814_v2 = vmul.u32 %v812_v47, %v17066_v11  ;;  %v816_v63 = vmul.u32 %v812_v47, %v17079_v44 }
 0x5ac   : > { %v3470_v25 = vor.u32 %v3469_v59, %v3468_v4  ;;  %v3473_v9 = vshll.u32 %v3472_v32, 23  ;;  %v797_v22 = vshrl.u32 %v17082_v19, 16  ;;  %v832_v27 = vmul.u32 %v17038_v46, %v17130_v20 }
 0x5ad   : > { %v17149_v36 = vadd.f32 1.0, %v3336_v24  ;;  %v3484_v5 = vsel %vm17140_vm10, 0, %v3482_v53  ;;  %v817_v21 = vmul.u32 %v813_v40, %v17079_v44  ;;  %vm822_vm11 = vc.u32 %v814_v2, %v818_v12  ;;  %v18150_v44 = vld [vmem:[#allocation93_spill] sm:$0xff] }
 0x5ae   : > { %v3474_v39 = vor.u32 4788187, %v3473_v9  ;;  %v8308_v13 = vand.u32 3, %v8307_v37  ;;  %v808_v11 = vadd.s32 %v807_v15, %v797_v22  ;;  %v823_v38 = vsel %vm822_vm11, 1, %v17760_v18 }
 0x5af   : > { %v3350_v45 = vxor.u32 2147483648, %v17136_v43  ;;  %v820_v29 = vshll.u32 %v816_v63, 16  ;;  %v824_v19 = vadd.s32 %v818_v12, %v814_v2  ;;  %v825_v50 = vadd.s32 %v823_v38, %v817_v21 }
 0x5b0   : > { %v3475_v62 = vand.u32 2147483647, %v3474_v39  ;;  %v3477_v16 = vcvt.s32.f32 %v3470_v25  ;;  %v8462_v7 = vadd.s32 3, %v3484_v5  ;;  %v799_v34 = vshrl.u32 %v17091_v49, 16 }
 0x5b1   : > { %v3353_v30 = vxor.u32 2147483648, %v17149_v36  ;;  %v17158_v17 = vand.u32 3, %v3484_v5  ;;  %vm826_vm6 = vc.u32 %v824_v19, %v820_v29  ;;  %v893_v40 = vand.u32 2147483647, %v18150_v44 }
 0x5b2   : > { %v3478_v60 = vmul.f32 %v3477_v16, %v3475_v62  ;;  %vm8310_vm15 = vcmp.eq.s32.totalorder %v8308_v13, 0  ;;  %v17161_v8 = vadd.s32 %v808_v11, %v799_v34  ;;  %v827_v48 = vsel %vm826_vm6, 1, %v17760_v18 }
 0x5b3   : > { %v8312_v1 = vsel %vm8310_vm15, %v17149_v36, %v3350_v45  ;;  %v3347_v14 = vand.u32 3, %v3330_v42  ;;  %v819_v47 = vshrl.u32 %v815_v6, 16  ;;  %v829_v52 = vadd.s32 %v827_v48, %v825_v50 }
 0x5b4   : > { %v3479_v0 = vxor.u32 2147483648, %v3478_v60  ;;  %vm8309_vm4 = vcmp.lt.s32.totalorder %v8308_v13, 2  ;;  %vm8313_vm7 = vcmp.eq.s32.totalorder %v8308_v13, 2  ;;  %v821_v49 = vshrl.u32 %v816_v63, 16 }
 0x5b5   : > { %v8315_v55 = vsel %vm8313_vm7, %v3353_v30, %v17136_v43  ;;  %v17166_v24 = vadd.s32 %v824_v19, %v820_v29  ;;  %v830_v4 = vadd.s32 %v829_v52, %v819_v47  ;;  %v900_v53 = vand.u32 8388607, %v893_v40 }
 0x5b6   : > { %v3480_v15 = vsel %vm3359_vm0, %v3479_v0, %v3478_v60  ;;  %v8316_v59 = vsel %vm8309_vm4, %v8312_v1, %v8315_v55  ;;  %v17172_v32 = vand.u32 3, %v8462_v7  ;;  %v911_v6 = vshrl.u32 %v17793_v10, %v17011_v57 }
 0x5b7   : > { %v17179_v42 = vsel %vm17140_vm10, %v18130_v54, %v3480_v15  ;;  %vm3348_vm1 = vcmp.lt.s32.totalorder %v3347_v14, 2  ;;  %vm3349_vm12 = vcmp.eq.s32.totalorder %v3347_v14, 0  ;;  %v831_v37 = vadd.s32 %v830_v4, %v821_v49 }
 0x5b8   : > { %vm834_vm3 = vc.u32 %v17161_v8, %v17166_v24  ;;  %v3485_v12 = vmul.f32 %v17179_v42, %v17179_v42  ;;  %v910_v2 = vshll.u32 %v17757_v31, %v16764_v61  ;;  %v913_v63 = vshll.u32 %v17793_v10, %v16764_v61 }
 0x5b9   : > { %v914_v33 = vshrl.u32 %v17794_v51, %v17011_v57  ;;  %v835_v25 = vadd.s32 1, %v831_v37  ;;  %v901_v9 = vor.u32 8388608, %v900_v53  ;;  %v916_v22 = vshll.u32 %v17794_v51, %v16764_v61 }
 0x5ba   : > { %v917_v5 = vshrl.u32 %v17687_v58, %v17011_v57  ;;  %vm3346_vm8 = vweird.f32 %v15894_v26  ;;  %v3486_v21 = vmul.f32 -0.001358992, %v3485_v12  ;;  %v3493_v39 = vmul.f32 -0.00019511016, %v3485_v12 }
 0x5bb   : > { %v17196_v13 = vor.u32 %v911_v6, %v910_v2  ;;  %v17198_v11 = vor.u32 %v914_v33, %v913_v63  ;;  %v836_v10 = vsel %vm834_vm3, %v835_v25, %v831_v37  ;;  %vm925_vm5 = vcmp.lt.s32.totalorder %v16998_v23, 1 }
 0x5bc   : > { %v17200_v38 = vor.u32 %v917_v5, %v916_v22  ;;  %vm927_vm14 = vcmp.lt.s32.totalorder %v16998_v23, 3  ;;  %v3487_v29 = vadd.f32 0.041655596, %v3486_v21  ;;  %v3494_v51 = vadd.f32 0.008332121, %v3493_v39 }
 0x5bd   : > { %v837_v58 = vadd.s32 %v836_v10, %v832_v27  ;;  %v939_v61 = vsel %vm927_vm14, %v17058_v56, %v17101_v41  ;;  %v3351_v19 = vsel %vm3349_vm12, %v17149_v36, %v3350_v45  ;;  %vm3352_vm13 = vcmp.eq.s32.totalorder %v3347_v14, 2 }
 0x5be   : > { %v937_v50 = vsel %vm925_vm5, %v17198_v11, %v17200_v38  ;;  %v17217_v62 = vshll.u32 %v901_v9, 8  ;;  %v3488_v16 = vmul.f32 %v3487_v29, %v3485_v12  ;;  %v3495_v7 = vmul.f32 %v3494_v51, %v3485_v12 }
 0x5bf   : > { %v838_v46 = vadd.s32 536870912, %v837_v58  ;;  %vm926_vm0 = vcmp.lt.s32.totalorder %v16998_v23, 2  ;;  %v3354_v20 = vsel %vm3352_vm13, %v3353_v30, %v17136_v43  ;;  %vm3506_vm9 = vcmp.eq.s32.totalorder %v17158_v17, 2 }
 0x5c0   : > { %v933_v56 = vsel %vm925_vm5, %v17196_v13, %v17198_v11  ;;  %v935_v41 = vsel %vm927_vm14, %v17200_v38, %v17097_v28  ;;  %v940_v27 = vsel %vm926_vm0, %v937_v50, %v939_v61  ;;  %v3489_v36 = vadd.f32 -0.4999988, %v3488_v16 }
 0x5c1   : > { %v3496_v45 = vadd.f32 -0.16666654, %v3495_v7  ;;  %v3355_v34 = vsel %vm3348_vm1, %v3351_v19, %v3354_v20  ;;  %v17233_v43 = vshrl.u32 %v838_v46, 30  ;;  %vm8465_vm10 = vcmp.eq.s32.totalorder %v17172_v32, 0  ;;  %v10666_v46 = vld [vmem:[%s17272_s24 + $0x8] sm:$0xff] }
 0x5c2   : > { %vm3503_vm11 = vcmp.eq.s32.totalorder %v17158_v17, 0  ;;  %v942_v30 = vand.u32 65535, %v17217_v62  ;;  %v17239_v60 = vshrl.u32 %v17217_v62, 16  ;;  %v944_v48 = vand.u32 65535, %v940_v27  ;;  %v10670_v20 = vld [vmem:[%s17277_s30 + $0x8] sm:$0xff] }
 0x5c3   : > { %v945_v28 = vshrl.u32 %v940_v27, 16  ;;  %v3490_v1 = vmul.f32 %v3489_v36, %v3485_v12  ;;  %v3497_v47 = vmul.f32 %v3496_v45, %v3485_v12  ;;  %vm8464_vm6 = vcmp.lt.s32.totalorder %v17172_v32, 2 }
 0x5c4   : > { %vm3502_vm15 = vcmp.lt.s32.totalorder %v17158_v17, 2  ;;  %v840_v14 = vshll.u32 %v17233_v43, 30  ;;  %v936_v52 = vsel %vm926_vm0, %v933_v56, %v935_v41  ;;  %v8317_v0 = vsel %vm3346_vm8, nan, %v8316_v59 }
 0x5c5   : > { %vm8468_vm4 = vcmp.eq.s32.totalorder %v17172_v32, 2  ;;  %v17249_v49 = vmul.u32 %v945_v28, %v942_v30  ;;  %v17252_v55 = vmul.u32 %v944_v48, %v17239_v60  ;;  %v3491_v4 = vadd.f32 1.0, %v3490_v1 }
 0x5c6   : > { %v3498_v53 = vadd.f32 1.0, %v3497_v47  ;;  %v3356_v15 = vsel %vm3346_vm8, nan, %v3355_v34  ;;  %v17256_v6 = vsub.s32 %v837_v58, %v840_v14  ;;  %v946_v37 = vmul.u32 %v944_v48, %v942_v30 }
 0x5c7   : > { %v950_v12 = vshll.u32 %v17249_v49, 16  ;;  %v966_v2 = vand.u32 65535, %v936_v52  ;;  %v967_v59 = vshrl.u32 %v936_v52, 16  ;;  %v3507_v33 = vxor.u32 2147483648, %v3491_v4 }
 0x5c8   : > { %v3499_v63 = vmul.f32 %v3498_v53, %v17179_v42  ;;  %vm842_vm7 = vcmp.lt.s32.totalorder %v17256_v6, 0  ;;  %v843_v25 = vsub.s32 0, %v17256_v6  ;;  %v949_v9 = vmul.u32 %v945_v28, %v17239_v60 }
 0x5c9   : > { %v952_v26 = vshll.u32 %v17252_v55, 16  ;;  %vm954_vm1 = vc.u32 %v946_v37, %v950_v12  ;;  %v956_v22 = vadd.s32 %v950_v12, %v946_v37  ;;  %v969_v51 = vmul.u32 %v967_v59, %v942_v30 }
 0x5ca   : > { %v3504_v5 = vxor.u32 2147483648, %v3499_v63  ;;  %v8470_v21 = vsel %vm8468_vm4, %v3507_v33, %v3499_v63  ;;  %v3508_v39 = vsel %vm3506_vm9, %v3507_v33, %v3499_v63  ;;  %v844_v42 = vsel %vm842_vm7, %v843_v25, %v17256_v6 }
 0x5cb   : > { %v845_v10 = vclz %v844_v42  ;;  %v955_v29 = vsel %vm954_vm1, 1, %v17760_v18  ;;  %vm958_vm12 = vc.u32 %v956_v22, %v952_v26  ;;  %vm3500_vm3 = vweird.f32 %v18130_v54 }
 0x5cc   : > { %v8467_v58 = vsel %vm8465_vm10, %v3491_v4, %v3504_v5  ;;  %v3505_v61 = vsel %vm3503_vm11, %v3491_v4, %v3504_v5  ;;  %v957_v19 = vadd.s32 %v955_v29, %v949_v9  ;;  %v959_v50 = vsel %vm958_vm12, 1, %v17760_v18 }
 0x5cd   : > { %v8471_v16 = vsel %vm8464_vm6, %v8467_v58, %v8470_v21  ;;  %v3509_v7 = vsel %vm3502_vm15, %v3505_v61, %v3508_v39  ;;  %v10882_v56 = vadd.s32 4294967294, %v845_v10  ;;  %v970_v45 = vmul.u32 %v966_v2, %v17239_v60 }
 0x5ce   : > { %v8472_v41 = vsel %vm3500_vm3, nan, %v8471_v16  ;;  %v3510_v27 = vsel %vm3500_vm3, nan, %v3509_v7  ;;  %v961_v36 = vadd.s32 %v959_v50, %v957_v19  ;;  %v972_v28 = vshll.u32 %v969_v51, 16 }
 0x5cf   : > { %v10651_v34 = vpack.c.bf16 %v8472_v41, %v8317_v0  ;;  %v5675_v48 = vpack.c.bf16 %v3510_v27, %v3356_v15  ;;  %vm10883_vm8 = vcmp.lt.s32.totalorder %v10882_v56, 0  ;;  %v10668_v1 = vpack.c.bf16 %v10666_v46, %v10666_v46 }
 0x5d0   : > { %v10672_v54 = vpack.c.bf16 %v10670_v20, %v10670_v20  ;;  %v848_v47 = vsel %vm10883_vm8, 0, %v10882_v56  ;;  %v968_v32 = vmul.u32 %v966_v2, %v942_v30  ;;  %v833_v17 = vadd.s32 %v17166_v24, %v17161_v8 }
 0x5d1   : > { %10693 = vmatpush.bf16.msra.mxu1 %v10651_v34  ;;  %10719 = vmatpush.bf16.msra.mxu3 %v5675_v48  ;;  %v849_v14 = vsub.s32 32, %v848_v47  ;;  %v853_v52 = vsub.s32 4294967266, %v848_v47  ;;  %v951_v4 = vshrl.u32 %v17249_v49, 16  ;;  %v971_v53 = vmul.u32 %v967_v59, %v17239_v60 }
 0x5d2   : > { %v974_v37 = vshll.u32 %v970_v45, 16  ;;  %vm976_vm13 = vc.u32 %v968_v32, %v972_v28  ;;  %v978_v0 = vadd.s32 %v972_v28, %v968_v32  ;;  %v930_v8 = vsel %vm928_vm2, %v17200_v38, 2102212464 }
 0x5d3   : > { %v854_v15 = vadd.s32 127, %v853_v52  ;;  %v962_v12 = vadd.s32 %v961_v36, %v951_v4  ;;  %v977_v63 = vsel %vm976_vm13, 1, %v17760_v18  ;;  %v851_v30 = vshrl.u32 %v833_v17, %v849_v14 }
 0x5d4   : > { %10720 = vmatmul.bf16.vlgmr.msra.gmra.mxu3 %v10668_v1  ;;  %10694 = vmatmul.bf16.vlgmr.msra.gmra.mxu1 %v10672_v54  ;;  %v979_v24 = vadd.s32 %v977_v63, %v971_v53  ;;  %vm980_vm9 = vc.u32 %v978_v0, %v974_v37  ;;  %v909_v60 = vshrl.u32 %v17757_v31, %v17011_v57  ;;  %v953_v49 = vshrl.u32 %v17252_v55, 16 }
 0x5d5   : > { %v855_v2 = vshll.u32 %v854_v15, 23  ;;  %v981_v59 = vsel %vm980_vm9, 1, %v17760_v18  ;;  %v850_v33 = vshll.u32 %v17256_v6, %v848_v47  ;;  %v973_v25 = vshrl.u32 %v969_v51, 16 }
 0x5d6   : > { %v983_v9 = vadd.s32 %v981_v59, %v979_v24  ;;  %v929_v22 = vsel %vm925_vm5, %v909_v60, %v17196_v13  ;;  %v931_v38 = vsel %vm927_vm14, %v17198_v11, %v930_v8  ;;  %v963_v5 = vadd.s32 %v962_v12, %v953_v49 }
 0x5d7   : > { %v856_v26 = vor.u32 4788187, %v855_v2  ;;  %v852_v21 = vor.u32 %v851_v30, %v850_v33  ;;  %v975_v31 = vshrl.u32 %v970_v45, 16  ;;  %v982_v55 = vadd.s32 %v978_v0, %v974_v37 }
 0x5d8   : > { %v984_v57 = vadd.s32 %v983_v9, %v973_v25  ;;  %v932_v18 = vsel %vm926_vm0, %v929_v22, %v931_v38  ;;  %vm741_vm5 = vcmp.lt.s32.totalorder %v18135_v3, 0  ;;  %vm17321_vm14 = vcmp.le.f32.partialorder %v739_v35, 0.7853982 }
 0x5d9   : > { %v857_v39 = vand.u32 2147483647, %v856_v26  ;;  %vm988_vm2 = vc.u32 %v963_v5, %v982_v55  ;;  %v859_v42 = vcvt.s32.f32 %v852_v21  ;;  %v986_v29 = vmul.u32 %v17217_v62, %v932_v18 }
 0x5da   : > { %v985_v6 = vadd.s32 %v984_v57, %v975_v31  ;;  %v987_v34 = vadd.s32 %v982_v55, %v963_v5  ;;  %v863_v15 = vsub.s32 4, %v17233_v43  ;;  %vm17331_vm11 = vcmp.le.f32.partialorder %v893_v40, 0.7853982 }
 0x5db   : > { %v860_v13 = vmul.f32 %v859_v42, %v857_v39  ;;  %vm895_vm6 = vcmp.lt.s32.totalorder %v18150_v44, 0 }
 0x5dc   : > { %v989_v10 = vadd.s32 1, %v985_v6  ;;  %v864_v2 = vsel %vm741_vm5, %v863_v15, %v17233_v43 }
 0x5dd   : > { %v861_v11 = vxor.u32 2147483648, %v860_v13  ;;  %v866_v40 = vsel %vm17321_vm14, 0, %v864_v2 }
 0x5de   : > { %v990_v51 = vsel %vm988_vm2, %v989_v10, %v985_v6  ;;  %v5827_v55 = vadd.s32 3, %v866_v40  ;;  %v883_v42 = vand.u32 3, %v866_v40 }
 0x5df   : > { %v991_v58 = vadd.s32 %v990_v51, %v986_v29  ;;  %v862_v16 = vsel %vm741_vm5, %v861_v11, %v860_v13 }
 0x5e0   : > { %v865_v62 = vsel %vm17321_vm14, %v18135_v3, %v862_v16  ;;  %vm884_vm15 = vcmp.lt.s32.totalorder %v883_v42, 2  ;;  %vm885_vm12 = vcmp.eq.s32.totalorder %v883_v42, 0  ;;  %vm888_vm3 = vcmp.eq.s32.totalorder %v883_v42, 2 }
 0x5e1   : > { %v992_v61 = vadd.s32 536870912, %v991_v58  ;;  %v867_v56 = vmul.f32 %v865_v62, %v865_v62 }
 0x5e3   : > { %v993_v19 = vshrl.u32 %v992_v61, 30  ;;  %v875_v36 = vmul.f32 -0.00019511016, %v867_v56  ;;  %v868_v32 = vmul.f32 -0.001358992, %v867_v56 }
 0x5e5   : > { %v994_v50 = vshll.u32 %v993_v19, 30  ;;  %v876_v35 = vadd.f32 0.008332121, %v875_v36  ;;  %v869_v53 = vadd.f32 0.041655596, %v868_v32  ;;  %v1017_v59 = vsub.s32 4, %v993_v19 }
 0x5e7   : > { %v995_v23 = vsub.s32 %v991_v58, %v994_v50  ;;  %v877_v52 = vmul.f32 %v876_v35, %v867_v56  ;;  %v870_v30 = vmul.f32 %v869_v53, %v867_v56  ;;  %v1018_v22 = vsel %vm895_vm6, %v1017_v59, %v993_v19 }
 0x5e8   : > { %v1020_v43 = vsel %vm17331_vm11, 0, %v1018_v22  ;;  %v5828_v58 = vand.u32 3, %v5827_v55 }
 0x5e9   : > { %vm996_vm0 = vcmp.lt.s32.totalorder %v995_v23, 0  ;;  %v997_v46 = vsub.s32 0, %v995_v23  ;;  %v878_v12 = vadd.f32 -0.16666654, %v877_v52  ;;  %v871_v25 = vadd.f32 -0.4999988, %v870_v30 }
 0x5ea   : > { %v5982_v51 = vadd.s32 3, %v1020_v43  ;;  %v1037_v50 = vand.u32 3, %v1020_v43  ;;  %vm5829_vm4 = vcmp.lt.s32.totalorder %v5828_v58, 2  ;;  %vm5830_vm7 = vcmp.eq.s32.totalorder %v5828_v58, 0 }
 0x5eb   : > { %v998_v20 = vsel %vm996_vm0, %v997_v46, %v995_v23  ;;  %v879_v60 = vmul.f32 %v878_v12, %v867_v56  ;;  %v872_v21 = vmul.f32 %v871_v25, %v867_v56  ;;  %vm5833_vm1 = vcmp.eq.s32.totalorder %v5828_v58, 2 }
 0x5ec   : > { %v999_v41 = vclz %v998_v20  ;;  %v5983_v46 = vand.u32 3, %v5982_v51  ;;  %vm1038_vm8 = vcmp.lt.s32.totalorder %v1037_v50, 2  ;;  %vm1039_vm13 = vcmp.eq.s32.totalorder %v1037_v50, 0 }
 0x5ed   : > { %v880_v26 = vadd.f32 1.0, %v879_v60  ;;  %v873_v10 = vadd.f32 1.0, %v872_v21  ;;  %vm1042_vm9 = vcmp.eq.s32.totalorder %v1037_v50, 2  ;;  %vm882_vm0 = vweird.f32 %v18135_v3 }
 0x5ee   : > { %v10885_v27 = vadd.s32 4294967294, %v999_v41  ;;  %vm5984_vm2 = vcmp.lt.s32.totalorder %v5983_v46, 2  ;;  %vm5985_vm5 = vcmp.eq.s32.totalorder %v5983_v46, 0  ;;  %vm5988_vm14 = vcmp.eq.s32.totalorder %v5983_v46, 2 }
 0x5ef   : > { %v881_v39 = vmul.f32 %v880_v26, %v865_v62  ;;  %v889_v16 = vxor.u32 2147483648, %v873_v10 }
 0x5f0   : > { %vm10886_vm10 = vcmp.lt.s32.totalorder %v10885_v27, 0 }
 0x5f1   : > { %v1002_v45 = vsel %vm10886_vm10, 0, %v10885_v27  ;;  %v886_v61 = vxor.u32 2147483648, %v881_v39  ;;  %v5835_v36 = vsel %vm5833_vm1, %v889_v16, %v881_v39  ;;  %vm1036_vm10 = vweird.f32 %v18150_v44 }
 0x5f2   : > { %v1003_v48 = vsub.s32 32, %v1002_v45  ;;  %v1007_v28 = vsub.s32 4294967266, %v1002_v45  ;;  %v1004_v1 = vshll.u32 %v995_v23, %v1002_v45  ;;  %v890_v45 = vsel %vm888_vm3, %v889_v16, %v881_v39 }
 0x5f3   : > { %v5832_v56 = vsel %vm5830_vm7, %v873_v10, %v886_v61  ;;  %v887_v41 = vsel %vm885_vm12, %v873_v10, %v886_v61 }
 0x5f4   : > { %v1005_v54 = vshrl.u32 %v987_v34, %v1003_v48  ;;  %v1008_v47 = vadd.s32 127, %v1007_v28  ;;  %v5836_v34 = vsel %vm5829_vm4, %v5832_v56, %v5835_v36  ;;  %v891_v48 = vsel %vm884_vm15, %v887_v41, %v890_v45 }
 0x5f5   : > { %v5837_v52 = vsel %vm882_vm0, nan, %v5836_v34  ;;  %v892_v53 = vsel %vm882_vm0, nan, %v891_v48 }
 0x5f6   : > { %v1006_v17 = vor.u32 %v1005_v54, %v1004_v1  ;;  %v1009_v14 = vshll.u32 %v1008_v47, 23 }
 0x5f8   : > { %v1010_v4 = vor.u32 4788187, %v1009_v14  ;;  %v1013_v0 = vcvt.s32.f32 %v1006_v17  ;;  %v10669_v17 = vld [vmem:[%s17277_s30] sm:$0xff] }
 0x5f9   : > { %v10665_v14 = vld [vmem:[%s17272_s24] sm:$0xff]  ;;  %v10671_v12 = vpack.c.bf16 %v10669_v17, %v10669_v17 }
 0x5fa   : > { %v1011_v37 = vand.u32 2147483647, %v1010_v4 }
 0x5fc   : > { %v1014_v63 = vmul.f32 %v1013_v0, %v1011_v37 }
 0x5fe   : > { %v1015_v8 = vxor.u32 2147483648, %v1014_v63 }
 0x600   : > { %v1016_v49 = vsel %vm895_vm6, %v1015_v8, %v1014_v63  ;;  %v10667_v63 = vpack.c.bf16 %v10665_v14, %v10665_v14 }
 0x601   : > { %v1019_v33 = vsel %vm17331_vm11, %v18150_v44, %v1016_v49 }
 0x602   : > { %v1021_v9 = vmul.f32 %v1019_v33, %v1019_v33 }
 0x604   : > { %v1022_v38 = vmul.f32 -0.001358992, %v1021_v9  ;;  %v1029_v5 = vmul.f32 -0.00019511016, %v1021_v9 }
 0x606   : > { %v1023_v31 = vadd.f32 0.041655596, %v1022_v38  ;;  %v1030_v57 = vadd.f32 0.008332121, %v1029_v5 }
 0x608   : > { %v1024_v18 = vmul.f32 %v1023_v31, %v1021_v9  ;;  %v1031_v6 = vmul.f32 %v1030_v57, %v1021_v9 }
 0x60a   : > { %v1025_v29 = vadd.f32 -0.4999988, %v1024_v18  ;;  %v1032_v13 = vadd.f32 -0.16666654, %v1031_v6 }
 0x60c   : > { %v1026_v11 = vmul.f32 %v1025_v29, %v1021_v9  ;;  %v1033_v19 = vmul.f32 %v1032_v13, %v1021_v9 }
 0x60e   : > { %v1027_v23 = vadd.f32 1.0, %v1026_v11  ;;  %v1034_v7 = vadd.f32 1.0, %v1033_v19 }
 0x610   : > { %v1035_v62 = vmul.f32 %v1034_v7, %v1019_v33  ;;  %v1043_v20 = vxor.u32 2147483648, %v1027_v23 }
 0x612   : > { %v1040_v27 = vxor.u32 2147483648, %v1035_v62  ;;  %v5990_v35 = vsel %vm5988_vm14, %v1043_v20, %v1035_v62  ;;  %v1044_v54 = vsel %vm1042_vm9, %v1043_v20, %v1035_v62 }
 0x614   : > { %v5987_v28 = vsel %vm5985_vm5, %v1027_v23, %v1040_v27  ;;  %v1041_v1 = vsel %vm1039_vm13, %v1027_v23, %v1040_v27 }
 0x615   : > { %v5991_v47 = vsel %vm5984_vm2, %v5987_v28, %v5990_v35  ;;  %v1045_v32 = vsel %vm1038_vm8, %v1041_v1, %v1044_v54 }
 0x616   : > { %v5992_v4 = vsel %vm1036_vm10, nan, %v5991_v47  ;;  %v1046_v37 = vsel %vm1036_vm10, nan, %v1045_v32 }
 0x617   : > { %v10643_v0 = vpack.c.bf16 %v5992_v4, %v5837_v52  ;;  %v5667_v15 = vpack.c.bf16 %v1046_v37, %v892_v53 }
 0x619   : > { %10680 = vmatpush.bf16.msra.mxu0 %v10643_v0  ;;  %10706 = vmatpush.bf16.msra.mxu2 %v5667_v15 }
 0x61c   : > { %10681 = vmatmul.bf16.vlgmr.msra.gmra.mxu0 %v10671_v12  ;;  %10707 = vmatmul.bf16.vlgmr.msra.gmra.mxu2 %v10667_v63 }
 0x651   : > { %v10695_v3 = vpop.f32.mrf.mxu1 }
 0x657   : > { %v10721_v44 = vpop.f32.mrf.mxu3 }
 0x659   : > { %v10697_v30 = vpop.f32.mrf.mxu1 }
 0x65f   : > { %v10723_v8 = vpop.f32.mrf.mxu3 }
 0x699   : > { %v10682_v24 = vpop.f32.mrf.mxu0 }
 0x69a   : > { %v10696_v2 = vadd.f32 %v10695_v3, %v10682_v24 }
 0x69f   : > { %v10708_v60 = vpop.f32.mrf.mxu2 }
 0x6a0   : > { %v10709_v49 = vadd.f32 %v10708_v60, %v10696_v2 }
 0x6a1   : > { %v10684_v59 = vpop.f32.mrf.mxu0 }
 0x6a2   : > { %v10722_v33 = vadd.f32 %v10721_v44, %v10709_v49 }
 0x6a4   : > { %10726 = vst [vmem:[%s285_s12] sm:$0xff] %v10722_v33 }
 0x6a7   : > { %v10710_v25 = vpop.f32.mrf.mxu2 }
 0x6a8   : > { %11211 = shalt.err (!%p11208_p5)
}
 0x6a9   : > { %11079 = dma.vmem_to_hbm [thread:$0]  (%p11337_p4), %s10742_s14, 128, %s10744_s21, %s10728_s13  }
 0x6aa PF: > { %p11085_p6 = scmp.ge.s32.totalorder %s11262_s20, 2  ;;  %s10755_s5 = sand.u32 1, %s11242_s15  }
 0x6ab   : > { %s10756_s6 = scalar_lea.sflag [#allocation3], %s10755_s5 }
 0x6ac   : > { %p11082_p7 = pnand %p11085_p6, %p11344_p8 }
 0x6ae   : > { %p11083_p9 = pneg %p11082_p7 }
 0x6b0   : > { %11237 = dma.done.wait (%p11083_p9), %s10756_s6, 128  }
 0x6b1   : > { %11239 = vsyncadd (%p11083_p9), %s10756_s6, 4294967168  ;;  %s17_s20 = sadd.s32 1, %s11262_s20   ;;  %s18155_s15 = smov %s11246_s16 }
 0x6b2   : > { %p14_p10 = scmp.ge.s32.totalorder %s17_s20, 4   ;;  %s18156_s16 = smov %s11250_s17 }
 0x6b3   : > { %s18157_s17 = smov %s11350_s28  ;;  %s18158_s18 = smov %s11258_s19 }
 0x6b4   : > { %s18159_s19 = smov %s18161_s23  ;;  %16 = sbr.rel (!%p14_p10) target bundleno = 4 (0x4), region = 84 }
 0x6b9   :  { %10762 = vsyncpa [#allocation3], 1 }
 0x6ba   :  { %10764 = vsyncpa [#allocation3 + $0x1], 1 }

</bundles_post_ra>
